<compile_context>
chip_gen: v7x
topology: tpu7x:2x2x1
jax: 0.10.0
libtpu: 0.0.40
codegen_flags: <defaults>
</compile_context>

<pallas_src>
import jax
import jax.numpy as jnp
from jax.experimental import pallas as pl
from jax.experimental.pallas import tpu as pltpu


def _full_spec(shape):
    n = len(shape)
    return pl.BlockSpec(tuple(shape), lambda b, _n=n: (0,) * _n)


# ---------------- Pallas kernels ----------------
def _stage1_kernel(p_ref, w_ref, v_ref, o_ref):
    """conv1 matmul (per pool quadrant) -> max -> +bias -> BN1 -> sigmoid."""
    w = w_ref[...]                                                 # (25, 30)
    y0 = jnp.dot(p_ref[0, 0], w, preferred_element_type=jnp.float32)
    y1 = jnp.dot(p_ref[0, 1], w, preferred_element_type=jnp.float32)
    y2 = jnp.dot(p_ref[0, 2], w, preferred_element_type=jnp.float32)
    y3 = jnp.dot(p_ref[0, 3], w, preferred_element_type=jnp.float32)
    m = jnp.maximum(jnp.maximum(y0, y1), jnp.maximum(y2, y3))      # (484, 30)
    v = v_ref[...]                                                 # (3, 30): b1, s1, t1
    o_ref[0] = jax.nn.sigmoid((m + v[0:1]) * v[1:2] + v[2:3])


def _tail_kernel(p_ref, w2_ref, v30_ref, wq_ref, wk_ref, wv_ref, wo_ref,
                 v5_ref, w4_ref, w5_ref, wfc_ref, scal_ref, o_ref):
    """conv2+pool+BN2+sigmoid -> self-attention -> BN3+sigmoid -> 2x(1x1 conv,
    folded BN, sigmoid) -> FC, all for one batch element."""
    w2 = w2_ref[...]                                               # (750, 30)
    y0 = jnp.dot(p_ref[0, 0], w2, preferred_element_type=jnp.float32)
    y1 = jnp.dot(p_ref[0, 1], w2, preferred_element_type=jnp.float32)
    y2 = jnp.dot(p_ref[0, 2], w2, preferred_element_type=jnp.float32)
    y3 = jnp.dot(p_ref[0, 3], w2, preferred_element_type=jnp.float32)
    m = jnp.maximum(jnp.maximum(y0, y1), jnp.maximum(y2, y3))      # (81, 30)

    v30 = v30_ref[...]                                             # (8, 30)
    b2, s2, t2 = v30[0:1], v30[1:2], v30[2:3]
    bo, s3, t3 = v30[3:4], v30[4:5], v30[5:6]
    b4, b5 = v30[6:7], v30[7:8]
    v5 = v5_ref[...]                                               # (3, 5)
    bq, bk, bv = v5[0:1], v5[1:2], v5[2:3]

    a2 = jax.nn.sigmoid((m + b2) * s2 + t2)                        # (81, 30)

    # --- self-attention over the 81 spatial positions (q=k=v=5, v_mapping) ---
    q = jnp.dot(a2, wq_ref[...], preferred_element_type=jnp.float32) + bq
    k = jnp.dot(a2, wk_ref[...], preferred_element_type=jnp.float32) + bk
    v = jnp.dot(a2, wv_ref[...], preferred_element_type=jnp.float32) + bv
    energy = jax.lax.dot_general(q, k, (((1,), (1,)), ((), ())),
                                 preferred_element_type=jnp.float32)  # (81, 81)
    energy = energy - jnp.max(energy, axis=-1, keepdims=True)
    pexp = jnp.exp(energy)
    attn = pexp * pl.reciprocal(jnp.sum(pexp, axis=-1, keepdims=True), approx=True)
    outv = jnp.dot(attn, v, preferred_element_type=jnp.float32)       # (81, 5)
    att = jnp.dot(outv, wo_ref[...], preferred_element_type=jnp.float32) + bo
    y = scal_ref[0] * att + a2                                      # gamma*out + x

    # --- layers_sa_reg: BN3 + sigmoid ---
    y = jax.nn.sigmoid(y * s3 + t3)
    # --- b_cpbs: 1x1 convs with BN folded into weights ---
    y = jax.nn.sigmoid(jnp.dot(y, w4_ref[...],
                               preferred_element_type=jnp.float32) + b4)
    y = jax.nn.sigmoid(jnp.dot(y, w5_ref[...],
                               preferred_element_type=jnp.float32) + b5)

    # --- FC (2430 -> 1) as VPU multiply + reduction; wfc pre-permuted (81,30) ---
    prod = y * wfc_ref[...]
    tot = jnp.sum(jnp.sum(prod, axis=1, keepdims=True), axis=0, keepdims=True)
    o_ref[0] = tot + scal_ref[1]                                   # (1, 1)


# ---------------- pallas_call wrappers ----------------
def run_stage1(p1, w1, v1):
    B, _, M, K = p1.shape                      # (B, 4, 484, 25)
    C = w1.shape[1]
    return pl.pallas_call(
        _stage1_kernel,
        out_shape=jax.ShapeDtypeStruct((B, M, C), jnp.float32),
        grid=(B,),
        in_specs=[pl.BlockSpec((1, 4, M, K), lambda b: (b, 0, 0, 0)),
                  _full_spec(w1.shape),
                  _full_spec(v1.shape)],
        out_specs=pl.BlockSpec((1, M, C), lambda b: (b, 0, 0)),
        compiler_params=pltpu.CompilerParams(
            dimension_semantics=("parallel",)),
    )(p1, w1, v1)


def run_tail(p2, w2, vec30, wq, wk, wv, wo, vec5, w4, w5, wfc, scal):
    B, _, M, K = p2.shape                      # (B, 4, 81, 750)
    out = pl.pallas_call(
        _tail_kernel,
        out_shape=jax.ShapeDtypeStruct((B, 1, 1), jnp.float32),
        grid=(B,),
        in_specs=[pl.BlockSpec((1, 4, M, K), lambda b: (b, 0, 0, 0)),
                  _full_spec(w2.shape), _full_spec(vec30.shape),
                  _full_spec(wq.shape), _full_spec(wk.shape),
                  _full_spec(wv.shape), _full_spec(wo.shape),
                  _full_spec(vec5.shape), _full_spec(w4.shape),
                  _full_spec(w5.shape), _full_spec(wfc.shape),
                  pl.BlockSpec(memory_space=pltpu.MemorySpace.SMEM)],
        out_specs=pl.BlockSpec((1, 1, 1), lambda b: (b, 0, 0)),
        compiler_params=pltpu.CompilerParams(
            dimension_semantics=("parallel",)),
    )(p2, w2, vec30, wq, wk, wv, wo, vec5, w4, w5, wfc, scal)
    return out.reshape(B, 1)


# ---------------- JAX glue ----------------
def quadrant_patches(x, kh, kw):
    """im2col (valid conv) + 2x2-maxpool quadrant split.
    (B,H,W,C) -> (B, 4, (Ho//2)*(Wo//2), kh*kw*C)."""
    B, H, W, C = x.shape
    Ho, Wo = H - kh + 1, W - kw + 1
    cols = []
    for i in range(kh):
        for j in range(kw):
            cols.append(x[:, i:i + Ho, j:j + Wo, :])
    cols = jnp.concatenate(cols, axis=-1)                    # (B, Ho, Wo, kh*kw*C)
    Hp, Wp = Ho // 2, Wo // 2
    quads = [cols[:, di:di + 2 * Hp:2, dj:dj + 2 * Wp:2, :]
             for di in (0, 1) for dj in (0, 1)]
    q = jnp.stack(quads, axis=1)                             # (B, 4, Hp, Wp, K)
    return q.reshape(B, 4, Hp * Wp, kh * kw * C)


def init_params(key):
    ks = jax.random.split(key, 18)

    def conv_w(k, cout, cin, kh, kw):
        fan_in = cin * kh * kw
        return jax.random.uniform(k, (cout, cin, kh, kw), jnp.float32,
                                  -1.0, 1.0) / jnp.sqrt(float(fan_in))

    def to_mat(w):
        # torch conv weight (Cout,Cin,kh,kw) -> (kh*kw*Cin, Cout), im2col order
        cout, cin, kh, kw = w.shape
        return jnp.transpose(w, (2, 3, 1, 0)).reshape(kh * kw * cin, cout)

    def bias(k, n, fan_in):
        return jax.random.uniform(k, (n,), jnp.float32, -1.0, 1.0) / jnp.sqrt(float(fan_in))

    def bn_fold(c, eps=1e-5):
        # PyTorch BatchNorm2d defaults: weight=1, bias=0, running_mean=0, running_var=1
        gamma = jnp.ones((c,), jnp.float32)
        beta = jnp.zeros((c,), jnp.float32)
        mean = jnp.zeros((c,), jnp.float32)
        var = jnp.ones((c,), jnp.float32)
        scale = gamma / jnp.sqrt(var + eps)
        shift = beta - mean * scale
        return scale, shift

    P = {}
    w1 = to_mat(conv_w(ks[0], 30, 1, 5, 5));   b1 = bias(ks[1], 30, 25)
    s1, t1 = bn_fold(30)
    P['w1'] = w1
    P['v1'] = jnp.stack([b1, s1, t1], axis=0)                 # (3, 30)

    w2 = to_mat(conv_w(ks[2], 30, 30, 5, 5));  b2 = bias(ks[3], 30, 750)
    s2, t2 = bn_fold(30)

    wq = to_mat(conv_w(ks[4], 5, 30, 1, 1));   bq = bias(ks[5], 5, 30)
    wk = to_mat(conv_w(ks[6], 5, 30, 1, 1));   bk = bias(ks[7], 5, 30)
    wv = to_mat(conv_w(ks[8], 5, 30, 1, 1));   bv = bias(ks[9], 5, 30)
    wo = to_mat(conv_w(ks[10], 30, 5, 1, 1));  bo = bias(ks[11], 30, 5)
    gamma_att = jnp.zeros((), jnp.float32)                    # nn.Parameter(torch.zeros(1))

    s3, t3 = bn_fold(30)

    w4 = to_mat(conv_w(ks[12], 30, 30, 1, 1)); b4 = bias(ks[13], 30, 30)
    s4, t4 = bn_fold(30)
    w4f = w4 * s4[None, :]                                    # exact BN4 fold
    b4f = b4 * s4 + t4

    w5 = to_mat(conv_w(ks[14], 30, 30, 1, 1)); b5 = bias(ks[15], 30, 30)
    s5, t5 = bn_fold(30)
    w5f = w5 * s5[None, :]                                    # exact BN5 fold
    b5f = b5 * s5 + t5

    wfc = jax.random.uniform(ks[16], (9 * 9 * 30, 1), jnp.float32,
                             -1.0, 1.0) / jnp.sqrt(2430.0)
    bfc = jax.random.uniform(ks[17], (1,), jnp.float32,
                             -1.0, 1.0) / jnp.sqrt(2430.0)
    # permute FC rows once at init: NCHW flat index c*81+p  ->  [p, c]
    wfc_mat = wfc.reshape(30, 81).T                           # (81, 30)

    P['w2'] = w2
    P['vec30'] = jnp.stack([b2, s2, t2, bo, s3, t3, b4f, b5f], axis=0)  # (8, 30)
    P['wq'], P['wk'], P['wv'], P['wo'] = wq, wk, wv, wo
    P['vec5'] = jnp.stack([bq, bk, bv], axis=0)               # (3, 5)
    P['w4'], P['w5'] = w4f, w5f
    P['wfc'] = wfc_mat
    P['scal'] = jnp.stack([gamma_att, bfc[0]])                # (2,): gamma, fc bias
    return P


def forward(x_nchw, P):
    B = x_nchw.shape[0]
    x = jnp.transpose(x_nchw, (0, 2, 3, 1))                   # NHWC (B, 48, 48, 1)

    # stage 1: conv5x5 -> maxpool2 -> BN1 -> sigmoid  (fused, one kernel)
    p1 = quadrant_patches(x, 5, 5)                            # (B, 4, 484, 25)
    a1 = run_stage1(p1, P['w1'], P['v1'])                     # (B, 484, 30)
    a1 = a1.reshape(B, 22, 22, 30)

    # stage 2 + attention + BN3 + 1x1 convs + FC  (fused, one kernel)
    p2 = quadrant_patches(a1, 5, 5)                           # (B, 4, 81, 750)
    out = run_tail(p2, P['w2'], P['vec30'], P['wq'], P['wk'], P['wv'],
                   P['wo'], P['vec5'], P['w4'], P['w5'], P['wfc'], P['scal'])
    return out                                                # (B, 1)


if __name__ == "__main__":
    key = jax.random.PRNGKey(0)
    # NCHW input like the PyTorch module (48x48 so the FC sees 9*9*30 features)
    x = jax.random.normal(key, (2, 1, 48, 48), dtype=jnp.float32)
    P = init_params(jax.random.PRNGKey(42))
    out = jax.jit(forward)(x, P)
    jax.block_until_ready(out)
    assert out.shape == (2, 1) and out.dtype == jnp.float32
    print("KERNEL_OK")
</pallas_src>

<mosaic_0001>
module attributes {stable_mosaic.version = 11 : i64} {
  func.func @_stage1_kernel(%arg0: i32, %arg1: memref<1x4x484x25xf32, #tpu.memory_space<vmem>>, %arg2: memref<25x30xf32, #tpu.memory_space<vmem>>, %arg3: memref<3x30xf32, #tpu.memory_space<vmem>>, %arg4: memref<1x484x30xf32, #tpu.memory_space<vmem>>) attributes {dimension_semantics = [#tpu.dimension_semantics<parallel>], iteration_bounds = array<i64: 2>, scalar_prefetch = 0 : i64, scratch_operands = 0 : i64, tpu.core_type = #tpu.core_type<tc>, window_params = [{transform_indices = @transform_0, window_bounds = array<i64: 1, 4, 484, 25>}, {pipeline_mode = #tpu.pipeline_mode<synchronous>, transform_indices = @transform_1, window_bounds = array<i64: 25, 30>}, {pipeline_mode = #tpu.pipeline_mode<synchronous>, transform_indices = @transform_2, window_bounds = array<i64: 3, 30>}, {transform_indices = @transform_3, window_bounds = array<i64: 1, 484, 30>}]} {
    %c0 = arith.constant 0 : index
    %c0_0 = arith.constant 0 : index
    %0 = vector.load %arg2[%c0, %c0_0] : memref<25x30xf32, #tpu.memory_space<vmem>>, vector<25x30xf32>
    %c0_1 = arith.constant 0 : index
    %c0_2 = arith.constant 0 : index
    %c0_3 = arith.constant 0 : index
    %c0_4 = arith.constant 0 : index
    %1 = vector.load %arg1[%c0_1, %c0_2, %c0_3, %c0_4] : memref<1x4x484x25xf32, #tpu.memory_space<vmem>>, vector<1x1x484x25xf32>
    %2 = vector.shape_cast %1 : vector<1x1x484x25xf32> to vector<484x25xf32>
    %cst = arith.constant dense<0.000000e+00> : vector<484x30xf32>
    %3 = tpu.matmul %2, %0, %cst {dimension_numbers = #tpu.dot_dimension_numbers<[1], [0], [0], [1], [0, 0, 1, 1], [], []>} : vector<484x25xf32>, vector<25x30xf32>, vector<484x30xf32> -> vector<484x30xf32>
    %c0_5 = arith.constant 0 : index
    %c1 = arith.constant 1 : index
    %c0_6 = arith.constant 0 : index
    %c0_7 = arith.constant 0 : index
    %4 = vector.load %arg1[%c0_5, %c1, %c0_6, %c0_7] : memref<1x4x484x25xf32, #tpu.memory_space<vmem>>, vector<1x1x484x25xf32>
    %5 = vector.shape_cast %4 : vector<1x1x484x25xf32> to vector<484x25xf32>
    %cst_8 = arith.constant dense<0.000000e+00> : vector<484x30xf32>
    %6 = tpu.matmul %5, %0, %cst_8 {dimension_numbers = #tpu.dot_dimension_numbers<[1], [0], [0], [1], [0, 0, 1, 1], [], []>} : vector<484x25xf32>, vector<25x30xf32>, vector<484x30xf32> -> vector<484x30xf32>
    %c0_9 = arith.constant 0 : index
    %c2 = arith.constant 2 : index
    %c0_10 = arith.constant 0 : index
    %c0_11 = arith.constant 0 : index
    %7 = vector.load %arg1[%c0_9, %c2, %c0_10, %c0_11] : memref<1x4x484x25xf32, #tpu.memory_space<vmem>>, vector<1x1x484x25xf32>
    %8 = vector.shape_cast %7 : vector<1x1x484x25xf32> to vector<484x25xf32>
    %cst_12 = arith.constant dense<0.000000e+00> : vector<484x30xf32>
    %9 = tpu.matmul %8, %0, %cst_12 {dimension_numbers = #tpu.dot_dimension_numbers<[1], [0], [0], [1], [0, 0, 1, 1], [], []>} : vector<484x25xf32>, vector<25x30xf32>, vector<484x30xf32> -> vector<484x30xf32>
    %c0_13 = arith.constant 0 : index
    %c3 = arith.constant 3 : index
    %c0_14 = arith.constant 0 : index
    %c0_15 = arith.constant 0 : index
    %10 = vector.load %arg1[%c0_13, %c3, %c0_14, %c0_15] : memref<1x4x484x25xf32, #tpu.memory_space<vmem>>, vector<1x1x484x25xf32>
    %11 = vector.shape_cast %10 : vector<1x1x484x25xf32> to vector<484x25xf32>
    %cst_16 = arith.constant dense<0.000000e+00> : vector<484x30xf32>
    %12 = tpu.matmul %11, %0, %cst_16 {dimension_numbers = #tpu.dot_dimension_numbers<[1], [0], [0], [1], [0, 0, 1, 1], [], []>} : vector<484x25xf32>, vector<25x30xf32>, vector<484x30xf32> -> vector<484x30xf32>
    %13 = arith.maximumf %3, %6 : vector<484x30xf32>
    %14 = arith.maximumf %9, %12 : vector<484x30xf32>
    %15 = arith.maximumf %13, %14 : vector<484x30xf32>
    %c0_17 = arith.constant 0 : index
    %c0_18 = arith.constant 0 : index
    %16 = vector.load %arg3[%c0_17, %c0_18] : memref<3x30xf32, #tpu.memory_space<vmem>>, vector<3x30xf32>
    %17 = vector.extract_strided_slice %16 {offsets = [0, 0], sizes = [1, 30], strides = [1, 1]} : vector<3x30xf32> to vector<1x30xf32>
    %18 = vector.broadcast %17 : vector<1x30xf32> to vector<484x30xf32>
    %19 = arith.addf %15, %18 : vector<484x30xf32>
    %20 = vector.extract_strided_slice %16 {offsets = [1, 0], sizes = [1, 30], strides = [1, 1]} : vector<3x30xf32> to vector<1x30xf32>
    %21 = vector.broadcast %20 : vector<1x30xf32> to vector<484x30xf32>
    %22 = arith.mulf %19, %21 : vector<484x30xf32>
    %23 = vector.extract_strided_slice %16 {offsets = [2, 0], sizes = [1, 30], strides = [1, 1]} : vector<3x30xf32> to vector<1x30xf32>
    %24 = vector.broadcast %23 : vector<1x30xf32> to vector<484x30xf32>
    %25 = arith.addf %22, %24 : vector<484x30xf32>
    %26 = arith.negf %25 : vector<484x30xf32>
    %27 = math.exp %26 : vector<484x30xf32>
    %cst_19 = arith.constant 1.000000e+00 : f32
    %28 = vector.broadcast %cst_19 : f32 to vector<484x30xf32>
    %29 = arith.addf %28, %27 : vector<484x30xf32>
    %30 = arith.divf %28, %29 : vector<484x30xf32>
    %c0_20 = arith.constant 0 : index
    %c0_21 = arith.constant 0 : index
    %c0_22 = arith.constant 0 : index
    %31 = vector.load %arg4[%c0_20, %c0_21, %c0_22] : memref<1x484x30xf32, #tpu.memory_space<vmem>>, vector<1x484x30xf32>
    %32 = vector.shape_cast %31 : vector<1x484x30xf32> to vector<484x30xf32>
    %33 = vector.shape_cast %30 : vector<484x30xf32> to vector<1x484x30xf32>
    tpu.vector_store %arg4[%c0_20, %c0_21, %c0_22], %33 {strides = array<i32>} : memref<1x484x30xf32, #tpu.memory_space<vmem>>, vector<1x484x30xf32>,
    return
  }
  func.func @transform_0(%arg0: i32) -> (i32, i32, i32, i32) {
    %c0_i32 = arith.constant 0 : i32
    %c0_i32_0 = arith.constant 0 : i32
    %c0_i32_1 = arith.constant 0 : i32
    %c0_i32_2 = arith.constant 0 : i32
    return %arg0, %c0_i32, %c0_i32_0, %c0_i32_1 : i32, i32, i32, i32
  }
  func.func @transform_1(%arg0: i32) -> (i32, i32) {
    %c0_i32 = arith.constant 0 : i32
    %c0_i32_0 = arith.constant 0 : i32
    %c0_i32_1 = arith.constant 0 : i32
    return %c0_i32, %c0_i32_0 : i32, i32
  }
  func.func @transform_2(%arg0: i32) -> (i32, i32) {
    %c0_i32 = arith.constant 0 : i32
    %c0_i32_0 = arith.constant 0 : i32
    %c0_i32_1 = arith.constant 0 : i32
    return %c0_i32, %c0_i32_0 : i32, i32
  }
  func.func @transform_3(%arg0: i32) -> (i32, i32, i32) {
    %c0_i32 = arith.constant 0 : i32
    %c0_i32_0 = arith.constant 0 : i32
    %c0_i32_1 = arith.constant 0 : i32
    return %arg0, %c0_i32, %c0_i32_0 : i32, i32, i32
  }
}

module attributes {stable_mosaic.version = 11 : i64} {
  func.func @_tail_kernel(%arg0: i32, %arg1: memref<1x4x81x750xf32, #tpu.memory_space<vmem>>, %arg2: memref<750x30xf32, #tpu.memory_space<vmem>>, %arg3: memref<8x30xf32, #tpu.memory_space<vmem>>, %arg4: memref<30x5xf32, #tpu.memory_space<vmem>>, %arg5: memref<30x5xf32, #tpu.memory_space<vmem>>, %arg6: memref<30x5xf32, #tpu.memory_space<vmem>>, %arg7: memref<5x30xf32, #tpu.memory_space<vmem>>, %arg8: memref<3x5xf32, #tpu.memory_space<vmem>>, %arg9: memref<30x30xf32, #tpu.memory_space<vmem>>, %arg10: memref<30x30xf32, #tpu.memory_space<vmem>>, %arg11: memref<81x30xf32, #tpu.memory_space<vmem>>, %arg12: memref<2xf32, #tpu.memory_space<smem>>, %arg13: memref<1x1x1xf32, #tpu.memory_space<vmem>>) attributes {dimension_semantics = [#tpu.dimension_semantics<parallel>], iteration_bounds = array<i64: 2>, scalar_prefetch = 0 : i64, scratch_operands = 0 : i64, tpu.core_type = #tpu.core_type<tc>, window_params = [{transform_indices = @transform_0, window_bounds = array<i64: 1, 4, 81, 750>}, {pipeline_mode = #tpu.pipeline_mode<synchronous>, transform_indices = @transform_1, window_bounds = array<i64: 750, 30>}, {pipeline_mode = #tpu.pipeline_mode<synchronous>, transform_indices = @transform_2, window_bounds = array<i64: 8, 30>}, {pipeline_mode = #tpu.pipeline_mode<synchronous>, transform_indices = @transform_3, window_bounds = array<i64: 30, 5>}, {pipeline_mode = #tpu.pipeline_mode<synchronous>, transform_indices = @transform_4, window_bounds = array<i64: 30, 5>}, {pipeline_mode = #tpu.pipeline_mode<synchronous>, transform_indices = @transform_5, window_bounds = array<i64: 30, 5>}, {pipeline_mode = #tpu.pipeline_mode<synchronous>, transform_indices = @transform_6, window_bounds = array<i64: 5, 30>}, {pipeline_mode = #tpu.pipeline_mode<synchronous>, transform_indices = @transform_7, window_bounds = array<i64: 3, 5>}, {pipeline_mode = #tpu.pipeline_mode<synchronous>, transform_indices = @transform_8, window_bounds = array<i64: 30, 30>}, {pipeline_mode = #tpu.pipeline_mode<synchronous>, transform_indices = @transform_9, window_bounds = array<i64: 30, 30>}, {pipeline_mode = #tpu.pipeline_mode<synchronous>, transform_indices = @transform_10, window_bounds = array<i64: 81, 30>}, {transform_indices = @transform_11, window_bounds = array<i64: 2>}, {transform_indices = @transform_12, window_bounds = array<i64: 1, 1, 1>}]} {
    %c0 = arith.constant 0 : index
    %c0_0 = arith.constant 0 : index
    %0 = vector.load %arg2[%c0, %c0_0] : memref<750x30xf32, #tpu.memory_space<vmem>>, vector<750x30xf32>
    %c0_1 = arith.constant 0 : index
    %c0_2 = arith.constant 0 : index
    %c0_3 = arith.constant 0 : index
    %c0_4 = arith.constant 0 : index
    %1 = vector.load %arg1[%c0_1, %c0_2, %c0_3, %c0_4] : memref<1x4x81x750xf32, #tpu.memory_space<vmem>>, vector<1x1x81x750xf32>
    %2 = vector.shape_cast %1 : vector<1x1x81x750xf32> to vector<81x750xf32>
    %cst = arith.constant dense<0.000000e+00> : vector<81x30xf32>
    %3 = tpu.matmul %2, %0, %cst {dimension_numbers = #tpu.dot_dimension_numbers<[1], [0], [0], [1], [0, 0, 1, 1], [], []>} : vector<81x750xf32>, vector<750x30xf32>, vector<81x30xf32> -> vector<81x30xf32>
    %c0_5 = arith.constant 0 : index
    %c1 = arith.constant 1 : index
    %c0_6 = arith.constant 0 : index
    %c0_7 = arith.constant 0 : index
    %4 = vector.load %arg1[%c0_5, %c1, %c0_6, %c0_7] : memref<1x4x81x750xf32, #tpu.memory_space<vmem>>, vector<1x1x81x750xf32>
    %5 = vector.shape_cast %4 : vector<1x1x81x750xf32> to vector<81x750xf32>
    %cst_8 = arith.constant dense<0.000000e+00> : vector<81x30xf32>
    %6 = tpu.matmul %5, %0, %cst_8 {dimension_numbers = #tpu.dot_dimension_numbers<[1], [0], [0], [1], [0, 0, 1, 1], [], []>} : vector<81x750xf32>, vector<750x30xf32>, vector<81x30xf32> -> vector<81x30xf32>
    %c0_9 = arith.constant 0 : index
    %c2 = arith.constant 2 : index
    %c0_10 = arith.constant 0 : index
    %c0_11 = arith.constant 0 : index
    %7 = vector.load %arg1[%c0_9, %c2, %c0_10, %c0_11] : memref<1x4x81x750xf32, #tpu.memory_space<vmem>>, vector<1x1x81x750xf32>
    %8 = vector.shape_cast %7 : vector<1x1x81x750xf32> to vector<81x750xf32>
    %cst_12 = arith.constant dense<0.000000e+00> : vector<81x30xf32>
    %9 = tpu.matmul %8, %0, %cst_12 {dimension_numbers = #tpu.dot_dimension_numbers<[1], [0], [0], [1], [0, 0, 1, 1], [], []>} : vector<81x750xf32>, vector<750x30xf32>, vector<81x30xf32> -> vector<81x30xf32>
    %c0_13 = arith.constant 0 : index
    %c3 = arith.constant 3 : index
    %c0_14 = arith.constant 0 : index
    %c0_15 = arith.constant 0 : index
    %10 = vector.load %arg1[%c0_13, %c3, %c0_14, %c0_15] : memref<1x4x81x750xf32, #tpu.memory_space<vmem>>, vector<1x1x81x750xf32>
    %11 = vector.shape_cast %10 : vector<1x1x81x750xf32> to vector<81x750xf32>
    %cst_16 = arith.constant dense<0.000000e+00> : vector<81x30xf32>
    %12 = tpu.matmul %11, %0, %cst_16 {dimension_numbers = #tpu.dot_dimension_numbers<[1], [0], [0], [1], [0, 0, 1, 1], [], []>} : vector<81x750xf32>, vector<750x30xf32>, vector<81x30xf32> -> vector<81x30xf32>
    %13 = arith.maximumf %3, %6 : vector<81x30xf32>
    %14 = arith.maximumf %9, %12 : vector<81x30xf32>
    %15 = arith.maximumf %13, %14 : vector<81x30xf32>
    %c0_17 = arith.constant 0 : index
    %c0_18 = arith.constant 0 : index
    %16 = vector.load %arg3[%c0_17, %c0_18] : memref<8x30xf32, #tpu.memory_space<vmem>>, vector<8x30xf32>
    %17 = vector.extract_strided_slice %16 {offsets = [0, 0], sizes = [1, 30], strides = [1, 1]} : vector<8x30xf32> to vector<1x30xf32>
    %18 = vector.extract_strided_slice %16 {offsets = [1, 0], sizes = [1, 30], strides = [1, 1]} : vector<8x30xf32> to vector<1x30xf32>
    %19 = vector.extract_strided_slice %16 {offsets = [2, 0], sizes = [1, 30], strides = [1, 1]} : vector<8x30xf32> to vector<1x30xf32>
    %20 = vector.extract_strided_slice %16 {offsets = [3, 0], sizes = [1, 30], strides = [1, 1]} : vector<8x30xf32> to vector<1x30xf32>
    %21 = vector.extract_strided_slice %16 {offsets = [4, 0], sizes = [1, 30], strides = [1, 1]} : vector<8x30xf32> to vector<1x30xf32>
    %22 = vector.extract_strided_slice %16 {offsets = [5, 0], sizes = [1, 30], strides = [1, 1]} : vector<8x30xf32> to vector<1x30xf32>
    %23 = vector.extract_strided_slice %16 {offsets = [6, 0], sizes = [1, 30], strides = [1, 1]} : vector<8x30xf32> to vector<1x30xf32>
    %24 = vector.extract_strided_slice %16 {offsets = [7, 0], sizes = [1, 30], strides = [1, 1]} : vector<8x30xf32> to vector<1x30xf32>
    %c0_19 = arith.constant 0 : index
    %c0_20 = arith.constant 0 : index
    %25 = vector.load %arg8[%c0_19, %c0_20] : memref<3x5xf32, #tpu.memory_space<vmem>>, vector<3x5xf32>
    %26 = vector.extract_strided_slice %25 {offsets = [0, 0], sizes = [1, 5], strides = [1, 1]} : vector<3x5xf32> to vector<1x5xf32>
    %27 = vector.extract_strided_slice %25 {offsets = [1, 0], sizes = [1, 5], strides = [1, 1]} : vector<3x5xf32> to vector<1x5xf32>
    %28 = vector.extract_strided_slice %25 {offsets = [2, 0], sizes = [1, 5], strides = [1, 1]} : vector<3x5xf32> to vector<1x5xf32>
    %29 = vector.broadcast %17 : vector<1x30xf32> to vector<81x30xf32>
    %30 = arith.addf %15, %29 : vector<81x30xf32>
    %31 = vector.broadcast %18 : vector<1x30xf32> to vector<81x30xf32>
    %32 = arith.mulf %30, %31 : vector<81x30xf32>
    %33 = vector.broadcast %19 : vector<1x30xf32> to vector<81x30xf32>
    %34 = arith.addf %32, %33 : vector<81x30xf32>
    %35 = arith.negf %34 : vector<81x30xf32>
    %36 = math.exp %35 : vector<81x30xf32>
    %cst_21 = arith.constant 1.000000e+00 : f32
    %37 = vector.broadcast %cst_21 : f32 to vector<81x30xf32>
    %38 = arith.addf %37, %36 : vector<81x30xf32>
    %39 = arith.divf %37, %38 : vector<81x30xf32>
    %c0_22 = arith.constant 0 : index
    %c0_23 = arith.constant 0 : index
    %40 = vector.load %arg4[%c0_22, %c0_23] : memref<30x5xf32, #tpu.memory_space<vmem>>, vector<30x5xf32>
    %cst_24 = arith.constant dense<0.000000e+00> : vector<81x5xf32>
    %41 = tpu.matmul %39, %40, %cst_24 {dimension_numbers = #tpu.dot_dimension_numbers<[1], [0], [0], [1], [0, 0, 1, 1], [], []>} : vector<81x30xf32>, vector<30x5xf32>, vector<81x5xf32> -> vector<81x5xf32>
    %42 = vector.broadcast %26 : vector<1x5xf32> to vector<81x5xf32>
    %43 = arith.addf %41, %42 : vector<81x5xf32>
    %c0_25 = arith.constant 0 : index
    %c0_26 = arith.constant 0 : index
    %44 = vector.load %arg5[%c0_25, %c0_26] : memref<30x5xf32, #tpu.memory_space<vmem>>, vector<30x5xf32>
    %cst_27 = arith.constant dense<0.000000e+00> : vector<81x5xf32>
    %45 = tpu.matmul %39, %44, %cst_27 {dimension_numbers = #tpu.dot_dimension_numbers<[1], [0], [0], [1], [0, 0, 1, 1], [], []>} : vector<81x30xf32>, vector<30x5xf32>, vector<81x5xf32> -> vector<81x5xf32>
    %46 = vector.broadcast %27 : vector<1x5xf32> to vector<81x5xf32>
    %47 = arith.addf %45, %46 : vector<81x5xf32>
    %c0_28 = arith.constant 0 : index
    %c0_29 = arith.constant 0 : index
    %48 = vector.load %arg6[%c0_28, %c0_29] : memref<30x5xf32, #tpu.memory_space<vmem>>, vector<30x5xf32>
    %cst_30 = arith.constant dense<0.000000e+00> : vector<81x5xf32>
    %49 = tpu.matmul %39, %48, %cst_30 {dimension_numbers = #tpu.dot_dimension_numbers<[1], [0], [0], [1], [0, 0, 1, 1], [], []>} : vector<81x30xf32>, vector<30x5xf32>, vector<81x5xf32> -> vector<81x5xf32>
    %50 = vector.broadcast %28 : vector<1x5xf32> to vector<81x5xf32>
    %51 = arith.addf %49, %50 : vector<81x5xf32>
    %cst_31 = arith.constant dense<0.000000e+00> : vector<81x81xf32>
    %52 = tpu.matmul %43, %47, %cst_31 {dimension_numbers = #tpu.dot_dimension_numbers<[1], [1], [0], [0], [0, 0, 1, 0], [], []>} : vector<81x5xf32>, vector<81x5xf32>, vector<81x81xf32> -> vector<81x81xf32>
    %cst_32 = arith.constant dense<0xFF800000> : vector<81xf32>
    %53 = vector.multi_reduction <maximumf>, %52, %cst_32 [1] : vector<81x81xf32> to vector<81xf32>
    %54 = vector.shape_cast %53 : vector<81xf32> to vector<81x1xf32>
    %55 = vector.broadcast %54 : vector<81x1xf32> to vector<81x81xf32>
    %56 = arith.subf %52, %55 : vector<81x81xf32>
    %57 = math.exp %56 : vector<81x81xf32>
    %cst_33 = arith.constant dense<0.000000e+00> : vector<81xf32>
    %58 = vector.multi_reduction <add>, %57, %cst_33 [1] : vector<81x81xf32> to vector<81xf32>
    %59 = vector.shape_cast %58 : vector<81xf32> to vector<81x1xf32>
    %60 = tpu.reciprocal %59 {approx = true} : vector<81x1xf32> -> vector<81x1xf32>
    %61 = vector.broadcast %60 : vector<81x1xf32> to vector<81x81xf32>
    %62 = arith.mulf %57, %61 : vector<81x81xf32>
    %cst_34 = arith.constant dense<0.000000e+00> : vector<81x5xf32>
    %63 = tpu.matmul %62, %51, %cst_34 {dimension_numbers = #tpu.dot_dimension_numbers<[1], [0], [0], [1], [0, 0, 1, 1], [], []>} : vector<81x81xf32>, vector<81x5xf32>, vector<81x5xf32> -> vector<81x5xf32>
    %c0_35 = arith.constant 0 : index
    %c0_36 = arith.constant 0 : index
    %64 = vector.load %arg7[%c0_35, %c0_36] : memref<5x30xf32, #tpu.memory_space<vmem>>, vector<5x30xf32>
    %cst_37 = arith.constant dense<0.000000e+00> : vector<81x30xf32>
    %65 = tpu.matmul %63, %64, %cst_37 {dimension_numbers = #tpu.dot_dimension_numbers<[1], [0], [0], [1], [0, 0, 1, 1], [], []>} : vector<81x5xf32>, vector<5x30xf32>, vector<81x30xf32> -> vector<81x30xf32>
    %66 = vector.broadcast %20 : vector<1x30xf32> to vector<81x30xf32>
    %67 = arith.addf %65, %66 : vector<81x30xf32>
    %c0_38 = arith.constant 0 : index
    %68 = memref.load %arg12[%c0_38] : memref<2xf32, #tpu.memory_space<smem>>
    %69 = vector.broadcast %68 : f32 to vector<81x30xf32>
    %70 = arith.mulf %69, %67 : vector<81x30xf32>
    %71 = arith.addf %70, %39 : vector<81x30xf32>
    %72 = vector.broadcast %21 : vector<1x30xf32> to vector<81x30xf32>
    %73 = arith.mulf %71, %72 : vector<81x30xf32>
    %74 = vector.broadcast %22 : vector<1x30xf32> to vector<81x30xf32>
    %75 = arith.addf %73, %74 : vector<81x30xf32>
    %76 = arith.negf %75 : vector<81x30xf32>
    %77 = math.exp %76 : vector<81x30xf32>
    %cst_39 = arith.constant 1.000000e+00 : f32
    %78 = vector.broadcast %cst_39 : f32 to vector<81x30xf32>
    %79 = arith.addf %78, %77 : vector<81x30xf32>
    %80 = arith.divf %78, %79 : vector<81x30xf32>
    %c0_40 = arith.constant 0 : index
    %c0_41 = arith.constant 0 : index
    %81 = vector.load %arg9[%c0_40, %c0_41] : memref<30x30xf32, #tpu.memory_space<vmem>>, vector<30x30xf32>
    %cst_42 = arith.constant dense<0.000000e+00> : vector<81x30xf32>
    %82 = tpu.matmul %80, %81, %cst_42 {dimension_numbers = #tpu.dot_dimension_numbers<[1], [0], [0], [1], [0, 0, 1, 1], [], []>} : vector<81x30xf32>, vector<30x30xf32>, vector<81x30xf32> -> vector<81x30xf32>
    %83 = vector.broadcast %23 : vector<1x30xf32> to vector<81x30xf32>
    %84 = arith.addf %82, %83 : vector<81x30xf32>
    %85 = arith.negf %84 : vector<81x30xf32>
    %86 = math.exp %85 : vector<81x30xf32>
    %cst_43 = arith.constant 1.000000e+00 : f32
    %87 = vector.broadcast %cst_43 : f32 to vector<81x30xf32>
    %88 = arith.addf %87, %86 : vector<81x30xf32>
    %89 = arith.divf %87, %88 : vector<81x30xf32>
    %c0_44 = arith.constant 0 : index
    %c0_45 = arith.constant 0 : index
    %90 = vector.load %arg10[%c0_44, %c0_45] : memref<30x30xf32, #tpu.memory_space<vmem>>, vector<30x30xf32>
    %cst_46 = arith.constant dense<0.000000e+00> : vector<81x30xf32>
    %91 = tpu.matmul %89, %90, %cst_46 {dimension_numbers = #tpu.dot_dimension_numbers<[1], [0], [0], [1], [0, 0, 1, 1], [], []>} : vector<81x30xf32>, vector<30x30xf32>, vector<81x30xf32> -> vector<81x30xf32>
    %92 = vector.broadcast %24 : vector<1x30xf32> to vector<81x30xf32>
    %93 = arith.addf %91, %92 : vector<81x30xf32>
    %94 = arith.negf %93 : vector<81x30xf32>
    %95 = math.exp %94 : vector<81x30xf32>
    %cst_47 = arith.constant 1.000000e+00 : f32
    %96 = vector.broadcast %cst_47 : f32 to vector<81x30xf32>
    %97 = arith.addf %96, %95 : vector<81x30xf32>
    %98 = arith.divf %96, %97 : vector<81x30xf32>
    %c0_48 = arith.constant 0 : index
    %c0_49 = arith.constant 0 : index
    %99 = vector.load %arg11[%c0_48, %c0_49] : memref<81x30xf32, #tpu.memory_space<vmem>>, vector<81x30xf32>
    %100 = arith.mulf %98, %99 : vector<81x30xf32>
    %cst_50 = arith.constant dense<0.000000e+00> : vector<81xf32>
    %101 = vector.multi_reduction <add>, %100, %cst_50 [1] : vector<81x30xf32> to vector<81xf32>
    %102 = vector.shape_cast %101 : vector<81xf32> to vector<81x1xf32>
    %cst_51 = arith.constant dense<0.000000e+00> : vector<1xf32>
    %103 = vector.multi_reduction <add>, %102, %cst_51 [0] : vector<81x1xf32> to vector<1xf32>
    %104 = vector.shape_cast %103 : vector<1xf32> to vector<1x1xf32>
    %c1_52 = arith.constant 1 : index
    %105 = memref.load %arg12[%c1_52] : memref<2xf32, #tpu.memory_space<smem>>
    %106 = vector.broadcast %105 : f32 to vector<1x1xf32>
    %107 = arith.addf %104, %106 : vector<1x1xf32>
    %c0_53 = arith.constant 0 : index
    %c0_54 = arith.constant 0 : index
    %c0_55 = arith.constant 0 : index
    %108 = vector.load %arg13[%c0_53, %c0_54, %c0_55] : memref<1x1x1xf32, #tpu.memory_space<vmem>>, vector<1x1x1xf32>
    %109 = vector.shape_cast %108 : vector<1x1x1xf32> to vector<1x1xf32>
    %110 = vector.shape_cast %107 : vector<1x1xf32> to vector<1x1x1xf32>
    tpu.vector_store %arg13[%c0_53, %c0_54, %c0_55], %110 {strides = array<i32>} : memref<1x1x1xf32, #tpu.memory_space<vmem>>, vector<1x1x1xf32>,
    return
  }
  func.func @transform_0(%arg0: i32) -> (i32, i32, i32, i32) {
    %c0_i32 = arith.constant 0 : i32
    %c0_i32_0 = arith.constant 0 : i32
    %c0_i32_1 = arith.constant 0 : i32
    %c0_i32_2 = arith.constant 0 : i32
    return %arg0, %c0_i32, %c0_i32_0, %c0_i32_1 : i32, i32, i32, i32
  }
  func.func @transform_1(%arg0: i32) -> (i32, i32) {
    %c0_i32 = arith.constant 0 : i32
    %c0_i32_0 = arith.constant 0 : i32
    %c0_i32_1 = arith.constant 0 : i32
    return %c0_i32, %c0_i32_0 : i32, i32
  }
  func.func @transform_2(%arg0: i32) -> (i32, i32) {
    %c0_i32 = arith.constant 0 : i32
    %c0_i32_0 = arith.constant 0 : i32
    %c0_i32_1 = arith.constant 0 : i32
    return %c0_i32, %c0_i32_0 : i32, i32
  }
  func.func @transform_3(%arg0: i32) -> (i32, i32) {
    %c0_i32 = arith.constant 0 : i32
    %c0_i32_0 = arith.constant 0 : i32
    %c0_i32_1 = arith.constant 0 : i32
    return %c0_i32, %c0_i32_0 : i32, i32
  }
  func.func @transform_4(%arg0: i32) -> (i32, i32) {
    %c0_i32 = arith.constant 0 : i32
    %c0_i32_0 = arith.constant 0 : i32
    %c0_i32_1 = arith.constant 0 : i32
    return %c0_i32, %c0_i32_0 : i32, i32
  }
  func.func @transform_5(%arg0: i32) -> (i32, i32) {
    %c0_i32 = arith.constant 0 : i32
    %c0_i32_0 = arith.constant 0 : i32
    %c0_i32_1 = arith.constant 0 : i32
    return %c0_i32, %c0_i32_0 : i32, i32
  }
  func.func @transform_6(%arg0: i32) -> (i32, i32) {
    %c0_i32 = arith.constant 0 : i32
    %c0_i32_0 = arith.constant 0 : i32
    %c0_i32_1 = arith.constant 0 : i32
    return %c0_i32, %c0_i32_0 : i32, i32
  }
  func.func @transform_7(%arg0: i32) -> (i32, i32) {
    %c0_i32 = arith.constant 0 : i32
    %c0_i32_0 = arith.constant 0 : i32
    %c0_i32_1 = arith.constant 0 : i32
    return %c0_i32, %c0_i32_0 : i32, i32
  }
  func.func @transform_8(%arg0: i32) -> (i32, i32) {
    %c0_i32 = arith.constant 0 : i32
    %c0_i32_0 = arith.constant 0 : i32
    %c0_i32_1 = arith.constant 0 : i32
    return %c0_i32, %c0_i32_0 : i32, i32
  }
  func.func @transform_9(%arg0: i32) -> (i32, i32) {
    %c0_i32 = arith.constant 0 : i32
    %c0_i32_0 = arith.constant 0 : i32
    %c0_i32_1 = arith.constant 0 : i32
    return %c0_i32, %c0_i32_0 : i32, i32
  }
  func.func @transform_10(%arg0: i32) -> (i32, i32) {
    %c0_i32 = arith.constant 0 : i32
    %c0_i32_0 = arith.constant 0 : i32
    %c0_i32_1 = arith.constant 0 : i32
    return %c0_i32, %c0_i32_0 : i32, i32
  }
  func.func @transform_11(%arg0: i32) -> i32 {
    %c0_i32 = arith.constant 0 : i32
    %c0_i32_0 = arith.constant 0 : i32
    return %c0_i32 : i32
  }
  func.func @transform_12(%arg0: i32) -> (i32, i32, i32) {
    %c0_i32 = arith.constant 0 : i32
    %c0_i32_0 = arith.constant 0 : i32
    %c0_i32_1 = arith.constant 0 : i32
    return %arg0, %c0_i32, %c0_i32_0 : i32, i32, i32
  }
}

</mosaic_0001>

<bundles_post_ra>
// kernel: forward.2
= control target key start
LH: loop header
LB: loop body
LE: loop exit
PB: predicated region body
PF: predicated region fallthrough
CT: control target
= control target key end

     0   :  { %s5345_s12 = smov 0   ;;  %s7233_s0 = inlined_call_operand.vmem [shape: f32[2,4,484,25], index: 0, kind: input, shape index: {}]   ;;  %s7234_s1 = inlined_call_operand.vmem [shape: f32[25,30], index: 1, kind: input, shape index: {}]   ;;  %s7235_s2 = inlined_call_operand.vmem [shape: f32[3,30], index: 2, kind: input, shape index: {}]   ;;  %s7236_s3 = inlined_call_operand.vmem [shape: f32[2,484,30], index: 3, kind: output, shape index: {}]  }
   0x1 LB: > { %s3502_s13 = sadd.s32 4294967295, %s5319_s12   ;;  %p3506_p0 = scmp.ge.s32.totalorder %s5319_s12, 1  ;;  %s5319_s12 = sphi %s5345_s12, %s13_s12  }
   0x2   : > { %p137_p1 = scmp.lt.s32.totalorder %s5319_s12, 3 }
   0x4   : > { %p138_p2 = pnand %p3506_p0, %p137_p1 }
   0x6   : > { %141 = sbr.rel (%p138_p2) target bundleno = 757 (0x2f5), region = 32 }
   0xd   : > { %v171_v0 = vld [vmem:[%s7234_s1] sm:$0xff]  ;;  %v172_v1 = vld [vmem:[%s7234_s1 + $0x8] sm:$0xff]  ;;  %v173_v2 = vld [vmem:[%s7234_s1 + $0x10] sm:$0xff]  ;;  %vm420_vm0 = vcmask 1040384   ;;  %v5321_v3 = vmov 0.0|0.0   ;;  %p161_p3 = scmp.lt.s32.totalorder %s3502_s13, 1 }
   0xe   : > { %5027 = vmatprep.subr.bf16.mxu0 %v5321_v3  ;;  %5034 = vmatprep.subr.bf16.mxu1 %v5321_v3  ;;  %v5028_v4 = vpack.c.bf16 %v172_v1, %v171_v0  ;;  %v174_v5 = vld [vmem:[%s7234_s1 + $0x18] sm:$0x1]  ;;  %vm5322_vm1 = vmmov 0   ;;  %v7312_v6 = vmov 0.0   ;;  %vm5324_vm2 = vmmov 1  }
   0xf   : > { %4271 = vmatprep.mubr.msk.f32.mxu0 %vm5322_vm1, %v7312_v6  ;;  %4462 = vmatprep.mubr.msk.f32.mxu1 %vm5322_vm1, %v7312_v6  ;;  %v5031_v7 = vpack.c.bf16 %v174_v5, %v173_v2  ;;  %s7532_s13 = smov (!%p161_p3, %s3502_s13), 1  ;;  %vm5372_vm3 = vmpackc.low %vm420_vm0, %vm5324_vm2  ;;  %vm236_vm4 = vcmask 203776   ;;  %vm3384_vm5 = vcmask 244736   ;;  %vm3445_vm6 = vcmask 240640  }
  0x10   : > { %5029 = vmatpush3.bf16.msra.mxu0 %v5028_v4  ;;  %5036 = vmatpush3.bf16.msra.mxu1 %v5028_v4  ;;  %s5055_s22 = smul.u32 1952, %s7532_s13 }
  0x11   : > { %5030 = vmatprep.subr.bf16.mxu0 %v5321_v3  ;;  %5037 = vmatprep.subr.bf16.mxu1 %v5321_v3  ;;  %s5056_s28 = smul.u32 488, %s7532_s13 }
  0x12   : > { %s5384_s25 = scalar_lea.vmem %s7233_s0, %s5055_s22 }
  0x13   : > { %v175_v9 = vld [vmem:[%s5384_s25] sm:$0xff]  ;;  %v3571_v10 = vld [vmem:[%s5384_s25 + $0x1e8] sm:$0xff]  ;;  %v3572_v12 = vld [vmem:[%s5384_s25 + $0x1f0] sm:$0xff]  ;;  %s6787_s4 = scalar_lea.vmem %s7236_s3, %s5056_s28 }
  0x14   : > { %5033 = vmatpush3.bf16.msk.msra.mxu0 %vm5372_vm3, %v5031_v7  ;;  %5040 = vmatpush3.bf16.msk.msra.mxu1 %vm5372_vm3, %v5031_v7  ;;  %v176_v11 = vld [vmem:[%s5384_s25 + $0x8] sm:$0xff]  ;;  %v177_v13 = vld [vmem:[%s5384_s25 + $0x10] sm:$0xff]  ;;  %v3573_v14 = vld [vmem:[%s5384_s25 + $0x1f8] sm:$0xff] }
  0x15   : > { %5041 = vmatprep.subr.bf16.mxu0 %v5321_v3  ;;  %5048 = vmatprep.subr.bf16.mxu1 %v5321_v3  ;;  %v178_v15 = vld [vmem:[%s5384_s25 + $0x18] sm:$0xff]  ;;  %v3574_v16 = vld [vmem:[%s5384_s25 + $0x200] sm:$0xff]  ;;  %v3575_v18 = vld [vmem:[%s5384_s25 + $0x208] sm:$0xff] }
  0x16   : > { %v179_v17 = vld [vmem:[%s5384_s25 + $0x20] sm:$0xff]  ;;  %v180_v19 = vld [vmem:[%s5384_s25 + $0x28] sm:$0xff]  ;;  %v3576_v20 = vld [vmem:[%s5384_s25 + $0x210] sm:$0xff] }
  0x17   : > { %4272 = vmatmul.mubr.msk.f32.vlgmr.msra.gmra.mrb[0].mxu0 %vm236_vm4, %v175_v9  ;;  %4463 = vmatmul.mubr.msk.f32.vlgmr.msra.gmra.mrb[0].mxu1 %vm236_vm4, %v3571_v10  ;;  %v181_v21 = vld [vmem:[%s5384_s25 + $0x30] sm:$0xff]  ;;  %v3577_v22 = vld [vmem:[%s5384_s25 + $0x218] sm:$0xff]  ;;  %v3578_v24 = vld [vmem:[%s5384_s25 + $0x220] sm:$0xff] }
  0x18   : > { %5043 = vmatpush3.bf16.msra.mxu0 %v5028_v4  ;;  %5050 = vmatpush3.bf16.msra.mxu1 %v5028_v4  ;;  %v182_v23 = vld [vmem:[%s5384_s25 + $0x38] sm:$0xff]  ;;  %v183_v25 = vld [vmem:[%s5384_s25 + $0x40] sm:$0xff]  ;;  %v3579_v26 = vld [vmem:[%s5384_s25 + $0x228] sm:$0xff] }
  0x19   : > { %4274 = vmatprep.mubr.msk.f32.mxu0 %vm5322_vm1, %v7312_v6  ;;  %4465 = vmatprep.mubr.msk.f32.mxu1 %vm5322_vm1, %v7312_v6  ;;  %v184_v27 = vld [vmem:[%s5384_s25 + $0x48] sm:$0xff]  ;;  %v3580_v28 = vld [vmem:[%s5384_s25 + $0x230] sm:$0xff]  ;;  %v3581_v30 = vld [vmem:[%s5384_s25 + $0x238] sm:$0xff] }
  0x1a   : > { %5044 = vmatprep.subr.bf16.mxu0 %v5321_v3  ;;  %5051 = vmatprep.subr.bf16.mxu1 %v5321_v3  ;;  %v185_v29 = vld [vmem:[%s5384_s25 + $0x50] sm:$0xff]  ;;  %v186_v31 = vld [vmem:[%s5384_s25 + $0x58] sm:$0xff]  ;;  %v3582_v32 = vld [vmem:[%s5384_s25 + $0x240] sm:$0xff] }
  0x1b   : > { %4275 = vmatmul.mubr.msk.f32.gmra.mrb[2].mxu0 %vm236_vm4, %v176_v11  ;;  %4466 = vmatmul.mubr.msk.f32.gmra.mrb[2].mxu1 %vm236_vm4, %v3572_v12  ;;  %v187_v33 = vld [vmem:[%s5384_s25 + $0x60] sm:$0xff]  ;;  %v3583_v34 = vld [vmem:[%s5384_s25 + $0x248] sm:$0xff]  ;;  %v3584_v36 = vld [vmem:[%s5384_s25 + $0x250] sm:$0xff] }
  0x1c   : > { %4277 = vmatprep.mubr.msk.f32.mxu0 %vm5322_vm1, %v7312_v6  ;;  %4468 = vmatprep.mubr.msk.f32.mxu1 %vm5322_vm1, %v7312_v6  ;;  %v188_v35 = vld [vmem:[%s5384_s25 + $0x68] sm:$0xff]  ;;  %v189_v37 = vld [vmem:[%s5384_s25 + $0x70] sm:$0xff]  ;;  %v3585_v38 = vld [vmem:[%s5384_s25 + $0x258] sm:$0xff] }
  0x1d   : > { %5047 = vmatpush3.bf16.msk.msra.mxu0 %vm5372_vm3, %v5031_v7  ;;  %5054 = vmatpush3.bf16.msk.msra.mxu1 %vm5372_vm3, %v5031_v7  ;;  %v190_v39 = vld [vmem:[%s5384_s25 + $0x78] sm:$0xff]  ;;  %v3586_v40 = vld [vmem:[%s5384_s25 + $0x260] sm:$0xff]  ;;  %v3587_v42 = vld [vmem:[%s5384_s25 + $0x268] sm:$0xff] }
  0x1e   : > { %v191_v41 = vld [vmem:[%s5384_s25 + $0x80] sm:$0xff]  ;;  %v192_v43 = vld [vmem:[%s5384_s25 + $0x88] sm:$0xff]  ;;  %v3588_v44 = vld [vmem:[%s5384_s25 + $0x270] sm:$0xff] }
  0x1f   : > { %4278 = vmatmul.mubr.msk.f32.gmra.mrb[4].mxu0 %vm236_vm4, %v177_v13  ;;  %4469 = vmatmul.mubr.msk.f32.gmra.mrb[4].mxu1 %vm236_vm4, %v3573_v14  ;;  %v193_v45 = vld [vmem:[%s5384_s25 + $0x90] sm:$0xff]  ;;  %v3589_v46 = vld [vmem:[%s5384_s25 + $0x278] sm:$0xff]  ;;  %v3590_v48 = vld [vmem:[%s5384_s25 + $0x280] sm:$0xff] }
  0x20   : > { %4280 = vmatprep.mubr.msk.f32.mxu0 %vm5322_vm1, %v7312_v6  ;;  %4471 = vmatprep.mubr.msk.f32.mxu1 %vm5322_vm1, %v7312_v6  ;;  %v194_v47 = vld [vmem:[%s5384_s25 + $0x98] sm:$0xff]  ;;  %v195_v49 = vld [vmem:[%s5384_s25 + $0xa0] sm:$0xff]  ;;  %v3591_v50 = vld [vmem:[%s5384_s25 + $0x288] sm:$0xff] }
  0x21   : > { %v196_v51 = vld [vmem:[%s5384_s25 + $0xa8] sm:$0xff]  ;;  %v3592_v52 = vld [vmem:[%s5384_s25 + $0x290] sm:$0xff]  ;;  %v3593_v54 = vld [vmem:[%s5384_s25 + $0x298] sm:$0xff] }
  0x22   : > { %v197_v53 = vld [vmem:[%s5384_s25 + $0xb0] sm:$0xff]  ;;  %v198_v55 = vld [vmem:[%s5384_s25 + $0xb8] sm:$0xff]  ;;  %v3594_v56 = vld [vmem:[%s5384_s25 + $0x2a0] sm:$0xff] }
  0x23   : > { %4281 = vmatmul.mubr.msk.f32.gmra.mrb[6].mxu0 %vm236_vm4, %v178_v15  ;;  %4472 = vmatmul.mubr.msk.f32.gmra.mrb[6].mxu1 %vm236_vm4, %v3574_v16  ;;  %v199_v57 = vld [vmem:[%s5384_s25 + $0xc0] sm:$0xff]  ;;  %v3595_v58 = vld [vmem:[%s5384_s25 + $0x2a8] sm:$0xff]  ;;  %v3596_v60 = vld [vmem:[%s5384_s25 + $0x2b0] sm:$0xff] }
  0x24   : > { %4283 = vmatprep.mubr.msk.f32.mxu0 %vm5322_vm1, %v7312_v6  ;;  %4474 = vmatprep.mubr.msk.f32.mxu1 %vm5322_vm1, %v7312_v6  ;;  %v200_v59 = vld [vmem:[%s5384_s25 + $0xc8] sm:$0xff]  ;;  %v201_v61 = vld [vmem:[%s5384_s25 + $0xd0] sm:$0xff]  ;;  %v3597_v62 = vld [vmem:[%s5384_s25 + $0x2b8] sm:$0xff] }
  0x25   : > { %v202_v63 = vld [vmem:[%s5384_s25 + $0xd8] sm:$0xff]  ;;  %v3598_v0 = vld [vmem:[%s5384_s25 + $0x2c0] sm:$0xff]  ;;  %v3599_v2 = vld [vmem:[%s5384_s25 + $0x2c8] sm:$0xff] }
  0x26   : > { %v203_v1 = vld [vmem:[%s5384_s25 + $0xe0] sm:$0xff]  ;;  %v204_v3 = vld [vmem:[%s5384_s25 + $0xe8] sm:$0xff]  ;;  %v3600_v4 = vld [vmem:[%s5384_s25 + $0x2d0] sm:$0xff] }
  0x27   : > { %4284 = vmatmul.mubr.msk.f32.gmra.mrb[8].mxu0 %vm236_vm4, %v179_v17  ;;  %4475 = vmatmul.mubr.msk.f32.gmra.mrb[8].mxu1 %vm236_vm4, %v3575_v18  ;;  %v205_v5 = vld [vmem:[%s5384_s25 + $0xf0] sm:$0xff]  ;;  %v3601_v7 = vld [vmem:[%s5384_s25 + $0x2d8] sm:$0xff]  ;;  %v3602_v9 = vld [vmem:[%s5384_s25 + $0x2e0] sm:$0xff] }
  0x28   : > { %4286 = vmatprep.mubr.msk.f32.mxu0 %vm5322_vm1, %v7312_v6  ;;  %4477 = vmatprep.mubr.msk.f32.mxu1 %vm5322_vm1, %v7312_v6  ;;  %v206_v8 = vld [vmem:[%s5384_s25 + $0xf8] sm:$0xff]  ;;  %v207_v10 = vld [vmem:[%s5384_s25 + $0x100] sm:$0xff]  ;;  %v3603_v11 = vld [vmem:[%s5384_s25 + $0x2e8] sm:$0xff] }
  0x29   : > { %v208_v12 = vld [vmem:[%s5384_s25 + $0x108] sm:$0xff]  ;;  %v3604_v13 = vld [vmem:[%s5384_s25 + $0x2f0] sm:$0xff]  ;;  %v3605_v15 = vld [vmem:[%s5384_s25 + $0x2f8] sm:$0xff] }
  0x2a   : > { %v209_v14 = vld [vmem:[%s5384_s25 + $0x110] sm:$0xff]  ;;  %v210_v16 = vld [vmem:[%s5384_s25 + $0x118] sm:$0xff]  ;;  %v3606_v17 = vld [vmem:[%s5384_s25 + $0x300] sm:$0xff] }
  0x2b   : > { %4287 = vmatmul.mubr.msk.f32.gmra.mrb[10].mxu0 %vm236_vm4, %v180_v19  ;;  %4478 = vmatmul.mubr.msk.f32.gmra.mrb[10].mxu1 %vm236_vm4, %v3576_v20  ;;  %v211_v18 = vld [vmem:[%s5384_s25 + $0x120] sm:$0xff]  ;;  %v3607_v19 = vld [vmem:[%s5384_s25 + $0x308] sm:$0xff] }
  0x2c   : > { %4289 = vmatprep.mubr.msk.f32.mxu0 %vm5322_vm1, %v7312_v6  ;;  %4480 = vmatprep.mubr.msk.f32.mxu1 %vm5322_vm1, %v7312_v6  ;;  %v212_v20 = vld [vmem:[%s5384_s25 + $0x128] sm:$0xff] }
  0x2f   : > { %4290 = vmatmul.mubr.msk.f32.gmra.mrb[12].mxu0 %vm236_vm4, %v181_v21  ;;  %4481 = vmatmul.mubr.msk.f32.gmra.mrb[12].mxu1 %vm236_vm4, %v3577_v22  ;;  %v3608_v21 = vld [vmem:[%s5384_s25 + $0x310] sm:$0xff] }
  0x30   : > { %4292 = vmatprep.mubr.msk.f32.mxu0 %vm5322_vm1, %v7312_v6  ;;  %4483 = vmatprep.mubr.msk.f32.mxu1 %vm5322_vm1, %v7312_v6  ;;  %v213_v22 = vld [vmem:[%s5384_s25 + $0x130] sm:$0xff] }
  0x33   : > { %4293 = vmatmul.mubr.msk.f32.gmra.mrb[14].mxu0 %vm236_vm4, %v182_v23  ;;  %4484 = vmatmul.mubr.msk.f32.gmra.mrb[14].mxu1 %vm236_vm4, %v3578_v24  ;;  %v3609_v23 = vld [vmem:[%s5384_s25 + $0x318] sm:$0xff] }
  0x34   : > { %4295 = vmatprep.mubr.msk.f32.mxu0 %vm5322_vm1, %v7312_v6  ;;  %4486 = vmatprep.mubr.msk.f32.mxu1 %vm5322_vm1, %v7312_v6  ;;  %v214_v24 = vld [vmem:[%s5384_s25 + $0x138] sm:$0xff] }
  0x37   : > { %4296 = vmatmul.mubr.msk.f32.gmra.mrb[16].mxu0 %vm236_vm4, %v183_v25  ;;  %4487 = vmatmul.mubr.msk.f32.gmra.mrb[16].mxu1 %vm236_vm4, %v3579_v26  ;;  %v3610_v25 = vld [vmem:[%s5384_s25 + $0x320] sm:$0xff] }
  0x38   : > { %4298 = vmatprep.mubr.msk.f32.mxu0 %vm5322_vm1, %v7312_v6  ;;  %4489 = vmatprep.mubr.msk.f32.mxu1 %vm5322_vm1, %v7312_v6  ;;  %v215_v26 = vld [vmem:[%s5384_s25 + $0x140] sm:$0xff] }
  0x3b   : > { %4299 = vmatmul.mubr.msk.f32.gmra.mrb[18].mxu0 %vm236_vm4, %v184_v27  ;;  %4490 = vmatmul.mubr.msk.f32.gmra.mrb[18].mxu1 %vm236_vm4, %v3580_v28  ;;  %v3611_v27 = vld [vmem:[%s5384_s25 + $0x328] sm:$0xff] }
  0x3c   : > { %4301 = vmatprep.mubr.msk.f32.mxu0 %vm5322_vm1, %v7312_v6  ;;  %4492 = vmatprep.mubr.msk.f32.mxu1 %vm5322_vm1, %v7312_v6  ;;  %v216_v28 = vld [vmem:[%s5384_s25 + $0x148] sm:$0xff] }
  0x3f   : > { %4302 = vmatmul.mubr.msk.f32.gmra.mrb[20].mxu0 %vm236_vm4, %v185_v29  ;;  %4493 = vmatmul.mubr.msk.f32.gmra.mrb[20].mxu1 %vm236_vm4, %v3581_v30  ;;  %v3612_v29 = vld [vmem:[%s5384_s25 + $0x330] sm:$0xff] }
  0x40   : > { %4304 = vmatprep.mubr.msk.f32.mxu0 %vm5322_vm1, %v7312_v6  ;;  %4495 = vmatprep.mubr.msk.f32.mxu1 %vm5322_vm1, %v7312_v6  ;;  %v217_v30 = vld [vmem:[%s5384_s25 + $0x150] sm:$0xff] }
  0x43   : > { %4305 = vmatmul.mubr.msk.f32.gmra.mrb[22].mxu0 %vm236_vm4, %v186_v31  ;;  %4496 = vmatmul.mubr.msk.f32.gmra.mrb[22].mxu1 %vm236_vm4, %v3582_v32  ;;  %v3613_v31 = vld [vmem:[%s5384_s25 + $0x338] sm:$0xff] }
  0x44   : > { %4307 = vmatprep.mubr.msk.f32.mxu0 %vm5322_vm1, %v7312_v6  ;;  %4498 = vmatprep.mubr.msk.f32.mxu1 %vm5322_vm1, %v7312_v6  ;;  %v218_v32 = vld [vmem:[%s5384_s25 + $0x158] sm:$0xff] }
  0x47   : > { %4308 = vmatmul.mubr.msk.f32.gmra.mrb[24].mxu0 %vm236_vm4, %v187_v33  ;;  %4499 = vmatmul.mubr.msk.f32.gmra.mrb[24].mxu1 %vm236_vm4, %v3583_v34  ;;  %v3614_v33 = vld [vmem:[%s5384_s25 + $0x340] sm:$0xff] }
  0x48   : > { %4310 = vmatprep.mubr.msk.f32.mxu0 %vm5322_vm1, %v7312_v6  ;;  %4501 = vmatprep.mubr.msk.f32.mxu1 %vm5322_vm1, %v7312_v6  ;;  %v219_v34 = vld [vmem:[%s5384_s25 + $0x160] sm:$0xff] }
  0x4b   : > { %4311 = vmatmul.mubr.msk.f32.gmra.mrb[26].mxu0 %vm236_vm4, %v188_v35  ;;  %4502 = vmatmul.mubr.msk.f32.gmra.mrb[26].mxu1 %vm236_vm4, %v3584_v36  ;;  %v3615_v35 = vld [vmem:[%s5384_s25 + $0x348] sm:$0xff] }
  0x4c   : > { %4313 = vmatprep.mubr.msk.f32.mxu0 %vm5322_vm1, %v7312_v6  ;;  %4504 = vmatprep.mubr.msk.f32.mxu1 %vm5322_vm1, %v7312_v6  ;;  %v220_v36 = vld [vmem:[%s5384_s25 + $0x168] sm:$0xff] }
  0x4f   : > { %4314 = vmatmul.mubr.msk.f32.gmra.mrb[28].mxu0 %vm236_vm4, %v189_v37  ;;  %4505 = vmatmul.mubr.msk.f32.gmra.mrb[28].mxu1 %vm236_vm4, %v3585_v38  ;;  %v3616_v37 = vld [vmem:[%s5384_s25 + $0x350] sm:$0xff] }
  0x50   : > { %4316 = vmatprep.mubr.msk.f32.mxu0 %vm5322_vm1, %v7312_v6  ;;  %4507 = vmatprep.mubr.msk.f32.mxu1 %vm5322_vm1, %v7312_v6  ;;  %v221_v38 = vld [vmem:[%s5384_s25 + $0x170] sm:$0xff] }
  0x53   : > { %4317 = vmatmul.mubr.msk.f32.gmra.mrb[30].mxu0 %vm236_vm4, %v190_v39  ;;  %4508 = vmatmul.mubr.msk.f32.gmra.mrb[30].mxu1 %vm236_vm4, %v3586_v40  ;;  %v3617_v39 = vld [vmem:[%s5384_s25 + $0x358] sm:$0xff] }
  0x54   : > { %4319 = vmatprep.mubr.msk.f32.mxu0 %vm5322_vm1, %v7312_v6  ;;  %4510 = vmatprep.mubr.msk.f32.mxu1 %vm5322_vm1, %v7312_v6  ;;  %v222_v40 = vld [vmem:[%s5384_s25 + $0x178] sm:$0xff] }
  0x57   : > { %4320 = vmatmul.mubr.msk.f32.gmra.mrb[32].mxu0 %vm236_vm4, %v191_v41  ;;  %4511 = vmatmul.mubr.msk.f32.gmra.mrb[32].mxu1 %vm236_vm4, %v3587_v42  ;;  %v3618_v41 = vld [vmem:[%s5384_s25 + $0x360] sm:$0xff] }
  0x58   : > { %4322 = vmatprep.mubr.msk.f32.mxu0 %vm5322_vm1, %v7312_v6  ;;  %4513 = vmatprep.mubr.msk.f32.mxu1 %vm5322_vm1, %v7312_v6  ;;  %v223_v42 = vld [vmem:[%s5384_s25 + $0x180] sm:$0xff] }
  0x5b   : > { %4323 = vmatmul.mubr.msk.f32.gmra.mrb[34].mxu0 %vm236_vm4, %v192_v43  ;;  %4514 = vmatmul.mubr.msk.f32.gmra.mrb[34].mxu1 %vm236_vm4, %v3588_v44  ;;  %v3619_v43 = vld [vmem:[%s5384_s25 + $0x368] sm:$0xff] }
  0x5c   : > { %4325 = vmatprep.mubr.msk.f32.mxu0 %vm5322_vm1, %v7312_v6  ;;  %4516 = vmatprep.mubr.msk.f32.mxu1 %vm5322_vm1, %v7312_v6  ;;  %v224_v44 = vld [vmem:[%s5384_s25 + $0x188] sm:$0xff] }
  0x5f   : > { %4326 = vmatmul.mubr.msk.f32.gmra.mrb[36].mxu0 %vm236_vm4, %v193_v45  ;;  %4517 = vmatmul.mubr.msk.f32.gmra.mrb[36].mxu1 %vm236_vm4, %v3589_v46  ;;  %v3620_v45 = vld [vmem:[%s5384_s25 + $0x370] sm:$0xff] }
  0x60   : > { %4328 = vmatprep.mubr.msk.f32.mxu0 %vm5322_vm1, %v7312_v6  ;;  %4519 = vmatprep.mubr.msk.f32.mxu1 %vm5322_vm1, %v7312_v6  ;;  %v225_v46 = vld [vmem:[%s5384_s25 + $0x190] sm:$0xff] }
  0x63   : > { %4329 = vmatmul.mubr.msk.f32.gmra.mrb[38].mxu0 %vm236_vm4, %v194_v47  ;;  %4520 = vmatmul.mubr.msk.f32.gmra.mrb[38].mxu1 %vm236_vm4, %v3590_v48  ;;  %v3621_v47 = vld [vmem:[%s5384_s25 + $0x378] sm:$0xff] }
  0x64   : > { %4331 = vmatprep.mubr.msk.f32.mxu0 %vm5322_vm1, %v7312_v6  ;;  %4522 = vmatprep.mubr.msk.f32.mxu1 %vm5322_vm1, %v7312_v6  ;;  %v226_v48 = vld [vmem:[%s5384_s25 + $0x198] sm:$0xff] }
  0x67   : > { %4332 = vmatmul.mubr.msk.f32.gmra.mrb[40].mxu0 %vm236_vm4, %v195_v49  ;;  %4523 = vmatmul.mubr.msk.f32.gmra.mrb[40].mxu1 %vm236_vm4, %v3591_v50  ;;  %v3622_v49 = vld [vmem:[%s5384_s25 + $0x380] sm:$0xff] }
  0x68   : > { %4334 = vmatprep.mubr.msk.f32.mxu0 %vm5322_vm1, %v7312_v6  ;;  %4525 = vmatprep.mubr.msk.f32.mxu1 %vm5322_vm1, %v7312_v6  ;;  %v227_v50 = vld [vmem:[%s5384_s25 + $0x1a0] sm:$0xff] }
  0x6b   : > { %4335 = vmatmul.mubr.msk.f32.gmra.mrb[42].mxu0 %vm236_vm4, %v196_v51  ;;  %4526 = vmatmul.mubr.msk.f32.gmra.mrb[42].mxu1 %vm236_vm4, %v3592_v52  ;;  %v3623_v51 = vld [vmem:[%s5384_s25 + $0x388] sm:$0xff] }
  0x6c   : > { %4337 = vmatprep.mubr.msk.f32.mxu0 %vm5322_vm1, %v7312_v6  ;;  %4528 = vmatprep.mubr.msk.f32.mxu1 %vm5322_vm1, %v7312_v6  ;;  %v228_v52 = vld [vmem:[%s5384_s25 + $0x1a8] sm:$0xff] }
  0x6f   : > { %4338 = vmatmul.mubr.msk.f32.gmra.mrb[44].mxu0 %vm236_vm4, %v197_v53  ;;  %4529 = vmatmul.mubr.msk.f32.gmra.mrb[44].mxu1 %vm236_vm4, %v3593_v54  ;;  %v3624_v53 = vld [vmem:[%s5384_s25 + $0x390] sm:$0xff] }
  0x70   : > { %4340 = vmatprep.mubr.msk.f32.mxu0 %vm5322_vm1, %v7312_v6  ;;  %4531 = vmatprep.mubr.msk.f32.mxu1 %vm5322_vm1, %v7312_v6 }
  0x73   : > { %4341 = vmatmul.mubr.msk.f32.gmra.mrb[46].mxu0 %vm236_vm4, %v198_v55  ;;  %4532 = vmatmul.mubr.msk.f32.gmra.mrb[46].mxu1 %vm236_vm4, %v3594_v56 }
  0x74   : > { %4343 = vmatprep.mubr.msk.f32.mxu0 %vm5322_vm1, %v7312_v6  ;;  %4534 = vmatprep.mubr.msk.f32.mxu1 %vm5322_vm1, %v7312_v6 }
  0x77   : > { %4344 = vmatmul.mubr.msk.f32.gmra.mrb[48].mxu0 %vm236_vm4, %v199_v57  ;;  %4535 = vmatmul.mubr.msk.f32.gmra.mrb[48].mxu1 %vm236_vm4, %v3595_v58 }
  0x78   : > { %4346 = vmatprep.mubr.msk.f32.mxu0 %vm5322_vm1, %v7312_v6  ;;  %4537 = vmatprep.mubr.msk.f32.mxu1 %vm5322_vm1, %v7312_v6 }
  0x7b   : > { %4347 = vmatmul.mubr.msk.f32.gmra.mrb[50].mxu0 %vm236_vm4, %v200_v59  ;;  %4538 = vmatmul.mubr.msk.f32.gmra.mrb[50].mxu1 %vm236_vm4, %v3596_v60  ;;  %v229_v59 = vld [vmem:[%s5384_s25 + $0x1b0] sm:$0xff]  ;;  %v3625_v60 = vld [vmem:[%s5384_s25 + $0x398] sm:$0xff] }
  0x7c   : > { %4349 = vmatprep.mubr.msk.f32.mxu0 %vm5322_vm1, %v7312_v6  ;;  %4540 = vmatprep.mubr.msk.f32.mxu1 %vm5322_vm1, %v7312_v6 }
  0x7f   : > { %4350 = vmatmul.mubr.msk.f32.gmra.mrb[52].mxu0 %vm236_vm4, %v201_v61  ;;  %4541 = vmatmul.mubr.msk.f32.gmra.mrb[52].mxu1 %vm236_vm4, %v3597_v62 }
  0x80   : > { %4352 = vmatprep.mubr.msk.f32.mxu0 %vm5322_vm1, %v7312_v6  ;;  %4543 = vmatprep.mubr.msk.f32.mxu1 %vm5322_vm1, %v7312_v6 }
  0x83   : > { %4353 = vmatmul.mubr.msk.f32.gmra.mrb[54].mxu0 %vm236_vm4, %v202_v63  ;;  %4544 = vmatmul.mubr.msk.f32.gmra.mrb[54].mxu1 %vm236_vm4, %v3598_v0 }
  0x84   : > { %4355 = vmatprep.mubr.msk.f32.mxu0 %vm5322_vm1, %v7312_v6  ;;  %4546 = vmatprep.mubr.msk.f32.mxu1 %vm5322_vm1, %v7312_v6 }
  0x87   : > { %4356 = vmatmul.mubr.msk.f32.gmra.mrb[56].mxu0 %vm236_vm4, %v203_v1  ;;  %4547 = vmatmul.mubr.msk.f32.gmra.mrb[56].mxu1 %vm236_vm4, %v3599_v2  ;;  %v230_v2 = vld [vmem:[%s5384_s25 + $0x1b8] sm:$0xff] }
  0x88   : > { %4358 = vmatprep.mubr.msk.f32.mxu0 %vm5322_vm1, %v7312_v6  ;;  %4549 = vmatprep.mubr.msk.f32.mxu1 %vm5322_vm1, %v7312_v6 }
  0x8b   : > { %4359 = vmatmul.mubr.msk.f32.gmra.mrb[58].mxu0 %vm236_vm4, %v204_v3  ;;  %4550 = vmatmul.mubr.msk.f32.gmra.mrb[58].mxu1 %vm236_vm4, %v3600_v4  ;;  %v3626_v3 = vld [vmem:[%s5384_s25 + $0x3a0] sm:$0xff] }
  0x8c   : > { %4361 = vmatprep.mubr.msk.f32.mxu0 %vm5322_vm1, %v7312_v6  ;;  %4552 = vmatprep.mubr.msk.f32.mxu1 %vm5322_vm1, %v7312_v6 }
  0x8f   : > { %4362 = vmatmul.mubr.msk.f32.gmra.mrb[60].mxu0 %vm236_vm4, %v205_v5  ;;  %4553 = vmatmul.mubr.msk.f32.gmra.mrb[60].mxu1 %vm236_vm4, %v3601_v7 }
  0x90   : > { %4364 = vmatprep.mubr.msk.f32.mxu0 %vm5322_vm1, %v7312_v6  ;;  %4555 = vmatprep.mubr.msk.f32.mxu1 %vm5322_vm1, %v7312_v6 }
  0x93   : > { %4365 = vmatmul.mubr.msk.f32.gmra.mrb[62].mxu0 %vm236_vm4, %v206_v8  ;;  %4556 = vmatmul.mubr.msk.f32.gmra.mrb[62].mxu1 %vm236_vm4, %v3602_v9 }
  0x94   : > { %4367 = vmatprep.mubr.msk.f32.mxu0 %vm5322_vm1, %v7312_v6  ;;  %4558 = vmatprep.mubr.msk.f32.mxu1 %vm5322_vm1, %v7312_v6 }
  0x97   : > { %4368 = vmatmul.mubr.msk.f32.gmra.mrb[64].mxu0 %vm236_vm4, %v207_v10  ;;  %4559 = vmatmul.mubr.msk.f32.gmra.mrb[64].mxu1 %vm236_vm4, %v3603_v11  ;;  %v231_v10 = vld [vmem:[%s5384_s25 + $0x1c0] sm:$0xff]  ;;  %v3627_v11 = vld [vmem:[%s5384_s25 + $0x3a8] sm:$0xff] }
  0x98   : > { %4370 = vmatprep.mubr.msk.f32.mxu0 %vm5322_vm1, %v7312_v6  ;;  %4561 = vmatprep.mubr.msk.f32.mxu1 %vm5322_vm1, %v7312_v6 }
  0x9b   : > { %4371 = vmatmul.mubr.msk.f32.gmra.mrb[66].mxu0 %vm236_vm4, %v208_v12  ;;  %4562 = vmatmul.mubr.msk.f32.gmra.mrb[66].mxu1 %vm236_vm4, %v3604_v13 }
  0x9c   : > { %4373 = vmatprep.mubr.msk.f32.mxu0 %vm5322_vm1, %v7312_v6  ;;  %4564 = vmatprep.mubr.msk.f32.mxu1 %vm5322_vm1, %v7312_v6 }
  0x9f   : > { %4374 = vmatmul.mubr.msk.f32.gmra.mrb[68].mxu0 %vm236_vm4, %v209_v14  ;;  %4565 = vmatmul.mubr.msk.f32.gmra.mrb[68].mxu1 %vm236_vm4, %v3605_v15 }
  0xa0   : > { %4376 = vmatprep.mubr.msk.f32.mxu0 %vm5322_vm1, %v7312_v6  ;;  %4567 = vmatprep.mubr.msk.f32.mxu1 %vm5322_vm1, %v7312_v6 }
  0xa3   : > { %4377 = vmatmul.mubr.msk.f32.gmra.mrb[70].mxu0 %vm236_vm4, %v210_v16  ;;  %4568 = vmatmul.mubr.msk.f32.gmra.mrb[70].mxu1 %vm236_vm4, %v3606_v17  ;;  %v232_v17 = vld [vmem:[%s5384_s25 + $0x1c8] sm:$0xff] }
  0xa4   : > { %4379 = vmatprep.mubr.msk.f32.mxu0 %vm5322_vm1, %v7312_v6  ;;  %4570 = vmatprep.mubr.msk.f32.mxu1 %vm5322_vm1, %v7312_v6 }
  0xa7   : > { %4380 = vmatmul.mubr.msk.f32.gmra.mrb[72].mxu0 %vm236_vm4, %v211_v18  ;;  %4571 = vmatmul.mubr.msk.f32.gmra.mrb[72].mxu1 %vm236_vm4, %v3607_v19  ;;  %v3628_v18 = vld [vmem:[%s5384_s25 + $0x3b0] sm:$0xff] }
  0xa8   : > { %4382 = vmatprep.mubr.msk.f32.mxu0 %vm5322_vm1, %v7312_v6  ;;  %4573 = vmatprep.mubr.msk.f32.mxu1 %vm5322_vm1, %v7312_v6 }
  0xab   : > { %4383 = vmatmul.mubr.msk.f32.gmra.mrb[74].mxu0 %vm236_vm4, %v212_v20  ;;  %4574 = vmatmul.mubr.msk.f32.gmra.mrb[74].mxu1 %vm236_vm4, %v3608_v21 }
  0xac   : > { %4385 = vmatprep.mubr.msk.f32.mxu0 %vm5322_vm1, %v7312_v6  ;;  %4576 = vmatprep.mubr.msk.f32.mxu1 %vm5322_vm1, %v7312_v6 }
  0xaf   : > { %4386 = vmatmul.mubr.msk.f32.gmra.mrb[76].mxu0 %vm236_vm4, %v213_v22  ;;  %4577 = vmatmul.mubr.msk.f32.gmra.mrb[76].mxu1 %vm236_vm4, %v3609_v23 }
  0xb0   : > { %4388 = vmatprep.mubr.msk.f32.mxu0 %vm5322_vm1, %v7312_v6  ;;  %4579 = vmatprep.mubr.msk.f32.mxu1 %vm5322_vm1, %v7312_v6 }
  0xb3   : > { %4389 = vmatmul.mubr.msk.f32.gmra.mrb[78].mxu0 %vm236_vm4, %v214_v24  ;;  %4580 = vmatmul.mubr.msk.f32.gmra.mrb[78].mxu1 %vm236_vm4, %v3610_v25  ;;  %v233_v24 = vld [vmem:[%s5384_s25 + $0x1d0] sm:$0xff]  ;;  %v3629_v25 = vld [vmem:[%s5384_s25 + $0x3b8] sm:$0xff] }
  0xb4   : > { %4391 = vmatprep.mubr.msk.f32.mxu0 %vm5322_vm1, %v7312_v6  ;;  %4582 = vmatprep.mubr.msk.f32.mxu1 %vm5322_vm1, %v7312_v6 }
  0xb7   : > { %4392 = vmatmul.mubr.msk.f32.gmra.mrb[80].mxu0 %vm236_vm4, %v215_v26  ;;  %4583 = vmatmul.mubr.msk.f32.gmra.mrb[80].mxu1 %vm236_vm4, %v3611_v27 }
  0xb8   : > { %4394 = vmatprep.mubr.msk.f32.mxu0 %vm5322_vm1, %v7312_v6  ;;  %4585 = vmatprep.mubr.msk.f32.mxu1 %vm5322_vm1, %v7312_v6 }
  0xbb   : > { %4395 = vmatmul.mubr.msk.f32.gmra.mrb[82].mxu0 %vm236_vm4, %v216_v28  ;;  %4586 = vmatmul.mubr.msk.f32.gmra.mrb[82].mxu1 %vm236_vm4, %v3612_v29 }
  0xbc   : > { %4397 = vmatprep.mubr.msk.f32.mxu0 %vm5322_vm1, %v7312_v6  ;;  %4588 = vmatprep.mubr.msk.f32.mxu1 %vm5322_vm1, %v7312_v6 }
  0xbf   : > { %4398 = vmatmul.mubr.msk.f32.gmra.mrb[84].mxu0 %vm236_vm4, %v217_v30  ;;  %4589 = vmatmul.mubr.msk.f32.gmra.mrb[84].mxu1 %vm236_vm4, %v3613_v31  ;;  %v234_v31 = vld [vmem:[%s5384_s25 + $0x1d8] sm:$0xff] }
  0xc0   : > { %4400 = vmatprep.mubr.msk.f32.mxu0 %vm5322_vm1, %v7312_v6  ;;  %4591 = vmatprep.mubr.msk.f32.mxu1 %vm5322_vm1, %v7312_v6 }
  0xc3   : > { %4401 = vmatmul.mubr.msk.f32.gmra.mrb[86].mxu0 %vm236_vm4, %v218_v32  ;;  %4592 = vmatmul.mubr.msk.f32.gmra.mrb[86].mxu1 %vm236_vm4, %v3614_v33  ;;  %v3630_v32 = vld [vmem:[%s5384_s25 + $0x3c0] sm:$0xff] }
  0xc4   : > { %4403 = vmatprep.mubr.msk.f32.mxu0 %vm5322_vm1, %v7312_v6  ;;  %4594 = vmatprep.mubr.msk.f32.mxu1 %vm5322_vm1, %v7312_v6 }
  0xc7   : > { %4404 = vmatmul.mubr.msk.f32.gmra.mrb[88].mxu0 %vm236_vm4, %v219_v34  ;;  %4595 = vmatmul.mubr.msk.f32.gmra.mrb[88].mxu1 %vm236_vm4, %v3615_v35 }
  0xc8   : > { %4406 = vmatprep.mubr.msk.f32.mxu0 %vm5322_vm1, %v7312_v6  ;;  %4597 = vmatprep.mubr.msk.f32.mxu1 %vm5322_vm1, %v7312_v6 }
  0xcb   : > { %4407 = vmatmul.mubr.msk.f32.gmra.mrb[90].mxu0 %vm236_vm4, %v220_v36  ;;  %4598 = vmatmul.mubr.msk.f32.gmra.mrb[90].mxu1 %vm236_vm4, %v3616_v37 }
  0xcc   : > { %4409 = vmatprep.mubr.msk.f32.mxu0 %vm5322_vm1, %v7312_v6  ;;  %4600 = vmatprep.mubr.msk.f32.mxu1 %vm5322_vm1, %v7312_v6 }
  0xcf   : > { %4410 = vmatmul.mubr.msk.f32.gmra.mrb[92].mxu0 %vm236_vm4, %v221_v38  ;;  %4601 = vmatmul.mubr.msk.f32.gmra.mrb[92].mxu1 %vm236_vm4, %v3617_v39  ;;  %v235_v38 = vld [vmem:[%s5384_s25 + $0x1e0] sm:$0xf]  ;;  %v3631_v39 = vld [vmem:[%s5384_s25 + $0x3c8] sm:$0xf] }
  0xd0   : > { %4412 = vmatprep.mubr.msk.f32.mxu0 %vm5322_vm1, %v7312_v6  ;;  %4603 = vmatprep.mubr.msk.f32.mxu1 %vm5322_vm1, %v7312_v6 }
  0xd3   : > { %4413 = vmatmul.mubr.msk.f32.gmra.mrb[94].mxu0 %vm236_vm4, %v222_v40  ;;  %4604 = vmatmul.mubr.msk.f32.gmra.mrb[94].mxu1 %vm236_vm4, %v3618_v41 }
  0xd4   : > { %4415 = vmatprep.mubr.msk.f32.mxu0 %vm5322_vm1, %v7312_v6  ;;  %4606 = vmatprep.mubr.msk.f32.mxu1 %vm5322_vm1, %v7312_v6 }
  0xd7   : > { %4416 = vmatmul.mubr.msk.f32.gmra.mrb[96].mxu0 %vm236_vm4, %v223_v42  ;;  %4607 = vmatmul.mubr.msk.f32.gmra.mrb[96].mxu1 %vm236_vm4, %v3619_v43 }
  0xd8   : > { %4418 = vmatprep.mubr.msk.f32.mxu0 %vm5322_vm1, %v7312_v6  ;;  %4609 = vmatprep.mubr.msk.f32.mxu1 %vm5322_vm1, %v7312_v6 }
  0xdb   : > { %4419 = vmatmul.mubr.msk.f32.gmra.mrb[98].mxu0 %vm236_vm4, %v224_v44  ;;  %4610 = vmatmul.mubr.msk.f32.gmra.mrb[98].mxu1 %vm236_vm4, %v3620_v45  ;;  %v3694_v45 = vld [vmem:[%s5384_s25 + $0x3d0] sm:$0xff] }
  0xdc   : > { %4421 = vmatprep.mubr.msk.f32.mxu0 %vm5322_vm1, %v7312_v6  ;;  %4612 = vmatprep.mubr.msk.f32.mxu1 %vm5322_vm1, %v7312_v6 }
  0xdf   : > { %4422 = vmatmul.mubr.msk.f32.gmra.mrb[100].mxu0 %vm236_vm4, %v225_v46  ;;  %4613 = vmatmul.mubr.msk.f32.gmra.mrb[100].mxu1 %vm236_vm4, %v3621_v47  ;;  %v3817_v46 = vld [vmem:[%s5384_s25 + $0x5b8] sm:$0xff] }
  0xe0   : > { %4424 = vmatprep.mubr.msk.f32.mxu0 %vm5322_vm1, %v7312_v6  ;;  %4615 = vmatprep.mubr.msk.f32.mxu1 %vm5322_vm1, %v7312_v6 }
  0xe3   : > { %4425 = vmatmul.mubr.msk.f32.gmra.mrb[102].mxu0 %vm236_vm4, %v226_v48  ;;  %4616 = vmatmul.mubr.msk.f32.gmra.mrb[102].mxu1 %vm236_vm4, %v3622_v49 }
  0xe4   : > { %4427 = vmatprep.mubr.msk.f32.mxu0 %vm5322_vm1, %v7312_v6  ;;  %4618 = vmatprep.mubr.msk.f32.mxu1 %vm5322_vm1, %v7312_v6 }
  0xe7   : > { %4428 = vmatmul.mubr.msk.f32.gmra.mrb[104].mxu0 %vm236_vm4, %v227_v50  ;;  %4619 = vmatmul.mubr.msk.f32.gmra.mrb[104].mxu1 %vm236_vm4, %v3623_v51 }
  0xe8   : > { %4430 = vmatprep.mubr.msk.f32.mxu0 %vm5322_vm1, %v7312_v6  ;;  %4621 = vmatprep.mubr.msk.f32.mxu1 %vm5322_vm1, %v7312_v6 }
  0xea   : > { %v5816_v54 = vpop.f32.mrb[0].mxu0  ;;  %v5818_v55 = vpop.f32.mrb[0].mxu1 }
  0xeb   : > { %v4273_v57 = vpop.f32.mrb[1].mxu0  ;;  %4431 = vmatmul.mubr.msk.f32.gmra.mrb[106].mxu0 %vm236_vm4, %v228_v52  ;;  %v4464_v58 = vpop.f32.mrb[1].mxu1  ;;  %4622 = vmatmul.mubr.msk.f32.gmra.mrb[106].mxu1 %vm236_vm4, %v3624_v53  ;;  %v3695_v52 = vld [vmem:[%s5384_s25 + $0x3d8] sm:$0xff]  ;;  %v3818_v53 = vld [vmem:[%s5384_s25 + $0x5c0] sm:$0xff] }
  0xec   : > { %4433 = vmatprep.mubr.msk.f32.mxu0 %vm5322_vm1, %v7312_v6  ;;  %4624 = vmatprep.mubr.msk.f32.mxu1 %vm5322_vm1, %v7312_v6 }
  0xee   : > { %v5830_v61 = vpop.f32.mrb[2].mxu0  ;;  %v5832_v62 = vpop.f32.mrb[2].mxu1 }
  0xef   : > { %v4276_v0 = vpop.f32.mrb[3].mxu0  ;;  %4434 = vmatmul.mubr.msk.f32.gmra.mrb[108].mxu0 %vm236_vm4, %v229_v59  ;;  %v4467_v1 = vpop.f32.mrb[3].mxu1  ;;  %4625 = vmatmul.mubr.msk.f32.gmra.mrb[108].mxu1 %vm236_vm4, %v3625_v60 }
  0xf0   : > { %4436 = vmatprep.mubr.msk.f32.mxu0 %vm5322_vm1, %v7312_v6  ;;  %4627 = vmatprep.mubr.msk.f32.mxu1 %vm5322_vm1, %v7312_v6  ;;  %v3696_v1 = vld [vmem:[%s5384_s25 + $0x3e0] sm:$0xff] }
  0xf2   : > { %v5844_v4 = vpop.f32.mrb[4].mxu0  ;;  %v5846_v5 = vpop.f32.mrb[4].mxu1 }
  0xf3   : > { %v4279_v8 = vpop.f32.mrb[5].mxu0  ;;  %4437 = vmatmul.mubr.msk.f32.gmra.mrb[110].mxu0 %vm236_vm4, %v230_v2  ;;  %v4470_v9 = vpop.f32.mrb[5].mxu1  ;;  %4628 = vmatmul.mubr.msk.f32.gmra.mrb[110].mxu1 %vm236_vm4, %v3626_v3  ;;  %v3819_v2 = vld [vmem:[%s5384_s25 + $0x5c8] sm:$0xff] }
  0xf4   : > { %4439 = vmatprep.mubr.msk.f32.mxu0 %vm5322_vm1, %v7312_v6  ;;  %4630 = vmatprep.mubr.msk.f32.mxu1 %vm5322_vm1, %v7312_v6 }
  0xf6   : > { %v5858_v12 = vpop.f32.mrb[6].mxu0  ;;  %v5860_v13 = vpop.f32.mrb[6].mxu1 }
  0xf7   : > { %v4282_v15 = vpop.f32.mrb[7].mxu0  ;;  %4440 = vmatmul.mubr.msk.f32.gmra.mrb[112].mxu0 %vm236_vm4, %v231_v10  ;;  %v4473_v16 = vpop.f32.mrb[7].mxu1  ;;  %4631 = vmatmul.mubr.msk.f32.gmra.mrb[112].mxu1 %vm236_vm4, %v3627_v11 }
  0xf8   : > { %4442 = vmatprep.mubr.msk.f32.mxu0 %vm5322_vm1, %v7312_v6  ;;  %4633 = vmatprep.mubr.msk.f32.mxu1 %vm5322_vm1, %v7312_v6  ;;  %v3697_v15 = vld [vmem:[%s5384_s25 + $0x3e8] sm:$0xff]  ;;  %v3820_v16 = vld [vmem:[%s5384_s25 + $0x5d0] sm:$0xff] }
  0xfa   : > { %v5872_v19 = vpop.f32.mrb[8].mxu0  ;;  %v5874_v20 = vpop.f32.mrb[8].mxu1 }
  0xfb   : > { %v4285_v22 = vpop.f32.mrb[9].mxu0  ;;  %4443 = vmatmul.mubr.msk.f32.gmra.mrb[114].mxu0 %vm236_vm4, %v232_v17  ;;  %v4476_v23 = vpop.f32.mrb[9].mxu1  ;;  %4634 = vmatmul.mubr.msk.f32.gmra.mrb[114].mxu1 %vm236_vm4, %v3628_v18 }
  0xfc   : > { %4445 = vmatprep.mubr.msk.f32.mxu0 %vm5322_vm1, %v7312_v6  ;;  %4636 = vmatprep.mubr.msk.f32.mxu1 %vm5322_vm1, %v7312_v6 }
  0xfe   : > { %v5886_v26 = vpop.f32.mrb[10].mxu0  ;;  %v5888_v27 = vpop.f32.mrb[10].mxu1 }
  0xff   : > { %v4288_v29 = vpop.f32.mrb[11].mxu0  ;;  %4446 = vmatmul.mubr.msk.f32.gmra.mrb[116].mxu0 %vm236_vm4, %v233_v24  ;;  %v4479_v30 = vpop.f32.mrb[11].mxu1  ;;  %4637 = vmatmul.mubr.msk.f32.gmra.mrb[116].mxu1 %vm236_vm4, %v3629_v25  ;;  %v3698_v25 = vld [vmem:[%s5384_s25 + $0x3f0] sm:$0xff] }
 0x100   : > { %4448 = vmatprep.mubr.msk.f32.mxu0 %vm5322_vm1, %v7312_v6  ;;  %4639 = vmatprep.mubr.msk.f32.mxu1 %vm5322_vm1, %v7312_v6  ;;  %v3821_v29 = vld [vmem:[%s5384_s25 + $0x5d8] sm:$0xff] }
 0x102   : > { %v5900_v33 = vpop.f32.mrb[12].mxu0  ;;  %v5902_v34 = vpop.f32.mrb[12].mxu1 }
 0x103   : > { %v4291_v36 = vpop.f32.mrb[13].mxu0  ;;  %4449 = vmatmul.mubr.msk.f32.gmra.mrb[118].mxu0 %vm236_vm4, %v234_v31  ;;  %v4482_v37 = vpop.f32.mrb[13].mxu1  ;;  %4640 = vmatmul.mubr.msk.f32.gmra.mrb[118].mxu1 %vm236_vm4, %v3630_v32 }
 0x104   : > { %4451 = vmatprep.mubr.msk.f32.mxu0 %vm5322_vm1, %v7312_v6  ;;  %4642 = vmatprep.mubr.msk.f32.mxu1 %vm5322_vm1, %v7312_v6 }
 0x106   : > { %v5914_v40 = vpop.f32.mrb[14].mxu0  ;;  %v5916_v41 = vpop.f32.mrb[14].mxu1 }
 0x107   : > { %v4294_v43 = vpop.f32.mrb[15].mxu0  ;;  %4452 = vmatmul.mubr.msk.f32.gmra.mrb[120].mxu0 %vm236_vm4, %v235_v38  ;;  %v4485_v44 = vpop.f32.mrb[15].mxu1  ;;  %4643 = vmatmul.mubr.msk.f32.gmra.mrb[120].mxu1 %vm236_vm4, %v3631_v39  ;;  %v3699_v38 = vld [vmem:[%s5384_s25 + $0x3f8] sm:$0xff]  ;;  %v3822_v39 = vld [vmem:[%s5384_s25 + $0x5e0] sm:$0xff] }
 0x108   : > { %4653 = vmatprep.mubr.msk.f32.mxu0 %vm5322_vm1, %v7312_v6  ;;  %4844 = vmatprep.mubr.msk.f32.mxu1 %vm5322_vm1, %v7312_v6 }
 0x10a   : > { %v5928_v47 = vpop.f32.mrb[16].mxu0  ;;  %v5930_v48 = vpop.f32.mrb[16].mxu1 }
 0x10b   : > { %v4297_v50 = vpop.f32.mrb[17].mxu0  ;;  %v4488_v51 = vpop.f32.mrb[17].mxu1  ;;  %4654 = vmatmul.mubr.msk.f32.vlgmr.msra.gmra.mrb[122].mxu0 %vm236_vm4, %v3694_v45  ;;  %4845 = vmatmul.mubr.msk.f32.vlgmr.msra.gmra.mrb[122].mxu1 %vm236_vm4, %v3817_v46 }
 0x10c   : > { %4656 = vmatprep.mubr.msk.f32.mxu0 %vm5322_vm1, %v7312_v6  ;;  %4847 = vmatprep.mubr.msk.f32.mxu1 %vm5322_vm1, %v7312_v6  ;;  %v3700_v51 = vld [vmem:[%s5384_s25 + $0x400] sm:$0xff] }
 0x10e   : > { %v5942_v57 = vpop.f32.mrb[18].mxu0  ;;  %v5944_v58 = vpop.f32.mrb[18].mxu1 }
 0x10f   : > { %v4300_v60 = vpop.f32.mrb[19].mxu0  ;;  %v4491_v0 = vpop.f32.mrb[19].mxu1  ;;  %4657 = vmatmul.mubr.msk.f32.gmra.mrb[124].mxu0 %vm236_vm4, %v3695_v52  ;;  %4848 = vmatmul.mubr.msk.f32.gmra.mrb[124].mxu1 %vm236_vm4, %v3818_v53  ;;  %v3823_v52 = vld [vmem:[%s5384_s25 + $0x5e8] sm:$0xff] }
 0x110   : > { %4659 = vmatprep.mubr.msk.f32.mxu0 %vm5322_vm1, %v7312_v6  ;;  %4850 = vmatprep.mubr.msk.f32.mxu1 %vm5322_vm1, %v7312_v6 }
 0x112   : > { %v5956_v3 = vpop.f32.mrb[20].mxu0  ;;  %v5958_v8 = vpop.f32.mrb[20].mxu1 }
 0x113   : > { %v4303_v10 = vpop.f32.mrb[21].mxu0  ;;  %v4494_v11 = vpop.f32.mrb[21].mxu1  ;;  %4660 = vmatmul.mubr.msk.f32.gmra.mrb[126].mxu0 %vm236_vm4, %v3696_v1  ;;  %4851 = vmatmul.mubr.msk.f32.gmra.mrb[126].mxu1 %vm236_vm4, %v3819_v2 }
 0x114   : > { %4662 = vmatprep.mubr.msk.f32.mxu0 %vm5322_vm1, %v7312_v6  ;;  %4853 = vmatprep.mubr.msk.f32.mxu1 %vm5322_vm1, %v7312_v6  ;;  %v3701_v10 = vld [vmem:[%s5384_s25 + $0x408] sm:$0xff]  ;;  %v3824_v11 = vld [vmem:[%s5384_s25 + $0x5f0] sm:$0xff] }
 0x116   : > { %v5970_v17 = vpop.f32.mrb[22].mxu0  ;;  %v5972_v18 = vpop.f32.mrb[22].mxu1 }
 0x117   : > { %v4306_v23 = vpop.f32.mrb[23].mxu0  ;;  %v4497_v24 = vpop.f32.mrb[23].mxu1  ;;  %4663 = vmatmul.mubr.msk.f32.gmra.mrb[128].mxu0 %vm236_vm4, %v3697_v15  ;;  %4854 = vmatmul.mubr.msk.f32.gmra.mrb[128].mxu1 %vm236_vm4, %v3820_v16 }
 0x118   : > { %4665 = vmatprep.mubr.msk.f32.mxu0 %vm5322_vm1, %v7312_v6  ;;  %4856 = vmatprep.mubr.msk.f32.mxu1 %vm5322_vm1, %v7312_v6 }
 0x11a   : > { %v5984_v30 = vpop.f32.mrb[24].mxu0  ;;  %v5986_v31 = vpop.f32.mrb[24].mxu1 }
 0x11b   : > { %v4309_v36 = vpop.f32.mrb[25].mxu0  ;;  %v4500_v37 = vpop.f32.mrb[25].mxu1  ;;  %4666 = vmatmul.mubr.msk.f32.gmra.mrb[130].mxu0 %vm236_vm4, %v3698_v25  ;;  %4857 = vmatmul.mubr.msk.f32.gmra.mrb[130].mxu1 %vm236_vm4, %v3821_v29  ;;  %v3702_v29 = vld [vmem:[%s5384_s25 + $0x410] sm:$0xff] }
 0x11c   : > { %4668 = vmatprep.mubr.msk.f32.mxu0 %vm5322_vm1, %v7312_v6  ;;  %4859 = vmatprep.mubr.msk.f32.mxu1 %vm5322_vm1, %v7312_v6  ;;  %v3825_v36 = vld [vmem:[%s5384_s25 + $0x5f8] sm:$0xff] }
 0x11e   : > { %v5998_v43 = vpop.f32.mrb[26].mxu0  ;;  %v6000_v44 = vpop.f32.mrb[26].mxu1 }
 0x11f   : > { %v4312_v46 = vpop.f32.mrb[27].mxu0  ;;  %v4503_v50 = vpop.f32.mrb[27].mxu1  ;;  %4669 = vmatmul.mubr.msk.f32.gmra.mrb[132].mxu0 %vm236_vm4, %v3699_v38  ;;  %4860 = vmatmul.mubr.msk.f32.gmra.mrb[132].mxu1 %vm236_vm4, %v3822_v39 }
 0x120   : > { %4671 = vmatprep.mubr.msk.f32.mxu0 %vm5322_vm1, %v7312_v6  ;;  %4862 = vmatprep.mubr.msk.f32.mxu1 %vm5322_vm1, %v7312_v6 }
 0x122   : > { %v6012_v53 = vpop.f32.mrb[28].mxu0  ;;  %v6014_v60 = vpop.f32.mrb[28].mxu1 }
 0x123   : > { %v4315_v1 = vpop.f32.mrb[29].mxu0  ;;  %v4506_v2 = vpop.f32.mrb[29].mxu1  ;;  %4672 = vmatmul.mubr.msk.f32.gmra.mrb[134].mxu0 %vm236_vm4, %v3700_v51  ;;  %4863 = vmatmul.mubr.msk.f32.gmra.mrb[134].mxu1 %vm236_vm4, %v3823_v52  ;;  %v3703_v51 = vld [vmem:[%s5384_s25 + $0x418] sm:$0xff]  ;;  %v3826_v52 = vld [vmem:[%s5384_s25 + $0x600] sm:$0xff] }
 0x124   : > { %4674 = vmatprep.mubr.msk.f32.mxu0 %vm5322_vm1, %v7312_v6  ;;  %4865 = vmatprep.mubr.msk.f32.mxu1 %vm5322_vm1, %v7312_v6 }
 0x126   : > { %v6026_v15 = vpop.f32.mrb[30].mxu0  ;;  %v6028_v16 = vpop.f32.mrb[30].mxu1 }
 0x127   : > { %v4318_v24 = vpop.f32.mrb[31].mxu0  ;;  %v4509_v25 = vpop.f32.mrb[31].mxu1  ;;  %4675 = vmatmul.mubr.msk.f32.gmra.mrb[136].mxu0 %vm236_vm4, %v3701_v10  ;;  %4866 = vmatmul.mubr.msk.f32.gmra.mrb[136].mxu1 %vm236_vm4, %v3824_v11 }
 0x128   : > { %4677 = vmatprep.mubr.msk.f32.mxu0 %vm5322_vm1, %v7312_v6  ;;  %4868 = vmatprep.mubr.msk.f32.mxu1 %vm5322_vm1, %v7312_v6  ;;  %v3704_v25 = vld [vmem:[%s5384_s25 + $0x420] sm:$0xff] }
 0x12a   : > { %v6040_v37 = vpop.f32.mrb[32].mxu0  ;;  %v6042_v38 = vpop.f32.mrb[32].mxu1 }
 0x12b   : > { %v4321_v46 = vpop.f32.mrb[33].mxu0  ;;  %v4512_v50 = vpop.f32.mrb[33].mxu1  ;;  %4678 = vmatmul.mubr.msk.f32.gmra.mrb[138].mxu0 %vm236_vm4, %v3702_v29  ;;  %4869 = vmatmul.mubr.msk.f32.gmra.mrb[138].mxu1 %vm236_vm4, %v3825_v36  ;;  %v3827_v29 = vld [vmem:[%s5384_s25 + $0x608] sm:$0xff] }
 0x12c   : > { %4680 = vmatprep.mubr.msk.f32.mxu0 %vm5322_vm1, %v7312_v6  ;;  %4871 = vmatprep.mubr.msk.f32.mxu1 %vm5322_vm1, %v7312_v6  ;;  %v3829_v50 = vld [vmem:[%s5384_s25 + $0x618] sm:$0xff] }
 0x12e   : > { %v6054_v1 = vpop.f32.mrb[34].mxu0  ;;  %v6056_v2 = vpop.f32.mrb[34].mxu1 }
 0x12f   : > { %v4324_v11 = vpop.f32.mrb[35].mxu0  ;;  %v4515_v24 = vpop.f32.mrb[35].mxu1  ;;  %4681 = vmatmul.mubr.msk.f32.gmra.mrb[140].mxu0 %vm236_vm4, %v3703_v51  ;;  %4872 = vmatmul.mubr.msk.f32.gmra.mrb[140].mxu1 %vm236_vm4, %v3826_v52  ;;  %v3705_v52 = vld [vmem:[%s5384_s25 + $0x428] sm:$0xff] }
 0x130   : > { %4683 = vmatprep.mubr.msk.f32.mxu0 %vm5322_vm1, %v7312_v6  ;;  %4874 = vmatprep.mubr.msk.f32.mxu1 %vm5322_vm1, %v7312_v6  ;;  %v3828_v24 = vld [vmem:[%s5384_s25 + $0x610] sm:$0xff] }
 0x132   : > { %v6068_v36 = vpop.f32.mrb[36].mxu0  ;;  %v6070_v46 = vpop.f32.mrb[36].mxu1 }
 0x133   : > { %v4327_v11 = vpop.f32.mrb[37].mxu0  ;;  %v4518_v51 = vpop.f32.mrb[37].mxu1  ;;  %4684 = vmatmul.mubr.msk.f32.gmra.mrb[142].mxu0 %vm236_vm4, %v3704_v25  ;;  %4875 = vmatmul.mubr.msk.f32.gmra.mrb[142].mxu1 %vm236_vm4, %v3827_v29  ;;  %v3706_v29 = vld [vmem:[%s5384_s25 + $0x430] sm:$0xff] }
 0x134   : > { %4686 = vmatprep.mubr.msk.f32.mxu0 %vm5322_vm1, %v7312_v6  ;;  %4877 = vmatprep.mubr.msk.f32.mxu1 %vm5322_vm1, %v7312_v6  ;;  %v3830_v11 = vld [vmem:[%s5384_s25 + $0x620] sm:$0xff] }
 0x136   : > { %v6082_v10 = vpop.f32.mrb[38].mxu0  ;;  %v6084_v39 = vpop.f32.mrb[38].mxu1 }
 0x137   : > { %v4330_v51 = vpop.f32.mrb[39].mxu0  ;;  %v4521_v25 = vpop.f32.mrb[39].mxu1  ;;  %4687 = vmatmul.mubr.msk.f32.gmra.mrb[144].mxu0 %vm236_vm4, %v3705_v52  ;;  %4878 = vmatmul.mubr.msk.f32.gmra.mrb[144].mxu1 %vm236_vm4, %v3828_v24  ;;  %v3707_v24 = vld [vmem:[%s5384_s25 + $0x438] sm:$0xff] }
 0x138   : > { %4689 = vmatprep.mubr.msk.f32.mxu0 %vm5322_vm1, %v7312_v6  ;;  %4880 = vmatprep.mubr.msk.f32.mxu1 %vm5322_vm1, %v7312_v6  ;;  %v3831_v51 = vld [vmem:[%s5384_s25 + $0x628] sm:$0xff] }
 0x13a   : > { %v6096_v23 = vpop.f32.mrb[40].mxu0  ;;  %v6098_v0 = vpop.f32.mrb[40].mxu1 }
 0x13b   : > { %v4333_v25 = vpop.f32.mrb[41].mxu0  ;;  %v4524_v52 = vpop.f32.mrb[41].mxu1  ;;  %4690 = vmatmul.mubr.msk.f32.gmra.mrb[146].mxu0 %vm236_vm4, %v3706_v29  ;;  %4881 = vmatmul.mubr.msk.f32.gmra.mrb[146].mxu1 %vm236_vm4, %v3829_v50  ;;  %v3708_v50 = vld [vmem:[%s5384_s25 + $0x440] sm:$0xff] }
 0x13c   : > { %4692 = vmatprep.mubr.msk.f32.mxu0 %vm5322_vm1, %v7312_v6  ;;  %4883 = vmatprep.mubr.msk.f32.mxu1 %vm5322_vm1, %v7312_v6  ;;  %v3832_v25 = vld [vmem:[%s5384_s25 + $0x630] sm:$0xff] }
 0x13e   : > { %v6110_v45 = vpop.f32.mrb[42].mxu0  ;;  %v6112_v32 = vpop.f32.mrb[42].mxu1 }
 0x13f   : > { %v4336_v52 = vpop.f32.mrb[43].mxu0  ;;  %v4527_v29 = vpop.f32.mrb[43].mxu1  ;;  %4693 = vmatmul.mubr.msk.f32.gmra.mrb[148].mxu0 %vm236_vm4, %v3707_v24  ;;  %4884 = vmatmul.mubr.msk.f32.gmra.mrb[148].mxu1 %vm236_vm4, %v3830_v11  ;;  %v3709_v11 = vld [vmem:[%s5384_s25 + $0x448] sm:$0xff] }
 0x140   : > { %4695 = vmatprep.mubr.msk.f32.mxu0 %vm5322_vm1, %v7312_v6  ;;  %4886 = vmatprep.mubr.msk.f32.mxu1 %vm5322_vm1, %v7312_v6  ;;  %v3833_v52 = vld [vmem:[%s5384_s25 + $0x638] sm:$0xff] }
 0x142   : > { %v6124_v22 = vpop.f32.mrb[44].mxu0  ;;  %v6126_v9 = vpop.f32.mrb[44].mxu1 }
 0x143   : > { %v4339_v29 = vpop.f32.mrb[45].mxu0  ;;  %v4530_v24 = vpop.f32.mrb[45].mxu1  ;;  %4696 = vmatmul.mubr.msk.f32.gmra.mrb[150].mxu0 %vm236_vm4, %v3708_v50  ;;  %4887 = vmatmul.mubr.msk.f32.gmra.mrb[150].mxu1 %vm236_vm4, %v3831_v51  ;;  %v3710_v51 = vld [vmem:[%s5384_s25 + $0x450] sm:$0xff] }
 0x144   : > { %4698 = vmatprep.mubr.msk.f32.mxu0 %vm5322_vm1, %v7312_v6  ;;  %4889 = vmatprep.mubr.msk.f32.mxu1 %vm5322_vm1, %v7312_v6  ;;  %v3834_v29 = vld [vmem:[%s5384_s25 + $0x640] sm:$0xff] }
 0x146   : > { %v6138_v59 = vpop.f32.mrb[46].mxu0  ;;  %v6140_v49 = vpop.f32.mrb[46].mxu1 }
 0x147   : > { %7317 = vst [vmem:[#allocation2_spill] sm:$0xff] %v6138_v59  ;;  %7318 = vst [vmem:[#allocation3_spill] sm:$0xff] %v6140_v49  ;;  %v4342_v24 = vpop.f32.mrb[47].mxu0  ;;  %v4533_v50 = vpop.f32.mrb[47].mxu1  ;;  %4699 = vmatmul.mubr.msk.f32.gmra.mrb[152].mxu0 %vm236_vm4, %v3709_v11  ;;  %4890 = vmatmul.mubr.msk.f32.gmra.mrb[152].mxu1 %vm236_vm4, %v3832_v25  ;;  %v3711_v25 = vld [vmem:[%s5384_s25 + $0x458] sm:$0xff]  ;;  %v7394_v59 = vmov 0.0  }
 0x148   : > { %4701 = vmatprep.mubr.msk.f32.mxu0 %vm5322_vm1, %v7312_v6  ;;  %4892 = vmatprep.mubr.msk.f32.mxu1 %vm5322_vm1, %v7312_v6  ;;  %v3835_v24 = vld [vmem:[%s5384_s25 + $0x648] sm:$0xff] }
 0x14a   : > { %v6152_v42 = vpop.f32.mrb[48].mxu0  ;;  %v6154_v35 = vpop.f32.mrb[48].mxu1 }
 0x14b   : > { %7319 = vst [vmem:[#allocation4_spill] sm:$0xff] %v6152_v42  ;;  %7320 = vst [vmem:[#allocation5_spill] sm:$0xff] %v6154_v35  ;;  %v4345_v50 = vpop.f32.mrb[49].mxu0  ;;  %v4536_v11 = vpop.f32.mrb[49].mxu1  ;;  %4702 = vmatmul.mubr.msk.f32.gmra.mrb[154].mxu0 %vm236_vm4, %v3710_v51  ;;  %4893 = vmatmul.mubr.msk.f32.gmra.mrb[154].mxu1 %vm236_vm4, %v3833_v52  ;;  %v3712_v52 = vld [vmem:[%s5384_s25 + $0x460] sm:$0xff]  ;;  %v3871_v42 = vld [vmem:[%s5384_s25 + $0x768] sm:$0xff] }
 0x14c   : > { %4704 = vmatprep.mubr.msk.f32.mxu0 %vm5322_vm1, %v7312_v6  ;;  %4895 = vmatprep.mubr.msk.f32.mxu1 %vm5322_vm1, %v7312_v6  ;;  %v3836_v50 = vld [vmem:[%s5384_s25 + $0x650] sm:$0xff]  ;;  %v3748_v35 = vld [vmem:[%s5384_s25 + $0x580] sm:$0xff] }
 0x14e   : > { %v6166_v28 = vpop.f32.mrb[50].mxu0  ;;  %v6168_v21 = vpop.f32.mrb[50].mxu1 }
 0x14f   : > { %7321 = vst [vmem:[#allocation6_spill] sm:$0xff] %v6166_v28  ;;  %7322 = vst [vmem:[#allocation7_spill] sm:$0xff] %v6168_v21  ;;  %v4348_v11 = vpop.f32.mrb[51].mxu0  ;;  %v4539_v51 = vpop.f32.mrb[51].mxu1  ;;  %4705 = vmatmul.mubr.msk.f32.gmra.mrb[156].mxu0 %vm236_vm4, %v3711_v25  ;;  %4896 = vmatmul.mubr.msk.f32.gmra.mrb[156].mxu1 %vm236_vm4, %v3834_v29  ;;  %v3713_v29 = vld [vmem:[%s5384_s25 + $0x468] sm:$0xff] }
 0x150   : > { %4707 = vmatprep.mubr.msk.f32.mxu0 %vm5322_vm1, %v7312_v6  ;;  %4898 = vmatprep.mubr.msk.f32.mxu1 %vm5322_vm1, %v7312_v6  ;;  %v3837_v11 = vld [vmem:[%s5384_s25 + $0x658] sm:$0xff] }
 0x152   : > { %v6180_v14 = vpop.f32.mrb[52].mxu0  ;;  %v6182_v7 = vpop.f32.mrb[52].mxu1 }
 0x153   : > { %7323 = vst [vmem:[#allocation8_spill] sm:$0xff] %v6180_v14  ;;  %7324 = vst [vmem:[#allocation9_spill] sm:$0xff] %v6182_v7  ;;  %v4351_v51 = vpop.f32.mrb[53].mxu0  ;;  %v4542_v25 = vpop.f32.mrb[53].mxu1  ;;  %4708 = vmatmul.mubr.msk.f32.gmra.mrb[158].mxu0 %vm236_vm4, %v3712_v52  ;;  %4899 = vmatmul.mubr.msk.f32.gmra.mrb[158].mxu1 %vm236_vm4, %v3835_v24  ;;  %v3714_v24 = vld [vmem:[%s5384_s25 + $0x470] sm:$0xff] }
 0x154   : > { %4710 = vmatprep.mubr.msk.f32.mxu0 %vm5322_vm1, %v7312_v6  ;;  %4901 = vmatprep.mubr.msk.f32.mxu1 %vm5322_vm1, %v7312_v6  ;;  %v3838_v51 = vld [vmem:[%s5384_s25 + $0x660] sm:$0xff] }
 0x156   : > { %v6194_v63 = vpop.f32.mrb[54].mxu0  ;;  %v6196_v56 = vpop.f32.mrb[54].mxu1 }
 0x157   : > { %7325 = vst [vmem:[#allocation10_spill] sm:$0xff] %v6194_v63  ;;  %7326 = vst [vmem:[#allocation11_spill] sm:$0xff] %v6196_v56  ;;  %v4354_v25 = vpop.f32.mrb[55].mxu0  ;;  %v4545_v52 = vpop.f32.mrb[55].mxu1  ;;  %4711 = vmatmul.mubr.msk.f32.gmra.mrb[160].mxu0 %vm236_vm4, %v3713_v29  ;;  %4902 = vmatmul.mubr.msk.f32.gmra.mrb[160].mxu1 %vm236_vm4, %v3836_v50  ;;  %v3715_v50 = vld [vmem:[%s5384_s25 + $0x478] sm:$0xff] }
 0x158   : > { %4713 = vmatprep.mubr.msk.f32.mxu0 %vm5322_vm1, %v7312_v6  ;;  %4904 = vmatprep.mubr.msk.f32.mxu1 %vm5322_vm1, %v7312_v6  ;;  %v3839_v25 = vld [vmem:[%s5384_s25 + $0x668] sm:$0xff] }
 0x15a   : > { %v6208_v7 = vpop.f32.mrb[56].mxu0  ;;  %v6210_v14 = vpop.f32.mrb[56].mxu1 }
 0x15b   : > { %7327 = vst [vmem:[#allocation12_spill] sm:$0xff] %v6208_v7  ;;  %7328 = vst [vmem:[#allocation13_spill] sm:$0xff] %v6210_v14  ;;  %v4357_v52 = vpop.f32.mrb[57].mxu0  ;;  %v4548_v29 = vpop.f32.mrb[57].mxu1  ;;  %4714 = vmatmul.mubr.msk.f32.gmra.mrb[162].mxu0 %vm236_vm4, %v3714_v24  ;;  %4905 = vmatmul.mubr.msk.f32.gmra.mrb[162].mxu1 %vm236_vm4, %v3837_v11  ;;  %v3716_v11 = vld [vmem:[%s5384_s25 + $0x480] sm:$0xff] }
 0x15c   : > { %4716 = vmatprep.mubr.msk.f32.mxu0 %vm5322_vm1, %v7312_v6  ;;  %4907 = vmatprep.mubr.msk.f32.mxu1 %vm5322_vm1, %v7312_v6  ;;  %v3840_v52 = vld [vmem:[%s5384_s25 + $0x670] sm:$0xff] }
 0x15e   : > { %v6222_v56 = vpop.f32.mrb[58].mxu0  ;;  %v6224_v63 = vpop.f32.mrb[58].mxu1 }
 0x15f   : > { %7329 = vst [vmem:[#allocation14_spill] sm:$0xff] %v6222_v56  ;;  %7330 = vst [vmem:[#allocation15_spill] sm:$0xff] %v6224_v63  ;;  %v4360_v29 = vpop.f32.mrb[59].mxu0  ;;  %v4551_v24 = vpop.f32.mrb[59].mxu1  ;;  %4717 = vmatmul.mubr.msk.f32.gmra.mrb[164].mxu0 %vm236_vm4, %v3715_v50  ;;  %4908 = vmatmul.mubr.msk.f32.gmra.mrb[164].mxu1 %vm236_vm4, %v3838_v51  ;;  %v3717_v51 = vld [vmem:[%s5384_s25 + $0x488] sm:$0xff] }
 0x160   : > { %4719 = vmatprep.mubr.msk.f32.mxu0 %vm5322_vm1, %v7312_v6  ;;  %4910 = vmatprep.mubr.msk.f32.mxu1 %vm5322_vm1, %v7312_v6  ;;  %v3841_v29 = vld [vmem:[%s5384_s25 + $0x678] sm:$0xff] }
 0x162   : > { %v6236_v14 = vpop.f32.mrb[60].mxu0  ;;  %v6238_v7 = vpop.f32.mrb[60].mxu1 }
 0x163   : > { %7331 = vst [vmem:[#allocation16_spill] sm:$0xff] %v6236_v14  ;;  %7332 = vst [vmem:[#allocation17_spill] sm:$0xff] %v6238_v7  ;;  %v4363_v24 = vpop.f32.mrb[61].mxu0  ;;  %v4554_v50 = vpop.f32.mrb[61].mxu1  ;;  %4720 = vmatmul.mubr.msk.f32.gmra.mrb[166].mxu0 %vm236_vm4, %v3716_v11  ;;  %4911 = vmatmul.mubr.msk.f32.gmra.mrb[166].mxu1 %vm236_vm4, %v3839_v25  ;;  %v3718_v25 = vld [vmem:[%s5384_s25 + $0x490] sm:$0xff] }
 0x164   : > { %4722 = vmatprep.mubr.msk.f32.mxu0 %vm5322_vm1, %v7312_v6  ;;  %4913 = vmatprep.mubr.msk.f32.mxu1 %vm5322_vm1, %v7312_v6  ;;  %v3842_v24 = vld [vmem:[%s5384_s25 + $0x680] sm:$0xff] }
 0x166   : > { %v6250_v63 = vpop.f32.mrb[62].mxu0  ;;  %v6252_v56 = vpop.f32.mrb[62].mxu1 }
 0x167   : > { %7333 = vst [vmem:[#allocation18_spill] sm:$0xff] %v6250_v63  ;;  %7334 = vst [vmem:[#allocation19_spill] sm:$0xff] %v6252_v56  ;;  %v4366_v50 = vpop.f32.mrb[63].mxu0  ;;  %v4557_v11 = vpop.f32.mrb[63].mxu1  ;;  %4723 = vmatmul.mubr.msk.f32.gmra.mrb[168].mxu0 %vm236_vm4, %v3717_v51  ;;  %4914 = vmatmul.mubr.msk.f32.gmra.mrb[168].mxu1 %vm236_vm4, %v3840_v52  ;;  %v3719_v52 = vld [vmem:[%s5384_s25 + $0x498] sm:$0xff] }
 0x168   : > { %4725 = vmatprep.mubr.msk.f32.mxu0 %vm5322_vm1, %v7312_v6  ;;  %4916 = vmatprep.mubr.msk.f32.mxu1 %vm5322_vm1, %v7312_v6  ;;  %v3843_v50 = vld [vmem:[%s5384_s25 + $0x688] sm:$0xff] }
 0x16a   : > { %v6264_v7 = vpop.f32.mrb[64].mxu0  ;;  %v6266_v14 = vpop.f32.mrb[64].mxu1 }
 0x16b   : > { %7335 = vst [vmem:[#allocation20_spill] sm:$0xff] %v6264_v7  ;;  %7336 = vst [vmem:[#allocation21_spill] sm:$0xff] %v6266_v14  ;;  %v4369_v11 = vpop.f32.mrb[65].mxu0  ;;  %v4560_v51 = vpop.f32.mrb[65].mxu1  ;;  %4726 = vmatmul.mubr.msk.f32.gmra.mrb[170].mxu0 %vm236_vm4, %v3718_v25  ;;  %4917 = vmatmul.mubr.msk.f32.gmra.mrb[170].mxu1 %vm236_vm4, %v3841_v29  ;;  %v3720_v29 = vld [vmem:[%s5384_s25 + $0x4a0] sm:$0xff] }
 0x16c   : > { %4728 = vmatprep.mubr.msk.f32.mxu0 %vm5322_vm1, %v7312_v6  ;;  %4919 = vmatprep.mubr.msk.f32.mxu1 %vm5322_vm1, %v7312_v6  ;;  %v3844_v11 = vld [vmem:[%s5384_s25 + $0x690] sm:$0xff] }
 0x16e   : > { %v6278_v56 = vpop.f32.mrb[66].mxu0  ;;  %v6280_v63 = vpop.f32.mrb[66].mxu1 }
 0x16f   : > { %7337 = vst [vmem:[#allocation22_spill] sm:$0xff] %v6278_v56  ;;  %7338 = vst [vmem:[#allocation23_spill] sm:$0xff] %v6280_v63  ;;  %v4372_v51 = vpop.f32.mrb[67].mxu0  ;;  %v4563_v25 = vpop.f32.mrb[67].mxu1  ;;  %4729 = vmatmul.mubr.msk.f32.gmra.mrb[172].mxu0 %vm236_vm4, %v3719_v52  ;;  %4920 = vmatmul.mubr.msk.f32.gmra.mrb[172].mxu1 %vm236_vm4, %v3842_v24  ;;  %v3721_v24 = vld [vmem:[%s5384_s25 + $0x4a8] sm:$0xff] }
 0x170   : > { %4731 = vmatprep.mubr.msk.f32.mxu0 %vm5322_vm1, %v7312_v6  ;;  %4922 = vmatprep.mubr.msk.f32.mxu1 %vm5322_vm1, %v7312_v6  ;;  %v3845_v51 = vld [vmem:[%s5384_s25 + $0x698] sm:$0xff] }
 0x172   : > { %v6292_v14 = vpop.f32.mrb[68].mxu0  ;;  %v6294_v7 = vpop.f32.mrb[68].mxu1 }
 0x173   : > { %7339 = vst [vmem:[#allocation24_spill] sm:$0xff] %v6292_v14  ;;  %7340 = vst [vmem:[#allocation25_spill] sm:$0xff] %v6294_v7  ;;  %v4375_v25 = vpop.f32.mrb[69].mxu0  ;;  %v4566_v52 = vpop.f32.mrb[69].mxu1  ;;  %4732 = vmatmul.mubr.msk.f32.gmra.mrb[174].mxu0 %vm236_vm4, %v3720_v29  ;;  %4923 = vmatmul.mubr.msk.f32.gmra.mrb[174].mxu1 %vm236_vm4, %v3843_v50  ;;  %v3722_v50 = vld [vmem:[%s5384_s25 + $0x4b0] sm:$0xff] }
 0x174   : > { %4734 = vmatprep.mubr.msk.f32.mxu0 %vm5322_vm1, %v7312_v6  ;;  %4925 = vmatprep.mubr.msk.f32.mxu1 %vm5322_vm1, %v7312_v6  ;;  %v3846_v25 = vld [vmem:[%s5384_s25 + $0x6a0] sm:$0xff] }
 0x176   : > { %v6306_v63 = vpop.f32.mrb[70].mxu0  ;;  %v6308_v56 = vpop.f32.mrb[70].mxu1 }
 0x177   : > { %7341 = vst [vmem:[#allocation26_spill] sm:$0xff] %v6306_v63  ;;  %7342 = vst [vmem:[#allocation27_spill] sm:$0xff] %v6308_v56  ;;  %v4378_v52 = vpop.f32.mrb[71].mxu0  ;;  %v4569_v29 = vpop.f32.mrb[71].mxu1  ;;  %4735 = vmatmul.mubr.msk.f32.gmra.mrb[176].mxu0 %vm236_vm4, %v3721_v24  ;;  %4926 = vmatmul.mubr.msk.f32.gmra.mrb[176].mxu1 %vm236_vm4, %v3844_v11  ;;  %v3723_v11 = vld [vmem:[%s5384_s25 + $0x4b8] sm:$0xff] }
 0x178   : > { %4737 = vmatprep.mubr.msk.f32.mxu0 %vm5322_vm1, %v7312_v6  ;;  %4928 = vmatprep.mubr.msk.f32.mxu1 %vm5322_vm1, %v7312_v6  ;;  %v3847_v52 = vld [vmem:[%s5384_s25 + $0x6a8] sm:$0xff] }
 0x17a   : > { %v6320_v7 = vpop.f32.mrb[72].mxu0  ;;  %v6322_v14 = vpop.f32.mrb[72].mxu1 }
 0x17b   : > { %7343 = vst [vmem:[#allocation28_spill] sm:$0xff] %v6320_v7  ;;  %7344 = vst [vmem:[#allocation29_spill] sm:$0xff] %v6322_v14  ;;  %v4381_v29 = vpop.f32.mrb[73].mxu0  ;;  %v4572_v24 = vpop.f32.mrb[73].mxu1  ;;  %4738 = vmatmul.mubr.msk.f32.gmra.mrb[178].mxu0 %vm236_vm4, %v3722_v50  ;;  %4929 = vmatmul.mubr.msk.f32.gmra.mrb[178].mxu1 %vm236_vm4, %v3845_v51  ;;  %v3724_v51 = vld [vmem:[%s5384_s25 + $0x4c0] sm:$0xff] }
 0x17c   : > { %4740 = vmatprep.mubr.msk.f32.mxu0 %vm5322_vm1, %v7312_v6  ;;  %4931 = vmatprep.mubr.msk.f32.mxu1 %vm5322_vm1, %v7312_v6  ;;  %v3848_v29 = vld [vmem:[%s5384_s25 + $0x6b0] sm:$0xff] }
 0x17e   : > { %v6334_v56 = vpop.f32.mrb[74].mxu0  ;;  %v6336_v63 = vpop.f32.mrb[74].mxu1 }
 0x17f   : > { %7345 = vst [vmem:[#allocation30_spill] sm:$0xff] %v6334_v56  ;;  %7346 = vst [vmem:[#allocation31_spill] sm:$0xff] %v6336_v63  ;;  %v4384_v24 = vpop.f32.mrb[75].mxu0  ;;  %v4575_v50 = vpop.f32.mrb[75].mxu1  ;;  %4741 = vmatmul.mubr.msk.f32.gmra.mrb[180].mxu0 %vm236_vm4, %v3723_v11  ;;  %4932 = vmatmul.mubr.msk.f32.gmra.mrb[180].mxu1 %vm236_vm4, %v3846_v25  ;;  %v3725_v25 = vld [vmem:[%s5384_s25 + $0x4c8] sm:$0xff] }
 0x180   : > { %4743 = vmatprep.mubr.msk.f32.mxu0 %vm5322_vm1, %v7312_v6  ;;  %4934 = vmatprep.mubr.msk.f32.mxu1 %vm5322_vm1, %v7312_v6  ;;  %v3849_v24 = vld [vmem:[%s5384_s25 + $0x6b8] sm:$0xff] }
 0x182   : > { %v6348_v14 = vpop.f32.mrb[76].mxu0  ;;  %v6350_v7 = vpop.f32.mrb[76].mxu1 }
 0x183   : > { %7347 = vst [vmem:[#allocation32_spill] sm:$0xff] %v6348_v14  ;;  %7348 = vst [vmem:[#allocation33_spill] sm:$0xff] %v6350_v7  ;;  %v4387_v50 = vpop.f32.mrb[77].mxu0  ;;  %v4578_v11 = vpop.f32.mrb[77].mxu1  ;;  %4744 = vmatmul.mubr.msk.f32.gmra.mrb[182].mxu0 %vm236_vm4, %v3724_v51  ;;  %4935 = vmatmul.mubr.msk.f32.gmra.mrb[182].mxu1 %vm236_vm4, %v3847_v52  ;;  %v3726_v52 = vld [vmem:[%s5384_s25 + $0x4d0] sm:$0xff] }
 0x184   : > { %4746 = vmatprep.mubr.msk.f32.mxu0 %vm5322_vm1, %v7312_v6  ;;  %4937 = vmatprep.mubr.msk.f32.mxu1 %vm5322_vm1, %v7312_v6  ;;  %v3850_v50 = vld [vmem:[%s5384_s25 + $0x6c0] sm:$0xff] }
 0x186   : > { %v6362_v63 = vpop.f32.mrb[78].mxu0  ;;  %v6364_v56 = vpop.f32.mrb[78].mxu1 }
 0x187   : > { %7349 = vst [vmem:[#allocation34_spill] sm:$0xff] %v6362_v63  ;;  %7350 = vst [vmem:[#allocation35_spill] sm:$0xff] %v6364_v56  ;;  %v4390_v11 = vpop.f32.mrb[79].mxu0  ;;  %v4581_v51 = vpop.f32.mrb[79].mxu1  ;;  %4747 = vmatmul.mubr.msk.f32.gmra.mrb[184].mxu0 %vm236_vm4, %v3725_v25  ;;  %4938 = vmatmul.mubr.msk.f32.gmra.mrb[184].mxu1 %vm236_vm4, %v3848_v29  ;;  %v3727_v29 = vld [vmem:[%s5384_s25 + $0x4d8] sm:$0xff] }
 0x188   : > { %4749 = vmatprep.mubr.msk.f32.mxu0 %vm5322_vm1, %v7312_v6  ;;  %4940 = vmatprep.mubr.msk.f32.mxu1 %vm5322_vm1, %v7312_v6  ;;  %v3851_v11 = vld [vmem:[%s5384_s25 + $0x6c8] sm:$0xff] }
 0x18a   : > { %v6376_v7 = vpop.f32.mrb[80].mxu0  ;;  %v6378_v14 = vpop.f32.mrb[80].mxu1 }
 0x18b   : > { %7351 = vst [vmem:[#allocation36_spill] sm:$0xff] %v6376_v7  ;;  %7352 = vst [vmem:[#allocation37_spill] sm:$0xff] %v6378_v14  ;;  %v4393_v51 = vpop.f32.mrb[81].mxu0  ;;  %v4584_v25 = vpop.f32.mrb[81].mxu1  ;;  %4750 = vmatmul.mubr.msk.f32.gmra.mrb[186].mxu0 %vm236_vm4, %v3726_v52  ;;  %4941 = vmatmul.mubr.msk.f32.gmra.mrb[186].mxu1 %vm236_vm4, %v3849_v24  ;;  %v3728_v24 = vld [vmem:[%s5384_s25 + $0x4e0] sm:$0xff] }
 0x18c   : > { %4752 = vmatprep.mubr.msk.f32.mxu0 %vm5322_vm1, %v7312_v6  ;;  %4943 = vmatprep.mubr.msk.f32.mxu1 %vm5322_vm1, %v7312_v6  ;;  %v3852_v51 = vld [vmem:[%s5384_s25 + $0x6d0] sm:$0xff] }
 0x18e   : > { %v6390_v56 = vpop.f32.mrb[82].mxu0  ;;  %v6392_v63 = vpop.f32.mrb[82].mxu1 }
 0x18f   : > { %7353 = vst [vmem:[#allocation38_spill] sm:$0xff] %v6390_v56  ;;  %7354 = vst [vmem:[#allocation39_spill] sm:$0xff] %v6392_v63  ;;  %v4396_v25 = vpop.f32.mrb[83].mxu0  ;;  %v4587_v52 = vpop.f32.mrb[83].mxu1  ;;  %4753 = vmatmul.mubr.msk.f32.gmra.mrb[188].mxu0 %vm236_vm4, %v3727_v29  ;;  %4944 = vmatmul.mubr.msk.f32.gmra.mrb[188].mxu1 %vm236_vm4, %v3850_v50  ;;  %v3729_v50 = vld [vmem:[%s5384_s25 + $0x4e8] sm:$0xff] }
 0x190   : > { %4755 = vmatprep.mubr.msk.f32.mxu0 %vm5322_vm1, %v7312_v6  ;;  %4946 = vmatprep.mubr.msk.f32.mxu1 %vm5322_vm1, %v7312_v6  ;;  %v3853_v25 = vld [vmem:[%s5384_s25 + $0x6d8] sm:$0xff] }
 0x192   : > { %v6404_v14 = vpop.f32.mrb[84].mxu0  ;;  %v6406_v7 = vpop.f32.mrb[84].mxu1 }
 0x193   : > { %7355 = vst [vmem:[#allocation40_spill] sm:$0xff] %v6404_v14  ;;  %7356 = vst [vmem:[#allocation41_spill] sm:$0xff] %v6406_v7  ;;  %v4399_v52 = vpop.f32.mrb[85].mxu0  ;;  %v4590_v29 = vpop.f32.mrb[85].mxu1  ;;  %4756 = vmatmul.mubr.msk.f32.gmra.mrb[190].mxu0 %vm236_vm4, %v3728_v24  ;;  %4947 = vmatmul.mubr.msk.f32.gmra.mrb[190].mxu1 %vm236_vm4, %v3851_v11  ;;  %v3730_v11 = vld [vmem:[%s5384_s25 + $0x4f0] sm:$0xff] }
 0x194   : > { %4758 = vmatprep.mubr.msk.f32.mxu0 %vm5322_vm1, %v7312_v6  ;;  %4949 = vmatprep.mubr.msk.f32.mxu1 %vm5322_vm1, %v7312_v6  ;;  %v3854_v52 = vld [vmem:[%s5384_s25 + $0x6e0] sm:$0xff] }
 0x196   : > { %v6418_v63 = vpop.f32.mrb[86].mxu0  ;;  %v6420_v56 = vpop.f32.mrb[86].mxu1 }
 0x197   : > { %7357 = vst [vmem:[#allocation42_spill] sm:$0xff] %v6418_v63  ;;  %7358 = vst [vmem:[#allocation43_spill] sm:$0xff] %v6420_v56  ;;  %v4402_v29 = vpop.f32.mrb[87].mxu0  ;;  %v4593_v24 = vpop.f32.mrb[87].mxu1  ;;  %4759 = vmatmul.mubr.msk.f32.gmra.mrb[192].mxu0 %vm236_vm4, %v3729_v50  ;;  %4950 = vmatmul.mubr.msk.f32.gmra.mrb[192].mxu1 %vm236_vm4, %v3852_v51  ;;  %v3731_v51 = vld [vmem:[%s5384_s25 + $0x4f8] sm:$0xff] }
 0x198   : > { %4761 = vmatprep.mubr.msk.f32.mxu0 %vm5322_vm1, %v7312_v6  ;;  %4952 = vmatprep.mubr.msk.f32.mxu1 %vm5322_vm1, %v7312_v6  ;;  %v3855_v29 = vld [vmem:[%s5384_s25 + $0x6e8] sm:$0xff] }
 0x19a   : > { %v6432_v7 = vpop.f32.mrb[88].mxu0  ;;  %v6434_v14 = vpop.f32.mrb[88].mxu1 }
 0x19b   : > { %7359 = vst [vmem:[#allocation44_spill] sm:$0xff] %v6432_v7  ;;  %7360 = vst [vmem:[#allocation45_spill] sm:$0xff] %v6434_v14  ;;  %v4405_v24 = vpop.f32.mrb[89].mxu0  ;;  %v4596_v50 = vpop.f32.mrb[89].mxu1  ;;  %4762 = vmatmul.mubr.msk.f32.gmra.mrb[194].mxu0 %vm236_vm4, %v3730_v11  ;;  %4953 = vmatmul.mubr.msk.f32.gmra.mrb[194].mxu1 %vm236_vm4, %v3853_v25  ;;  %v3732_v25 = vld [vmem:[%s5384_s25 + $0x500] sm:$0xff] }
 0x19c   : > { %4764 = vmatprep.mubr.msk.f32.mxu0 %vm5322_vm1, %v7312_v6  ;;  %4955 = vmatprep.mubr.msk.f32.mxu1 %vm5322_vm1, %v7312_v6  ;;  %v3856_v24 = vld [vmem:[%s5384_s25 + $0x6f0] sm:$0xff] }
 0x19e   : > { %v6446_v56 = vpop.f32.mrb[90].mxu0  ;;  %v6448_v63 = vpop.f32.mrb[90].mxu1 }
 0x19f   : > { %7361 = vst [vmem:[#allocation46_spill] sm:$0xff] %v6446_v56  ;;  %7362 = vst [vmem:[#allocation47_spill] sm:$0xff] %v6448_v63  ;;  %v4408_v50 = vpop.f32.mrb[91].mxu0  ;;  %v4599_v11 = vpop.f32.mrb[91].mxu1  ;;  %4765 = vmatmul.mubr.msk.f32.gmra.mrb[196].mxu0 %vm236_vm4, %v3731_v51  ;;  %4956 = vmatmul.mubr.msk.f32.gmra.mrb[196].mxu1 %vm236_vm4, %v3854_v52  ;;  %v3733_v52 = vld [vmem:[%s5384_s25 + $0x508] sm:$0xff] }
 0x1a0   : > { %4767 = vmatprep.mubr.msk.f32.mxu0 %vm5322_vm1, %v7312_v6  ;;  %4958 = vmatprep.mubr.msk.f32.mxu1 %vm5322_vm1, %v7312_v6  ;;  %v3857_v50 = vld [vmem:[%s5384_s25 + $0x6f8] sm:$0xff] }
 0x1a2   : > { %v6460_v14 = vpop.f32.mrb[92].mxu0  ;;  %v6462_v7 = vpop.f32.mrb[92].mxu1 }
 0x1a3   : > { %7363 = vst [vmem:[#allocation48_spill] sm:$0xff] %v6460_v14  ;;  %7364 = vst [vmem:[#allocation49_spill] sm:$0xff] %v6462_v7  ;;  %v4411_v11 = vpop.f32.mrb[93].mxu0  ;;  %v4602_v51 = vpop.f32.mrb[93].mxu1  ;;  %4768 = vmatmul.mubr.msk.f32.gmra.mrb[198].mxu0 %vm236_vm4, %v3732_v25  ;;  %4959 = vmatmul.mubr.msk.f32.gmra.mrb[198].mxu1 %vm236_vm4, %v3855_v29  ;;  %v3734_v29 = vld [vmem:[%s5384_s25 + $0x510] sm:$0xff] }
 0x1a4   : > { %4770 = vmatprep.mubr.msk.f32.mxu0 %vm5322_vm1, %v7312_v6  ;;  %4961 = vmatprep.mubr.msk.f32.mxu1 %vm5322_vm1, %v7312_v6  ;;  %v3858_v11 = vld [vmem:[%s5384_s25 + $0x700] sm:$0xff] }
 0x1a6   : > { %v6474_v63 = vpop.f32.mrb[94].mxu0  ;;  %v6476_v56 = vpop.f32.mrb[94].mxu1 }
 0x1a7   : > { %7365 = vst [vmem:[#allocation50_spill] sm:$0xff] %v6474_v63  ;;  %7366 = vst [vmem:[#allocation51_spill] sm:$0xff] %v6476_v56  ;;  %v4414_v51 = vpop.f32.mrb[95].mxu0  ;;  %v4605_v25 = vpop.f32.mrb[95].mxu1  ;;  %4771 = vmatmul.mubr.msk.f32.gmra.mrb[200].mxu0 %vm236_vm4, %v3733_v52  ;;  %4962 = vmatmul.mubr.msk.f32.gmra.mrb[200].mxu1 %vm236_vm4, %v3856_v24  ;;  %v3735_v24 = vld [vmem:[%s5384_s25 + $0x518] sm:$0xff] }
 0x1a8   : > { %4773 = vmatprep.mubr.msk.f32.mxu0 %vm5322_vm1, %v7312_v6  ;;  %4964 = vmatprep.mubr.msk.f32.mxu1 %vm5322_vm1, %v7312_v6  ;;  %v3859_v51 = vld [vmem:[%s5384_s25 + $0x708] sm:$0xff] }
 0x1aa   : > { %v6488_v7 = vpop.f32.mrb[96].mxu0  ;;  %v6490_v14 = vpop.f32.mrb[96].mxu1 }
 0x1ab   : > { %7367 = vst [vmem:[#allocation52_spill] sm:$0xff] %v6488_v7  ;;  %7368 = vst [vmem:[#allocation53_spill] sm:$0xff] %v6490_v14  ;;  %v4417_v25 = vpop.f32.mrb[97].mxu0  ;;  %v4608_v52 = vpop.f32.mrb[97].mxu1  ;;  %4774 = vmatmul.mubr.msk.f32.gmra.mrb[202].mxu0 %vm236_vm4, %v3734_v29  ;;  %4965 = vmatmul.mubr.msk.f32.gmra.mrb[202].mxu1 %vm236_vm4, %v3857_v50  ;;  %v3736_v50 = vld [vmem:[%s5384_s25 + $0x520] sm:$0xff] }
 0x1ac   : > { %4776 = vmatprep.mubr.msk.f32.mxu0 %vm5322_vm1, %v7312_v6  ;;  %4967 = vmatprep.mubr.msk.f32.mxu1 %vm5322_vm1, %v7312_v6  ;;  %v3860_v25 = vld [vmem:[%s5384_s25 + $0x710] sm:$0xff] }
 0x1ae   : > { %v6502_v56 = vpop.f32.mrb[98].mxu0  ;;  %v6504_v63 = vpop.f32.mrb[98].mxu1 }
 0x1af   : > { %7369 = vst [vmem:[#allocation54_spill] sm:$0xff] %v6502_v56  ;;  %7370 = vst [vmem:[#allocation55_spill] sm:$0xff] %v6504_v63  ;;  %v4420_v52 = vpop.f32.mrb[99].mxu0  ;;  %v4611_v29 = vpop.f32.mrb[99].mxu1  ;;  %4777 = vmatmul.mubr.msk.f32.gmra.mrb[204].mxu0 %vm236_vm4, %v3735_v24  ;;  %4968 = vmatmul.mubr.msk.f32.gmra.mrb[204].mxu1 %vm236_vm4, %v3858_v11  ;;  %v3737_v11 = vld [vmem:[%s5384_s25 + $0x528] sm:$0xff] }
 0x1b0   : > { %4779 = vmatprep.mubr.msk.f32.mxu0 %vm5322_vm1, %v7312_v6  ;;  %4970 = vmatprep.mubr.msk.f32.mxu1 %vm5322_vm1, %v7312_v6  ;;  %v3861_v52 = vld [vmem:[%s5384_s25 + $0x718] sm:$0xff] }
 0x1b2   : > { %v6516_v14 = vpop.f32.mrb[100].mxu0  ;;  %v6518_v7 = vpop.f32.mrb[100].mxu1 }
 0x1b3   : > { %7371 = vst [vmem:[#allocation56_spill] sm:$0xff] %v6516_v14  ;;  %7372 = vst [vmem:[#allocation57_spill] sm:$0xff] %v6518_v7  ;;  %v4423_v29 = vpop.f32.mrb[101].mxu0  ;;  %v4614_v24 = vpop.f32.mrb[101].mxu1  ;;  %4780 = vmatmul.mubr.msk.f32.gmra.mrb[206].mxu0 %vm236_vm4, %v3736_v50  ;;  %4971 = vmatmul.mubr.msk.f32.gmra.mrb[206].mxu1 %vm236_vm4, %v3859_v51  ;;  %v3738_v51 = vld [vmem:[%s5384_s25 + $0x530] sm:$0xff] }
 0x1b4   : > { %4782 = vmatprep.mubr.msk.f32.mxu0 %vm5322_vm1, %v7312_v6  ;;  %4973 = vmatprep.mubr.msk.f32.mxu1 %vm5322_vm1, %v7312_v6  ;;  %v3862_v29 = vld [vmem:[%s5384_s25 + $0x720] sm:$0xff] }
 0x1b6   : > { %v6530_v63 = vpop.f32.mrb[102].mxu0  ;;  %v6532_v56 = vpop.f32.mrb[102].mxu1 }
 0x1b7   : > { %7373 = vst [vmem:[#allocation58_spill] sm:$0xff] %v6530_v63  ;;  %7374 = vst [vmem:[#allocation59_spill] sm:$0xff] %v6532_v56  ;;  %v4426_v24 = vpop.f32.mrb[103].mxu0  ;;  %v4617_v50 = vpop.f32.mrb[103].mxu1  ;;  %4783 = vmatmul.mubr.msk.f32.gmra.mrb[208].mxu0 %vm236_vm4, %v3737_v11  ;;  %4974 = vmatmul.mubr.msk.f32.gmra.mrb[208].mxu1 %vm236_vm4, %v3860_v25  ;;  %v3739_v25 = vld [vmem:[%s5384_s25 + $0x538] sm:$0xff] }
 0x1b8   : > { %4785 = vmatprep.mubr.msk.f32.mxu0 %vm5322_vm1, %v7312_v6  ;;  %4976 = vmatprep.mubr.msk.f32.mxu1 %vm5322_vm1, %v7312_v6  ;;  %v3863_v24 = vld [vmem:[%s5384_s25 + $0x728] sm:$0xff] }
 0x1ba   : > { %v6544_v7 = vpop.f32.mrb[104].mxu0  ;;  %v6546_v14 = vpop.f32.mrb[104].mxu1 }
 0x1bb   : > { %7375 = vst [vmem:[#allocation60_spill] sm:$0xff] %v6544_v7  ;;  %7376 = vst [vmem:[#allocation61_spill] sm:$0xff] %v6546_v14  ;;  %v4429_v50 = vpop.f32.mrb[105].mxu0  ;;  %v4620_v11 = vpop.f32.mrb[105].mxu1  ;;  %4786 = vmatmul.mubr.msk.f32.gmra.mrb[210].mxu0 %vm236_vm4, %v3738_v51  ;;  %4977 = vmatmul.mubr.msk.f32.gmra.mrb[210].mxu1 %vm236_vm4, %v3861_v52  ;;  %v3740_v52 = vld [vmem:[%s5384_s25 + $0x540] sm:$0xff] }
 0x1bc   : > { %4788 = vmatprep.mubr.msk.f32.mxu0 %vm5322_vm1, %v7312_v6  ;;  %4979 = vmatprep.mubr.msk.f32.mxu1 %vm5322_vm1, %v7312_v6  ;;  %v3864_v50 = vld [vmem:[%s5384_s25 + $0x730] sm:$0xff] }
 0x1be   : > { %v6558_v56 = vpop.f32.mrb[106].mxu0  ;;  %v6560_v63 = vpop.f32.mrb[106].mxu1 }
 0x1bf   : > { %7377 = vst [vmem:[#allocation62_spill] sm:$0xff] %v6558_v56  ;;  %7378 = vst [vmem:[#allocation63_spill] sm:$0xff] %v6560_v63  ;;  %v4432_v11 = vpop.f32.mrb[107].mxu0  ;;  %v4623_v51 = vpop.f32.mrb[107].mxu1  ;;  %4789 = vmatmul.mubr.msk.f32.gmra.mrb[212].mxu0 %vm236_vm4, %v3739_v25  ;;  %4980 = vmatmul.mubr.msk.f32.gmra.mrb[212].mxu1 %vm236_vm4, %v3862_v29  ;;  %v3741_v29 = vld [vmem:[%s5384_s25 + $0x548] sm:$0xff] }
 0x1c0   : > { %4791 = vmatprep.mubr.msk.f32.mxu0 %vm5322_vm1, %v7312_v6  ;;  %4982 = vmatprep.mubr.msk.f32.mxu1 %vm5322_vm1, %v7312_v6  ;;  %v3865_v11 = vld [vmem:[%s5384_s25 + $0x738] sm:$0xff] }
 0x1c2   : > { %v6572_v14 = vpop.f32.mrb[108].mxu0  ;;  %v6574_v7 = vpop.f32.mrb[108].mxu1 }
 0x1c3   : > { %7379 = vst [vmem:[#allocation64_spill] sm:$0xff] %v6572_v14  ;;  %7380 = vst [vmem:[#allocation65_spill] sm:$0xff] %v6574_v7  ;;  %v4435_v51 = vpop.f32.mrb[109].mxu0  ;;  %v4626_v25 = vpop.f32.mrb[109].mxu1  ;;  %4792 = vmatmul.mubr.msk.f32.gmra.mrb[214].mxu0 %vm236_vm4, %v3740_v52  ;;  %4983 = vmatmul.mubr.msk.f32.gmra.mrb[214].mxu1 %vm236_vm4, %v3863_v24  ;;  %v3742_v24 = vld [vmem:[%s5384_s25 + $0x550] sm:$0xff] }
 0x1c4   : > { %4794 = vmatprep.mubr.msk.f32.mxu0 %vm5322_vm1, %v7312_v6  ;;  %4985 = vmatprep.mubr.msk.f32.mxu1 %vm5322_vm1, %v7312_v6  ;;  %v3866_v51 = vld [vmem:[%s5384_s25 + $0x740] sm:$0xff] }
 0x1c6   : > { %v6586_v63 = vpop.f32.mrb[110].mxu0  ;;  %v6588_v56 = vpop.f32.mrb[110].mxu1 }
 0x1c7   : > { %7381 = vst [vmem:[#allocation66_spill] sm:$0xff] %v6586_v63  ;;  %7382 = vst [vmem:[#allocation67_spill] sm:$0xff] %v6588_v56  ;;  %v4438_v25 = vpop.f32.mrb[111].mxu0  ;;  %v4629_v52 = vpop.f32.mrb[111].mxu1  ;;  %4795 = vmatmul.mubr.msk.f32.gmra.mrb[216].mxu0 %vm236_vm4, %v3741_v29  ;;  %4986 = vmatmul.mubr.msk.f32.gmra.mrb[216].mxu1 %vm236_vm4, %v3864_v50  ;;  %v3743_v50 = vld [vmem:[%s5384_s25 + $0x558] sm:$0xff] }
 0x1c8   : > { %4797 = vmatprep.mubr.msk.f32.mxu0 %vm5322_vm1, %v7312_v6  ;;  %4988 = vmatprep.mubr.msk.f32.mxu1 %vm5322_vm1, %v7312_v6  ;;  %v3867_v25 = vld [vmem:[%s5384_s25 + $0x748] sm:$0xff] }
 0x1ca   : > { %v6600_v7 = vpop.f32.mrb[112].mxu0  ;;  %v6602_v14 = vpop.f32.mrb[112].mxu1 }
 0x1cb   : > { %7383 = vst [vmem:[#allocation68_spill] sm:$0xff] %v6600_v7  ;;  %7384 = vst [vmem:[#allocation69_spill] sm:$0xff] %v6602_v14  ;;  %v4441_v52 = vpop.f32.mrb[113].mxu0  ;;  %v4632_v29 = vpop.f32.mrb[113].mxu1  ;;  %4798 = vmatmul.mubr.msk.f32.gmra.mrb[218].mxu0 %vm236_vm4, %v3742_v24  ;;  %4989 = vmatmul.mubr.msk.f32.gmra.mrb[218].mxu1 %vm236_vm4, %v3865_v11  ;;  %v3744_v11 = vld [vmem:[%s5384_s25 + $0x560] sm:$0xff] }
 0x1cc   : > { %4800 = vmatprep.mubr.msk.f32.mxu0 %vm5322_vm1, %v7312_v6  ;;  %4991 = vmatprep.mubr.msk.f32.mxu1 %vm5322_vm1, %v7312_v6  ;;  %v3745_v52 = vld [vmem:[%s5384_s25 + $0x568] sm:$0xff] }
 0x1ce   : > { %v6614_v56 = vpop.f32.mrb[114].mxu0  ;;  %v6616_v63 = vpop.f32.mrb[114].mxu1 }
 0x1cf   : > { %7385 = vst [vmem:[#allocation70_spill] sm:$0xff] %v6614_v56  ;;  %7386 = vst [vmem:[#allocation71_spill] sm:$0xff] %v6616_v63  ;;  %v4444_v29 = vpop.f32.mrb[115].mxu0  ;;  %v4635_v24 = vpop.f32.mrb[115].mxu1  ;;  %4801 = vmatmul.mubr.msk.f32.gmra.mrb[220].mxu0 %vm236_vm4, %v3743_v50  ;;  %4992 = vmatmul.mubr.msk.f32.gmra.mrb[220].mxu1 %vm236_vm4, %v3866_v51  ;;  %v2823_v51 = vlaneseq  ;;  %v3868_v63 = vld [vmem:[%s5384_s25 + $0x750] sm:$0xff] }
 0x1d0   : > { %4803 = vmatprep.mubr.msk.f32.mxu0 %vm5322_vm1, %v7312_v6  ;;  %4994 = vmatprep.mubr.msk.f32.mxu1 %vm5322_vm1, %v7312_v6 }
 0x1d2   : > { %v6628_v14 = vpop.f32.mrb[116].mxu0  ;;  %v6630_v7 = vpop.f32.mrb[116].mxu1 }
 0x1d3   : > { %7387 = vst [vmem:[#allocation72_spill] sm:$0xff] %v6628_v14  ;;  %7388 = vst [vmem:[#allocation73_spill] sm:$0xff] %v6630_v7  ;;  %v4447_v50 = vpop.f32.mrb[117].mxu0  ;;  %v4638_v24 = vpop.f32.mrb[117].mxu1  ;;  %4804 = vmatmul.mubr.msk.f32.gmra.mrb[222].mxu0 %vm236_vm4, %v3744_v11  ;;  %4995 = vmatmul.mubr.msk.f32.gmra.mrb[222].mxu1 %vm236_vm4, %v3867_v25  ;;  %v3746_v7 = vld [vmem:[%s5384_s25 + $0x570] sm:$0xff]  ;;  %v3869_v14 = vld [vmem:[%s5384_s25 + $0x758] sm:$0xff] }
 0x1d4   : > { %4806 = vmatprep.mubr.msk.f32.mxu0 %vm5322_vm1, %v7312_v6  ;;  %4997 = vmatprep.mubr.msk.f32.mxu1 %vm5322_vm1, %v7312_v6  ;;  %v2824_v24 = vshrl.u32 %v2823_v51, 7 }
 0x1d6   : > { %v6642_v56 = vpop.f32.mrb[118].mxu0  ;;  %v6644_v29 = vpop.f32.mrb[118].mxu1  ;;  %v2825_v51 = vsub.s32 0, %v2824_v24 }
 0x1d7   : > { %7389 = vst [vmem:[#allocation74_spill] sm:$0xff] %v6642_v56  ;;  %7390 = vst [vmem:[#allocation75_spill] sm:$0xff] %v6644_v29  ;;  %v4450_v50 = vpop.f32.mrb[119].mxu0  ;;  %v4641_v25 = vpop.f32.mrb[119].mxu1  ;;  %4807 = vmatmul.mubr.msk.f32.gmra.mrb[224].mxu0 %vm236_vm4, %v3745_v52  ;;  %4998 = vmatmul.mubr.msk.f32.gmra.mrb[224].mxu1 %vm236_vm4, %v3868_v63  ;;  %v3747_v52 = vld [vmem:[%s5384_s25 + $0x578] sm:$0xff]  ;;  %v2955_v29 = vsub.s32 2, %v2824_v24 }
 0x1d8   : > { %4809 = vmatprep.mubr.msk.f32.mxu0 %vm5322_vm1, %v7312_v6  ;;  %5000 = vmatprep.mubr.msk.f32.mxu1 %vm5322_vm1, %v7312_v6  ;;  %v2822_v25 = vld [vmem:[%s7235_s2] sm:$0x7] }
 0x1da   : > { %v6656_v21 = vpop.f32.mrb[120].mxu0  ;;  %v6658_v11 = vpop.f32.mrb[120].mxu1 }
 0x1db   : > { %7391 = vst [vmem:[#allocation76_spill] sm:$0xff] %v6656_v21  ;;  %7392 = vst [vmem:[#allocation77_spill] sm:$0xff] %v6658_v11  ;;  %v4453_v50 = vpop.f32.mrb[121].mxu0  ;;  %v4644_v63 = vpop.f32.mrb[121].mxu1  ;;  %4810 = vmatmul.mubr.msk.f32.gmra.mrb[226].mxu0 %vm236_vm4, %v3746_v7  ;;  %5001 = vmatmul.mubr.msk.f32.gmra.mrb[226].mxu1 %vm236_vm4, %v3869_v14  ;;  %v6673_v14 = vrot.slane %v2822_v25, %v2825_v51 }
 0x1dc   : > { %4812 = vmatprep.mubr.msk.f32.mxu0 %vm5322_vm1, %v7312_v6  ;;  %5003 = vmatprep.mubr.msk.f32.mxu1 %vm5322_vm1, %v7312_v6  ;;  %v3870_v50 = vld [vmem:[%s5384_s25 + $0x760] sm:$0xff]  ;;  %v2890_v63 = vsub.s32 1, %v2824_v24 }
 0x1de   : > { %v1720_v11 = vpop.f32.mrb[122].mxu0  ;;  %v2335_v7 = vpop.f32.mrb[122].mxu1 }
 0x1df   : > { %v2700_v21 = vmax.f32 %v1720_v11, %v2335_v7  ;;  %v4655_v56 = vpop.f32.mrb[123].mxu0  ;;  %4813 = vmatmul.mubr.msk.f32.gmra.mrb[228].mxu0 %vm236_vm4, %v3747_v52  ;;  %v4846_v28 = vpop.f32.mrb[123].mxu1  ;;  %5004 = vmatmul.mubr.msk.f32.gmra.mrb[228].mxu1 %vm236_vm4, %v3870_v50  ;;  %v7393_v11 = vmax.f32 %v5816_v54, %v5818_v55  ;;  %v6689_v50 = vrot.slane %v2822_v25, %v2955_v29  ;;  %v3749_v54 = vld [vmem:[%s5384_s25 + $0x588] sm:$0xff]  ;;  %v3872_v55 = vld [vmem:[%s5384_s25 + $0x770] sm:$0xff] }
 0x1e0   : > { %4815 = vmatprep.mubr.msk.f32.mxu0 %vm5322_vm1, %v7312_v6  ;;  %5006 = vmatprep.mubr.msk.f32.mxu1 %vm5322_vm1, %v7312_v6  ;;  %v6686_v56 = vrot.slane %v2822_v25, %v2890_v63 }
 0x1e1   : > { %v2761_v24 = vmax.f32 %v7393_v11, %v2700_v21 }
 0x1e2   : > { %v1725_v52 = vpop.f32.mrb[124].mxu0  ;;  %v2340_v28 = vpop.f32.mrb[124].mxu1 }
 0x1e3   : > { %v2827_v51 = vadd.f32 %v6673_v14, %v2761_v24  ;;  %v2701_v7 = vmax.f32 %v1725_v52, %v2340_v28  ;;  %v4658_v49 = vpop.f32.mrb[125].mxu0  ;;  %4816 = vmatmul.mubr.msk.f32.gmra.mrb[230].mxu0 %vm236_vm4, %v3748_v35  ;;  %v4849_v6 = vpop.f32.mrb[125].mxu1  ;;  %5007 = vmatmul.mubr.msk.f32.gmra.mrb[230].mxu1 %vm236_vm4, %v3871_v42 }
 0x1e4   : > { %4818 = vmatprep.mubr.msk.f32.mxu0 %vm5322_vm1, %v7394_v59  ;;  %5009 = vmatprep.mubr.msk.f32.mxu1 %vm5322_vm1, %v7394_v59  ;;  %v7395_v49 = vmax.f32 %v5830_v61, %v5832_v62  ;;  %v3750_v61 = vld [vmem:[%s5384_s25 + $0x590] sm:$0xff]  ;;  %v3873_v62 = vld [vmem:[%s5384_s25 + $0x778] sm:$0xff] }
 0x1e5   : > { %v2892_v21 = vmul.f32 %v6686_v56, %v2827_v51  ;;  %v7396_v51 = vmax.f32 %v5844_v4, %v5846_v5  ;;  %v3751_v4 = vld [vmem:[%s5384_s25 + $0x598] sm:$0xff]  ;;  %v3874_v5 = vld [vmem:[%s5384_s25 + $0x780] sm:$0xff] }
 0x1e6   : > { %v2762_v29 = vmax.f32 %v7395_v49, %v2701_v7  ;;  %v1730_v35 = vpop.f32.mrb[126].mxu0  ;;  %v2345_v6 = vpop.f32.mrb[126].mxu1 }
 0x1e7   : > { %v2957_v42 = vadd.f32 %v6689_v50, %v2892_v21  ;;  %v2702_v63 = vmax.f32 %v1730_v35, %v2345_v6  ;;  %v4661_v11 = vpop.f32.mrb[127].mxu0  ;;  %4819 = vmatmul.mubr.msk.f32.gmra.mrb[232].mxu0 %vm236_vm4, %v3749_v54  ;;  %v4852_v24 = vpop.f32.mrb[127].mxu1  ;;  %5010 = vmatmul.mubr.msk.f32.gmra.mrb[232].mxu1 %vm236_vm4, %v3872_v55 }
 0x1e8   : > { %v2828_v25 = vadd.f32 %v6673_v14, %v2762_v29  ;;  %4821 = vmatprep.mubr.msk.f32.mxu0 %vm5322_vm1, %v7394_v59  ;;  %5012 = vmatprep.mubr.msk.f32.mxu1 %vm5322_vm1, %v7394_v59 }
 0x1e9   : > { %v3940_v52 = vmul.f32 -1.442695, %v2957_v42  ;;  %v2763_v7 = vmax.f32 %v7396_v51, %v2702_v63  ;;  %v7397_v63 = vmax.f32 %v5858_v12, %v5860_v13  ;;  %v3752_v12 = vld [vmem:[%s5384_s25 + $0x5a0] sm:$0xff]  ;;  %v3875_v13 = vld [vmem:[%s5384_s25 + $0x788] sm:$0xff] }
 0x1ea   : > { %v2893_v28 = vmul.f32 %v6686_v56, %v2828_v25  ;;  %v1735_v54 = vpop.f32.mrb[128].mxu0  ;;  %v2350_v21 = vpop.f32.mrb[128].mxu1 }
 0x1eb   : > { %5069 = vpow2.f32 %v3940_v52  ;;  %v2829_v49 = vadd.f32 %v6673_v14, %v2763_v7  ;;  %v2703_v29 = vmax.f32 %v1735_v54, %v2350_v21  ;;  %v4664_v35 = vpop.f32.mrb[129].mxu0  ;;  %4822 = vmatmul.mubr.msk.f32.gmra.mrb[234].mxu0 %vm236_vm4, %v3750_v61  ;;  %v4855_v6 = vpop.f32.mrb[129].mxu1  ;;  %5013 = vmatmul.mubr.msk.f32.gmra.mrb[234].mxu1 %vm236_vm4, %v3873_v62 }
 0x1ec   : > { %v2958_v55 = vadd.f32 %v6689_v50, %v2893_v28  ;;  %4824 = vmatprep.mubr.msk.f32.mxu0 %vm5322_vm1, %v7394_v59  ;;  %5015 = vmatprep.mubr.msk.f32.mxu1 %vm5322_vm1, %v7394_v59 }
 0x1ed   : > { %v2894_v25 = vmul.f32 %v6686_v56, %v2829_v49  ;;  %v2764_v11 = vmax.f32 %v7397_v63, %v2703_v29 }
 0x1ee   : > { %v3941_v42 = vmul.f32 -1.442695, %v2958_v55  ;;  %v1740_v24 = vpop.f32.mrb[130].mxu0  ;;  %v2355_v61 = vpop.f32.mrb[130].mxu1  ;;  %v7398_v55 = vmax.f32 %v5872_v19, %v5874_v20  ;;  %v3753_v19 = vld [vmem:[%s5384_s25 + $0x5a8] sm:$0xff]  ;;  %v3876_v20 = vld [vmem:[%s5384_s25 + $0x790] sm:$0xff] }
 0x1ef   : > { %v2959_v62 = vadd.f32 %v6689_v50, %v2894_v25  ;;  %v2830_v52 = vadd.f32 %v6673_v14, %v2764_v11  ;;  %v2704_v28 = vmax.f32 %v1740_v24, %v2355_v61  ;;  %v4667_v51 = vpop.f32.mrb[131].mxu0  ;;  %4825 = vmatmul.mubr.msk.f32.gmra.mrb[236].mxu0 %vm236_vm4, %v3751_v4  ;;  %v4858_v7 = vpop.f32.mrb[131].mxu1  ;;  %5016 = vmatmul.mubr.msk.f32.gmra.mrb[236].mxu1 %vm236_vm4, %v3874_v5 }
 0x1f0   : > { %5071 = vpow2.f32 %v3941_v42  ;;  %4827 = vmatprep.mubr.msk.f32.mxu0 %vm5322_vm1, %v7394_v59  ;;  %5018 = vmatprep.mubr.msk.f32.mxu1 %vm5322_vm1, %v7394_v59  ;;  %v7399_v61 = vmax.f32 %v5886_v26, %v5888_v27  ;;  %v3754_v26 = vld [vmem:[%s5384_s25 + $0x5b0] sm:$0xf]  ;;  %v3877_v27 = vld [vmem:[%s5384_s25 + $0x798] sm:$0xf] }
 0x1f1   : > { %v3942_v54 = vmul.f32 -1.442695, %v2959_v62  ;;  %v2895_v21 = vmul.f32 %v6686_v56, %v2830_v52  ;;  %v2765_v49 = vmax.f32 %v7398_v55, %v2704_v28 }
 0x1f2   : > { %v1745_v29 = vpop.f32.mrb[132].mxu0  ;;  %v2360_v35 = vpop.f32.mrb[132].mxu1 }
 0x1f3   : > { %5073 = vpow2.f32 %v3942_v54  ;;  %v2960_v6 = vadd.f32 %v6689_v50, %v2895_v21  ;;  %v2831_v4 = vadd.f32 %v6673_v14, %v2765_v49  ;;  %v2705_v5 = vmax.f32 %v1745_v29, %v2360_v35  ;;  %v4670_v42 = vpop.f32.mrb[133].mxu0  ;;  %4828 = vmatmul.mubr.msk.f32.gmra.mrb[238].mxu0 %vm236_vm4, %v3752_v12  ;;  %v4861_v25 = vpop.f32.mrb[133].mxu1  ;;  %5019 = vmatmul.mubr.msk.f32.gmra.mrb[238].mxu1 %vm236_vm4, %v3875_v13 }
 0x1f4   : > { %4830 = vmatprep.mubr.msk.f32.mxu0 %vm5322_vm1, %v7394_v59  ;;  %5021 = vmatprep.mubr.msk.f32.mxu1 %vm5322_vm1, %v7394_v59  ;;  %v7400_v35 = vmax.f32 %v5900_v33, %v5902_v34 }
 0x1f5   : > { %v5070_v63 = vpop.eup %5069  ;;  %v3943_v11 = vmul.f32 -1.442695, %v2960_v6  ;;  %v2896_v24 = vmul.f32 %v6686_v56, %v2831_v4  ;;  %v2766_v62 = vmax.f32 %v7399_v61, %v2705_v5 }
 0x1f6   : > { %v3201_v52 = vadd.f32 1.0, %v5070_v63  ;;  %v1750_v28 = vpop.f32.mrb[134].mxu0  ;;  %v2365_v51 = vpop.f32.mrb[134].mxu1 }
 0x1f7   : > { %5075 = vpow2.f32 %v3943_v11  ;;  %v2961_v7 = vadd.f32 %v6689_v50, %v2896_v24  ;;  %v2832_v12 = vadd.f32 %v6673_v14, %v2766_v62  ;;  %v2706_v13 = vmax.f32 %v1750_v28, %v2365_v51  ;;  %v4673_v54 = vpop.f32.mrb[135].mxu0  ;;  %4831 = vmatmul.mubr.msk.f32.gmra.mrb[240].mxu0 %vm236_vm4, %v3753_v19  ;;  %v4864_v21 = vpop.f32.mrb[135].mxu1  ;;  %5022 = vmatmul.mubr.msk.f32.gmra.mrb[240].mxu1 %vm236_vm4, %v3876_v20 }
 0x1f8   : > { %5077 = vrcp.f32 %v3201_v52  ;;  %4833 = vmatprep.mubr.msk.f32.mxu0 %vm5322_vm1, %v7394_v59  ;;  %5024 = vmatprep.mubr.msk.f32.mxu1 %vm5322_vm1, %v7394_v59  ;;  %v7401_v24 = vmax.f32 %v5914_v40, %v5916_v41 }
 0x1f9   : > { %v3944_v49 = vmul.f32 -1.442695, %v2961_v7  ;;  %v2897_v29 = vmul.f32 %v6686_v56, %v2832_v12  ;;  %v2767_v6 = vmax.f32 %v7400_v35, %v2706_v13 }
 0x1fa   : > { %v5072_v55 = vpop.eup %5071  ;;  %v1755_v5 = vpop.f32.mrb[136].mxu0 }
 0x1fb   : > { %v3202_v4 = vadd.f32 1.0, %v5072_v55  ;;  %v2370_v42 = vpop.f32.mrb[136].mxu1  ;;  %5079 = vpow2.f32 %v3944_v49  ;;  %v2962_v25 = vadd.f32 %v6689_v50, %v2897_v29  ;;  %v2833_v19 = vadd.f32 %v6673_v14, %v2767_v6  ;;  %v4676_v20 = vpop.f32.mrb[137].mxu0  ;;  %4834 = vmatmul.mubr.msk.f32.gmra.mrb[242].mxu0 %vm236_vm4, %v3754_v26  ;;  %5025 = vmatmul.mubr.msk.f32.gmra.mrb[242].mxu1 %vm236_vm4, %v3877_v27 }
 0x1fc   : > { %v2707_v59 = vmax.f32 %v1755_v5, %v2370_v42  ;;  %v4867_v63 = vpop.f32.mrb[137].mxu1  ;;  %v7402_v26 = vmax.f32 %v5928_v47, %v5930_v48  ;;  %v7403_v48 = vmax.f32 %v5942_v57, %v5944_v58  ;;  %v7404_v58 = vmax.f32 %v5956_v3, %v5958_v8 }
 0x1fd   : > { %5081 = vrcp.f32 %v3202_v4  ;;  %v5074_v11 = vpop.eup %5073  ;;  %v3945_v33 = vmul.f32 -1.442695, %v2962_v25  ;;  %v2898_v34 = vmul.f32 %v6686_v56, %v2833_v19  ;;  %v7405_v8 = vmax.f32 %v5970_v17, %v5972_v18 }
 0x1fe   : > { %v2768_v61 = vmax.f32 %v7401_v24, %v2707_v59  ;;  %v3203_v62 = vadd.f32 1.0, %v5074_v11  ;;  %v1760_v52 = vpop.f32.mrb[138].mxu0  ;;  %v2375_v28 = vpop.f32.mrb[138].mxu1  ;;  %v7406_v18 = vmax.f32 %v5984_v30, %v5986_v31  ;;  %v7407_v31 = vmax.f32 %v5998_v43, %v6000_v44 }
 0x1ff   : > { %5083 = vpow2.f32 %v3945_v33  ;;  %v2963_v51 = vadd.f32 %v6689_v50, %v2898_v34  ;;  %v2708_v12 = vmax.f32 %v1760_v52, %v2375_v28  ;;  %v4679_v13 = vpop.f32.mrb[139].mxu0  ;;  %v4870_v54 = vpop.f32.mrb[139].mxu1  ;;  %v7408_v44 = vmax.f32 %v6012_v53, %v6014_v60 }
 0x200   : > { %v2834_v7 = vadd.f32 %v6673_v14, %v2768_v61  ;;  %5085 = vrcp.f32 %v3203_v62  ;;  %v7409_v60 = vmax.f32 %v6026_v15, %v6028_v16  ;;  %v7410_v16 = vmax.f32 %v6040_v37, %v6042_v38 }
 0x201   : > { %v5076_v40 = vpop.eup %5075  ;;  %v3946_v41 = vmul.f32 -1.442695, %v2963_v51  ;;  %v2769_v27 = vmax.f32 %v7402_v26, %v2708_v12  ;;  %v7411_v38 = vmax.f32 %v6054_v1, %v6056_v2  ;;  %v7412_v2 = vmax.f32 %v6068_v36, %v6070_v46 }
 0x202   : > { %v2899_v21 = vmul.f32 %v6686_v56, %v2834_v7  ;;  %v5078_v55 = vpop.eup %5077  ;;  %v3204_v49 = vadd.f32 1.0, %v5076_v40  ;;  %v1765_v29 = vpop.f32.mrb[140].mxu0  ;;  %v7413_v46 = vmax.f32 %v6082_v10, %v6084_v39  ;;  %v7414_v10 = vmax.f32 %v6096_v23, %v6098_v0 }
 0x203   : > { %v2380_v35 = vpop.f32.mrb[140].mxu1  ;;  %3385 = vst.msk [vmem:[%s6787_s4] sm:$0xff] %vm3384_vm5, %v5078_v55  ;;  %5087 = vpow2.f32 %v3946_v41  ;;  %v2835_v4 = vadd.f32 %v6673_v14, %v2769_v27  ;;  %v4682_v42 = vpop.f32.mrb[141].mxu0  ;;  %v7415_v23 = vmax.f32 %v6110_v45, %v6112_v32  ;;  %v7416_v45 = vmax.f32 %v6124_v22, %v6126_v9  ;;  %v7417_v22 = vld [vmem:[#allocation2_spill] sm:$0xff] }
 0x204   : > { %v2964_v6 = vadd.f32 %v6689_v50, %v2899_v21  ;;  %v2709_v5 = vmax.f32 %v1765_v29, %v2380_v35  ;;  %v4873_v25 = vpop.f32.mrb[141].mxu1  ;;  %5089 = vrcp.f32 %v3204_v49 }
 0x205   : > { %v5080_v19 = vpop.eup %5079  ;;  %v2900_v47 = vmul.f32 %v6686_v56, %v2835_v4 }
 0x206   : > { %v3947_v59 = vmul.f32 -1.442695, %v2964_v6  ;;  %v2770_v20 = vmax.f32 %v7403_v48, %v2709_v5  ;;  %v3205_v11 = vadd.f32 1.0, %v5080_v19  ;;  %v1770_v33 = vpop.f32.mrb[142].mxu0  ;;  %v2385_v34 = vpop.f32.mrb[142].mxu1 }
 0x207   : > { %v5082_v63 = vpop.eup %5081  ;;  %v2965_v24 = vadd.f32 %v6689_v50, %v2900_v47  ;;  %v2710_v62 = vmax.f32 %v1770_v33, %v2385_v34  ;;  %v4685_v52 = vpop.f32.mrb[143].mxu0 }
 0x208   : > { %3386 = vst.msk [vmem:[%s6787_s4 + $0x8] sm:$0xff] %vm3384_vm5, %v5082_v63  ;;  %5091 = vpow2.f32 %v3947_v59  ;;  %v2836_v61 = vadd.f32 %v6673_v14, %v2770_v20  ;;  %v4876_v28 = vpop.f32.mrb[143].mxu1 }
 0x209   : > { %5093 = vrcp.f32 %v3205_v11  ;;  %v5084_v51 = vpop.eup %5083  ;;  %v3948_v7 = vmul.f32 -1.442695, %v2965_v24  ;;  %v2771_v12 = vmax.f32 %v7404_v58, %v2710_v62 }
 0x20a   : > { %v2901_v57 = vmul.f32 %v6686_v56, %v2836_v61  ;;  %v5086_v13 = vpop.eup %5085  ;;  %v3206_v54 = vadd.f32 1.0, %v5084_v51  ;;  %v1775_v40 = vpop.f32.mrb[144].mxu0 }
 0x20b   : > { %v2390_v41 = vpop.f32.mrb[144].mxu1  ;;  %3387 = vst.msk [vmem:[%s6787_s4 + $0x10] sm:$0xff] %vm3384_vm5, %v5086_v13  ;;  %5095 = vpow2.f32 %v3948_v7  ;;  %v2837_v26 = vadd.f32 %v6673_v14, %v2771_v12  ;;  %v4688_v55 = vpop.f32.mrb[145].mxu0 }
 0x20c   : > { %v2966_v21 = vadd.f32 %v6689_v50, %v2901_v57  ;;  %v2711_v27 = vmax.f32 %v1775_v40, %v2390_v41  ;;  %v4879_v49 = vpop.f32.mrb[145].mxu1  ;;  %5097 = vrcp.f32 %v3206_v54 }
 0x20d   : > { %v5088_v29 = vpop.eup %5087  ;;  %v2902_v3 = vmul.f32 %v6686_v56, %v2837_v26 }
 0x20e   : > { %v3949_v35 = vmul.f32 -1.442695, %v2966_v21  ;;  %v2772_v6 = vmax.f32 %v7405_v8, %v2711_v27  ;;  %v5090_v4 = vpop.eup %5089  ;;  %v3207_v5 = vadd.f32 1.0, %v5088_v29  ;;  %v1780_v42 = vpop.f32.mrb[146].mxu0 }
 0x20f   : > { %v2395_v25 = vpop.f32.mrb[146].mxu1  ;;  %3388 = vst.msk [vmem:[%s6787_s4 + $0x18] sm:$0xff] %vm3384_vm5, %v5090_v4  ;;  %v2967_v19 = vadd.f32 %v6689_v50, %v2902_v3  ;;  %v4691_v48 = vpop.f32.mrb[147].mxu0 }
 0x210   : > { %5099 = vpow2.f32 %v3949_v35  ;;  %v2838_v59 = vadd.f32 %v6673_v14, %v2772_v6  ;;  %v2712_v47 = vmax.f32 %v1780_v42, %v2395_v25  ;;  %v4882_v20 = vpop.f32.mrb[147].mxu1 }
 0x211   : > { %5101 = vrcp.f32 %v3207_v5  ;;  %v3950_v11 = vmul.f32 -1.442695, %v2967_v19 }
 0x212   : > { %v5092_v63 = vpop.eup %5091  ;;  %v2903_v17 = vmul.f32 %v6686_v56, %v2838_v59  ;;  %v2773_v33 = vmax.f32 %v7406_v18, %v2712_v47  ;;  %v1785_v61 = vpop.f32.mrb[148].mxu0 }
 0x213   : > { %v5094_v34 = vpop.eup %5093  ;;  %v3208_v24 = vadd.f32 1.0, %v5092_v63  ;;  %v2400_v62 = vpop.f32.mrb[148].mxu1  ;;  %5103 = vpow2.f32 %v3950_v11 }
 0x214   : > { %3389 = vst.msk [vmem:[%s6787_s4 + $0x20] sm:$0xff] %vm3384_vm5, %v5094_v34  ;;  %v2968_v52 = vadd.f32 %v6689_v50, %v2903_v17  ;;  %v2839_v28 = vadd.f32 %v6673_v14, %v2773_v33  ;;  %v2713_v51 = vmax.f32 %v1785_v61, %v2400_v62  ;;  %v4694_v7 = vpop.f32.mrb[149].mxu0  ;;  %v4885_v57 = vpop.f32.mrb[149].mxu1 }
 0x215   : > { %5105 = vrcp.f32 %v3208_v24  ;;  %v5096_v58 = vpop.eup %5095 }
 0x216   : > { %v3951_v12 = vmul.f32 -1.442695, %v2968_v52  ;;  %v2904_v30 = vmul.f32 %v6686_v56, %v2839_v28  ;;  %v2774_v13 = vmax.f32 %v7407_v31, %v2713_v51  ;;  %v5098_v54 = vpop.eup %5097  ;;  %v3209_v40 = vadd.f32 1.0, %v5096_v58  ;;  %v1790_v41 = vpop.f32.mrb[150].mxu0 }
 0x217   : > { %v2405_v21 = vpop.f32.mrb[150].mxu1  ;;  %3390 = vst.msk [vmem:[%s6787_s4 + $0x28] sm:$0xff] %vm3384_vm5, %v5098_v54  ;;  %v4697_v49 = vpop.f32.mrb[151].mxu0 }
 0x218   : > { %5107 = vpow2.f32 %v3951_v12  ;;  %v2969_v26 = vadd.f32 %v6689_v50, %v2904_v30  ;;  %v2840_v27 = vadd.f32 %v6673_v14, %v2774_v13  ;;  %v2714_v55 = vmax.f32 %v1790_v41, %v2405_v21  ;;  %v4888_v29 = vpop.f32.mrb[151].mxu1 }
 0x219   : > { %5109 = vrcp.f32 %v3209_v40 }
 0x21a   : > { %v5100_v35 = vpop.eup %5099  ;;  %v3952_v3 = vmul.f32 -1.442695, %v2969_v26  ;;  %v2905_v43 = vmul.f32 %v6686_v56, %v2840_v27  ;;  %v2775_v8 = vmax.f32 %v7408_v44, %v2714_v55  ;;  %v1795_v5 = vpop.f32.mrb[152].mxu0 }
 0x21b   : > { %v5102_v6 = vpop.eup %5101  ;;  %v3210_v4 = vadd.f32 1.0, %v5100_v35  ;;  %v2410_v42 = vpop.f32.mrb[152].mxu1 }
 0x21c   : > { %3391 = vst.msk [vmem:[%s6787_s4 + $0x30] sm:$0xff] %vm3384_vm5, %v5102_v6  ;;  %5111 = vpow2.f32 %v3952_v3  ;;  %v2970_v25 = vadd.f32 %v6689_v50, %v2905_v43  ;;  %v2841_v19 = vadd.f32 %v6673_v14, %v2775_v8  ;;  %v2715_v59 = vmax.f32 %v1795_v5, %v2410_v42  ;;  %v4700_v47 = vpop.f32.mrb[153].mxu0  ;;  %v4891_v48 = vpop.f32.mrb[153].mxu1 }
 0x21d   : > { %5113 = vrcp.f32 %v3210_v4  ;;  %v5104_v20 = vpop.eup %5103 }
 0x21e   : > { %v3953_v63 = vmul.f32 -1.442695, %v2970_v25  ;;  %v2906_v53 = vmul.f32 %v6686_v56, %v2841_v19  ;;  %v2776_v11 = vmax.f32 %v7409_v60, %v2715_v59  ;;  %v3211_v18 = vadd.f32 1.0, %v5104_v20  ;;  %v1800_v33 = vpop.f32.mrb[154].mxu0  ;;  %v2415_v34 = vpop.f32.mrb[154].mxu1 }
 0x21f   : > { %v5106_v17 = vpop.eup %5105  ;;  %v2716_v62 = vmax.f32 %v1800_v33, %v2415_v34  ;;  %v4703_v52 = vpop.f32.mrb[155].mxu0 }
 0x220   : > { %3392 = vst.msk [vmem:[%s6787_s4 + $0x38] sm:$0xff] %vm3384_vm5, %v5106_v17  ;;  %5115 = vpow2.f32 %v3953_v63  ;;  %v2971_v24 = vadd.f32 %v6689_v50, %v2906_v53  ;;  %v2842_v61 = vadd.f32 %v6673_v14, %v2776_v11  ;;  %v4894_v28 = vpop.f32.mrb[155].mxu1 }
 0x221   : > { %5117 = vrcp.f32 %v3211_v18  ;;  %v2777_v57 = vmax.f32 %v7410_v16, %v2716_v62 }
 0x222   : > { %v5108_v51 = vpop.eup %5107  ;;  %v3954_v7 = vmul.f32 -1.442695, %v2971_v24  ;;  %v2907_v15 = vmul.f32 %v6686_v56, %v2842_v61  ;;  %v1805_v30 = vpop.f32.mrb[156].mxu0 }
 0x223   : > { %v5110_v58 = vpop.eup %5109  ;;  %v3212_v12 = vadd.f32 1.0, %v5108_v51  ;;  %v2420_v31 = vpop.f32.mrb[156].mxu1  ;;  %v2843_v54 = vadd.f32 %v6673_v14, %v2777_v57 }
 0x224   : > { %3393 = vst.msk [vmem:[%s6787_s4 + $0x40] sm:$0xff] %vm3384_vm5, %v5110_v58  ;;  %5119 = vpow2.f32 %v3954_v7  ;;  %v2972_v13 = vadd.f32 %v6689_v50, %v2907_v15  ;;  %v2717_v40 = vmax.f32 %v1805_v30, %v2420_v31  ;;  %v4706_v41 = vpop.f32.mrb[157].mxu0  ;;  %v4897_v21 = vpop.f32.mrb[157].mxu1 }
 0x225   : > { %5121 = vrcp.f32 %v3212_v12  ;;  %v2908_v37 = vmul.f32 %v6686_v56, %v2843_v54 }
 0x226   : > { %v5112_v26 = vpop.eup %5111  ;;  %v3955_v27 = vmul.f32 -1.442695, %v2972_v13  ;;  %v2778_v55 = vmax.f32 %v7411_v38, %v2717_v40  ;;  %v1810_v35 = vpop.f32.mrb[158].mxu0 }
 0x227   : > { %v5114_v49 = vpop.eup %5113  ;;  %v3213_v29 = vadd.f32 1.0, %v5112_v26  ;;  %v2425_v3 = vpop.f32.mrb[158].mxu1  ;;  %v2973_v43 = vadd.f32 %v6689_v50, %v2908_v37 }
 0x228   : > { %3394 = vst.msk [vmem:[%s6787_s4 + $0x48] sm:$0xff] %vm3384_vm5, %v5114_v49  ;;  %5123 = vpow2.f32 %v3955_v27  ;;  %v2844_v44 = vadd.f32 %v6673_v14, %v2778_v55  ;;  %v2718_v8 = vmax.f32 %v1810_v35, %v2425_v3  ;;  %v4709_v6 = vpop.f32.mrb[159].mxu0  ;;  %v4900_v4 = vpop.f32.mrb[159].mxu1 }
 0x229   : > { %5125 = vrcp.f32 %v3213_v29  ;;  %v3956_v42 = vmul.f32 -1.442695, %v2973_v43 }
 0x22a   : > { %v5116_v5 = vpop.eup %5115  ;;  %v2909_v1 = vmul.f32 %v6686_v56, %v2844_v44  ;;  %v2779_v25 = vmax.f32 %v7412_v2, %v2718_v8  ;;  %v1815_v47 = vpop.f32.mrb[160].mxu0 }
 0x22b   : > { %v5118_v19 = vpop.eup %5117  ;;  %v3214_v59 = vadd.f32 1.0, %v5116_v5  ;;  %v2430_v48 = vpop.f32.mrb[160].mxu1  ;;  %5127 = vpow2.f32 %v3956_v42 }
 0x22c   : > { %3395 = vst.msk [vmem:[%s6787_s4 + $0x50] sm:$0xff] %vm3384_vm5, %v5118_v19  ;;  %v2974_v20 = vadd.f32 %v6689_v50, %v2909_v1  ;;  %v2845_v63 = vadd.f32 %v6673_v14, %v2779_v25  ;;  %v2719_v53 = vmax.f32 %v1815_v47, %v2430_v48  ;;  %v4712_v60 = vpop.f32.mrb[161].mxu0  ;;  %v4903_v11 = vpop.f32.mrb[161].mxu1 }
 0x22d   : > { %5129 = vrcp.f32 %v3214_v59  ;;  %v7418_v11 = vld [vmem:[#allocation3_spill] sm:$0xff] }
 0x22e   : > { %v5120_v17 = vpop.eup %5119  ;;  %v3957_v18 = vmul.f32 -1.442695, %v2974_v20  ;;  %v2910_v36 = vmul.f32 %v6686_v56, %v2845_v63  ;;  %v2780_v33 = vmax.f32 %v7413_v46, %v2719_v53  ;;  %v1820_v61 = vpop.f32.mrb[162].mxu0 }
 0x22f   : > { %v5122_v34 = vpop.eup %5121  ;;  %v3215_v24 = vadd.f32 1.0, %v5120_v17  ;;  %v2435_v62 = vpop.f32.mrb[162].mxu1  ;;  %v7419_v17 = vmax.f32 %v7417_v22, %v7418_v11 }
 0x230   : > { %3396 = vst.msk [vmem:[%s6787_s4 + $0x58] sm:$0xff] %vm3384_vm5, %v5122_v34  ;;  %5131 = vpow2.f32 %v3957_v18  ;;  %v2975_v52 = vadd.f32 %v6689_v50, %v2910_v36  ;;  %v2846_v28 = vadd.f32 %v6673_v14, %v2780_v33  ;;  %v2720_v51 = vmax.f32 %v1820_v61, %v2435_v62  ;;  %v4715_v7 = vpop.f32.mrb[163].mxu0  ;;  %v4906_v15 = vpop.f32.mrb[163].mxu1 }
 0x231   : > { %5133 = vrcp.f32 %v3215_v24 }
 0x232   : > { %v5124_v16 = vpop.eup %5123  ;;  %v3958_v57 = vmul.f32 -1.442695, %v2975_v52  ;;  %v2911_v39 = vmul.f32 %v6686_v56, %v2846_v28  ;;  %v2781_v58 = vmax.f32 %v7414_v10, %v2720_v51  ;;  %v1825_v31 = vpop.f32.mrb[164].mxu0 }
 0x233   : > { %v5126_v12 = vpop.eup %5125  ;;  %v3216_v30 = vadd.f32 1.0, %v5124_v16  ;;  %v2440_v13 = vpop.f32.mrb[164].mxu1  ;;  %v7420_v16 = vld [vmem:[#allocation4_spill] sm:$0xff] }
 0x234   : > { %3397 = vst.msk [vmem:[%s6787_s4 + $0x60] sm:$0xff] %vm3384_vm5, %v5126_v12  ;;  %5135 = vpow2.f32 %v3958_v57  ;;  %v2976_v54 = vadd.f32 %v6689_v50, %v2911_v39  ;;  %v2847_v40 = vadd.f32 %v6673_v14, %v2781_v58  ;;  %v2721_v41 = vmax.f32 %v1825_v31, %v2440_v13  ;;  %v4718_v21 = vpop.f32.mrb[165].mxu0  ;;  %v4909_v26 = vpop.f32.mrb[165].mxu1  ;;  %v7421_v57 = vld [vmem:[#allocation5_spill] sm:$0xff] }
 0x235   : > { %5137 = vrcp.f32 %v3216_v30  ;;  %v5128_v27 = vpop.eup %5127  ;;  %v7422_v39 = vmax.f32 %v7420_v16, %v7421_v57 }
 0x236   : > { %v3959_v37 = vmul.f32 -1.442695, %v2976_v54  ;;  %v2912_v0 = vmul.f32 %v6686_v56, %v2847_v40  ;;  %v2782_v38 = vmax.f32 %v7415_v23, %v2721_v41  ;;  %v3217_v49 = vadd.f32 1.0, %v5128_v27  ;;  %v1830_v29 = vpop.f32.mrb[166].mxu0  ;;  %v2445_v35 = vpop.f32.mrb[166].mxu1  ;;  %v7424_v23 = vld [vmem:[#allocation7_spill] sm:$0xff] }
 0x237   : > { %v5130_v55 = vpop.eup %5129  ;;  %v2722_v44 = vmax.f32 %v1830_v29, %v2445_v35  ;;  %v4721_v8 = vpop.f32.mrb[167].mxu0 }
 0x238   : > { %3398 = vst.msk [vmem:[%s6787_s4 + $0x68] sm:$0xff] %vm3384_vm5, %v5130_v55  ;;  %5139 = vpow2.f32 %v3959_v37  ;;  %v2977_v3 = vadd.f32 %v6689_v50, %v2912_v0  ;;  %v2848_v43 = vadd.f32 %v6673_v14, %v2782_v38  ;;  %v4912_v6 = vpop.f32.mrb[167].mxu1  ;;  %v7423_v0 = vld [vmem:[#allocation6_spill] sm:$0xff] }
 0x239   : > { %5141 = vrcp.f32 %v3217_v49  ;;  %v2783_v42 = vmax.f32 %v7416_v45, %v2722_v44  ;;  %v7425_v38 = vmax.f32 %v7423_v0, %v7424_v23 }
 0x23a   : > { %v5132_v4 = vpop.eup %5131  ;;  %v3960_v5 = vmul.f32 -1.442695, %v2977_v3  ;;  %v2913_v32 = vmul.f32 %v6686_v56, %v2848_v43  ;;  %v1835_v25 = vpop.f32.mrb[168].mxu0 }
 0x23b   : > { %v5134_v1 = vpop.eup %5133  ;;  %v3218_v2 = vadd.f32 1.0, %v5132_v4  ;;  %v2450_v19 = vpop.f32.mrb[168].mxu1  ;;  %v2849_v47 = vadd.f32 %v6673_v14, %v2783_v42  ;;  %v7426_v42 = vld [vmem:[#allocation8_spill] sm:$0xff] }
 0x23c   : > { %3399 = vst.msk [vmem:[%s6787_s4 + $0x70] sm:$0xff] %vm3384_vm5, %v5134_v1  ;;  %5143 = vpow2.f32 %v3960_v5  ;;  %v2978_v59 = vadd.f32 %v6689_v50, %v2913_v32  ;;  %v2723_v48 = vmax.f32 %v1835_v25, %v2450_v19  ;;  %v4724_v20 = vpop.f32.mrb[169].mxu0  ;;  %v4915_v63 = vpop.f32.mrb[169].mxu1  ;;  %v7427_v1 = vld [vmem:[#allocation9_spill] sm:$0xff] }
 0x23d   : > { %5145 = vrcp.f32 %v3218_v2  ;;  %v2914_v9 = vmul.f32 %v6686_v56, %v2849_v47  ;;  %v7428_v2 = vmax.f32 %v7426_v42, %v7427_v1 }
 0x23e   : > { %v5136_v53 = vpop.eup %5135  ;;  %v3961_v60 = vmul.f32 -1.442695, %v2978_v59  ;;  %v2784_v18 = vmax.f32 %v7419_v17, %v2723_v48  ;;  %v1840_v33 = vpop.f32.mrb[170].mxu0 }
 0x23f   : > { %v5138_v36 = vpop.eup %5137  ;;  %v3219_v46 = vadd.f32 1.0, %v5136_v53  ;;  %v2455_v34 = vpop.f32.mrb[170].mxu1  ;;  %v2979_v24 = vadd.f32 %v6689_v50, %v2914_v9 }
 0x240   : > { %3400 = vst.msk [vmem:[%s6787_s4 + $0x78] sm:$0xff] %vm3384_vm5, %v5138_v36  ;;  %5147 = vpow2.f32 %v3961_v60  ;;  %v2850_v61 = vadd.f32 %v6673_v14, %v2784_v18  ;;  %v2724_v62 = vmax.f32 %v1840_v33, %v2455_v34  ;;  %v4727_v52 = vpop.f32.mrb[171].mxu0  ;;  %v4918_v28 = vpop.f32.mrb[171].mxu1  ;;  %v7429_v18 = vld [vmem:[#allocation10_spill] sm:$0xff]  ;;  %v7430_v36 = vld [vmem:[#allocation11_spill] sm:$0xff] }
 0x241   : > { %5149 = vrcp.f32 %v3219_v46  ;;  %v3962_v7 = vmul.f32 -1.442695, %v2979_v24  ;;  %v7431_v46 = vmax.f32 %v7429_v18, %v7430_v36 }
 0x242   : > { %v5140_v51 = vpop.eup %5139  ;;  %v2915_v15 = vmul.f32 %v6686_v56, %v2850_v61  ;;  %v2785_v10 = vmax.f32 %v7422_v39, %v2724_v62  ;;  %v1845_v30 = vpop.f32.mrb[172].mxu0 }
 0x243   : > { %v5142_v58 = vpop.eup %5141  ;;  %v3220_v12 = vadd.f32 1.0, %v5140_v51  ;;  %v2460_v31 = vpop.f32.mrb[172].mxu1  ;;  %5151 = vpow2.f32 %v3962_v7 }
 0x244   : > { %3401 = vst.msk [vmem:[%s6787_s4 + $0x80] sm:$0xff] %vm3384_vm5, %v5142_v58  ;;  %v2980_v13 = vadd.f32 %v6689_v50, %v2915_v15  ;;  %v2851_v54 = vadd.f32 %v6673_v14, %v2785_v10  ;;  %v2725_v40 = vmax.f32 %v1845_v30, %v2460_v31  ;;  %v4730_v41 = vpop.f32.mrb[173].mxu0  ;;  %v4921_v21 = vpop.f32.mrb[173].mxu1  ;;  %v7432_v10 = vld [vmem:[#allocation12_spill] sm:$0xff]  ;;  %v7433_v58 = vld [vmem:[#allocation13_spill] sm:$0xff] }
 0x245   : > { %5153 = vrcp.f32 %v3220_v12  ;;  %v7434_v12 = vmax.f32 %v7432_v10, %v7433_v58 }
 0x246   : > { %v5144_v26 = vpop.eup %5143  ;;  %v3963_v27 = vmul.f32 -1.442695, %v2980_v13  ;;  %v2916_v37 = vmul.f32 %v6686_v56, %v2851_v54  ;;  %v2786_v55 = vmax.f32 %v7425_v38, %v2725_v40  ;;  %v1850_v35 = vpop.f32.mrb[174].mxu0 }
 0x247   : > { %v5146_v49 = vpop.eup %5145  ;;  %v3221_v29 = vadd.f32 1.0, %v5144_v26  ;;  %v2465_v3 = vpop.f32.mrb[174].mxu1 }
 0x248   : > { %3402 = vst.msk [vmem:[%s6787_s4 + $0x88] sm:$0xff] %vm3384_vm5, %v5146_v49  ;;  %5155 = vpow2.f32 %v3963_v27  ;;  %v2981_v43 = vadd.f32 %v6689_v50, %v2916_v37  ;;  %v2852_v44 = vadd.f32 %v6673_v14, %v2786_v55  ;;  %v2726_v8 = vmax.f32 %v1850_v35, %v2465_v3  ;;  %v4733_v6 = vpop.f32.mrb[175].mxu0  ;;  %v4924_v4 = vpop.f32.mrb[175].mxu1  ;;  %v7435_v55 = vld [vmem:[#allocation14_spill] sm:$0xff]  ;;  %v7436_v49 = vld [vmem:[#allocation15_spill] sm:$0xff] }
 0x249   : > { %5157 = vrcp.f32 %v3221_v29  ;;  %v7437_v29 = vmax.f32 %v7435_v55, %v7436_v49 }
 0x24a   : > { %v5148_v5 = vpop.eup %5147  ;;  %v3964_v32 = vmul.f32 -1.442695, %v2981_v43  ;;  %v2917_v45 = vmul.f32 %v6686_v56, %v2852_v44  ;;  %v2787_v25 = vmax.f32 %v7428_v2, %v2726_v8  ;;  %v1855_v47 = vpop.f32.mrb[176].mxu0 }
 0x24b   : > { %v5150_v19 = vpop.eup %5149  ;;  %v3222_v59 = vadd.f32 1.0, %v5148_v5  ;;  %v2470_v48 = vpop.f32.mrb[176].mxu1 }
 0x24c   : > { %3403 = vst.msk [vmem:[%s6787_s4 + $0x90] sm:$0xff] %vm3384_vm5, %v5150_v19  ;;  %5159 = vpow2.f32 %v3964_v32  ;;  %v2982_v20 = vadd.f32 %v6689_v50, %v2917_v45  ;;  %v2853_v63 = vadd.f32 %v6673_v14, %v2787_v25  ;;  %v2727_v53 = vmax.f32 %v1855_v47, %v2470_v48  ;;  %v4736_v60 = vpop.f32.mrb[177].mxu0  ;;  %v4927_v9 = vpop.f32.mrb[177].mxu1  ;;  %v7438_v25 = vld [vmem:[#allocation16_spill] sm:$0xff]  ;;  %v7439_v19 = vld [vmem:[#allocation17_spill] sm:$0xff] }
 0x24d   : > { %5161 = vrcp.f32 %v3222_v59  ;;  %v5152_v22 = vpop.eup %5151  ;;  %v7440_v59 = vmax.f32 %v7438_v25, %v7439_v19 }
 0x24e   : > { %v3965_v11 = vmul.f32 -1.442695, %v2982_v20  ;;  %v2918_v17 = vmul.f32 %v6686_v56, %v2853_v63  ;;  %v2788_v33 = vmax.f32 %v7431_v46, %v2727_v53  ;;  %v3223_v24 = vadd.f32 1.0, %v5152_v22  ;;  %v1860_v61 = vpop.f32.mrb[178].mxu0  ;;  %v2475_v62 = vpop.f32.mrb[178].mxu1 }
 0x24f   : > { %v5154_v34 = vpop.eup %5153  ;;  %v2728_v51 = vmax.f32 %v1860_v61, %v2475_v62  ;;  %v4739_v7 = vpop.f32.mrb[179].mxu0 }
 0x250   : > { %3404 = vst.msk [vmem:[%s6787_s4 + $0x98] sm:$0xff] %vm3384_vm5, %v5154_v34  ;;  %5163 = vpow2.f32 %v3965_v11  ;;  %v2983_v52 = vadd.f32 %v6689_v50, %v2918_v17  ;;  %v2854_v28 = vadd.f32 %v6673_v14, %v2788_v33  ;;  %v4930_v15 = vpop.f32.mrb[179].mxu1  ;;  %v7441_v33 = vld [vmem:[#allocation18_spill] sm:$0xff]  ;;  %v7442_v34 = vld [vmem:[#allocation19_spill] sm:$0xff] }
 0x251   : > { %5165 = vrcp.f32 %v3223_v24  ;;  %v2789_v30 = vmax.f32 %v7434_v12, %v2728_v51  ;;  %v7443_v24 = vmax.f32 %v7441_v33, %v7442_v34 }
 0x252   : > { %v5156_v16 = vpop.eup %5155  ;;  %v3966_v57 = vmul.f32 -1.442695, %v2983_v52  ;;  %v2919_v39 = vmul.f32 %v6686_v56, %v2854_v28  ;;  %v1865_v54 = vpop.f32.mrb[180].mxu0 }
 0x253   : > { %v5158_v31 = vpop.eup %5157  ;;  %v3224_v13 = vadd.f32 1.0, %v5156_v16  ;;  %v2480_v40 = vpop.f32.mrb[180].mxu1  ;;  %v2855_v21 = vadd.f32 %v6673_v14, %v2789_v30  ;;  %v7444_v30 = vld [vmem:[#allocation20_spill] sm:$0xff] }
 0x254   : > { %3405 = vst.msk [vmem:[%s6787_s4 + $0xa0] sm:$0xff] %vm3384_vm5, %v5158_v31  ;;  %5167 = vpow2.f32 %v3966_v57  ;;  %v2984_v41 = vadd.f32 %v6689_v50, %v2919_v39  ;;  %v2729_v26 = vmax.f32 %v1865_v54, %v2480_v40  ;;  %v4742_v27 = vpop.f32.mrb[181].mxu0  ;;  %v4933_v37 = vpop.f32.mrb[181].mxu1  ;;  %v7445_v31 = vld [vmem:[#allocation21_spill] sm:$0xff] }
 0x255   : > { %5169 = vrcp.f32 %v3224_v13  ;;  %v2920_v38 = vmul.f32 %v6686_v56, %v2855_v21  ;;  %v7446_v13 = vmax.f32 %v7444_v30, %v7445_v31 }
 0x256   : > { %v5160_v0 = vpop.eup %5159  ;;  %v3967_v23 = vmul.f32 -1.442695, %v2984_v41  ;;  %v2790_v35 = vmax.f32 %v7437_v29, %v2729_v26  ;;  %v1870_v44 = vpop.f32.mrb[182].mxu0 }
 0x257   : > { %v5162_v3 = vpop.eup %5161  ;;  %v3225_v43 = vadd.f32 1.0, %v5160_v0  ;;  %v2485_v8 = vpop.f32.mrb[182].mxu1  ;;  %v2985_v6 = vadd.f32 %v6689_v50, %v2920_v38 }
 0x258   : > { %3406 = vst.msk [vmem:[%s6787_s4 + $0xa8] sm:$0xff] %vm3384_vm5, %v5162_v3  ;;  %5171 = vpow2.f32 %v3967_v23  ;;  %v2856_v4 = vadd.f32 %v6673_v14, %v2790_v35  ;;  %v2730_v5 = vmax.f32 %v1870_v44, %v2485_v8  ;;  %v4745_v32 = vpop.f32.mrb[183].mxu0  ;;  %v4936_v45 = vpop.f32.mrb[183].mxu1  ;;  %v7447_v35 = vld [vmem:[#allocation22_spill] sm:$0xff]  ;;  %v7448_v3 = vld [vmem:[#allocation23_spill] sm:$0xff] }
 0x259   : > { %5173 = vrcp.f32 %v3225_v43  ;;  %v3968_v1 = vmul.f32 -1.442695, %v2985_v6  ;;  %v7449_v43 = vmax.f32 %v7447_v35, %v7448_v3 }
 0x25a   : > { %v5164_v42 = vpop.eup %5163  ;;  %v2921_v2 = vmul.f32 %v6686_v56, %v2856_v4  ;;  %v2791_v47 = vmax.f32 %v7440_v59, %v2730_v5  ;;  %v1875_v63 = vpop.f32.mrb[184].mxu0 }
 0x25b   : > { %v5166_v48 = vpop.eup %5165  ;;  %v3226_v20 = vadd.f32 1.0, %v5164_v42  ;;  %v2490_v53 = vpop.f32.mrb[184].mxu1  ;;  %5175 = vpow2.f32 %v3968_v1 }
 0x25c   : > { %3407 = vst.msk [vmem:[%s6787_s4 + $0xb0] sm:$0xff] %vm3384_vm5, %v5166_v48  ;;  %v2986_v60 = vadd.f32 %v6689_v50, %v2921_v2  ;;  %v2857_v9 = vadd.f32 %v6673_v14, %v2791_v47  ;;  %v2731_v22 = vmax.f32 %v1875_v63, %v2490_v53  ;;  %v4748_v11 = vpop.f32.mrb[185].mxu0  ;;  %v4939_v17 = vpop.f32.mrb[185].mxu1  ;;  %v7450_v47 = vld [vmem:[#allocation24_spill] sm:$0xff]  ;;  %v7451_v48 = vld [vmem:[#allocation25_spill] sm:$0xff] }
 0x25d   : > { %5177 = vrcp.f32 %v3226_v20  ;;  %v7452_v20 = vmax.f32 %v7450_v47, %v7451_v48 }
 0x25e   : > { %v5168_v18 = vpop.eup %5167  ;;  %v3969_v36 = vmul.f32 -1.442695, %v2986_v60  ;;  %v2922_v46 = vmul.f32 %v6686_v56, %v2857_v9  ;;  %v2792_v61 = vmax.f32 %v7443_v24, %v2731_v22  ;;  %v1880_v28 = vpop.f32.mrb[186].mxu0 }
 0x25f   : > { %v5170_v62 = vpop.eup %5169  ;;  %v3227_v52 = vadd.f32 1.0, %v5168_v18  ;;  %v2495_v51 = vpop.f32.mrb[186].mxu1 }
 0x260   : > { %3408 = vst.msk [vmem:[%s6787_s4 + $0xb8] sm:$0xff] %vm3384_vm5, %v5170_v62  ;;  %5179 = vpow2.f32 %v3969_v36  ;;  %v2987_v7 = vadd.f32 %v6689_v50, %v2922_v46  ;;  %v2858_v15 = vadd.f32 %v6673_v14, %v2792_v61  ;;  %v2732_v16 = vmax.f32 %v1880_v28, %v2495_v51  ;;  %v4751_v57 = vpop.f32.mrb[187].mxu0  ;;  %v4942_v39 = vpop.f32.mrb[187].mxu1  ;;  %v7453_v61 = vld [vmem:[#allocation26_spill] sm:$0xff]  ;;  %v7454_v62 = vld [vmem:[#allocation27_spill] sm:$0xff] }
 0x261   : > { %5181 = vrcp.f32 %v3227_v52  ;;  %v7455_v52 = vmax.f32 %v7453_v61, %v7454_v62 }
 0x262   : > { %v5172_v10 = vpop.eup %5171  ;;  %v3970_v58 = vmul.f32 -1.442695, %v2987_v7  ;;  %v2923_v12 = vmul.f32 %v6686_v56, %v2858_v15  ;;  %v2793_v54 = vmax.f32 %v7446_v13, %v2732_v16  ;;  %v1885_v21 = vpop.f32.mrb[188].mxu0 }
 0x263   : > { %v5174_v40 = vpop.eup %5173  ;;  %v3228_v41 = vadd.f32 1.0, %v5172_v10  ;;  %v2500_v26 = vpop.f32.mrb[188].mxu1 }
 0x264   : > { %3409 = vst.msk [vmem:[%s6787_s4 + $0xc0] sm:$0xff] %vm3384_vm5, %v5174_v40  ;;  %5183 = vpow2.f32 %v3970_v58  ;;  %v2988_v27 = vadd.f32 %v6689_v50, %v2923_v12  ;;  %v2859_v37 = vadd.f32 %v6673_v14, %v2793_v54  ;;  %v2733_v0 = vmax.f32 %v1885_v21, %v2500_v26  ;;  %v4754_v23 = vpop.f32.mrb[189].mxu0  ;;  %v4945_v38 = vpop.f32.mrb[189].mxu1  ;;  %v7456_v54 = vld [vmem:[#allocation28_spill] sm:$0xff]  ;;  %v7457_v40 = vld [vmem:[#allocation29_spill] sm:$0xff] }
 0x265   : > { %5185 = vrcp.f32 %v3228_v41  ;;  %v5176_v55 = vpop.eup %5175  ;;  %v7458_v41 = vmax.f32 %v7456_v54, %v7457_v40 }
 0x266   : > { %v3971_v49 = vmul.f32 -1.442695, %v2988_v27  ;;  %v2924_v29 = vmul.f32 %v6686_v56, %v2859_v37  ;;  %v2794_v44 = vmax.f32 %v7449_v43, %v2733_v0  ;;  %v3229_v6 = vadd.f32 1.0, %v5176_v55  ;;  %v1890_v4 = vpop.f32.mrb[190].mxu0  ;;  %v2505_v5 = vpop.f32.mrb[190].mxu1 }
 0x267   : > { %v5178_v8 = vpop.eup %5177  ;;  %v2734_v42 = vmax.f32 %v1890_v4, %v2505_v5  ;;  %v4757_v1 = vpop.f32.mrb[191].mxu0 }
 0x268   : > { %3410 = vst.msk [vmem:[%s6787_s4 + $0xc8] sm:$0xff] %vm3384_vm5, %v5178_v8  ;;  %5187 = vpow2.f32 %v3971_v49  ;;  %v2989_v32 = vadd.f32 %v6689_v50, %v2924_v29  ;;  %v2860_v45 = vadd.f32 %v6673_v14, %v2794_v44  ;;  %v4948_v2 = vpop.f32.mrb[191].mxu1  ;;  %v7459_v44 = vld [vmem:[#allocation30_spill] sm:$0xff]  ;;  %v7460_v8 = vld [vmem:[#allocation31_spill] sm:$0xff] }
 0x269   : > { %5189 = vrcp.f32 %v3229_v6  ;;  %v2795_v63 = vmax.f32 %v7452_v20, %v2734_v42  ;;  %v7461_v6 = vmax.f32 %v7459_v44, %v7460_v8 }
 0x26a   : > { %v5180_v25 = vpop.eup %5179  ;;  %v3972_v19 = vmul.f32 -1.442695, %v2989_v32  ;;  %v2925_v59 = vmul.f32 %v6686_v56, %v2860_v45  ;;  %v1895_v9 = vpop.f32.mrb[192].mxu0 }
 0x26b   : > { %v5182_v53 = vpop.eup %5181  ;;  %v3230_v60 = vadd.f32 1.0, %v5180_v25  ;;  %v2510_v22 = vpop.f32.mrb[192].mxu1  ;;  %v2861_v17 = vadd.f32 %v6673_v14, %v2795_v63  ;;  %v7462_v63 = vld [vmem:[#allocation32_spill] sm:$0xff] }
 0x26c   : > { %3411 = vst.msk [vmem:[%s6787_s4 + $0xd0] sm:$0xff] %vm3384_vm5, %v5182_v53  ;;  %5191 = vpow2.f32 %v3972_v19  ;;  %v2990_v11 = vadd.f32 %v6689_v50, %v2925_v59  ;;  %v2735_v18 = vmax.f32 %v1895_v9, %v2510_v22  ;;  %v4760_v36 = vpop.f32.mrb[193].mxu0  ;;  %v4951_v46 = vpop.f32.mrb[193].mxu1  ;;  %v7463_v53 = vld [vmem:[#allocation33_spill] sm:$0xff] }
 0x26d   : > { %5193 = vrcp.f32 %v3230_v60  ;;  %v2926_v24 = vmul.f32 %v6686_v56, %v2861_v17  ;;  %v7464_v60 = vmax.f32 %v7462_v63, %v7463_v53 }
 0x26e   : > { %v5184_v33 = vpop.eup %5183  ;;  %v3973_v34 = vmul.f32 -1.442695, %v2990_v11  ;;  %v2796_v28 = vmax.f32 %v7455_v52, %v2735_v18  ;;  %v1900_v15 = vpop.f32.mrb[194].mxu0 }
 0x26f   : > { %v5186_v51 = vpop.eup %5185  ;;  %v3231_v7 = vadd.f32 1.0, %v5184_v33  ;;  %v2515_v16 = vpop.f32.mrb[194].mxu1  ;;  %v2991_v57 = vadd.f32 %v6689_v50, %v2926_v24 }
 0x270   : > { %3412 = vst.msk [vmem:[%s6787_s4 + $0xd8] sm:$0xff] %vm3384_vm5, %v5186_v51  ;;  %5195 = vpow2.f32 %v3973_v34  ;;  %v2862_v39 = vadd.f32 %v6673_v14, %v2796_v28  ;;  %v2736_v10 = vmax.f32 %v1900_v15, %v2515_v16  ;;  %v4763_v58 = vpop.f32.mrb[195].mxu0  ;;  %v4954_v12 = vpop.f32.mrb[195].mxu1  ;;  %v7465_v28 = vld [vmem:[#allocation34_spill] sm:$0xff]  ;;  %v7466_v51 = vld [vmem:[#allocation35_spill] sm:$0xff] }
 0x271   : > { %5197 = vrcp.f32 %v3231_v7  ;;  %v3974_v31 = vmul.f32 -1.442695, %v2991_v57  ;;  %v7467_v7 = vmax.f32 %v7465_v28, %v7466_v51 }
 0x272   : > { %v5188_v30 = vpop.eup %5187  ;;  %v2927_v13 = vmul.f32 %v6686_v56, %v2862_v39  ;;  %v2797_v21 = vmax.f32 %v7458_v41, %v2736_v10  ;;  %v1905_v37 = vpop.f32.mrb[196].mxu0 }
 0x273   : > { %v5190_v26 = vpop.eup %5189  ;;  %v3232_v27 = vadd.f32 1.0, %v5188_v30  ;;  %v2520_v0 = vpop.f32.mrb[196].mxu1  ;;  %5199 = vpow2.f32 %v3974_v31 }
 0x274   : > { %3413 = vst.msk [vmem:[%s6787_s4 + $0xe0] sm:$0xff] %vm3384_vm5, %v5190_v26  ;;  %v2992_v23 = vadd.f32 %v6689_v50, %v2927_v13  ;;  %v2863_v38 = vadd.f32 %v6673_v14, %v2797_v21  ;;  %v2737_v55 = vmax.f32 %v1905_v37, %v2520_v0  ;;  %v4766_v49 = vpop.f32.mrb[197].mxu0  ;;  %v4957_v29 = vpop.f32.mrb[197].mxu1  ;;  %v7468_v21 = vld [vmem:[#allocation36_spill] sm:$0xff]  ;;  %v7469_v26 = vld [vmem:[#allocation37_spill] sm:$0xff] }
 0x275   : > { %5201 = vrcp.f32 %v3232_v27  ;;  %v7470_v27 = vmax.f32 %v7468_v21, %v7469_v26 }
 0x276   : > { %v5192_v35 = vpop.eup %5191  ;;  %v3975_v3 = vmul.f32 -1.442695, %v2992_v23  ;;  %v2928_v43 = vmul.f32 %v6686_v56, %v2863_v38  ;;  %v2798_v4 = vmax.f32 %v7461_v6, %v2737_v55  ;;  %v1910_v45 = vpop.f32.mrb[198].mxu0 }
 0x277   : > { %v5194_v5 = vpop.eup %5193  ;;  %v3233_v32 = vadd.f32 1.0, %v5192_v35  ;;  %v2525_v42 = vpop.f32.mrb[198].mxu1 }
 0x278   : > { %3414 = vst.msk [vmem:[%s6787_s4 + $0xe8] sm:$0xff] %vm3384_vm5, %v5194_v5  ;;  %5203 = vpow2.f32 %v3975_v3  ;;  %v2993_v1 = vadd.f32 %v6689_v50, %v2928_v43  ;;  %v2864_v2 = vadd.f32 %v6673_v14, %v2798_v4  ;;  %v2738_v25 = vmax.f32 %v1910_v45, %v2525_v42  ;;  %v4769_v19 = vpop.f32.mrb[199].mxu0  ;;  %v4960_v59 = vpop.f32.mrb[199].mxu1  ;;  %v7471_v4 = vld [vmem:[#allocation38_spill] sm:$0xff]  ;;  %v7472_v5 = vld [vmem:[#allocation39_spill] sm:$0xff] }
 0x279   : > { %5205 = vrcp.f32 %v3233_v32  ;;  %v7473_v32 = vmax.f32 %v7471_v4, %v7472_v5 }
 0x27a   : > { %v5196_v47 = vpop.eup %5195  ;;  %v3976_v48 = vmul.f32 -1.442695, %v2993_v1  ;;  %v2929_v20 = vmul.f32 %v6686_v56, %v2864_v2  ;;  %v2799_v9 = vmax.f32 %v7464_v60, %v2738_v25  ;;  %v1915_v17 = vpop.f32.mrb[200].mxu0 }
 0x27b   : > { %v5198_v22 = vpop.eup %5197  ;;  %v3234_v11 = vadd.f32 1.0, %v5196_v47  ;;  %v2530_v18 = vpop.f32.mrb[200].mxu1 }
 0x27c   : > { %3415 = vst.msk [vmem:[%s6787_s4 + $0xf0] sm:$0xff] %vm3384_vm5, %v5198_v22  ;;  %5207 = vpow2.f32 %v3976_v48  ;;  %v2994_v36 = vadd.f32 %v6689_v50, %v2929_v20  ;;  %v2865_v46 = vadd.f32 %v6673_v14, %v2799_v9  ;;  %v2739_v33 = vmax.f32 %v1915_v17, %v2530_v18  ;;  %v4772_v34 = vpop.f32.mrb[201].mxu0  ;;  %v4963_v24 = vpop.f32.mrb[201].mxu1  ;;  %v7474_v9 = vld [vmem:[#allocation40_spill] sm:$0xff]  ;;  %v7475_v22 = vld [vmem:[#allocation41_spill] sm:$0xff] }
 0x27d   : > { %5209 = vrcp.f32 %v3234_v11  ;;  %v5200_v61 = vpop.eup %5199  ;;  %v7476_v11 = vmax.f32 %v7474_v9, %v7475_v22 }
 0x27e   : > { %v3977_v62 = vmul.f32 -1.442695, %v2994_v36  ;;  %v2930_v52 = vmul.f32 %v6686_v56, %v2865_v46  ;;  %v2800_v15 = vmax.f32 %v7467_v7, %v2739_v33  ;;  %v3235_v57 = vadd.f32 1.0, %v5200_v61  ;;  %v1920_v39 = vpop.f32.mrb[202].mxu0  ;;  %v2535_v10 = vpop.f32.mrb[202].mxu1 }
 0x27f   : > { %v5202_v16 = vpop.eup %5201  ;;  %v2740_v30 = vmax.f32 %v1920_v39, %v2535_v10  ;;  %v4775_v31 = vpop.f32.mrb[203].mxu0 }
 0x280   : > { %3416 = vst.msk [vmem:[%s6787_s4 + $0xf8] sm:$0xff] %vm3384_vm5, %v5202_v16  ;;  %5211 = vpow2.f32 %v3977_v62  ;;  %v2995_v58 = vadd.f32 %v6689_v50, %v2930_v52  ;;  %v2866_v12 = vadd.f32 %v6673_v14, %v2800_v15  ;;  %v4966_v13 = vpop.f32.mrb[203].mxu1  ;;  %v7477_v15 = vld [vmem:[#allocation42_spill] sm:$0xff]  ;;  %v7478_v16 = vld [vmem:[#allocation43_spill] sm:$0xff] }
 0x281   : > { %5213 = vrcp.f32 %v3235_v57  ;;  %v2801_v37 = vmax.f32 %v7470_v27, %v2740_v30  ;;  %v7479_v57 = vmax.f32 %v7477_v15, %v7478_v16 }
 0x282   : > { %v5204_v54 = vpop.eup %5203  ;;  %v3978_v40 = vmul.f32 -1.442695, %v2995_v58  ;;  %v2931_v41 = vmul.f32 %v6686_v56, %v2866_v12  ;;  %v1925_v38 = vpop.f32.mrb[204].mxu0 }
 0x283   : > { %v5206_v0 = vpop.eup %5205  ;;  %v3236_v23 = vadd.f32 1.0, %v5204_v54  ;;  %v2540_v55 = vpop.f32.mrb[204].mxu1  ;;  %v2867_v29 = vadd.f32 %v6673_v14, %v2801_v37  ;;  %v7480_v37 = vld [vmem:[#allocation44_spill] sm:$0xff] }
 0x284   : > { %3417 = vst.msk [vmem:[%s6787_s4 + $0x100] sm:$0xff] %vm3384_vm5, %v5206_v0  ;;  %5215 = vpow2.f32 %v3978_v40  ;;  %v2996_v49 = vadd.f32 %v6689_v50, %v2931_v41  ;;  %v2741_v35 = vmax.f32 %v1925_v38, %v2540_v55  ;;  %v4778_v3 = vpop.f32.mrb[205].mxu0  ;;  %v4969_v43 = vpop.f32.mrb[205].mxu1  ;;  %v7481_v0 = vld [vmem:[#allocation45_spill] sm:$0xff] }
 0x285   : > { %5217 = vrcp.f32 %v3236_v23  ;;  %v2932_v6 = vmul.f32 %v6686_v56, %v2867_v29  ;;  %v7482_v23 = vmax.f32 %v7480_v37, %v7481_v0 }
 0x286   : > { %v5208_v44 = vpop.eup %5207  ;;  %v3979_v8 = vmul.f32 -1.442695, %v2996_v49  ;;  %v2802_v45 = vmax.f32 %v7473_v32, %v2741_v35  ;;  %v1930_v2 = vpop.f32.mrb[206].mxu0 }
 0x287   : > { %v5210_v42 = vpop.eup %5209  ;;  %v3237_v1 = vadd.f32 1.0, %v5208_v44  ;;  %v2545_v25 = vpop.f32.mrb[206].mxu1  ;;  %v2997_v19 = vadd.f32 %v6689_v50, %v2932_v6 }
 0x288   : > { %3418 = vst.msk [vmem:[%s6787_s4 + $0x108] sm:$0xff] %vm3384_vm5, %v5210_v42  ;;  %5219 = vpow2.f32 %v3979_v8  ;;  %v2868_v59 = vadd.f32 %v6673_v14, %v2802_v45  ;;  %v2742_v47 = vmax.f32 %v1930_v2, %v2545_v25  ;;  %v4781_v48 = vpop.f32.mrb[207].mxu0  ;;  %v4972_v20 = vpop.f32.mrb[207].mxu1  ;;  %v7483_v45 = vld [vmem:[#allocation46_spill] sm:$0xff]  ;;  %v7484_v42 = vld [vmem:[#allocation47_spill] sm:$0xff] }
 0x289   : > { %5221 = vrcp.f32 %v3237_v1  ;;  %v3980_v53 = vmul.f32 -1.442695, %v2997_v19  ;;  %v7485_v1 = vmax.f32 %v7483_v45, %v7484_v42 }
 0x28a   : > { %v5212_v63 = vpop.eup %5211  ;;  %v2933_v60 = vmul.f32 %v6686_v56, %v2868_v59  ;;  %v2803_v17 = vmax.f32 %v7476_v11, %v2742_v47  ;;  %v1935_v46 = vpop.f32.mrb[208].mxu0 }
 0x28b   : > { %v5214_v18 = vpop.eup %5213  ;;  %v3238_v36 = vadd.f32 1.0, %v5212_v63  ;;  %v2550_v33 = vpop.f32.mrb[208].mxu1  ;;  %5223 = vpow2.f32 %v3980_v53 }
 0x28c   : > { %3419 = vst.msk [vmem:[%s6787_s4 + $0x110] sm:$0xff] %vm3384_vm5, %v5214_v18  ;;  %v2998_v34 = vadd.f32 %v6689_v50, %v2933_v60  ;;  %v2869_v24 = vadd.f32 %v6673_v14, %v2803_v17  ;;  %v2743_v61 = vmax.f32 %v1935_v46, %v2550_v33  ;;  %v4784_v62 = vpop.f32.mrb[209].mxu0  ;;  %v4975_v52 = vpop.f32.mrb[209].mxu1  ;;  %v7486_v17 = vld [vmem:[#allocation48_spill] sm:$0xff]  ;;  %v7487_v18 = vld [vmem:[#allocation49_spill] sm:$0xff] }
 0x28d   : > { %5225 = vrcp.f32 %v3238_v36  ;;  %v7488_v36 = vmax.f32 %v7486_v17, %v7487_v18 }
 0x28e   : > { %v5216_v28 = vpop.eup %5215  ;;  %v3981_v51 = vmul.f32 -1.442695, %v2998_v34  ;;  %v2934_v7 = vmul.f32 %v6686_v56, %v2869_v24  ;;  %v2804_v39 = vmax.f32 %v7479_v57, %v2743_v61  ;;  %v1940_v12 = vpop.f32.mrb[210].mxu0 }
 0x28f   : > { %v5218_v10 = vpop.eup %5217  ;;  %v3239_v58 = vadd.f32 1.0, %v5216_v28  ;;  %v2555_v30 = vpop.f32.mrb[210].mxu1 }
 0x290   : > { %3420 = vst.msk [vmem:[%s6787_s4 + $0x118] sm:$0xff] %vm3384_vm5, %v5218_v10  ;;  %5227 = vpow2.f32 %v3981_v51  ;;  %v2999_v31 = vadd.f32 %v6689_v50, %v2934_v7  ;;  %v2870_v13 = vadd.f32 %v6673_v14, %v2804_v39  ;;  %v2744_v54 = vmax.f32 %v1940_v12, %v2555_v30  ;;  %v4787_v40 = vpop.f32.mrb[211].mxu0  ;;  %v4978_v41 = vpop.f32.mrb[211].mxu1  ;;  %v7489_v39 = vld [vmem:[#allocation50_spill] sm:$0xff]  ;;  %v7490_v10 = vld [vmem:[#allocation51_spill] sm:$0xff] }
 0x291   : > { %5229 = vrcp.f32 %v3239_v58  ;;  %v7491_v58 = vmax.f32 %v7489_v39, %v7490_v10 }
 0x292   : > { %v5220_v21 = vpop.eup %5219  ;;  %v3982_v26 = vmul.f32 -1.442695, %v2999_v31  ;;  %v2935_v27 = vmul.f32 %v6686_v56, %v2870_v13  ;;  %v2805_v38 = vmax.f32 %v7482_v23, %v2744_v54  ;;  %v1945_v29 = vpop.f32.mrb[212].mxu0 }
 0x293   : > { %v5222_v55 = vpop.eup %5221  ;;  %v3240_v49 = vadd.f32 1.0, %v5220_v21  ;;  %v2560_v35 = vpop.f32.mrb[212].mxu1 }
 0x294   : > { %3421 = vst.msk [vmem:[%s6787_s4 + $0x120] sm:$0xff] %vm3384_vm5, %v5222_v55  ;;  %5231 = vpow2.f32 %v3982_v26  ;;  %v3000_v3 = vadd.f32 %v6689_v50, %v2935_v27  ;;  %v2871_v43 = vadd.f32 %v6673_v14, %v2805_v38  ;;  %v2745_v44 = vmax.f32 %v1945_v29, %v2560_v35  ;;  %v4790_v8 = vpop.f32.mrb[213].mxu0  ;;  %v4981_v6 = vpop.f32.mrb[213].mxu1  ;;  %v7492_v38 = vld [vmem:[#allocation52_spill] sm:$0xff]  ;;  %v7493_v55 = vld [vmem:[#allocation53_spill] sm:$0xff] }
 0x295   : > { %5233 = vrcp.f32 %v3240_v49  ;;  %v5224_v4 = vpop.eup %5223  ;;  %v7494_v49 = vmax.f32 %v7492_v38, %v7493_v55 }
 0x296   : > { %v3983_v5 = vmul.f32 -1.442695, %v3000_v3  ;;  %v2936_v32 = vmul.f32 %v6686_v56, %v2871_v43  ;;  %v2806_v2 = vmax.f32 %v7485_v1, %v2745_v44  ;;  %v3241_v19 = vadd.f32 1.0, %v5224_v4  ;;  %v1950_v59 = vpop.f32.mrb[214].mxu0  ;;  %v2565_v47 = vpop.f32.mrb[214].mxu1 }
 0x297   : > { %v5226_v25 = vpop.eup %5225  ;;  %v2746_v63 = vmax.f32 %v1950_v59, %v2565_v47  ;;  %v4793_v53 = vpop.f32.mrb[215].mxu0 }
 0x298   : > { %3422 = vst.msk [vmem:[%s6787_s4 + $0x128] sm:$0xff] %vm3384_vm5, %v5226_v25  ;;  %5235 = vpow2.f32 %v3983_v5  ;;  %v3001_v48 = vadd.f32 %v6689_v50, %v2936_v32  ;;  %v2872_v20 = vadd.f32 %v6673_v14, %v2806_v2  ;;  %v4984_v60 = vpop.f32.mrb[215].mxu1  ;;  %v7495_v2 = vld [vmem:[#allocation54_spill] sm:$0xff]  ;;  %v7496_v25 = vld [vmem:[#allocation55_spill] sm:$0xff] }
 0x299   : > { %5237 = vrcp.f32 %v3241_v19  ;;  %v2807_v46 = vmax.f32 %v7488_v36, %v2746_v63  ;;  %v7497_v19 = vmax.f32 %v7495_v2, %v7496_v25 }
 0x29a   : > { %v5228_v9 = vpop.eup %5227  ;;  %v3984_v22 = vmul.f32 -1.442695, %v3001_v48  ;;  %v2937_v11 = vmul.f32 %v6686_v56, %v2872_v20  ;;  %v1955_v24 = vpop.f32.mrb[216].mxu0 }
 0x29b   : > { %v5230_v33 = vpop.eup %5229  ;;  %v3242_v34 = vadd.f32 1.0, %v5228_v9  ;;  %v2570_v61 = vpop.f32.mrb[216].mxu1  ;;  %v2873_v52 = vadd.f32 %v6673_v14, %v2807_v46  ;;  %v7498_v46 = vld [vmem:[#allocation56_spill] sm:$0xff] }
 0x29c   : > { %3423 = vst.msk [vmem:[%s6787_s4 + $0x130] sm:$0xff] %vm3384_vm5, %v5230_v33  ;;  %5239 = vpow2.f32 %v3984_v22  ;;  %v3002_v62 = vadd.f32 %v6689_v50, %v2937_v11  ;;  %v2747_v28 = vmax.f32 %v1955_v24, %v2570_v61  ;;  %v4796_v51 = vpop.f32.mrb[217].mxu0  ;;  %v4987_v7 = vpop.f32.mrb[217].mxu1  ;;  %v7499_v33 = vld [vmem:[#allocation57_spill] sm:$0xff] }
 0x29d   : > { %5241 = vrcp.f32 %v3242_v34  ;;  %v2938_v57 = vmul.f32 %v6686_v56, %v2873_v52  ;;  %v7500_v34 = vmax.f32 %v7498_v46, %v7499_v33 }
 0x29e   : > { %v5232_v15 = vpop.eup %5231  ;;  %v3985_v16 = vmul.f32 -1.442695, %v3002_v62  ;;  %v2808_v12 = vmax.f32 %v7491_v58, %v2747_v28  ;;  %v1960_v13 = vpop.f32.mrb[218].mxu0 }
 0x29f   : > { %v5234_v30 = vpop.eup %5233  ;;  %v3243_v31 = vadd.f32 1.0, %v5232_v15  ;;  %v2575_v54 = vpop.f32.mrb[218].mxu1  ;;  %v3003_v40 = vadd.f32 %v6689_v50, %v2938_v57 }
 0x2a0   : > { %3424 = vst.msk [vmem:[%s6787_s4 + $0x138] sm:$0xff] %vm3384_vm5, %v5234_v30  ;;  %5243 = vpow2.f32 %v3985_v16  ;;  %v2874_v41 = vadd.f32 %v6673_v14, %v2808_v12  ;;  %v2748_v21 = vmax.f32 %v1960_v13, %v2575_v54  ;;  %v4799_v26 = vpop.f32.mrb[219].mxu0  ;;  %v4990_v27 = vpop.f32.mrb[219].mxu1  ;;  %v7501_v12 = vld [vmem:[#allocation58_spill] sm:$0xff]  ;;  %v7502_v30 = vld [vmem:[#allocation59_spill] sm:$0xff] }
 0x2a1   : > { %5245 = vrcp.f32 %v3243_v31  ;;  %v3986_v0 = vmul.f32 -1.442695, %v3003_v40  ;;  %v7503_v31 = vmax.f32 %v7501_v12, %v7502_v30 }
 0x2a2   : > { %v5236_v37 = vpop.eup %5235  ;;  %v2939_v23 = vmul.f32 %v6686_v56, %v2874_v41  ;;  %v2809_v29 = vmax.f32 %v7494_v49, %v2748_v21  ;;  %v1965_v43 = vpop.f32.mrb[220].mxu0 }
 0x2a3   : > { %v5238_v35 = vpop.eup %5237  ;;  %v3244_v3 = vadd.f32 1.0, %v5236_v37  ;;  %v2580_v44 = vpop.f32.mrb[220].mxu1  ;;  %5247 = vpow2.f32 %v3986_v0 }
 0x2a4   : > { %3425 = vst.msk [vmem:[%s6787_s4 + $0x140] sm:$0xff] %vm3384_vm5, %v5238_v35  ;;  %v3004_v8 = vadd.f32 %v6689_v50, %v2939_v23  ;;  %v2875_v6 = vadd.f32 %v6673_v14, %v2809_v29  ;;  %v2749_v4 = vmax.f32 %v1965_v43, %v2580_v44  ;;  %v4802_v5 = vpop.f32.mrb[221].mxu0  ;;  %v4993_v32 = vpop.f32.mrb[221].mxu1  ;;  %v7504_v29 = vld [vmem:[#allocation60_spill] sm:$0xff]  ;;  %v7505_v35 = vld [vmem:[#allocation61_spill] sm:$0xff] }
 0x2a5   : > { %5249 = vrcp.f32 %v3244_v3  ;;  %v7506_v3 = vmax.f32 %v7504_v29, %v7505_v35 }
 0x2a6   : > { %v5240_v45 = vpop.eup %5239  ;;  %v3987_v42 = vmul.f32 -1.442695, %v3004_v8  ;;  %v2940_v1 = vmul.f32 %v6686_v56, %v2875_v6  ;;  %v2810_v59 = vmax.f32 %v7497_v19, %v2749_v4  ;;  %v1970_v20 = vpop.f32.mrb[222].mxu0 }
 0x2a7   : > { %v5242_v47 = vpop.eup %5241  ;;  %v3245_v48 = vadd.f32 1.0, %v5240_v45  ;;  %v2585_v63 = vpop.f32.mrb[222].mxu1 }
 0x2a8   : > { %3426 = vst.msk [vmem:[%s6787_s4 + $0x148] sm:$0xff] %vm3384_vm5, %v5242_v47  ;;  %5251 = vpow2.f32 %v3987_v42  ;;  %v3005_v53 = vadd.f32 %v6689_v50, %v2940_v1  ;;  %v2876_v60 = vadd.f32 %v6673_v14, %v2810_v59  ;;  %v2750_v9 = vmax.f32 %v1970_v20, %v2585_v63  ;;  %v4805_v22 = vpop.f32.mrb[223].mxu0  ;;  %v4996_v11 = vpop.f32.mrb[223].mxu1  ;;  %v7507_v59 = vld [vmem:[#allocation62_spill] sm:$0xff]  ;;  %v7508_v47 = vld [vmem:[#allocation63_spill] sm:$0xff] }
 0x2a9   : > { %5253 = vrcp.f32 %v3245_v48  ;;  %v7509_v48 = vmax.f32 %v7507_v59, %v7508_v47 }
 0x2aa   : > { %v5244_v17 = vpop.eup %5243  ;;  %v3988_v18 = vmul.f32 -1.442695, %v3005_v53  ;;  %v2941_v36 = vmul.f32 %v6686_v56, %v2876_v60  ;;  %v2811_v24 = vmax.f32 %v7500_v34, %v2750_v9  ;;  %v1975_v52 = vpop.f32.mrb[224].mxu0 }
 0x2ab   : > { %v5246_v61 = vpop.eup %5245  ;;  %v3246_v62 = vadd.f32 1.0, %v5244_v17  ;;  %v2590_v28 = vpop.f32.mrb[224].mxu1 }
 0x2ac   : > { %3427 = vst.msk [vmem:[%s6787_s4 + $0x150] sm:$0xff] %vm3384_vm5, %v5246_v61  ;;  %5255 = vpow2.f32 %v3988_v18  ;;  %v3006_v51 = vadd.f32 %v6689_v50, %v2941_v36  ;;  %v2877_v7 = vadd.f32 %v6673_v14, %v2811_v24  ;;  %v2751_v15 = vmax.f32 %v1975_v52, %v2590_v28  ;;  %v4808_v16 = vpop.f32.mrb[225].mxu0  ;;  %v4999_v57 = vpop.f32.mrb[225].mxu1  ;;  %v7510_v24 = vld [vmem:[#allocation64_spill] sm:$0xff]  ;;  %v7511_v61 = vld [vmem:[#allocation65_spill] sm:$0xff] }
 0x2ad   : > { %5257 = vrcp.f32 %v3246_v62  ;;  %v5248_v39 = vpop.eup %5247  ;;  %v7512_v62 = vmax.f32 %v7510_v24, %v7511_v61 }
 0x2ae   : > { %v3989_v10 = vmul.f32 -1.442695, %v3006_v51  ;;  %v2942_v58 = vmul.f32 %v6686_v56, %v2877_v7  ;;  %v2812_v13 = vmax.f32 %v7503_v31, %v2751_v15  ;;  %v3247_v40 = vadd.f32 1.0, %v5248_v39  ;;  %v1980_v41 = vpop.f32.mrb[226].mxu0  ;;  %v2595_v21 = vpop.f32.mrb[226].mxu1 }
 0x2af   : > { %v5250_v54 = vpop.eup %5249  ;;  %v2752_v37 = vmax.f32 %v1980_v41, %v2595_v21  ;;  %v4811_v0 = vpop.f32.mrb[227].mxu0 }
 0x2b0   : > { %3428 = vst.msk [vmem:[%s6787_s4 + $0x158] sm:$0xff] %vm3384_vm5, %v5250_v54  ;;  %5259 = vpow2.f32 %v3989_v10  ;;  %v3007_v26 = vadd.f32 %v6689_v50, %v2942_v58  ;;  %v2878_v27 = vadd.f32 %v6673_v14, %v2812_v13  ;;  %v5002_v23 = vpop.f32.mrb[227].mxu1  ;;  %v7513_v13 = vld [vmem:[#allocation66_spill] sm:$0xff]  ;;  %v7514_v54 = vld [vmem:[#allocation67_spill] sm:$0xff] }
 0x2b1   : > { %5261 = vrcp.f32 %v3247_v40  ;;  %v2813_v43 = vmax.f32 %v7506_v3, %v2752_v37  ;;  %v7515_v40 = vmax.f32 %v7513_v13, %v7514_v54 }
 0x2b2   : > { %v5252_v38 = vpop.eup %5251  ;;  %v3990_v55 = vmul.f32 -1.442695, %v3007_v26  ;;  %v2943_v49 = vmul.f32 %v6686_v56, %v2878_v27  ;;  %v1985_v6 = vpop.f32.mrb[228].mxu0 }
 0x2b3   : > { %v5254_v44 = vpop.eup %5253  ;;  %v3248_v8 = vadd.f32 1.0, %v5252_v38  ;;  %v2600_v4 = vpop.f32.mrb[228].mxu1  ;;  %v2879_v32 = vadd.f32 %v6673_v14, %v2813_v43  ;;  %v7516_v43 = vld [vmem:[#allocation68_spill] sm:$0xff] }
 0x2b4   : > { %3429 = vst.msk [vmem:[%s6787_s4 + $0x160] sm:$0xff] %vm3384_vm5, %v5254_v44  ;;  %5263 = vpow2.f32 %v3990_v55  ;;  %v3008_v5 = vadd.f32 %v6689_v50, %v2943_v49  ;;  %v2753_v45 = vmax.f32 %v1985_v6, %v2600_v4  ;;  %v4814_v42 = vpop.f32.mrb[229].mxu0  ;;  %v5005_v1 = vpop.f32.mrb[229].mxu1  ;;  %v7517_v44 = vld [vmem:[#allocation69_spill] sm:$0xff] }
 0x2b5   : > { %5265 = vrcp.f32 %v3248_v8  ;;  %v2944_v19 = vmul.f32 %v6686_v56, %v2879_v32  ;;  %v7518_v8 = vmax.f32 %v7516_v43, %v7517_v44 }
 0x2b6   : > { %v5256_v2 = vpop.eup %5255  ;;  %v3991_v25 = vmul.f32 -1.442695, %v3008_v5  ;;  %v2814_v20 = vmax.f32 %v7509_v48, %v2753_v45  ;;  %v1990_v60 = vpop.f32.mrb[230].mxu0 }
 0x2b7   : > { %v5258_v63 = vpop.eup %5257  ;;  %v3249_v53 = vadd.f32 1.0, %v5256_v2  ;;  %v2605_v9 = vpop.f32.mrb[230].mxu1  ;;  %v3009_v22 = vadd.f32 %v6689_v50, %v2944_v19 }
 0x2b8   : > { %3430 = vst.msk [vmem:[%s6787_s4 + $0x168] sm:$0xff] %vm3384_vm5, %v5258_v63  ;;  %5267 = vpow2.f32 %v3991_v25  ;;  %v2880_v11 = vadd.f32 %v6673_v14, %v2814_v20  ;;  %v2754_v17 = vmax.f32 %v1990_v60, %v2605_v9  ;;  %v4817_v18 = vpop.f32.mrb[231].mxu0  ;;  %v5008_v36 = vpop.f32.mrb[231].mxu1  ;;  %v7519_v20 = vld [vmem:[#allocation70_spill] sm:$0xff]  ;;  %v7520_v63 = vld [vmem:[#allocation71_spill] sm:$0xff] }
 0x2b9   : > { %5269 = vrcp.f32 %v3249_v53  ;;  %v3992_v33 = vmul.f32 -1.442695, %v3009_v22  ;;  %v7521_v53 = vmax.f32 %v7519_v20, %v7520_v63 }
 0x2ba   : > { %v5260_v46 = vpop.eup %5259  ;;  %v2945_v34 = vmul.f32 %v6686_v56, %v2880_v11  ;;  %v2815_v52 = vmax.f32 %v7512_v62, %v2754_v17  ;;  %v1995_v7 = vpop.f32.mrb[232].mxu0 }
 0x2bb   : > { %v5262_v28 = vpop.eup %5261  ;;  %v3250_v51 = vadd.f32 1.0, %v5260_v46  ;;  %v2610_v15 = vpop.f32.mrb[232].mxu1  ;;  %5271 = vpow2.f32 %v3992_v33 }
 0x2bc   : > { %3431 = vst.msk [vmem:[%s6787_s4 + $0x170] sm:$0xff] %vm3384_vm5, %v5262_v28  ;;  %v3010_v16 = vadd.f32 %v6689_v50, %v2945_v34  ;;  %v2881_v57 = vadd.f32 %v6673_v14, %v2815_v52  ;;  %v2755_v39 = vmax.f32 %v1995_v7, %v2610_v15  ;;  %v4820_v10 = vpop.f32.mrb[233].mxu0  ;;  %v5011_v58 = vpop.f32.mrb[233].mxu1  ;;  %v7522_v52 = vld [vmem:[#allocation72_spill] sm:$0xff]  ;;  %v7523_v28 = vld [vmem:[#allocation73_spill] sm:$0xff] }
 0x2bd   : > { %5273 = vrcp.f32 %v3250_v51  ;;  %v7524_v51 = vmax.f32 %v7522_v52, %v7523_v28 }
 0x2be   : > { %v5264_v12 = vpop.eup %5263  ;;  %v3993_v30 = vmul.f32 -1.442695, %v3010_v16  ;;  %v2946_v31 = vmul.f32 %v6686_v56, %v2881_v57  ;;  %v2816_v41 = vmax.f32 %v7515_v40, %v2755_v39  ;;  %v2000_v27 = vpop.f32.mrb[234].mxu0 }
 0x2bf   : > { %v5266_v21 = vpop.eup %5265  ;;  %v3251_v26 = vadd.f32 1.0, %v5264_v12  ;;  %v2615_v37 = vpop.f32.mrb[234].mxu1 }
 0x2c0   : > { %3432 = vst.msk [vmem:[%s6787_s4 + $0x178] sm:$0xff] %vm3384_vm5, %v5266_v21  ;;  %5275 = vpow2.f32 %v3993_v30  ;;  %v3011_v0 = vadd.f32 %v6689_v50, %v2946_v31  ;;  %v2882_v23 = vadd.f32 %v6673_v14, %v2816_v41  ;;  %v2756_v38 = vmax.f32 %v2000_v27, %v2615_v37  ;;  %v4823_v55 = vpop.f32.mrb[235].mxu0  ;;  %v5014_v49 = vpop.f32.mrb[235].mxu1  ;;  %v7525_v41 = vld [vmem:[#allocation74_spill] sm:$0xff]  ;;  %v7526_v21 = vld [vmem:[#allocation75_spill] sm:$0xff] }
 0x2c1   : > { %5277 = vrcp.f32 %v3251_v26  ;;  %v7527_v26 = vmax.f32 %v7525_v41, %v7526_v21 }
 0x2c2   : > { %v5268_v29 = vpop.eup %5267  ;;  %v3994_v35 = vmul.f32 -1.442695, %v3011_v0  ;;  %v2947_v3 = vmul.f32 %v6686_v56, %v2882_v23  ;;  %v2817_v6 = vmax.f32 %v7518_v8, %v2756_v38  ;;  %v2005_v32 = vpop.f32.mrb[236].mxu0 }
 0x2c3   : > { %v5270_v4 = vpop.eup %5269  ;;  %v3252_v5 = vadd.f32 1.0, %v5268_v29  ;;  %v2620_v45 = vpop.f32.mrb[236].mxu1 }
 0x2c4   : > { %3433 = vst.msk [vmem:[%s6787_s4 + $0x180] sm:$0xff] %vm3384_vm5, %v5270_v4  ;;  %5279 = vpow2.f32 %v3994_v35  ;;  %v3012_v42 = vadd.f32 %v6689_v50, %v2947_v3  ;;  %v2883_v1 = vadd.f32 %v6673_v14, %v2817_v6  ;;  %v2757_v2 = vmax.f32 %v2005_v32, %v2620_v45  ;;  %v4826_v25 = vpop.f32.mrb[237].mxu0  ;;  %v5017_v19 = vpop.f32.mrb[237].mxu1  ;;  %v7528_v6 = vld [vmem:[#allocation76_spill] sm:$0xff]  ;;  %v7529_v4 = vld [vmem:[#allocation77_spill] sm:$0xff] }
 0x2c5   : > { %5281 = vrcp.f32 %v3252_v5  ;;  %v5272_v59 = vpop.eup %5271  ;;  %v7530_v5 = vmax.f32 %v7528_v6, %v7529_v4 }
 0x2c6   : > { %v3995_v47 = vmul.f32 -1.442695, %v3012_v42  ;;  %v2948_v48 = vmul.f32 %v6686_v56, %v2883_v1  ;;  %v2818_v60 = vmax.f32 %v7521_v53, %v2757_v2  ;;  %v3253_v22 = vadd.f32 1.0, %v5272_v59  ;;  %v2010_v11 = vpop.f32.mrb[238].mxu0  ;;  %v2625_v17 = vpop.f32.mrb[238].mxu1 }
 0x2c7   : > { %v5274_v9 = vpop.eup %5273  ;;  %v2758_v46 = vmax.f32 %v2010_v11, %v2625_v17  ;;  %v4829_v33 = vpop.f32.mrb[239].mxu0 }
 0x2c8   : > { %3434 = vst.msk [vmem:[%s6787_s4 + $0x188] sm:$0xff] %vm3384_vm5, %v5274_v9  ;;  %5283 = vpow2.f32 %v3995_v47  ;;  %v3013_v18 = vadd.f32 %v6689_v50, %v2948_v48  ;;  %v2884_v36 = vadd.f32 %v6673_v14, %v2818_v60  ;;  %v5020_v34 = vpop.f32.mrb[239].mxu1 }
 0x2c9   : > { %5285 = vrcp.f32 %v3253_v22  ;;  %v2819_v7 = vmax.f32 %v7524_v51, %v2758_v46 }
 0x2ca   : > { %v5276_v24 = vpop.eup %5275  ;;  %v3996_v61 = vmul.f32 -1.442695, %v3013_v18  ;;  %v2949_v62 = vmul.f32 %v6686_v56, %v2884_v36  ;;  %v2015_v57 = vpop.f32.mrb[240].mxu0 }
 0x2cb   : > { %v5278_v15 = vpop.eup %5277  ;;  %v3254_v16 = vadd.f32 1.0, %v5276_v24  ;;  %v2630_v39 = vpop.f32.mrb[240].mxu1  ;;  %v2885_v58 = vadd.f32 %v6673_v14, %v2819_v7 }
 0x2cc   : > { %3435 = vst.msk [vmem:[%s6787_s4 + $0x190] sm:$0xff] %vm3384_vm5, %v5278_v15  ;;  %5287 = vpow2.f32 %v3996_v61  ;;  %v3014_v10 = vadd.f32 %v6689_v50, %v2949_v62  ;;  %v2759_v12 = vmax.f32 %v2015_v57, %v2630_v39  ;;  %v4832_v30 = vpop.f32.mrb[241].mxu0  ;;  %v5023_v31 = vpop.f32.mrb[241].mxu1 }
 0x2cd   : > { %5289 = vrcp.f32 %v3254_v16  ;;  %v2950_v40 = vmul.f32 %v6686_v56, %v2885_v58 }
 0x2ce   : > { %v5280_v13 = vpop.eup %5279  ;;  %v3997_v54 = vmul.f32 -1.442695, %v3014_v10  ;;  %v2820_v27 = vmax.f32 %v7527_v26, %v2759_v12  ;;  %v2020_v23 = vpop.f32.mrb[242].mxu0 }
 0x2cf   : > { %v5282_v37 = vpop.eup %5281  ;;  %v3255_v0 = vadd.f32 1.0, %v5280_v13  ;;  %v2635_v38 = vpop.f32.mrb[242].mxu1  ;;  %v3015_v55 = vadd.f32 %v6689_v50, %v2950_v40 }
 0x2d0   : > { %3436 = vst.msk [vmem:[%s6787_s4 + $0x198] sm:$0xff] %vm3384_vm5, %v5282_v37  ;;  %5291 = vpow2.f32 %v3997_v54  ;;  %v2886_v49 = vadd.f32 %v6673_v14, %v2820_v27  ;;  %v2760_v29 = vmax.f32 %v2020_v23, %v2635_v38  ;;  %v4835_v35 = vpop.f32.mrb[243].mxu0  ;;  %v5026_v3 = vpop.f32.mrb[243].mxu1 }
 0x2d1   : > { %5293 = vrcp.f32 %v3255_v0  ;;  %v3998_v44 = vmul.f32 -1.442695, %v3015_v55 }
 0x2d2   : > { %v5284_v43 = vpop.eup %5283  ;;  %v2951_v8 = vmul.f32 %v6686_v56, %v2886_v49  ;;  %v2821_v32 = vmax.f32 %v7530_v5, %v2760_v29 }
 0x2d3   : > { %v5286_v45 = vpop.eup %5285  ;;  %v3256_v42 = vadd.f32 1.0, %v5284_v43  ;;  %5295 = vpow2.f32 %v3998_v44 }
 0x2d4   : > { %3437 = vst.msk [vmem:[%s6787_s4 + $0x1a0] sm:$0xff] %vm3384_vm5, %v5286_v45  ;;  %v3016_v1 = vadd.f32 %v6689_v50, %v2951_v8  ;;  %v2887_v2 = vadd.f32 %v6673_v14, %v2821_v32 }
 0x2d5   : > { %5297 = vrcp.f32 %v3256_v42 }
 0x2d6   : > { %v5288_v25 = vpop.eup %5287  ;;  %v3999_v19 = vmul.f32 -1.442695, %v3016_v1  ;;  %v2952_v59 = vmul.f32 %v6686_v56, %v2887_v2 }
 0x2d7   : > { %v5290_v47 = vpop.eup %5289  ;;  %v3257_v48 = vadd.f32 1.0, %v5288_v25 }
 0x2d8   : > { %3438 = vst.msk [vmem:[%s6787_s4 + $0x1a8] sm:$0xff] %vm3384_vm5, %v5290_v47  ;;  %5299 = vpow2.f32 %v3999_v19  ;;  %v3017_v20 = vadd.f32 %v6689_v50, %v2952_v59 }
 0x2d9   : > { %5301 = vrcp.f32 %v3257_v48 }
 0x2da   : > { %v5292_v63 = vpop.eup %5291  ;;  %v4000_v53 = vmul.f32 -1.442695, %v3017_v20 }
 0x2db   : > { %v5294_v60 = vpop.eup %5293  ;;  %v3258_v9 = vadd.f32 1.0, %v5292_v63 }
 0x2dc   : > { %3439 = vst.msk [vmem:[%s6787_s4 + $0x1b0] sm:$0xff] %vm3384_vm5, %v5294_v60  ;;  %5303 = vpow2.f32 %v4000_v53 }
 0x2dd   : > { %5305 = vrcp.f32 %v3258_v9  ;;  %v5296_v14 = vpop.eup %5295 }
 0x2de   : > { %v3259_v22 = vadd.f32 1.0, %v5296_v14 }
 0x2df   : > { %v5298_v56 = vpop.eup %5297 }
 0x2e0   : > { %3440 = vst.msk [vmem:[%s6787_s4 + $0x1b8] sm:$0xff] %vm3384_vm5, %v5298_v56  ;;  %5307 = vrcp.f32 %v3259_v22 }
 0x2e2   : > { %v5300_v50 = vpop.eup %5299 }
 0x2e3   : > { %v5302_v11 = vpop.eup %5301  ;;  %v3260_v17 = vadd.f32 1.0, %v5300_v50 }
 0x2e4   : > { %3441 = vst.msk [vmem:[%s6787_s4 + $0x1c0] sm:$0xff] %vm3384_vm5, %v5302_v11 }
 0x2e5   : > { %5309 = vrcp.f32 %v3260_v17 }
 0x2e6   : > { %v5304_v18 = vpop.eup %5303 }
 0x2e7   : > { %v5306_v36 = vpop.eup %5305  ;;  %v3261_v46 = vadd.f32 1.0, %v5304_v18 }
 0x2e8   : > { %3442 = vst.msk [vmem:[%s6787_s4 + $0x1c8] sm:$0xff] %vm3384_vm5, %v5306_v36 }
 0x2e9   : > { %5311 = vrcp.f32 %v3261_v46 }
 0x2ea   : > { %v5308_v33 = vpop.eup %5307 }
 0x2eb   : > { %3443 = vst.msk [vmem:[%s6787_s4 + $0x1d0] sm:$0xff] %vm3384_vm5, %v5308_v33 }
 0x2ef   : > { %v5310_v34 = vpop.eup %5309 }
 0x2f0   : > { %3444 = vst.msk [vmem:[%s6787_s4 + $0x1d8] sm:$0xff] %vm3384_vm5, %v5310_v34 }
 0x2f3   : > { %v5312_v24 = vpop.eup %5311 }
 0x2f4   : > { %3446 = vst.msk [vmem:[%s6787_s4 + $0x1e0] sm:$0xf] %vm3445_vm6, %v5312_v24 }
 0x2f5 PF: > { %s13_s12 = sadd.s32 1, %s5319_s12  }
 0x2f6   : > { %p10_p4 = scmp.ge.s32.totalorder %s13_s12, 4  }
 0x2f8   :  { %12 = sbr.rel (!%p10_p4) target bundleno = 1 (0x1), region = 65 }

// kernel: forward.3
= control target key start
LH: loop header
LB: loop body
LE: loop exit
PB: predicated region body
PF: predicated region fallthrough
CT: control target
= control target key end

     0   :  { %17 = vsyncpa [#allocation3], 0  ;;  %s6543_s21 = smov 0   ;;  %s8578_s0 = inlined_call_operand.vmem [shape: f32[2,4,81,750], index: 0, kind: input, shape index: {}]   ;;  %s8579_s1 = inlined_call_operand.vmem [shape: f32[750,30], index: 1, kind: input, shape index: {}]   ;;  %s8580_s2 = inlined_call_operand.vmem [shape: f32[8,30], index: 2, kind: input, shape index: {}]   ;;  %s8581_s3 = inlined_call_operand.vmem [shape: f32[30,5], index: 3, kind: input, shape index: {}]   ;;  %s8582_s4 = inlined_call_operand.vmem [shape: f32[30,5], index: 4, kind: input, shape index: {}]   ;;  %s8583_s5 = inlined_call_operand.vmem [shape: f32[30,5], index: 5, kind: input, shape index: {}]   ;;  %s8584_s6 = inlined_call_operand.vmem [shape: f32[5,30], index: 6, kind: input, shape index: {}]   ;;  %s8585_s7 = inlined_call_operand.vmem [shape: f32[3,5], index: 7, kind: input, shape index: {}]   ;;  %s8586_s8 = inlined_call_operand.vmem [shape: f32[30,30], index: 8, kind: input, shape index: {}]   ;;  %s8587_s9 = inlined_call_operand.vmem [shape: f32[30,30], index: 9, kind: input, shape index: {}]   ;;  %s8588_s10 = inlined_call_operand.vmem [shape: f32[81,30], index: 10, kind: input, shape index: {}]   ;;  %s8589_s11 = inlined_call_operand.vmem [shape: f32[2], index: 11, kind: input, shape index: {}]   ;;  %s8590_s12 = inlined_call_operand.vmem [shape: f32[2,1,1], index: 12, kind: output, shape index: {}]  }
   0x1 LB: > { %s6549_s22 = sadd.s32 4294967295, %s6471_s21   ;;  %p4283_p0 = scmp.ge.s32.totalorder %s6471_s21, 1  ;;  %s6471_s21 = sphi %s6543_s21, %s23_s21  }
   0x2   : > { %p311_p1 = scmp.lt.s32.totalorder %s6471_s21, 3  ;;  %s354_s25 = sshll.u32 %s8589_s11, 4  ;;  %s355_s25 = int_to_ptr.vmem [resolvable:$true] %s354_s25 }
   0x3   : > { %p6210_p3 = scmp.eq.s32.totalorder %s6549_s22, 0  ;;  %s6446_s27 = scalar_lea.vmem %s355_s25, 16 }
   0x4   : > { %p6556_p2 = pnand %p4283_p0, %p311_p1  ;;  %p6447_p6 = scmp.ne.s32.totalorder %s355_s25, %s6446_s27 }
   0x5   : > { %p6454_p10 = scmp.lt.s32.totalorder %s355_s25, %s355_s25  ;;  %p6455_p11 = scmp.lt.s32.totalorder %s6446_s27, %s6446_s27 }
   0x6   : > { %p6206_p4 = pneg %p6556_p2 }
   0x7   : > { %p6456_p12 = por %p6455_p11, %p6454_p10 }
   0x8   : > { %p6207_p5 = pnand %p6210_p3, %p6206_p4 }
   0xa   : > { %p6448_p7 = pneg %p6207_p5 }
   0xc   : > { %p6449_p8 = pnand %p6448_p7, %p6447_p6 }
   0xe   : > { %p6450_p9 = pneg %p6449_p8 }
  0x10   : > { %p6457_p13 = pnand %p6456_p12, %p6450_p9 }
  0x12   : > { %6460 = shalt.err (!%p6457_p13)
}
  0x13   : > { %s6473_s28 = smov [#allocation2]   ;;  %375 = sbr.rel (%p6556_p2) target bundleno = 2516 (0x9d4), region = 68 }
  0x14   : > { %6209 = dma.vmem_to_smem (!%p6207_p5), %s355_s25, 16, %s6473_s28, [#allocation3]  }
  0x1a   : > { %6466 = dma.done.wait (%p6210_p3), [#allocation3], 16  }
  0x1b   : > { %6468 = vsyncadd (%p6210_p3), [#allocation3], 4294967280 }
  0x1c   : > { %381 = sfence }
  0x1d   : > { %v440_v0 = vld [vmem:[%s8579_s1 + $0x80] sm:$0xff]  ;;  %v441_v1 = vld [vmem:[%s8579_s1 + $0x88] sm:$0xff]  ;;  %v442_v11 = vld [vmem:[%s8579_s1 + $0x90] sm:$0xff]  ;;  %p416_p0 = scmp.lt.s32.totalorder %s6549_s22, 1  ;;  %vm584_vm0 = vcmask 900096   ;;  %vm618_vm1 = vcmask 1045504  }
  0x1e   : > { %v472_v2 = vld [vmem:[%s8579_s1 + $0x180] sm:$0xff]  ;;  %v6580_v3 = vpack.c.bf16 %v441_v1, %v440_v0  ;;  %v473_v4 = vld [vmem:[%s8579_s1 + $0x188] sm:$0xff]  ;;  %v443_v13 = vld [vmem:[%s8579_s1 + $0x98] sm:$0xff]  ;;  %vm6475_vm2 = vmmov 1   ;;  %vm6476_vm4 = vmmov 0   ;;  %vm2516_vm5 = vcmask 244736  }
  0x1f   : > { %v424_v5 = vld [vmem:[%s8579_s1] sm:$0xff]  ;;  %v425_v6 = vld [vmem:[%s8579_s1 + $0x8] sm:$0xff]  ;;  %v6591_v7 = vpack.c.bf16 %v473_v4, %v472_v2  ;;  %v474_v14 = vld [vmem:[%s8579_s1 + $0x190] sm:$0xff]  ;;  %v6618_v16 = vpack.c.bf16 %v443_v13, %v442_v11  ;;  %s8618_s22 = smov (!%p416_p0, %s6549_s22), 1  ;;  %vm2935_vm6 = vcmask 39936   ;;  %vm3278_vm8 = vcmask 1040384  }
  0x20   : > { %v6593_v8 = vpack.c.bf16 %v425_v6, %v424_v5  ;;  %v456_v9 = vld [vmem:[%s8579_s1 + $0x100] sm:$0xff]  ;;  %v457_v10 = vld [vmem:[%s8579_s1 + $0x108] sm:$0xff]  ;;  %5690 = vmatprep.subr.bf16.mxu0 %v6580_v3  ;;  %v475_v15 = vld [vmem:[%s8579_s1 + $0x198] sm:$0xff]  ;;  %s6201_s15 = smul.u32 2112, %s8618_s22  ;;  %vm3122_vm9 = vcmask 662528   ;;  %vm3153_vm10 = vcmask 655360   ;;  %s423_s28 = scalar_lea.vmem %s8590_s12, %s8618_s22 }
  0x21   : > { %v6605_v12 = vpack.c.bf16 %v457_v10, %v456_v9  ;;  %5722 = vmatprep.subr.bf16.mxu1 %v6591_v7  ;;  %v6620_v17 = vpack.c.bf16 %v475_v15, %v474_v14  ;;  %v426_v18 = vld [vmem:[%s8579_s1 + $0x10] sm:$0xff]  ;;  %v427_v19 = vld [vmem:[%s8579_s1 + $0x18] sm:$0xff]  ;;  %v444_v23 = vld [vmem:[%s8579_s1 + $0xa0] sm:$0xff]  ;;  %vm3440_vm11 = vcmask 1044480   ;;  %s3564_s25 = sld [smem:[#allocation2]]  ;;  %vm4196_vm12 = vcmask 237568  }
  0x22   : > { %5692 = vmatpush3.bf16.msra.mxu0 %v6593_v8  ;;  %v458_v20 = vld [vmem:[%s8579_s1 + $0x110] sm:$0xff]  ;;  %v6632_v21 = vpack.c.bf16 %v427_v19, %v426_v18  ;;  %v459_v22 = vld [vmem:[%s8579_s1 + $0x118] sm:$0xff]  ;;  %v445_v24 = vld [vmem:[%s8579_s1 + $0xa8] sm:$0xff]  ;;  %s6793_s19 = scalar_lea.vmem %s8578_s0, %s6201_s15  ;;  %s4685_s26 = sld [smem:[#allocation2 + $0x1]]  ;;  %vm4220_vm13 = vcmask 0  }
  0x23   : > { %5724 = vmatpush3.bf16.msra.mxu1 %v6605_v12  ;;  %5694 = vmatprep.subr.bf16.mxu0 %v6618_v16  ;;  %v6645_v25 = vpack.c.bf16 %v459_v22, %v458_v20  ;;  %v6647_v26 = vpack.c.bf16 %v445_v24, %v444_v23  ;;  %v476_v27 = vld [vmem:[%s8579_s1 + $0x1a0] sm:$0xff]  ;;  %v477_v28 = vld [vmem:[%s8579_s1 + $0x1a8] sm:$0xff]  ;;  %v446_v35 = vld [vmem:[%s8579_s1 + $0xb0] sm:$0xff] }
  0x24   : > { %5726 = vmatprep.subr.bf16.mxu1 %v6620_v17  ;;  %v428_v29 = vld [vmem:[%s8579_s1 + $0x20] sm:$0xff]  ;;  %v6659_v30 = vpack.c.bf16 %v477_v28, %v476_v27  ;;  %v429_v31 = vld [vmem:[%s8579_s1 + $0x28] sm:$0xff]  ;;  %v447_v36 = vld [vmem:[%s8579_s1 + $0xb8] sm:$0xff] }
  0x25   : > { %v460_v32 = vld [vmem:[%s8579_s1 + $0x120] sm:$0xff]  ;;  %v461_v33 = vld [vmem:[%s8579_s1 + $0x128] sm:$0xff]  ;;  %v6671_v34 = vpack.c.bf16 %v429_v31, %v428_v29  ;;  %v478_v37 = vld [vmem:[%s8579_s1 + $0x1b0] sm:$0xff]  ;;  %v6686_v39 = vpack.c.bf16 %v447_v36, %v446_v35 }
  0x26   : > { %5696 = vmatpush3.bf16.msra.mxu0 %v6632_v21  ;;  %v6684_v38 = vpack.c.bf16 %v461_v33, %v460_v32  ;;  %v479_v40 = vld [vmem:[%s8579_s1 + $0x1b8] sm:$0xff]  ;;  %v430_v41 = vld [vmem:[%s8579_s1 + $0x30] sm:$0xff]  ;;  %v448_v46 = vld [vmem:[%s8579_s1 + $0xc0] sm:$0xff] }
  0x27   : > { %5728 = vmatpush3.bf16.msra.mxu1 %v6645_v25  ;;  %5698 = vmatprep.subr.bf16.mxu0 %v6647_v26  ;;  %v431_v42 = vld [vmem:[%s8579_s1 + $0x38] sm:$0xff]  ;;  %v6698_v43 = vpack.c.bf16 %v479_v40, %v478_v37  ;;  %v462_v44 = vld [vmem:[%s8579_s1 + $0x130] sm:$0xff]  ;;  %v449_v47 = vld [vmem:[%s8579_s1 + $0xc8] sm:$0xff] }
  0x28   : > { %5730 = vmatprep.subr.bf16.mxu1 %v6659_v30  ;;  %v463_v45 = vld [vmem:[%s8579_s1 + $0x138] sm:$0xff]  ;;  %v480_v48 = vld [vmem:[%s8579_s1 + $0x1c0] sm:$0xff]  ;;  %v481_v49 = vld [vmem:[%s8579_s1 + $0x1c8] sm:$0xff]  ;;  %v6724_v50 = vpack.c.bf16 %v431_v42, %v430_v41  ;;  %v6730_v52 = vpack.c.bf16 %v449_v47, %v448_v46 }
  0x29   : > { %v6728_v51 = vpack.c.bf16 %v463_v45, %v462_v44  ;;  %v432_v53 = vld [vmem:[%s8579_s1 + $0x40] sm:$0xff]  ;;  %v433_v54 = vld [vmem:[%s8579_s1 + $0x48] sm:$0xff]  ;;  %v6742_v56 = vpack.c.bf16 %v481_v49, %v480_v48  ;;  %v450_v58 = vld [vmem:[%s8579_s1 + $0xd0] sm:$0xff] }
  0x2a   : > { %5700 = vmatpush3.bf16.msra.mxu0 %v6671_v34  ;;  %v464_v55 = vld [vmem:[%s8579_s1 + $0x140] sm:$0xff]  ;;  %v465_v57 = vld [vmem:[%s8579_s1 + $0x148] sm:$0xff]  ;;  %v451_v59 = vld [vmem:[%s8579_s1 + $0xd8] sm:$0xff]  ;;  %v6761_v62 = vpack.c.bf16 %v433_v54, %v432_v53 }
  0x2b   : > { %5732 = vmatpush3.bf16.msra.mxu1 %v6684_v38  ;;  %5702 = vmatprep.subr.bf16.mxu0 %v6686_v39  ;;  %v482_v60 = vld [vmem:[%s8579_s1 + $0x1d0] sm:$0xff]  ;;  %v483_v61 = vld [vmem:[%s8579_s1 + $0x1d8] sm:$0xff]  ;;  %v6765_v63 = vpack.c.bf16 %v465_v57, %v464_v55  ;;  %v6767_v0 = vpack.c.bf16 %v451_v59, %v450_v58  ;;  %v452_v9 = vld [vmem:[%s8579_s1 + $0xe0] sm:$0xff]  ;;  %v8591_v57 = vmov 0.0|0.0  }
  0x2c   : > { %5734 = vmatprep.subr.bf16.mxu1 %v6698_v43  ;;  %v434_v1 = vld [vmem:[%s8579_s1 + $0x50] sm:$0xff]  ;;  %v435_v2 = vld [vmem:[%s8579_s1 + $0x58] sm:$0xff]  ;;  %v6779_v5 = vpack.c.bf16 %v483_v61, %v482_v60  ;;  %v453_v10 = vld [vmem:[%s8579_s1 + $0xe8] sm:$0xff] }
  0x2d   : > { %v466_v4 = vld [vmem:[%s8579_s1 + $0x150] sm:$0xff]  ;;  %v467_v6 = vld [vmem:[%s8579_s1 + $0x158] sm:$0xff]  ;;  %v484_v11 = vld [vmem:[%s8579_s1 + $0x1e0] sm:$0xff]  ;;  %v6802_v14 = vpack.c.bf16 %v435_v2, %v434_v1  ;;  %v6814_v20 = vpack.c.bf16 %v453_v10, %v452_v9 }
  0x2e   : > { %5704 = vmatpush3.bf16.msra.mxu0 %v6724_v50  ;;  %v485_v13 = vld [vmem:[%s8579_s1 + $0x1e8] sm:$0xff]  ;;  %v436_v15 = vld [vmem:[%s8579_s1 + $0x60] sm:$0xff]  ;;  %v6812_v19 = vpack.c.bf16 %v467_v6, %v466_v4  ;;  %v521_v24 = vld [vmem:[%s6793_s19 + $0x18] sm:$0xff] }
  0x2f   : > { %5736 = vmatpush3.bf16.msra.mxu1 %v6728_v51  ;;  %5706 = vmatprep.subr.bf16.mxu0 %v6730_v52  ;;  %v437_v18 = vld [vmem:[%s8579_s1 + $0x68] sm:$0xff]  ;;  %v468_v22 = vld [vmem:[%s8579_s1 + $0x160] sm:$0xff]  ;;  %v6822_v27 = vpack.c.bf16 %v485_v13, %v484_v11  ;;  %v454_v29 = vld [vmem:[%s8579_s1 + $0xf0] sm:$0xff] }
  0x30   : > { %5738 = vmatprep.subr.bf16.mxu1 %v6742_v56  ;;  %v519_v23 = vld [vmem:[%s6793_s19 + $0x8] sm:$0xff]  ;;  %v455_v31 = vld [vmem:[%s8579_s1 + $0xf8] sm:$0xff]  ;;  %v486_v32 = vld [vmem:[%s8579_s1 + $0x1f0] sm:$0xff]  ;;  %806 = vmatprep.mubr.f32.mxu1 %v521_v24  ;;  %v6840_v35 = vpack.c.bf16 %v437_v18, %v436_v15 }
  0x31   : > { %v469_v28 = vld [vmem:[%s8579_s1 + $0x168] sm:$0xff]  ;;  %686 = vmatprep.mubr.f32.mxu0 %v519_v23  ;;  %v487_v33 = vld [vmem:[%s8579_s1 + $0x1f8] sm:$0xff]  ;;  %v6846_v37 = vpack.c.bf16 %v455_v31, %v454_v29  ;;  %v438_v40 = vld [vmem:[%s8579_s1 + $0x70] sm:$0xff] }
  0x32   : > { %5708 = vmatpush3.bf16.msra.mxu0 %v6761_v62  ;;  %v6844_v36 = vpack.c.bf16 %v469_v28, %v468_v22  ;;  %v439_v41 = vld [vmem:[%s8579_s1 + $0x78] sm:$0xff]  ;;  %v6855_v42 = vpack.c.bf16 %v487_v33, %v486_v32  ;;  %v470_v44 = vld [vmem:[%s8579_s1 + $0x170] sm:$0xff]  ;;  %v488_v48 = vld [vmem:[%s8579_s1 + $0x200] sm:$0xff] }
  0x33   : > { %5740 = vmatpush3.bf16.msra.mxu1 %v6765_v63  ;;  %5710 = vmatprep.subr.bf16.mxu0 %v6767_v0  ;;  %v471_v45 = vld [vmem:[%s8579_s1 + $0x178] sm:$0xff]  ;;  %v6864_v46 = vpack.c.bf16 %v439_v41, %v438_v40  ;;  %v489_v49 = vld [vmem:[%s8579_s1 + $0x208] sm:$0xff]  ;;  %v518_v53 = vld [vmem:[%s6793_s19] sm:$0xff] }
  0x34   : > { %5742 = vmatprep.subr.bf16.mxu1 %v6779_v5  ;;  %v6868_v47 = vpack.c.bf16 %v471_v45, %v470_v44  ;;  %v6879_v54 = vpack.c.bf16 %v489_v49, %v488_v48  ;;  %v520_v55 = vld [vmem:[%s6793_s19 + $0x10] sm:$0xff]  ;;  %v491_v59 = vld [vmem:[%s8579_s1 + $0x218] sm:$0xff]  ;;  %v527_v60 = vld [vmem:[%s6793_s19 + $0x48] sm:$0xff] }
  0x35   : > { %v490_v58 = vld [vmem:[%s8579_s1 + $0x210] sm:$0xff]  ;;  %v525_v61 = vld [vmem:[%s6793_s19 + $0x38] sm:$0xff]  ;;  %v526_v4 = vld [vmem:[%s6793_s19 + $0x40] sm:$0xff] }
  0x36   : > { %5712 = vmatpush3.bf16.msra.mxu0 %v6802_v14  ;;  %v6894_v1 = vpack.c.bf16 %v491_v59, %v490_v58  ;;  %v524_v2 = vld [vmem:[%s6793_s19 + $0x30] sm:$0xff]  ;;  %v492_v6 = vld [vmem:[%s8579_s1 + $0x220] sm:$0xff]  ;;  %v493_v9 = vld [vmem:[%s8579_s1 + $0x228] sm:$0xff] }
  0x37   : > { %5744 = vmatpush3.bf16.msra.mxu1 %v6812_v19  ;;  %5714 = vmatprep.subr.bf16.mxu0 %v6814_v20  ;;  %v533_v10 = vld [vmem:[%s6793_s19 + $0x78] sm:$0xff]  ;;  %v531_v11 = vld [vmem:[%s6793_s19 + $0x68] sm:$0xff]  ;;  %v6910_v13 = vpack.c.bf16 %v493_v9, %v492_v6  ;;  %v530_v15 = vld [vmem:[%s6793_s19 + $0x60] sm:$0xff] }
  0x38   : > { %5746 = vmatprep.subr.bf16.mxu1 %v6822_v27  ;;  %v532_v18 = vld [vmem:[%s6793_s19 + $0x70] sm:$0xff]  ;;  %v495_v23 = vld [vmem:[%s8579_s1 + $0x238] sm:$0xff]  ;;  %v539_v24 = vld [vmem:[%s6793_s19 + $0xa8] sm:$0xff] }
  0x39   : > { %v494_v22 = vld [vmem:[%s8579_s1 + $0x230] sm:$0xff]  ;;  %v537_v28 = vld [vmem:[%s6793_s19 + $0x98] sm:$0xff]  ;;  %v538_v32 = vld [vmem:[%s6793_s19 + $0xa0] sm:$0xff] }
  0x3a   : > { %5716 = vmatpush3.bf16.msra.mxu0 %v6840_v35  ;;  %v6926_v29 = vpack.c.bf16 %v495_v23, %v494_v22  ;;  %v536_v31 = vld [vmem:[%s6793_s19 + $0x90] sm:$0xff]  ;;  %v496_v33 = vld [vmem:[%s8579_s1 + $0x240] sm:$0xff]  ;;  %v497_v40 = vld [vmem:[%s8579_s1 + $0x248] sm:$0xff] }
  0x3b   : > { %5748 = vmatpush3.bf16.msra.mxu1 %v6844_v36  ;;  %5718 = vmatprep.subr.bf16.mxu0 %v6846_v37  ;;  %v545_v41 = vld [vmem:[%s6793_s19 + $0xd8] sm:$0xff]  ;;  %v543_v44 = vld [vmem:[%s6793_s19 + $0xc8] sm:$0xff]  ;;  %v6942_v45 = vpack.c.bf16 %v497_v40, %v496_v33  ;;  %v542_v48 = vld [vmem:[%s6793_s19 + $0xc0] sm:$0xff] }
  0x3c   : > { %5750 = vmatprep.subr.bf16.mxu1 %v6855_v42  ;;  %v544_v49 = vld [vmem:[%s6793_s19 + $0xd0] sm:$0xff]  ;;  %v551_v58 = vld [vmem:[%s6793_s19 + $0x108] sm:$0xff]  ;;  %v549_v59 = vld [vmem:[%s6793_s19 + $0xf8] sm:$0xff] }
  0x3d   : > { %v501_v6 = vld [vmem:[%s8579_s1 + $0x268] sm:$0xff]  ;;  %v557_v9 = vld [vmem:[%s6793_s19 + $0x138] sm:$0xff]  ;;  %v502_v22 = vld [vmem:[%s8579_s1 + $0x270] sm:$0xff] }
  0x3e   : > { %5720 = vmatpush3.bf16.msra.mxu0 %v6864_v46  ;;  %v503_v23 = vld [vmem:[%s8579_s1 + $0x278] sm:$0xff]  ;;  %v562_v33 = vld [vmem:[%s6793_s19 + $0x160] sm:$0xff]  ;;  %vm7095_vm3 = vmpackc.low %vm618_vm1, %vm6475_vm2 }
  0x3f   : > { %5752 = vmatpush3.bf16.msra.mxu1 %v6868_v47  ;;  %5753 = vmatprep.subr.bf16.mxu0 %v8591_v57  ;;  %v504_v40 = vld [vmem:[%s8579_s1 + $0x280] sm:$0xff]  ;;  %vm8049_vm7 = vmpackc.low %vm2935_vm6, %vm2935_vm6 }
  0x40   : > { %5800 = vmatprep.subr.bf16.mxu1 %v6580_v3 }
  0x41   : > { %687 = vmatmul.mubr.f32.vlgmr.msra.gmra.mrb[0].mxu0 %v518_v53  ;;  %v498_v53 = vld [vmem:[%s8579_s1 + $0x250] sm:$0xff] }
  0x42   : > { %807 = vmatmul.mubr.f32.vlgmr.msra.gmra.mrb[0].mxu1 %v520_v55  ;;  %5755 = vmatpush1.bf16.msra.mxu0 %v6879_v54  ;;  %v499_v55 = vld [vmem:[%s8579_s1 + $0x258] sm:$0xff] }
  0x43   : > { %811 = vmatprep.mubr.f32.mxu1 %v527_v60  ;;  %5756 = vmatprep.subr.bf16.mxu0 %v8591_v57  ;;  %v6958_v60 = vpack.c.bf16 %v499_v55, %v498_v53  ;;  %v566_v53 = vld [vmem:[%s6793_s19 + $0x180] sm:$0xff]  ;;  %v568_v55 = vld [vmem:[%s6793_s19 + $0x190] sm:$0xff] }
  0x44   : > { %5802 = vmatpush3.bf16.msra.mxu1 %v6593_v8  ;;  %691 = vmatprep.mubr.f32.mxu0 %v525_v61  ;;  %v548_v61 = vld [vmem:[%s6793_s19 + $0xf0] sm:$0xff] }
  0x45   : > { %5804 = vmatprep.subr.bf16.mxu1 %v6618_v16  ;;  %692 = vmatmul.mubr.f32.gmra.mrb[2].mxu0 %v524_v2  ;;  %v550_v2 = vld [vmem:[%s6793_s19 + $0x100] sm:$0xff] }
  0x46   : > { %812 = vmatmul.mubr.f32.gmra.mrb[2].mxu1 %v526_v4  ;;  %5758 = vmatpush1.bf16.msra.mxu0 %v6894_v1  ;;  %v500_v4 = vld [vmem:[%s8579_s1 + $0x260] sm:$0xff] }
  0x47   : > { %816 = vmatprep.mubr.f32.mxu1 %v533_v10  ;;  %5759 = vmatprep.subr.bf16.mxu0 %v8591_v57  ;;  %v555_v10 = vld [vmem:[%s6793_s19 + $0x128] sm:$0xff] }
  0x48   : > { %5806 = vmatpush3.bf16.msra.mxu1 %v6632_v21  ;;  %696 = vmatprep.mubr.f32.mxu0 %v531_v11  ;;  %v6974_v11 = vpack.c.bf16 %v501_v6, %v500_v4  ;;  %v572_v6 = vld [vmem:[%s6793_s19 + $0x1b0] sm:$0xff] }
  0x49   : > { %5808 = vmatprep.subr.bf16.mxu1 %v6647_v26  ;;  %697 = vmatmul.mubr.f32.gmra.mrb[4].mxu0 %v530_v15  ;;  %v554_v15 = vld [vmem:[%s6793_s19 + $0x120] sm:$0xff] }
  0x4a   : > { %817 = vmatmul.mubr.f32.gmra.mrb[4].mxu1 %v532_v18  ;;  %5761 = vmatpush1.bf16.msra.mxu0 %v6910_v13  ;;  %v556_v18 = vld [vmem:[%s6793_s19 + $0x130] sm:$0xff] }
  0x4b   : > { %821 = vmatprep.mubr.f32.mxu1 %v539_v24  ;;  %5762 = vmatprep.subr.bf16.mxu0 %v8591_v57  ;;  %v563_v24 = vld [vmem:[%s6793_s19 + $0x168] sm:$0xff] }
  0x4c   : > { %5810 = vmatpush3.bf16.msra.mxu1 %v6671_v34  ;;  %701 = vmatprep.mubr.f32.mxu0 %v537_v28  ;;  %v561_v28 = vld [vmem:[%s6793_s19 + $0x158] sm:$0xff] }
  0x4d   : > { %5812 = vmatprep.subr.bf16.mxu1 %v6686_v39  ;;  %702 = vmatmul.mubr.f32.gmra.mrb[6].mxu0 %v536_v31  ;;  %v6990_v31 = vpack.c.bf16 %v503_v23, %v502_v22  ;;  %v579_v22 = vld [vmem:[%s6793_s19 + $0x1e8] sm:$0x1] }
  0x4e   : > { %822 = vmatmul.mubr.f32.gmra.mrb[6].mxu1 %v538_v32  ;;  %5764 = vmatpush1.bf16.msra.mxu0 %v6926_v29  ;;  %v560_v32 = vld [vmem:[%s6793_s19 + $0x150] sm:$0xff] }
  0x4f   : > { %826 = vmatprep.mubr.f32.mxu1 %v545_v41  ;;  %5765 = vmatprep.subr.bf16.mxu0 %v8591_v57  ;;  %v505_v41 = vld [vmem:[%s8579_s1 + $0x288] sm:$0xff] }
  0x50   : > { %5814 = vmatpush3.bf16.msra.mxu1 %v6724_v50  ;;  %706 = vmatprep.mubr.f32.mxu0 %v543_v44  ;;  %v569_v44 = vld [vmem:[%s6793_s19 + $0x198] sm:$0xff] }
  0x51   : > { %5816 = vmatprep.subr.bf16.mxu1 %v6730_v52  ;;  %707 = vmatmul.mubr.f32.gmra.mrb[8].mxu0 %v542_v48  ;;  %v567_v48 = vld [vmem:[%s6793_s19 + $0x188] sm:$0xff] }
  0x52   : > { %827 = vmatmul.mubr.f32.gmra.mrb[8].mxu1 %v544_v49  ;;  %5767 = vmatpush1.bf16.msra.mxu0 %v6942_v45  ;;  %v7006_v49 = vpack.c.bf16 %v505_v41, %v504_v40  ;;  %v4302_v40 = vld [vmem:[%s6793_s19 + $0x218] sm:$0xff]  ;;  %v523_v41 = vld [vmem:[%s6793_s19 + $0x28] sm:$0xff] }
  0x53   : > { %831 = vmatprep.mubr.f32.mxu1 %v551_v58  ;;  %5768 = vmatprep.subr.bf16.mxu0 %v8591_v57  ;;  %v506_v58 = vld [vmem:[%s8579_s1 + $0x290] sm:$0xff] }
  0x54   : > { %5818 = vmatpush3.bf16.msra.mxu1 %v6761_v62  ;;  %711 = vmatprep.mubr.f32.mxu0 %v549_v59  ;;  %v507_v59 = vld [vmem:[%s8579_s1 + $0x298] sm:$0xff] }
  0x55   : > { %5820 = vmatprep.subr.bf16.mxu1 %v6767_v0  ;;  %712 = vmatmul.mubr.f32.gmra.mrb[10].mxu0 %v548_v61  ;;  %v575_v61 = vld [vmem:[%s6793_s19 + $0x1c8] sm:$0xff]  ;;  %v7022_v4 = vpack.c.bf16 %v507_v59, %v506_v58 }
  0x56   : > { %832 = vmatmul.mubr.f32.gmra.mrb[10].mxu1 %v550_v2  ;;  %5770 = vmatpush1.bf16.msra.mxu0 %v6958_v60  ;;  %v573_v2 = vld [vmem:[%s6793_s19 + $0x1b8] sm:$0xff]  ;;  %v4308_v58 = vld [vmem:[%s6793_s19 + $0x248] sm:$0xff] }
  0x57   : > { %836 = vmatprep.mubr.f32.mxu1 %v557_v9  ;;  %5771 = vmatprep.subr.bf16.mxu0 %v8591_v57  ;;  %v574_v9 = vld [vmem:[%s6793_s19 + $0x1c0] sm:$0xff] }
  0x58   : > { %5822 = vmatpush3.bf16.msra.mxu1 %v6802_v14  ;;  %716 = vmatprep.mubr.f32.mxu0 %v555_v10  ;;  %v508_v10 = vld [vmem:[%s8579_s1 + $0x2a0] sm:$0xff] }
  0x59   : > { %5824 = vmatprep.subr.bf16.mxu1 %v6814_v20  ;;  %717 = vmatmul.mubr.f32.gmra.mrb[12].mxu0 %v554_v15  ;;  %v509_v15 = vld [vmem:[%s8579_s1 + $0x2a8] sm:$0xff] }
  0x5a   : > { %837 = vmatmul.mubr.f32.gmra.mrb[12].mxu1 %v556_v18  ;;  %5773 = vmatpush1.bf16.msra.mxu0 %v6974_v11  ;;  %v581_v18 = vld [vmem:[%s6793_s19 + $0x1f8] sm:$0x1]  ;;  %v7036_v23 = vpack.c.bf16 %v509_v15, %v508_v10  ;;  %v4313_v15 = vld [vmem:[%s6793_s19 + $0x270] sm:$0xff] }
  0x5b   : > { %841 = vmatprep.mubr.f32.mxu1 %v563_v24  ;;  %5774 = vmatprep.subr.bf16.mxu0 %v8591_v57  ;;  %v578_v24 = vld [vmem:[%s6793_s19 + $0x1e0] sm:$0x1] }
  0x5c   : > { %5826 = vmatpush3.bf16.msra.mxu1 %v6840_v35  ;;  %721 = vmatprep.mubr.f32.mxu0 %v561_v28  ;;  %v580_v28 = vld [vmem:[%s6793_s19 + $0x1f0] sm:$0x1] }
  0x5d   : > { %5828 = vmatprep.subr.bf16.mxu1 %v6846_v37  ;;  %722 = vmatmul.mubr.f32.gmra.mrb[14].mxu0 %v560_v32  ;;  %v510_v32 = vld [vmem:[%s8579_s1 + $0x2b0] sm:$0xff] }
  0x5e   : > { %842 = vmatmul.mubr.f32.gmra.mrb[14].mxu1 %v562_v33  ;;  %5776 = vmatpush1.bf16.msra.mxu0 %v6990_v31  ;;  %v511_v33 = vld [vmem:[%s8579_s1 + $0x2b8] sm:$0xff] }
  0x5f   : > { %846 = vmatprep.mubr.f32.mxu1 %v569_v44  ;;  %5777 = vmatprep.subr.bf16.mxu0 %v8591_v57  ;;  %v7050_v44 = vpack.c.bf16 %v511_v33, %v510_v32  ;;  %v4319_v32 = vld [vmem:[%s6793_s19 + $0x2a0] sm:$0xff]  ;;  %v8598_v33 = vmov 0 }
  0x60   : > { %5830 = vmatpush3.bf16.msra.mxu1 %v6864_v46  ;;  %726 = vmatprep.mubr.f32.mxu0 %v567_v48  ;;  %v4301_v48 = vld [vmem:[%s6793_s19 + $0x210] sm:$0xff]  ;;  %v8599_v33 = vsel %vm7095_vm3, 4294967295, %v8598_v33 }
  0x61   : > { %727 = vmatmul.mubr.f32.gmra.mrb[16].mxu0 %v566_v53  ;;  %5832 = vmatprep.subr.bf16.mxu1 %v6591_v7  ;;  %v512_v53 = vld [vmem:[%s8579_s1 + $0x2c0] sm:$0xff]  ;;  %8600 = vst [vmem:[#allocation5_spill] sm:$0xff] %v8599_v33 }
  0x62   : > { %847 = vmatmul.mubr.f32.gmra.mrb[16].mxu1 %v568_v55  ;;  %5779 = vmatpush1.bf16.msra.mxu0 %v7006_v49  ;;  %v513_v55 = vld [vmem:[%s8579_s1 + $0x2c8] sm:$0xff] }
  0x63   : > { %851 = vmatprep.mubr.f32.mxu1 %v575_v61  ;;  %5780 = vmatprep.subr.bf16.mxu0 %v8591_v57  ;;  %v7063_v59 = vpack.c.bf16 %v513_v55, %v512_v53  ;;  %v4307_v61 = vld [vmem:[%s6793_s19 + $0x240] sm:$0xff]  ;;  %v529_v53 = vld [vmem:[%s6793_s19 + $0x58] sm:$0xff]  ;;  %v4332_v55 = vld [vmem:[%s6793_s19 + $0x308] sm:$0xff] }
  0x64   : > { %731 = vmatprep.mubr.f32.mxu0 %v573_v2  ;;  %v514_v2 = vld [vmem:[%s8579_s1 + $0x2d0] sm:$0xff] }
  0x65   : > { %732 = vmatmul.mubr.f32.gmra.mrb[18].mxu0 %v572_v6  ;;  %v515_v6 = vld [vmem:[%s8579_s1 + $0x2d8] sm:$0xff] }
  0x66   : > { %852 = vmatmul.mubr.f32.gmra.mrb[18].mxu1 %v574_v9  ;;  %5782 = vmatpush1.bf16.msra.mxu0 %v7022_v4  ;;  %v4314_v9 = vld [vmem:[%s6793_s19 + $0x278] sm:$0xff]  ;;  %v7077_v10 = vpack.c.bf16 %v515_v6, %v514_v2  ;;  %v535_v2 = vld [vmem:[%s6793_s19 + $0x88] sm:$0xff] }
  0x67   : > { %856 = vmatprep.mubr.f32.mxu1 %v581_v18  ;;  %5783 = vmatprep.subr.bf16.mxu0 %v8591_v57  ;;  %v516_v18 = vld [vmem:[%s8579_s1 + $0x2e0] sm:$0xff]  ;;  %v4338_v6 = vld [vmem:[%s6793_s19 + $0x338] sm:$0xff] }
  0x68   : > { %736 = vmatprep.mubr.f32.mxu0 %v579_v22  ;;  %v517_v22 = vld [vmem:[%s8579_s1 + $0x2e8] sm:$0x3f] }
  0x69   : > { %737 = vmatmul.mubr.f32.gmra.mrb[20].mxu0 %v578_v24  ;;  %v4320_v24 = vld [vmem:[%s6793_s19 + $0x2a8] sm:$0xff] }
  0x6a   : > { %857 = vmatmul.mubr.f32.gmra.mrb[20].mxu1 %v580_v28  ;;  %5785 = vmatpush1.bf16.msra.mxu0 %v7036_v23  ;;  %v7091_v28 = vpack.c.bf16 %v517_v22, %v516_v18  ;;  %v541_v18 = vld [vmem:[%s6793_s19 + $0xb8] sm:$0xff]  ;;  %v4344_v22 = vld [vmem:[%s6793_s19 + $0x368] sm:$0xff] }
  0x6b   : > { %1146 = vmatprep.mubr.f32.mxu1 %v4302_v40  ;;  %5786 = vmatprep.subr.bf16.mxu0 %v8591_v57  ;;  %v4326_v40 = vld [vmem:[%s6793_s19 + $0x2d8] sm:$0xff] }
  0x6c   : > { %4290 = vmatprep.mubr.msk.f32.mxu0 %vm584_vm0, %v523_v41  ;;  %v522_v41 = vld [vmem:[%s6793_s19 + $0x20] sm:$0xff] }
  0x6e   : > { %1147 = vmatmul.mubr.f32.vlgmr.msra.gmra.mrb[22].mxu1 %v4301_v48  ;;  %5788 = vmatpush1.bf16.msra.mxu0 %v7050_v44  ;;  %v4325_v48 = vld [vmem:[%s6793_s19 + $0x2d0] sm:$0xff] }
  0x6f   : > { %1151 = vmatprep.mubr.f32.mxu1 %v4308_v58  ;;  %5789 = vmatprep.subr.bf16.mxu0 %v8591_v57  ;;  %v528_v58 = vld [vmem:[%s6793_s19 + $0x50] sm:$0xff] }
  0x70   : > { %5834 = vmatpush3.bf16.msra.mxu1 %v6605_v12 }
  0x71   : > { %5836 = vmatprep.subr.bf16.mxu1 %v6620_v17 }
  0x72   : > { %1152 = vmatmul.mubr.f32.gmra.mrb[24].mxu1 %v4307_v61  ;;  %5791 = vmatpush1.bf16.msra.mxu0 %v7063_v59  ;;  %v4331_v61 = vld [vmem:[%s6793_s19 + $0x300] sm:$0xff] }
  0x73   : > { %1156 = vmatprep.mubr.f32.mxu1 %v4314_v9  ;;  %5792 = vmatprep.subr.bf16.mxu0 %v8591_v57  ;;  %v534_v9 = vld [vmem:[%s6793_s19 + $0x80] sm:$0xff] }
  0x74   : > { %5838 = vmatpush3.bf16.msra.mxu1 %v6645_v25 }
  0x75   : > { %5840 = vmatprep.subr.bf16.mxu1 %v6659_v30 }
  0x76   : > { %1157 = vmatmul.mubr.f32.gmra.mrb[26].mxu1 %v4313_v15  ;;  %5794 = vmatpush1.bf16.msra.mxu0 %v7077_v10  ;;  %v4337_v15 = vld [vmem:[%s6793_s19 + $0x330] sm:$0xff] }
  0x77   : > { %1161 = vmatprep.mubr.f32.mxu1 %v4320_v24  ;;  %5795 = vmatprep.subr.bf16.mxu0 %v8591_v57  ;;  %v540_v24 = vld [vmem:[%s6793_s19 + $0xb0] sm:$0xff] }
  0x78   : > { %5842 = vmatpush3.bf16.msra.mxu1 %v6684_v38 }
  0x79   : > { %5844 = vmatprep.subr.bf16.mxu1 %v6698_v43 }
  0x7a   : > { %1162 = vmatmul.mubr.f32.gmra.mrb[28].mxu1 %v4319_v32  ;;  %5798 = vmatpush1.bf16.msk.msra.mxu0 %vm7095_vm3, %v7091_v28  ;;  %v4343_v32 = vld [vmem:[%s6793_s19 + $0x360] sm:$0xff] }
  0x7b   : > { %1166 = vmatprep.mubr.f32.mxu1 %v4326_v40  ;;  %5863 = vmatprep.subr.bf16.mxu0 %v8591_v57  ;;  %v547_v40 = vld [vmem:[%s6793_s19 + $0xe8] sm:$0xff] }
  0x7c   : > { %5846 = vmatpush3.bf16.msra.mxu1 %v6728_v51 }
  0x7d   : > { %927 = vmatmul.mubr.f32.vlgmr.msra.gmra.mrb[22].mxu0 %v522_v41  ;;  %5848 = vmatprep.subr.bf16.mxu1 %v6742_v56  ;;  %v4350_v41 = vld [vmem:[%s6793_s19 + $0x398] sm:$0xff] }
  0x7e   : > { %1167 = vmatmul.mubr.f32.gmra.mrb[30].mxu1 %v4325_v48  ;;  %5865 = vmatpush1.bf16.msra.mxu0 %v6879_v54  ;;  %v546_v48 = vld [vmem:[%s6793_s19 + $0xe0] sm:$0xff] }
  0x7f   : > { %4291 = vmatprep.mubr.msk.f32.mxu0 %vm584_vm0, %v529_v53  ;;  %1171 = vmatprep.mubr.f32.mxu1 %v4332_v55  ;;  %v4349_v53 = vld [vmem:[%s6793_s19 + $0x390] sm:$0xff]  ;;  %v553_v55 = vld [vmem:[%s6793_s19 + $0x118] sm:$0xff] }
  0x80   : > { %5866 = vmatprep.subr.bf16.mxu0 %v8591_v57  ;;  %5850 = vmatpush3.bf16.msra.mxu1 %v6765_v63 }
  0x81   : > { %932 = vmatmul.mubr.f32.gmra.mrb[24].mxu0 %v528_v58  ;;  %5852 = vmatprep.subr.bf16.mxu1 %v6779_v5  ;;  %v4356_v58 = vld [vmem:[%s6793_s19 + $0x3c8] sm:$0xff] }
  0x82   : > { %1172 = vmatmul.mubr.f32.gmra.mrb[32].mxu1 %v4331_v61  ;;  %5868 = vmatpush1.bf16.msra.mxu0 %v6894_v1  ;;  %v552_v61 = vld [vmem:[%s6793_s19 + $0x110] sm:$0xff] }
  0x83   : > { %4292 = vmatprep.mubr.msk.f32.mxu0 %vm584_vm0, %v535_v2  ;;  %1176 = vmatprep.mubr.f32.mxu1 %v4338_v6  ;;  %v4355_v2 = vld [vmem:[%s6793_s19 + $0x3c0] sm:$0xff]  ;;  %v559_v6 = vld [vmem:[%s6793_s19 + $0x148] sm:$0xff] }
  0x84   : > { %5869 = vmatprep.subr.bf16.mxu0 %v8591_v57  ;;  %5854 = vmatpush3.bf16.msra.mxu1 %v6812_v19 }
  0x85   : > { %937 = vmatmul.mubr.f32.gmra.mrb[26].mxu0 %v534_v9  ;;  %5856 = vmatprep.subr.bf16.mxu1 %v6822_v27  ;;  %v4362_v9 = vld [vmem:[%s6793_s19 + $0x3f8] sm:$0x1] }
  0x86   : > { %1177 = vmatmul.mubr.f32.gmra.mrb[34].mxu1 %v4337_v15  ;;  %5871 = vmatpush1.bf16.msra.mxu0 %v6910_v13  ;;  %v558_v15 = vld [vmem:[%s6793_s19 + $0x140] sm:$0xff] }
  0x87   : > { %4293 = vmatprep.mubr.msk.f32.mxu0 %vm584_vm0, %v541_v18  ;;  %1181 = vmatprep.mubr.f32.mxu1 %v4344_v22  ;;  %v4361_v18 = vld [vmem:[%s6793_s19 + $0x3f0] sm:$0x1]  ;;  %v565_v22 = vld [vmem:[%s6793_s19 + $0x178] sm:$0xff] }
  0x88   : > { %5872 = vmatprep.subr.bf16.mxu0 %v8591_v57  ;;  %5858 = vmatpush3.bf16.msra.mxu1 %v6844_v36 }
  0x89   : > { %942 = vmatmul.mubr.f32.gmra.mrb[28].mxu0 %v540_v24  ;;  %5860 = vmatprep.subr.bf16.mxu1 %v6855_v42  ;;  %v4304_v24 = vld [vmem:[%s6793_s19 + $0x228] sm:$0xff] }
  0x8a   : > { %1182 = vmatmul.mubr.f32.gmra.mrb[36].mxu1 %v4343_v32  ;;  %5874 = vmatpush1.bf16.msra.mxu0 %v6926_v29  ;;  %v564_v32 = vld [vmem:[%s6793_s19 + $0x170] sm:$0xff] }
  0x8b   : > { %4294 = vmatprep.mubr.msk.f32.mxu0 %vm584_vm0, %v547_v40  ;;  %1186 = vmatprep.mubr.f32.mxu1 %v4350_v41  ;;  %v4303_v40 = vld [vmem:[%s6793_s19 + $0x220] sm:$0xff]  ;;  %v571_v41 = vld [vmem:[%s6793_s19 + $0x1a8] sm:$0xff] }
  0x8c   : > { %5875 = vmatprep.subr.bf16.mxu0 %v8591_v57  ;;  %5862 = vmatpush3.bf16.msra.mxu1 %v6868_v47 }
  0x8d   : > { %947 = vmatmul.mubr.f32.gmra.mrb[30].mxu0 %v546_v48  ;;  %5910 = vmatprep.subr.bf16.mxu1 %v6580_v3  ;;  %v4310_v48 = vld [vmem:[%s6793_s19 + $0x258] sm:$0xff] }
  0x8e   : > { %1187 = vmatmul.mubr.f32.gmra.mrb[38].mxu1 %v4349_v53  ;;  %5877 = vmatpush1.bf16.msra.mxu0 %v6942_v45  ;;  %v570_v53 = vld [vmem:[%s6793_s19 + $0x1a0] sm:$0xff] }
  0x8f   : > { %4295 = vmatprep.mubr.msk.f32.mxu0 %vm584_vm0, %v553_v55  ;;  %1191 = vmatprep.mubr.f32.mxu1 %v4356_v58  ;;  %v4309_v55 = vld [vmem:[%s6793_s19 + $0x250] sm:$0xff]  ;;  %v577_v58 = vld [vmem:[%s6793_s19 + $0x1d8] sm:$0xff] }
  0x90   : > { %5878 = vmatprep.subr.bf16.mxu0 %v8591_v57 }
  0x91   : > { %952 = vmatmul.mubr.f32.gmra.mrb[32].mxu0 %v552_v61  ;;  %v4316_v61 = vld [vmem:[%s6793_s19 + $0x288] sm:$0xff] }
  0x92   : > { %1192 = vmatmul.mubr.f32.gmra.mrb[40].mxu1 %v4355_v2  ;;  %5880 = vmatpush1.bf16.msra.mxu0 %v6958_v60  ;;  %v576_v2 = vld [vmem:[%s6793_s19 + $0x1d0] sm:$0xff] }
  0x93   : > { %4296 = vmatprep.mubr.msk.f32.mxu0 %vm584_vm0, %v559_v6  ;;  %1196 = vmatprep.mubr.f32.mxu1 %v4362_v9  ;;  %v4315_v6 = vld [vmem:[%s6793_s19 + $0x280] sm:$0xff]  ;;  %v583_v9 = vld [vmem:[%s6793_s19 + $0x208] sm:$0x1] }
  0x94   : > { %5881 = vmatprep.subr.bf16.mxu0 %v8591_v57 }
  0x95   : > { %957 = vmatmul.mubr.f32.gmra.mrb[34].mxu0 %v558_v15  ;;  %v4322_v15 = vld [vmem:[%s6793_s19 + $0x2b8] sm:$0xff] }
  0x96   : > { %1197 = vmatmul.mubr.f32.gmra.mrb[42].mxu1 %v4361_v18  ;;  %5883 = vmatpush1.bf16.msra.mxu0 %v6974_v11  ;;  %v582_v18 = vld [vmem:[%s6793_s19 + $0x200] sm:$0x1] }
  0x97   : > { %4297 = vmatprep.mubr.msk.f32.mxu0 %vm584_vm0, %v565_v22  ;;  %1266 = vmatprep.mubr.f32.mxu1 %v4304_v24  ;;  %v4321_v22 = vld [vmem:[%s6793_s19 + $0x2b0] sm:$0xff]  ;;  %v4328_v24 = vld [vmem:[%s6793_s19 + $0x2e8] sm:$0xff] }
  0x98   : > { %5884 = vmatprep.subr.bf16.mxu0 %v8591_v57 }
  0x99   : > { %962 = vmatmul.mubr.f32.gmra.mrb[36].mxu0 %v564_v32  ;;  %v4306_v32 = vld [vmem:[%s6793_s19 + $0x238] sm:$0xff] }
  0x9a   : > { %1267 = vmatmul.mubr.f32.vlgmr.msra.gmra.mrb[44].mxu1 %v4303_v40  ;;  %5886 = vmatpush1.bf16.msra.mxu0 %v6990_v31  ;;  %v4327_v40 = vld [vmem:[%s6793_s19 + $0x2e0] sm:$0xff] }
  0x9b   : > { %4298 = vmatprep.mubr.msk.f32.mxu0 %vm584_vm0, %v571_v41  ;;  %1271 = vmatprep.mubr.f32.mxu1 %v4310_v48  ;;  %v4334_v41 = vld [vmem:[%s6793_s19 + $0x318] sm:$0xff]  ;;  %v4333_v48 = vld [vmem:[%s6793_s19 + $0x310] sm:$0xff] }
  0x9c   : > { %5887 = vmatprep.subr.bf16.mxu0 %v8591_v57  ;;  %5912 = vmatpush3.bf16.msra.mxu1 %v6593_v8 }
  0x9d   : > { %967 = vmatmul.mubr.f32.gmra.mrb[38].mxu0 %v570_v53  ;;  %5914 = vmatprep.subr.bf16.mxu1 %v6618_v16  ;;  %v4340_v53 = vld [vmem:[%s6793_s19 + $0x348] sm:$0xff] }
  0x9e   : > { %1272 = vmatmul.mubr.f32.gmra.mrb[46].mxu1 %v4309_v55  ;;  %5889 = vmatpush1.bf16.msra.mxu0 %v7006_v49  ;;  %v4339_v55 = vld [vmem:[%s6793_s19 + $0x340] sm:$0xff] }
  0x9f   : > { %4299 = vmatprep.mubr.msk.f32.mxu0 %vm584_vm0, %v577_v58  ;;  %1276 = vmatprep.mubr.f32.mxu1 %v4316_v61  ;;  %v4346_v58 = vld [vmem:[%s6793_s19 + $0x378] sm:$0xff]  ;;  %v4345_v61 = vld [vmem:[%s6793_s19 + $0x370] sm:$0xff] }
  0xa0   : > { %5890 = vmatprep.subr.bf16.mxu0 %v8591_v57  ;;  %5916 = vmatpush3.bf16.msra.mxu1 %v6632_v21 }
  0xa1   : > { %972 = vmatmul.mubr.f32.gmra.mrb[40].mxu0 %v576_v2  ;;  %5918 = vmatprep.subr.bf16.mxu1 %v6647_v26  ;;  %v4352_v2 = vld [vmem:[%s6793_s19 + $0x3a8] sm:$0xff] }
  0xa2   : > { %1277 = vmatmul.mubr.f32.gmra.mrb[48].mxu1 %v4315_v6  ;;  %5892 = vmatpush1.bf16.msra.mxu0 %v7022_v4  ;;  %v4305_v6 = vld [vmem:[%s6793_s19 + $0x230] sm:$0xff] }
  0xa3   : > { %4300 = vmatprep.mubr.msk.f32.mxu0 %vm584_vm0, %v583_v9  ;;  %1281 = vmatprep.mubr.f32.mxu1 %v4322_v15  ;;  %v4351_v9 = vld [vmem:[%s6793_s19 + $0x3a0] sm:$0xff]  ;;  %v4312_v15 = vld [vmem:[%s6793_s19 + $0x268] sm:$0xff] }
  0xa4   : > { %5893 = vmatprep.subr.bf16.mxu0 %v8591_v57  ;;  %5920 = vmatpush3.bf16.msra.mxu1 %v6671_v34 }
  0xa5   : > { %977 = vmatmul.mubr.f32.gmra.mrb[42].mxu0 %v582_v18  ;;  %5922 = vmatprep.subr.bf16.mxu1 %v6686_v39  ;;  %v4358_v18 = vld [vmem:[%s6793_s19 + $0x3d8] sm:$0xff] }
  0xa6   : > { %1282 = vmatmul.mubr.f32.gmra.mrb[50].mxu1 %v4321_v22  ;;  %5895 = vmatpush1.bf16.msra.mxu0 %v7036_v23  ;;  %v4311_v22 = vld [vmem:[%s6793_s19 + $0x260] sm:$0xff] }
  0xa7   : > { %1286 = vmatprep.mubr.f32.mxu1 %v4328_v24  ;;  %5896 = vmatprep.subr.bf16.mxu0 %v8591_v57  ;;  %v4357_v24 = vld [vmem:[%s6793_s19 + $0x3d0] sm:$0xff] }
  0xa8   : > { %5924 = vmatpush3.bf16.msra.mxu1 %v6724_v50  ;;  %4368 = vmatprep.mubr.msk.f32.mxu0 %vm584_vm0, %v4306_v32  ;;  %v4318_v32 = vld [vmem:[%s6793_s19 + $0x298] sm:$0xff] }
  0xa9   : > { %5926 = vmatprep.subr.bf16.mxu1 %v6730_v52 }
  0xaa   : > { %1287 = vmatmul.mubr.f32.gmra.mrb[52].mxu1 %v4327_v40  ;;  %5898 = vmatpush1.bf16.msra.mxu0 %v7050_v44  ;;  %v4364_v40 = vld [vmem:[%s6793_s19 + $0x408] sm:$0x1] }
  0xab   : > { %1291 = vmatprep.mubr.f32.mxu1 %v4334_v41  ;;  %5899 = vmatprep.subr.bf16.mxu0 %v8591_v57  ;;  %v4317_v41 = vld [vmem:[%s6793_s19 + $0x290] sm:$0xff] }
  0xac   : > { %5928 = vmatpush3.bf16.msra.mxu1 %v6761_v62 }
  0xad   : > { %5930 = vmatprep.subr.bf16.mxu1 %v6767_v0 }
  0xae   : > { %1292 = vmatmul.mubr.f32.gmra.mrb[54].mxu1 %v4333_v48  ;;  %5901 = vmatpush1.bf16.msra.mxu0 %v7063_v59  ;;  %v4363_v48 = vld [vmem:[%s6793_s19 + $0x400] sm:$0x1] }
  0xaf   : > { %1296 = vmatprep.mubr.f32.mxu1 %v4340_v53  ;;  %5902 = vmatprep.subr.bf16.mxu0 %v8591_v57  ;;  %v4324_v53 = vld [vmem:[%s6793_s19 + $0x2c8] sm:$0xff] }
  0xb0   : > { %5932 = vmatpush3.bf16.msra.mxu1 %v6802_v14 }
  0xb1   : > { %5934 = vmatprep.subr.bf16.mxu1 %v6814_v20 }
  0xb2   : > { %1297 = vmatmul.mubr.f32.gmra.mrb[56].mxu1 %v4339_v55  ;;  %5904 = vmatpush1.bf16.msra.mxu0 %v7077_v10  ;;  %v4380_v55 = vld [vmem:[%s6793_s19 + $0x428] sm:$0xff] }
  0xb3   : > { %1301 = vmatprep.mubr.f32.mxu1 %v4346_v58  ;;  %5905 = vmatprep.subr.bf16.mxu0 %v8591_v57  ;;  %v4323_v58 = vld [vmem:[%s6793_s19 + $0x2c0] sm:$0xff] }
  0xb4   : > { %5936 = vmatpush3.bf16.msra.mxu1 %v6840_v35 }
  0xb5   : > { %5938 = vmatprep.subr.bf16.mxu1 %v6846_v37 }
  0xb6   : > { %1302 = vmatmul.mubr.f32.gmra.mrb[58].mxu1 %v4345_v61  ;;  %5908 = vmatpush1.bf16.msk.msra.mxu0 %vm7095_vm3, %v7091_v28  ;;  %v4379_v61 = vld [vmem:[%s6793_s19 + $0x420] sm:$0xff] }
  0xb7   : > { %1306 = vmatprep.mubr.f32.mxu1 %v4352_v2  ;;  %5942 = vmatprep.subr.bf16.mxu0 %v6591_v7  ;;  %v4330_v2 = vld [vmem:[%s6793_s19 + $0x2f8] sm:$0xff] }
  0xb8   : > { %5940 = vmatpush3.bf16.msra.mxu1 %v6864_v46 }
  0xb9   : > { %1387 = vmatmul.mubr.f32.vlgmr.msra.gmra.mrb[44].mxu0 %v4305_v6  ;;  %5973 = vmatprep.subr.bf16.mxu1 %v8591_v57  ;;  %v4329_v6 = vld [vmem:[%s6793_s19 + $0x2f0] sm:$0xff] }
  0xba   : > { %1307 = vmatmul.mubr.f32.gmra.mrb[60].mxu1 %v4351_v9  ;;  %4369 = vmatprep.mubr.msk.f32.mxu0 %vm584_vm0, %v4312_v15  ;;  %v4386_v9 = vld [vmem:[%s6793_s19 + $0x458] sm:$0xff]  ;;  %v4336_v15 = vld [vmem:[%s6793_s19 + $0x328] sm:$0xff] }
  0xbb   : > { %1311 = vmatprep.mubr.f32.mxu1 %v4358_v18  ;;  %5944 = vmatpush3.bf16.msra.mxu0 %v6605_v12  ;;  %v4385_v18 = vld [vmem:[%s6793_s19 + $0x450] sm:$0xff] }
  0xbc   : > { %5946 = vmatprep.subr.bf16.mxu0 %v6620_v17 }
  0xbd   : > { %1392 = vmatmul.mubr.f32.gmra.mrb[46].mxu0 %v4311_v22  ;;  %v4335_v22 = vld [vmem:[%s6793_s19 + $0x320] sm:$0xff] }
  0xbe   : > { %1312 = vmatmul.mubr.f32.gmra.mrb[62].mxu1 %v4357_v24  ;;  %4370 = vmatprep.mubr.msk.f32.mxu0 %vm584_vm0, %v4318_v32  ;;  %v4392_v24 = vld [vmem:[%s6793_s19 + $0x488] sm:$0xff]  ;;  %v4342_v32 = vld [vmem:[%s6793_s19 + $0x358] sm:$0xff] }
  0xbf   : > { %1316 = vmatprep.mubr.f32.mxu1 %v4364_v40  ;;  %5948 = vmatpush3.bf16.msra.mxu0 %v6645_v25  ;;  %v4391_v40 = vld [vmem:[%s6793_s19 + $0x480] sm:$0xff] }
  0xc0   : > { %5950 = vmatprep.subr.bf16.mxu0 %v6659_v30 }
  0xc1   : > { %1397 = vmatmul.mubr.f32.gmra.mrb[48].mxu0 %v4317_v41  ;;  %v4341_v41 = vld [vmem:[%s6793_s19 + $0x350] sm:$0xff] }
  0xc2   : > { %1317 = vmatmul.mubr.f32.gmra.mrb[64].mxu1 %v4363_v48  ;;  %4371 = vmatprep.mubr.msk.f32.mxu0 %vm584_vm0, %v4324_v53  ;;  %v4398_v48 = vld [vmem:[%s6793_s19 + $0x4b8] sm:$0xff]  ;;  %v4348_v53 = vld [vmem:[%s6793_s19 + $0x388] sm:$0xff] }
  0xc3   : > { %1606 = vmatprep.mubr.f32.mxu1 %v4380_v55  ;;  %5952 = vmatpush3.bf16.msra.mxu0 %v6684_v38  ;;  %v4397_v55 = vld [vmem:[%s6793_s19 + $0x4b0] sm:$0xff] }
  0xc4   : > { %5954 = vmatprep.subr.bf16.mxu0 %v6698_v43 }
  0xc5   : > { %1402 = vmatmul.mubr.f32.gmra.mrb[50].mxu0 %v4323_v58  ;;  %v4347_v58 = vld [vmem:[%s6793_s19 + $0x380] sm:$0xff] }
  0xc6   : > { %1607 = vmatmul.mubr.f32.vlgmr.msra.gmra.mrb[66].mxu1 %v4379_v61  ;;  %4372 = vmatprep.mubr.msk.f32.mxu0 %vm584_vm0, %v4330_v2  ;;  %v4404_v61 = vld [vmem:[%s6793_s19 + $0x4e8] sm:$0xff]  ;;  %v4354_v2 = vld [vmem:[%s6793_s19 + $0x3b8] sm:$0xff] }
  0xc7   : > { %5975 = vmatpush1.bf16.msra.mxu1 %v6879_v54  ;;  %5956 = vmatpush3.bf16.msra.mxu0 %v6728_v51 }
  0xc8   : > { %5976 = vmatprep.subr.bf16.mxu1 %v8591_v57  ;;  %5958 = vmatprep.subr.bf16.mxu0 %v6742_v56 }
  0xc9   : > { %1407 = vmatmul.mubr.f32.gmra.mrb[52].mxu0 %v4329_v6  ;;  %1611 = vmatprep.mubr.f32.mxu1 %v4386_v9  ;;  %v4403_v6 = vld [vmem:[%s6793_s19 + $0x4e0] sm:$0xff]  ;;  %v4410_v9 = vld [vmem:[%s6793_s19 + $0x518] sm:$0xff] }
  0xca   : > { %4373 = vmatprep.mubr.msk.f32.mxu0 %vm584_vm0, %v4336_v15  ;;  %1612 = vmatmul.mubr.f32.gmra.mrb[68].mxu1 %v4385_v18  ;;  %v4353_v15 = vld [vmem:[%s6793_s19 + $0x3b0] sm:$0xff]  ;;  %v4360_v18 = vld [vmem:[%s6793_s19 + $0x3e8] sm:$0xff] }
  0xcb   : > { %5978 = vmatpush1.bf16.msra.mxu1 %v6894_v1  ;;  %5960 = vmatpush3.bf16.msra.mxu0 %v6765_v63 }
  0xcc   : > { %5979 = vmatprep.subr.bf16.mxu1 %v8591_v57  ;;  %5962 = vmatprep.subr.bf16.mxu0 %v6779_v5 }
  0xcd   : > { %1412 = vmatmul.mubr.f32.gmra.mrb[54].mxu0 %v4335_v22  ;;  %1616 = vmatprep.mubr.f32.mxu1 %v4392_v24  ;;  %v4409_v22 = vld [vmem:[%s6793_s19 + $0x510] sm:$0xff]  ;;  %v4416_v24 = vld [vmem:[%s6793_s19 + $0x548] sm:$0xff] }
  0xce   : > { %4374 = vmatprep.mubr.msk.f32.mxu0 %vm584_vm0, %v4342_v32  ;;  %1617 = vmatmul.mubr.f32.gmra.mrb[70].mxu1 %v4391_v40  ;;  %v4359_v32 = vld [vmem:[%s6793_s19 + $0x3e0] sm:$0xff]  ;;  %v4366_v40 = vld [vmem:[%s6793_s19 + $0x418] sm:$0x1] }
  0xcf   : > { %5981 = vmatpush1.bf16.msra.mxu1 %v6910_v13  ;;  %5964 = vmatpush3.bf16.msra.mxu0 %v6812_v19 }
  0xd0   : > { %5982 = vmatprep.subr.bf16.mxu1 %v8591_v57  ;;  %5966 = vmatprep.subr.bf16.mxu0 %v6822_v27 }
  0xd1   : > { %1417 = vmatmul.mubr.f32.gmra.mrb[56].mxu0 %v4341_v41  ;;  %1621 = vmatprep.mubr.f32.mxu1 %v4398_v48  ;;  %v4415_v41 = vld [vmem:[%s6793_s19 + $0x540] sm:$0xff]  ;;  %v4422_v48 = vld [vmem:[%s6793_s19 + $0x578] sm:$0xff] }
  0xd2   : > { %4375 = vmatprep.mubr.msk.f32.mxu0 %vm584_vm0, %v4348_v53  ;;  %1622 = vmatmul.mubr.f32.gmra.mrb[72].mxu1 %v4397_v55  ;;  %v4382_v53 = vld [vmem:[%s6793_s19 + $0x438] sm:$0xff]  ;;  %v4421_v55 = vld [vmem:[%s6793_s19 + $0x570] sm:$0xff] }
  0xd3   : > { %5984 = vmatpush1.bf16.msra.mxu1 %v6926_v29  ;;  %5968 = vmatpush3.bf16.msra.mxu0 %v6844_v36 }
  0xd4   : > { %5985 = vmatprep.subr.bf16.mxu1 %v8591_v57  ;;  %5970 = vmatprep.subr.bf16.mxu0 %v6855_v42 }
  0xd5   : > { %1422 = vmatmul.mubr.f32.gmra.mrb[58].mxu0 %v4347_v58  ;;  %1626 = vmatprep.mubr.f32.mxu1 %v4404_v61  ;;  %v4428_v58 = vld [vmem:[%s6793_s19 + $0x5a8] sm:$0xff]  ;;  %v4381_v61 = vld [vmem:[%s6793_s19 + $0x430] sm:$0xff] }
  0xd6   : > { %4376 = vmatprep.mubr.msk.f32.mxu0 %vm584_vm0, %v4354_v2  ;;  %1627 = vmatmul.mubr.f32.gmra.mrb[74].mxu1 %v4403_v6  ;;  %v4388_v2 = vld [vmem:[%s6793_s19 + $0x468] sm:$0xff]  ;;  %v4427_v6 = vld [vmem:[%s6793_s19 + $0x5a0] sm:$0xff] }
  0xd7   : > { %5987 = vmatpush1.bf16.msra.mxu1 %v6942_v45  ;;  %5972 = vmatpush3.bf16.msra.mxu0 %v6868_v47 }
  0xd8   : > { %5988 = vmatprep.subr.bf16.mxu1 %v8591_v57  ;;  %1631 = vmatprep.mubr.f32.mxu1 %v4410_v9  ;;  %v4387_v9 = vld [vmem:[%s6793_s19 + $0x460] sm:$0xff] }
  0xd9   : > { %1427 = vmatmul.mubr.f32.gmra.mrb[60].mxu0 %v4353_v15  ;;  %6020 = vmatprep.subr.bf16.mxu0 %v6580_v3  ;;  %v4365_v3 = vld [vmem:[%s6793_s19 + $0x410] sm:$0x1]  ;;  %v4434_v15 = vld [vmem:[%s6793_s19 + $0x5d8] sm:$0xff] }
  0xda   : > { %4377 = vmatprep.mubr.msk.f32.mxu0 %vm584_vm0, %v4360_v18  ;;  %1632 = vmatmul.mubr.f32.gmra.mrb[76].mxu1 %v4409_v22  ;;  %v4394_v18 = vld [vmem:[%s6793_s19 + $0x498] sm:$0xff]  ;;  %v4433_v22 = vld [vmem:[%s6793_s19 + $0x5d0] sm:$0xff] }
  0xdb   : > { %5990 = vmatpush1.bf16.msra.mxu1 %v6958_v60  ;;  %1636 = vmatprep.mubr.f32.mxu1 %v4416_v24  ;;  %v4393_v24 = vld [vmem:[%s6793_s19 + $0x490] sm:$0xff] }
  0xdc   : > { %5991 = vmatprep.subr.bf16.mxu1 %v8591_v57 }
  0xdd   : > { %1432 = vmatmul.mubr.f32.gmra.mrb[62].mxu0 %v4359_v32  ;;  %v4400_v32 = vld [vmem:[%s6793_s19 + $0x4c8] sm:$0xff] }
  0xde   : > { %4378 = vmatprep.mubr.msk.f32.mxu0 %vm584_vm0, %v4366_v40  ;;  %1637 = vmatmul.mubr.f32.gmra.mrb[78].mxu1 %v4415_v41  ;;  %v4399_v40 = vld [vmem:[%s6793_s19 + $0x4c0] sm:$0xff]  ;;  %v4384_v41 = vld [vmem:[%s6793_s19 + $0x448] sm:$0xff] }
  0xdf   : > { %5993 = vmatpush1.bf16.msra.mxu1 %v6974_v11  ;;  %1641 = vmatprep.mubr.f32.mxu1 %v4422_v48  ;;  %v4418_v48 = vld [vmem:[%s6793_s19 + $0x558] sm:$0xff] }
  0xe0   : > { %5994 = vmatprep.subr.bf16.mxu1 %v8591_v57 }
  0xe1   : > { %1437 = vmatmul.mubr.f32.gmra.mrb[64].mxu0 %v4365_v3  ;;  %v4390_v3 = vld [vmem:[%s6793_s19 + $0x478] sm:$0xff] }
  0xe2   : > { %1726 = vmatprep.mubr.f32.mxu0 %v4382_v53  ;;  %1642 = vmatmul.mubr.f32.gmra.mrb[80].mxu1 %v4421_v55  ;;  %v4436_v53 = vld [vmem:[%s6793_s19 + $0x5e8] sm:$0xff] }
  0xe3   : > { %5996 = vmatpush1.bf16.msra.mxu1 %v6990_v31  ;;  %1646 = vmatprep.mubr.f32.mxu1 %v4428_v58  ;;  %v4396_v55 = vld [vmem:[%s6793_s19 + $0x4a8] sm:$0xff]  ;;  %v4442_v58 = vld [vmem:[%s6793_s19 + $0x618] sm:$0x1] }
  0xe4   : > { %5997 = vmatprep.subr.bf16.mxu1 %v8591_v57 }
  0xe5   : > { %1727 = vmatmul.mubr.f32.vlgmr.msra.gmra.mrb[66].mxu0 %v4381_v61  ;;  %v4458_v61 = vld [vmem:[%s6793_s19 + $0x638] sm:$0xff] }
  0xe6   : > { %1731 = vmatprep.mubr.f32.mxu0 %v4388_v2  ;;  %6022 = vmatpush3.bf16.msra.mxu0 %v6593_v8  ;;  %v4440_v8 = vld [vmem:[%s6793_s19 + $0x608] sm:$0x1] }
  0xe7   : > { %5999 = vmatpush1.bf16.msra.mxu1 %v7006_v49  ;;  %6024 = vmatprep.subr.bf16.mxu0 %v6618_v16  ;;  %v4439_v16 = vld [vmem:[%s6793_s19 + $0x600] sm:$0x1]  ;;  %v4408_v2 = vld [vmem:[%s6793_s19 + $0x508] sm:$0xff] }
  0xe8   : > { %6000 = vmatprep.subr.bf16.mxu1 %v8591_v57  ;;  %1647 = vmatmul.mubr.f32.gmra.mrb[82].mxu1 %v4427_v6  ;;  %v4414_v6 = vld [vmem:[%s6793_s19 + $0x538] sm:$0xff] }
  0xe9   : > { %1732 = vmatmul.mubr.f32.gmra.mrb[68].mxu0 %v4387_v9  ;;  %1651 = vmatprep.mubr.f32.mxu1 %v4434_v15  ;;  %v4464_v9 = vld [vmem:[%s6793_s19 + $0x668] sm:$0xff] }
  0xea   : > { %1736 = vmatprep.mubr.f32.mxu0 %v4394_v18  ;;  %6026 = vmatpush3.bf16.msra.mxu0 %v6632_v21  ;;  %v4406_v21 = vld [vmem:[%s6793_s19 + $0x4f8] sm:$0xff]  ;;  %v4420_v18 = vld [vmem:[%s6793_s19 + $0x568] sm:$0xff] }
  0xeb   : > { %6002 = vmatpush1.bf16.msra.mxu1 %v7022_v4  ;;  %6028 = vmatprep.subr.bf16.mxu0 %v6647_v26  ;;  %v4405_v26 = vld [vmem:[%s6793_s19 + $0x4f0] sm:$0xff] }
  0xec   : > { %6003 = vmatprep.subr.bf16.mxu1 %v8591_v57  ;;  %1652 = vmatmul.mubr.f32.gmra.mrb[84].mxu1 %v4433_v22 }
  0xed   : > { %1737 = vmatmul.mubr.f32.gmra.mrb[70].mxu0 %v4393_v24  ;;  %1656 = vmatprep.mubr.f32.mxu1 %v4440_v8  ;;  %v4469_v8 = vld [vmem:[%s6793_s19 + $0x690] sm:$0xff] }
  0xee   : > { %1741 = vmatprep.mubr.f32.mxu0 %v4400_v32  ;;  %6030 = vmatpush3.bf16.msra.mxu0 %v6671_v34  ;;  %v4412_v34 = vld [vmem:[%s6793_s19 + $0x528] sm:$0xff] }
  0xef   : > { %6005 = vmatpush1.bf16.msra.mxu1 %v7036_v23  ;;  %6032 = vmatprep.subr.bf16.mxu0 %v6686_v39  ;;  %v4411_v39 = vld [vmem:[%s6793_s19 + $0x520] sm:$0xff] }
  0xf0   : > { %6006 = vmatprep.subr.bf16.mxu1 %v8591_v57  ;;  %1657 = vmatmul.mubr.f32.gmra.mrb[86].mxu1 %v4439_v16  ;;  %v4419_v16 = vld [vmem:[%s6793_s19 + $0x560] sm:$0xff] }
  0xf1   : > { %1742 = vmatmul.mubr.f32.gmra.mrb[72].mxu0 %v4399_v40  ;;  %4446 = vmatprep.mubr.msk.f32.mxu1 %vm584_vm0, %v4384_v41  ;;  %v4476_v41 = vld [vmem:[%s6793_s19 + $0x6c8] sm:$0xff] }
  0xf2   : > { %1746 = vmatprep.mubr.f32.mxu0 %v4406_v21  ;;  %6034 = vmatpush3.bf16.msra.mxu0 %v6724_v50  ;;  %v4417_v50 = vld [vmem:[%s6793_s19 + $0x550] sm:$0xff] }
  0xf3   : > { %6008 = vmatpush1.bf16.msra.mxu1 %v7050_v44  ;;  %6036 = vmatprep.subr.bf16.mxu0 %v6730_v52  ;;  %v4424_v52 = vld [vmem:[%s6793_s19 + $0x588] sm:$0xff] }
  0xf4   : > { %6009 = vmatprep.subr.bf16.mxu1 %v8591_v57 }
  0xf5   : > { %1747 = vmatmul.mubr.f32.gmra.mrb[74].mxu0 %v4405_v26 }
  0xf6   : > { %1751 = vmatprep.mubr.f32.mxu0 %v4412_v34  ;;  %6038 = vmatpush3.bf16.msra.mxu0 %v6761_v62  ;;  %v4423_v62 = vld [vmem:[%s6793_s19 + $0x580] sm:$0xff] }
  0xf7   : > { %6011 = vmatpush1.bf16.msra.mxu1 %v7063_v59  ;;  %6040 = vmatprep.subr.bf16.mxu0 %v6767_v0  ;;  %v4383_v0 = vld [vmem:[%s6793_s19 + $0x440] sm:$0xff] }
  0xf8   : > { %6012 = vmatprep.subr.bf16.mxu1 %v8591_v57 }
  0xf9   : > { %1752 = vmatmul.mubr.f32.gmra.mrb[76].mxu0 %v4411_v39  ;;  %v4475_v39 = vld [vmem:[%s6793_s19 + $0x6c0] sm:$0xff] }
  0xfa   : > { %1756 = vmatprep.mubr.f32.mxu0 %v4418_v48  ;;  %6042 = vmatpush3.bf16.msra.mxu0 %v6802_v14  ;;  %v4430_v14 = vld [vmem:[%s6793_s19 + $0x5b8] sm:$0xff]  ;;  %v4432_v48 = vld [vmem:[%s6793_s19 + $0x5c8] sm:$0xff] }
  0xfb   : > { %6014 = vmatpush1.bf16.msra.mxu1 %v7077_v10  ;;  %6044 = vmatprep.subr.bf16.mxu0 %v6814_v20  ;;  %v4429_v20 = vld [vmem:[%s6793_s19 + $0x5b0] sm:$0xff] }
  0xfc   : > { %6015 = vmatprep.subr.bf16.mxu1 %v8591_v57 }
  0xfd   : > { %1757 = vmatmul.mubr.f32.gmra.mrb[78].mxu0 %v4417_v50 }
  0xfe   : > { %1761 = vmatprep.mubr.f32.mxu0 %v4424_v52  ;;  %6046 = vmatpush3.bf16.msra.mxu0 %v6840_v35  ;;  %v4389_v35 = vld [vmem:[%s6793_s19 + $0x470] sm:$0xff] }
  0xff   : > { %6018 = vmatpush1.bf16.msk.msra.mxu1 %vm7095_vm3, %v7091_v28  ;;  %6048 = vmatprep.subr.bf16.mxu0 %v6846_v37  ;;  %v4395_v37 = vld [vmem:[%s6793_s19 + $0x4a0] sm:$0xff] }
 0x100   : > { %6052 = vmatprep.subr.bf16.mxu1 %v6591_v7  ;;  %v4435_v7 = vld [vmem:[%s6793_s19 + $0x5e0] sm:$0xff] }
 0x101   : > { %1762 = vmatmul.mubr.f32.gmra.mrb[80].mxu0 %v4423_v62  ;;  %v4482_v62 = vld [vmem:[%s6793_s19 + $0x6f8] sm:$0xff] }
 0x102   : > { %1847 = vmatmul.mubr.f32.vlgmr.msra.gmra.mrb[88].mxu1 %v4383_v0  ;;  %1766 = vmatprep.mubr.f32.mxu0 %v4430_v14 }
 0x103   : > { %4447 = vmatprep.mubr.msk.f32.mxu1 %vm584_vm0, %v4390_v3  ;;  %6050 = vmatpush3.bf16.msra.mxu0 %v6864_v46  ;;  %v4402_v46 = vld [vmem:[%s6793_s19 + $0x4d8] sm:$0xff] }
 0x104   : > { %6054 = vmatpush3.bf16.msra.mxu1 %v6605_v12  ;;  %6083 = vmatprep.subr.bf16.mxu0 %v8591_v57  ;;  %v4441_v12 = vld [vmem:[%s6793_s19 + $0x610] sm:$0x1] }
 0x105   : > { %1767 = vmatmul.mubr.f32.gmra.mrb[82].mxu0 %v4429_v20  ;;  %6056 = vmatprep.subr.bf16.mxu1 %v6620_v17  ;;  %v4401_v17 = vld [vmem:[%s6793_s19 + $0x4d0] sm:$0xff] }
 0x106   : > { %1852 = vmatmul.mubr.f32.gmra.mrb[90].mxu1 %v4389_v35  ;;  %1771 = vmatprep.mubr.f32.mxu0 %v4436_v53  ;;  %v4481_v20 = vld [vmem:[%s6793_s19 + $0x6f0] sm:$0xff]  ;;  %v4438_v35 = vld [vmem:[%s6793_s19 + $0x5f8] sm:$0xff] }
 0x107   : > { %4448 = vmatprep.mubr.msk.f32.mxu1 %vm584_vm0, %v4396_v55 }
 0x108   : > { %6058 = vmatpush3.bf16.msra.mxu1 %v6645_v25  ;;  %v4457_v25 = vld [vmem:[%s6793_s19 + $0x630] sm:$0xff] }
 0x109   : > { %1772 = vmatmul.mubr.f32.gmra.mrb[84].mxu0 %v4435_v7  ;;  %6060 = vmatprep.subr.bf16.mxu1 %v6659_v30  ;;  %v4407_v30 = vld [vmem:[%s6793_s19 + $0x500] sm:$0xff]  ;;  %v4488_v7 = vld [vmem:[%s6793_s19 + $0x728] sm:$0xff] }
 0x10a   : > { %1857 = vmatmul.mubr.f32.gmra.mrb[92].mxu1 %v4395_v37  ;;  %1776 = vmatprep.mubr.f32.mxu0 %v4442_v58 }
 0x10b   : > { %4449 = vmatprep.mubr.msk.f32.mxu1 %vm584_vm0, %v4402_v46 }
 0x10c   : > { %6062 = vmatpush3.bf16.msra.mxu1 %v6684_v38  ;;  %v4463_v38 = vld [vmem:[%s6793_s19 + $0x660] sm:$0xff] }
 0x10d   : > { %1777 = vmatmul.mubr.f32.gmra.mrb[86].mxu0 %v4441_v12  ;;  %6064 = vmatprep.subr.bf16.mxu1 %v6698_v43  ;;  %v4413_v43 = vld [vmem:[%s6793_s19 + $0x530] sm:$0xff]  ;;  %v4487_v12 = vld [vmem:[%s6793_s19 + $0x720] sm:$0xff] }
 0x10e   : > { %1862 = vmatmul.mubr.f32.gmra.mrb[94].mxu1 %v4401_v17  ;;  %2066 = vmatprep.mubr.f32.mxu0 %v4458_v61  ;;  %v4444_v61 = vld [vmem:[%s6793_s19 + $0x628] sm:$0x1] }
 0x10f   : > { %4450 = vmatprep.mubr.msk.f32.mxu1 %vm584_vm0, %v4408_v2 }
 0x110   : > { %6066 = vmatpush3.bf16.msra.mxu1 %v6728_v51 }
 0x111   : > { %2067 = vmatmul.mubr.f32.vlgmr.msra.gmra.mrb[88].mxu0 %v4457_v25  ;;  %6068 = vmatprep.subr.bf16.mxu1 %v6742_v56 }
 0x112   : > { %1867 = vmatmul.mubr.f32.gmra.mrb[96].mxu1 %v4407_v30  ;;  %6085 = vmatpush1.bf16.msra.mxu0 %v6879_v54  ;;  %v4470_v54 = vld [vmem:[%s6793_s19 + $0x698] sm:$0xff] }
 0x113   : > { %4451 = vmatprep.mubr.msk.f32.mxu1 %vm584_vm0, %v4414_v6  ;;  %6086 = vmatprep.subr.bf16.mxu0 %v8591_v57  ;;  %v4494_v6 = vld [vmem:[%s6793_s19 + $0x758] sm:$0xff] }
 0x114   : > { %v4720_v15 = vpop.f32.mrb[0].mxu0  ;;  %6070 = vmatpush3.bf16.msra.mxu1 %v6765_v63  ;;  %2071 = vmatprep.mubr.f32.mxu0 %v4464_v9  ;;  %v4426_v63 = vld [vmem:[%s6793_s19 + $0x598] sm:$0xff] }
 0x115   : > { %v4785_v51 = vpop.f32.mrb[0].mxu1  ;;  %v4721_v56 = vpop.f32.mrb[1].mxu0  ;;  %6072 = vmatprep.subr.bf16.mxu1 %v6779_v5  ;;  %2072 = vmatmul.mubr.f32.gmra.mrb[90].mxu0 %v4463_v38 }
 0x116   : > { %1872 = vmatmul.mubr.f32.gmra.mrb[98].mxu1 %v4413_v43  ;;  %v4722_v22 = vadd.f32 %v4721_v56, %v4720_v15  ;;  %v4786_v24 = vpop.f32.mrb[1].mxu1  ;;  %6088 = vmatpush1.bf16.msra.mxu0 %v6894_v1  ;;  %v4493_v43 = vld [vmem:[%s6793_s19 + $0x750] sm:$0xff]  ;;  %v4443_v15 = vld [vmem:[%s6793_s19 + $0x620] sm:$0x1] }
 0x117   : > { %v4787_v32 = vadd.f32 %v4786_v24, %v4785_v51  ;;  %4452 = vmatprep.mubr.msk.f32.mxu1 %vm584_vm0, %v4420_v18  ;;  %6089 = vmatprep.subr.bf16.mxu0 %v8591_v57  ;;  %v4460_v51 = vld [vmem:[%s6793_s19 + $0x648] sm:$0xff] }
 0x118   : > { %6074 = vmatpush3.bf16.msra.mxu1 %v6812_v19  ;;  %2076 = vmatprep.mubr.f32.mxu0 %v4470_v54  ;;  %v4723_v5 = vpop.f32.mrb[2].mxu0  ;;  %v4425_v19 = vld [vmem:[%s6793_s19 + $0x590] sm:$0xff]  ;;  %v4500_v24 = vld [vmem:[%s6793_s19 + $0x788] sm:$0xff] }
 0x119   : > { %6076 = vmatprep.subr.bf16.mxu1 %v6822_v27  ;;  %2077 = vmatmul.mubr.f32.gmra.mrb[92].mxu0 %v4469_v8  ;;  %v4788_v40 = vpop.f32.mrb[2].mxu1  ;;  %v4724_v1 = vpop.f32.mrb[3].mxu0  ;;  %v7416_v21 = vadd.f32 %v4787_v32, %v4722_v22 }
 0x11a   : > { %1877 = vmatmul.mubr.f32.gmra.mrb[100].mxu1 %v4419_v16  ;;  %6091 = vmatpush1.bf16.msra.mxu0 %v6910_v13  ;;  %v4725_v26 = vadd.f32 %v4724_v1, %v4723_v5  ;;  %v4789_v34 = vpop.f32.mrb[3].mxu1  ;;  %v4499_v16 = vld [vmem:[%s6793_s19 + $0x780] sm:$0xff] }
 0x11b   : > { %4453 = vmatprep.mubr.msk.f32.mxu1 %vm584_vm0, %v4426_v63  ;;  %6092 = vmatprep.subr.bf16.mxu0 %v8591_v57  ;;  %v4790_v27 = vadd.f32 %v4789_v34, %v4788_v40  ;;  %v4459_v63 = vld [vmem:[%s6793_s19 + $0x640] sm:$0xff]  ;;  %v4466_v40 = vld [vmem:[%s6793_s19 + $0x678] sm:$0xff] }
 0x11c   : > { %6078 = vmatpush3.bf16.msra.mxu1 %v6844_v36  ;;  %2081 = vmatprep.mubr.f32.mxu0 %v4476_v41  ;;  %v4726_v50 = vpop.f32.mrb[4].mxu0  ;;  %v4431_v36 = vld [vmem:[%s6793_s19 + $0x5c0] sm:$0xff]  ;;  %v4506_v34 = vld [vmem:[%s6793_s19 + $0x7b8] sm:$0xff] }
 0x11d   : > { %6080 = vmatprep.subr.bf16.mxu1 %v6855_v42  ;;  %2082 = vmatmul.mubr.f32.gmra.mrb[94].mxu0 %v4475_v39  ;;  %v4791_v13 = vpop.f32.mrb[4].mxu1  ;;  %v4727_v52 = vpop.f32.mrb[5].mxu0  ;;  %v7427_v0 = vadd.f32 %v4790_v27, %v4725_v26  ;;  %v4505_v27 = vld [vmem:[%s6793_s19 + $0x7b0] sm:$0xff] }
 0x11e   : > { %1882 = vmatmul.mubr.f32.gmra.mrb[102].mxu1 %v4425_v19  ;;  %6094 = vmatpush1.bf16.msra.mxu0 %v6926_v29  ;;  %v4728_v14 = vadd.f32 %v4727_v52, %v4726_v50  ;;  %v4792_v3 = vpop.f32.mrb[5].mxu1 }
 0x11f   : > { %4454 = vmatprep.mubr.msk.f32.mxu1 %vm584_vm0, %v4432_v48  ;;  %6095 = vmatprep.subr.bf16.mxu0 %v8591_v57  ;;  %v4793_v42 = vadd.f32 %v4792_v3, %v4791_v13  ;;  %v4465_v48 = vld [vmem:[%s6793_s19 + $0x670] sm:$0xff]  ;;  %v4472_v13 = vld [vmem:[%s6793_s19 + $0x6a8] sm:$0xff] }
 0x120   : > { %6082 = vmatpush3.bf16.msra.mxu1 %v6868_v47  ;;  %2086 = vmatprep.mubr.f32.mxu0 %v4482_v62  ;;  %v4729_v53 = vpop.f32.mrb[6].mxu0  ;;  %v4437_v47 = vld [vmem:[%s6793_s19 + $0x5f0] sm:$0xff]  ;;  %v4512_v3 = vld [vmem:[%s6793_s19 + $0x7e8] sm:$0xff] }
 0x121   : > { %2087 = vmatmul.mubr.f32.gmra.mrb[96].mxu0 %v4481_v20  ;;  %v4794_v55 = vpop.f32.mrb[6].mxu1  ;;  %v4730_v29 = vpop.f32.mrb[7].mxu0  ;;  %v7437_v37 = vadd.f32 %v4793_v42, %v4728_v14  ;;  %6129 = vmatprep.subr.bf16.mxu1 %v8591_v57  ;;  %v4511_v42 = vld [vmem:[%s6793_s19 + $0x7e0] sm:$0xff] }
 0x122   : > { %1887 = vmatmul.mubr.f32.gmra.mrb[104].mxu1 %v4431_v36  ;;  %6097 = vmatpush1.bf16.msra.mxu0 %v6942_v45  ;;  %v4731_v58 = vadd.f32 %v4730_v29, %v4729_v53  ;;  %v4795_v46 = vpop.f32.mrb[7].mxu1 }
 0x123   : > { %4455 = vmatprep.mubr.msk.f32.mxu1 %vm584_vm0, %v4438_v35  ;;  %6098 = vmatprep.subr.bf16.mxu0 %v8591_v57  ;;  %v4796_v17 = vadd.f32 %v4795_v46, %v4794_v55  ;;  %v4471_v35 = vld [vmem:[%s6793_s19 + $0x6a0] sm:$0xff]  ;;  %v4478_v55 = vld [vmem:[%s6793_s19 + $0x6d8] sm:$0xff] }
 0x124   : > { %2091 = vmatprep.mubr.f32.mxu0 %v4488_v7  ;;  %v4732_v2 = vpop.f32.mrb[8].mxu0  ;;  %v4518_v46 = vld [vmem:[%s6793_s19 + $0x818] sm:$0x1] }
 0x125   : > { %2092 = vmatmul.mubr.f32.gmra.mrb[98].mxu0 %v4487_v12  ;;  %v4797_v25 = vpop.f32.mrb[8].mxu1  ;;  %v4733_v30 = vpop.f32.mrb[9].mxu0  ;;  %v7447_v45 = vadd.f32 %v4796_v17, %v4731_v58  ;;  %v4517_v17 = vld [vmem:[%s6793_s19 + $0x810] sm:$0x1] }
 0x126   : > { %1892 = vmatmul.mubr.f32.gmra.mrb[106].mxu1 %v4437_v47  ;;  %6100 = vmatpush1.bf16.msra.mxu0 %v6958_v60  ;;  %v4734_v9 = vadd.f32 %v4733_v30, %v4732_v2  ;;  %v4798_v38 = vpop.f32.mrb[9].mxu1 }
 0x127   : > { %4456 = vmatprep.mubr.msk.f32.mxu1 %vm584_vm0, %v4444_v61  ;;  %6101 = vmatprep.subr.bf16.mxu0 %v8591_v57  ;;  %v4799_v18 = vadd.f32 %v4798_v38, %v4797_v25  ;;  %v4477_v61 = vld [vmem:[%s6793_s19 + $0x6d0] sm:$0xff]  ;;  %v4484_v25 = vld [vmem:[%s6793_s19 + $0x708] sm:$0xff]  ;;  %v4462_v38 = vld [vmem:[%s6793_s19 + $0x658] sm:$0xff] }
 0x128   : > { %2096 = vmatprep.mubr.f32.mxu0 %v4494_v6  ;;  %v4735_v56 = vpop.f32.mrb[10].mxu0 }
 0x129   : > { %2097 = vmatmul.mubr.f32.gmra.mrb[100].mxu0 %v4493_v43  ;;  %v4800_v54 = vpop.f32.mrb[10].mxu1  ;;  %v4736_v22 = vpop.f32.mrb[11].mxu0  ;;  %v7456_v60 = vadd.f32 %v4799_v18, %v4734_v9  ;;  %v4483_v18 = vld [vmem:[%s6793_s19 + $0x700] sm:$0xff] }
 0x12a   : > { %1897 = vmatmul.mubr.f32.gmra.mrb[108].mxu1 %v4443_v15  ;;  %6103 = vmatpush1.bf16.msra.mxu0 %v6974_v11  ;;  %v4737_v8 = vadd.f32 %v4736_v22, %v4735_v56  ;;  %v4801_v32 = vpop.f32.mrb[11].mxu1  ;;  %v4490_v56 = vld [vmem:[%s6793_s19 + $0x738] sm:$0xff] }
 0x12b   : > { %2186 = vmatprep.mubr.f32.mxu1 %v4460_v51  ;;  %6104 = vmatprep.subr.bf16.mxu0 %v8591_v57  ;;  %v4802_v5 = vadd.f32 %v4801_v32, %v4800_v54 }
 0x12c   : > { %2101 = vmatprep.mubr.f32.mxu0 %v4500_v24  ;;  %v4738_v1 = vpop.f32.mrb[12].mxu0 }
 0x12d   : > { %2102 = vmatmul.mubr.f32.gmra.mrb[102].mxu0 %v4499_v16  ;;  %v4803_v41 = vpop.f32.mrb[12].mxu1  ;;  %v4739_v26 = vpop.f32.mrb[13].mxu0  ;;  %v7464_v39 = vadd.f32 %v4802_v5, %v4737_v8  ;;  %v4489_v16 = vld [vmem:[%s6793_s19 + $0x730] sm:$0xff]  ;;  %v4496_v5 = vld [vmem:[%s6793_s19 + $0x768] sm:$0xff] }
 0x12e   : > { %2187 = vmatmul.mubr.f32.vlgmr.msra.gmra.mrb[110].mxu1 %v4459_v63  ;;  %6106 = vmatpush1.bf16.msra.mxu0 %v6990_v31  ;;  %v4740_v11 = vadd.f32 %v4739_v26, %v4738_v1  ;;  %v4804_v19 = vpop.f32.mrb[13].mxu1 }
 0x12f   : > { %2191 = vmatprep.mubr.f32.mxu1 %v4466_v40  ;;  %6107 = vmatprep.subr.bf16.mxu0 %v8591_v57  ;;  %v4805_v50 = vadd.f32 %v4804_v19, %v4803_v41 }
 0x130   : > { %2106 = vmatprep.mubr.f32.mxu0 %v4506_v34  ;;  %v4741_v52 = vpop.f32.mrb[14].mxu0  ;;  %v4502_v34 = vld [vmem:[%s6793_s19 + $0x798] sm:$0xff] }
 0x131   : > { %2107 = vmatmul.mubr.f32.gmra.mrb[104].mxu0 %v4505_v27  ;;  %v4806_v62 = vpop.f32.mrb[14].mxu1  ;;  %v4742_v14 = vpop.f32.mrb[15].mxu0  ;;  %v7472_v20 = vadd.f32 %v4805_v50, %v4740_v11  ;;  %v4501_v27 = vld [vmem:[%s6793_s19 + $0x790] sm:$0xff] }
 0x132   : > { %2192 = vmatmul.mubr.f32.gmra.mrb[112].mxu1 %v4465_v48  ;;  %6109 = vmatpush1.bf16.msra.mxu0 %v7006_v49  ;;  %v4743_v31 = vadd.f32 %v4742_v14, %v4741_v52  ;;  %v4807_v36 = vpop.f32.mrb[15].mxu1  ;;  %v4508_v48 = vld [vmem:[%s6793_s19 + $0x7c8] sm:$0xff]  ;;  %v4507_v52 = vld [vmem:[%s6793_s19 + $0x7c0] sm:$0xff] }
 0x133   : > { %2196 = vmatprep.mubr.f32.mxu1 %v4472_v13  ;;  %6110 = vmatprep.subr.bf16.mxu0 %v8591_v57  ;;  %v4808_v53 = vadd.f32 %v4807_v36, %v4806_v62  ;;  %v4461_v13 = vld [vmem:[%s6793_s19 + $0x650] sm:$0xff]  ;;  %v4468_v62 = vld [vmem:[%s6793_s19 + $0x688] sm:$0xff] }
 0x134   : > { %2111 = vmatprep.mubr.f32.mxu0 %v4512_v3  ;;  %v4744_v29 = vpop.f32.mrb[16].mxu0  ;;  %v4514_v3 = vld [vmem:[%s6793_s19 + $0x7f8] sm:$0xff] }
 0x135   : > { %2112 = vmatmul.mubr.f32.gmra.mrb[106].mxu0 %v4511_v42  ;;  %v4809_v7 = vpop.f32.mrb[16].mxu1  ;;  %v4745_v58 = vpop.f32.mrb[17].mxu0  ;;  %v7480_v12 = vadd.f32 %v4808_v53, %v4743_v31  ;;  %v4513_v42 = vld [vmem:[%s6793_s19 + $0x7f0] sm:$0xff] }
 0x136   : > { %2197 = vmatmul.mubr.f32.gmra.mrb[114].mxu1 %v4471_v35  ;;  %6112 = vmatpush1.bf16.msra.mxu0 %v7022_v4  ;;  %v4746_v49 = vadd.f32 %v4745_v58, %v4744_v29  ;;  %v4810_v47 = vpop.f32.mrb[17].mxu1  ;;  %v4474_v35 = vld [vmem:[%s6793_s19 + $0x6b8] sm:$0xff]  ;;  %v4520_v29 = vld [vmem:[%s6793_s19 + $0x828] sm:$0x1] }
 0x137   : > { %2201 = vmatprep.mubr.f32.mxu1 %v4478_v55  ;;  %6113 = vmatprep.subr.bf16.mxu0 %v8591_v57  ;;  %v4811_v2 = vadd.f32 %v4810_v47, %v4809_v7 }
 0x138   : > { %2116 = vmatprep.mubr.f32.mxu0 %v4518_v46  ;;  %v4747_v30 = vpop.f32.mrb[18].mxu0 }
 0x139   : > { %2117 = vmatmul.mubr.f32.gmra.mrb[108].mxu0 %v4517_v17  ;;  %v4812_v6 = vpop.f32.mrb[18].mxu1  ;;  %v4748_v9 = vpop.f32.mrb[19].mxu0  ;;  %v7488_v43 = vadd.f32 %v4811_v2, %v4746_v49  ;;  %v4473_v49 = vld [vmem:[%s6793_s19 + $0x6b0] sm:$0xff]  ;;  %v4519_v17 = vld [vmem:[%s6793_s19 + $0x820] sm:$0x1] }
 0x13a   : > { %2202 = vmatmul.mubr.f32.gmra.mrb[116].mxu1 %v4477_v61  ;;  %6115 = vmatpush1.bf16.msra.mxu0 %v7036_v23  ;;  %v4749_v4 = vadd.f32 %v4748_v9, %v4747_v30  ;;  %v4813_v15 = vpop.f32.mrb[19].mxu1  ;;  %v4480_v61 = vld [vmem:[%s6793_s19 + $0x6e8] sm:$0xff]  ;;  %v4479_v9 = vld [vmem:[%s6793_s19 + $0x6e0] sm:$0xff] }
 0x13b   : > { %2206 = vmatprep.mubr.f32.mxu1 %v4484_v25  ;;  %6116 = vmatprep.subr.bf16.mxu0 %v8591_v57  ;;  %v4814_v51 = vadd.f32 %v4813_v15, %v4812_v6 }
 0x13c   : > { %4524 = vmatprep.mubr.msk.f32.mxu0 %vm584_vm0, %v4462_v38  ;;  %v4750_v54 = vpop.f32.mrb[20].mxu0 }
 0x13d   : > { %v4815_v22 = vpop.f32.mrb[20].mxu1  ;;  %v4751_v24 = vpop.f32.mrb[21].mxu0  ;;  %v7495_v8 = vadd.f32 %v4814_v51, %v4749_v4  ;;  %v4486_v4 = vld [vmem:[%s6793_s19 + $0x718] sm:$0xff] }
 0x13e   : > { %2207 = vmatmul.mubr.f32.gmra.mrb[118].mxu1 %v4483_v18  ;;  %6118 = vmatpush1.bf16.msra.mxu0 %v7050_v44  ;;  %v4752_v23 = vadd.f32 %v4751_v24, %v4750_v54  ;;  %v4816_v32 = vpop.f32.mrb[21].mxu1  ;;  %v4495_v44 = vld [vmem:[%s6793_s19 + $0x760] sm:$0xff]  ;;  %v4485_v54 = vld [vmem:[%s6793_s19 + $0x710] sm:$0xff]  ;;  %v4492_v24 = vld [vmem:[%s6793_s19 + $0x748] sm:$0xff] }
 0x13f   : > { %2211 = vmatprep.mubr.f32.mxu1 %v4490_v56  ;;  %6119 = vmatprep.subr.bf16.mxu0 %v8591_v57  ;;  %v4817_v63 = vadd.f32 %v4816_v32, %v4815_v22 }
 0x141   : > { %v4850_v40 = vpop.f32.mrb[22].mxu1  ;;  %v7501_v1 = vadd.f32 %v4817_v63, %v4752_v23 }
 0x142   : > { %2212 = vmatmul.mubr.f32.gmra.mrb[120].mxu1 %v4489_v16  ;;  %6121 = vmatpush1.bf16.msra.mxu0 %v7063_v59  ;;  %v4851_v41 = vpop.f32.mrb[23].mxu1 }
 0x143   : > { %2216 = vmatprep.mubr.f32.mxu1 %v4496_v5  ;;  %6122 = vmatprep.subr.bf16.mxu0 %v8591_v57  ;;  %v7506_v26 = vadd.f32 %v4851_v41, %v4850_v40  ;;  %v4491_v5 = vld [vmem:[%s6793_s19 + $0x740] sm:$0xff]  ;;  %v4498_v41 = vld [vmem:[%s6793_s19 + $0x778] sm:$0xff] }
 0x145   : > { %v4853_v11 = vpop.f32.mrb[24].mxu1 }
 0x146   : > { %2217 = vmatmul.mubr.f32.gmra.mrb[122].mxu1 %v4495_v44  ;;  %6124 = vmatpush1.bf16.msra.mxu0 %v7077_v10  ;;  %v4854_v19 = vpop.f32.mrb[25].mxu1 }
 0x147   : > { %2221 = vmatprep.mubr.f32.mxu1 %v4502_v34  ;;  %6125 = vmatprep.subr.bf16.mxu0 %v8591_v57  ;;  %v7512_v59 = vadd.f32 %v4854_v19, %v4853_v11 }
 0x149   : > { %v4856_v50 = vpop.f32.mrb[26].mxu1 }
 0x14a   : > { %2222 = vmatmul.mubr.f32.gmra.mrb[124].mxu1 %v4501_v27  ;;  %6128 = vmatpush1.bf16.msk.msra.mxu0 %vm7095_vm3, %v7091_v28  ;;  %v4857_v10 = vpop.f32.mrb[27].mxu1  ;;  %v4467_v28 = vld [vmem:[%s6793_s19 + $0x680] sm:$0xff]  ;;  %v4497_v27 = vld [vmem:[%s6793_s19 + $0x770] sm:$0xff] }
 0x14b   : > { %2226 = vmatprep.mubr.f32.mxu1 %v4508_v48  ;;  %v7521_v14 = vadd.f32 %v4857_v10, %v4856_v50  ;;  %6136 = vmatprep.subr.bf16.mxu0 %v8591_v57 }
 0x14d   : > { %2307 = vmatmul.mubr.f32.vlgmr.msra.gmra.mrb[110].mxu0 %v4461_v13  ;;  %v4859_v31 = vpop.f32.mrb[28].mxu1  ;;  %v4504_v13 = vld [vmem:[%s6793_s19 + $0x7a8] sm:$0xff] }
 0x14e   : > { %2227 = vmatmul.mubr.f32.gmra.mrb[126].mxu1 %v4507_v52  ;;  %4525 = vmatprep.mubr.msk.f32.mxu0 %vm584_vm0, %v4468_v62  ;;  %v4860_v36 = vpop.f32.mrb[29].mxu1 }
 0x14f   : > { %2231 = vmatprep.mubr.f32.mxu1 %v4514_v3  ;;  %v7529_v53 = vadd.f32 %v4860_v36, %v4859_v31  ;;  %v4503_v3 = vld [vmem:[%s6793_s19 + $0x7a0] sm:$0xff]  ;;  %v4510_v36 = vld [vmem:[%s6793_s19 + $0x7d8] sm:$0xff] }
 0x150   : > { %v928_v55 = vpop.f32.mrb[22].mxu0 }
 0x151   : > { %v7533_v7 = vadd.f32 %v928_v55, %v7416_v21  ;;  %2312 = vmatmul.mubr.f32.gmra.mrb[112].mxu0 %v4467_v28  ;;  %v930_v58 = vpop.f32.mrb[23].mxu0  ;;  %v4862_v46 = vpop.f32.mrb[30].mxu1 }
 0x152   : > { %2232 = vmatmul.mubr.f32.gmra.mrb[128].mxu1 %v4513_v42  ;;  %4526 = vmatprep.mubr.msk.f32.mxu0 %vm584_vm0, %v4474_v35  ;;  %v4863_v47 = vpop.f32.mrb[31].mxu1  ;;  %v4509_v58 = vld [vmem:[%s6793_s19 + $0x7d0] sm:$0xff] }
 0x153   : > { %2236 = vmatprep.mubr.f32.mxu1 %v4520_v29  ;;  %v7539_v2 = vadd.f32 %v4863_v47, %v4862_v46 }
 0x154   : > { %v933_v25 = vpop.f32.mrb[24].mxu0 }
 0x155   : > { %v7542_v30 = vadd.f32 %v933_v25, %v7427_v0  ;;  %2317 = vmatmul.mubr.f32.gmra.mrb[114].mxu0 %v4473_v49  ;;  %v935_v21 = vpop.f32.mrb[25].mxu0  ;;  %v4865_v6 = vpop.f32.mrb[32].mxu1  ;;  %v4516_v49 = vld [vmem:[%s6793_s19 + $0x808] sm:$0xff] }
 0x156   : > { %2237 = vmatmul.mubr.f32.gmra.mrb[130].mxu1 %v4519_v17  ;;  %4527 = vmatprep.mubr.msk.f32.mxu0 %vm584_vm0, %v4480_v61  ;;  %v4866_v38 = vpop.f32.mrb[33].mxu1  ;;  %v4515_v21 = vld [vmem:[%s6793_s19 + $0x800] sm:$0xff] }
 0x157   : > { %v7547_v15 = vadd.f32 %v4866_v38, %v4865_v6 }
 0x158   : > { %v938_v18 = vpop.f32.mrb[26].mxu0 }
 0x159   : > { %v7550_v51 = vadd.f32 %v938_v18, %v7437_v37  ;;  %2322 = vmatmul.mubr.f32.gmra.mrb[116].mxu0 %v4479_v9  ;;  %v940_v0 = vpop.f32.mrb[27].mxu0  ;;  %v4868_v56 = vpop.f32.mrb[34].mxu1  ;;  %v4522_v9 = vld [vmem:[%s6793_s19 + $0x838] sm:$0x1] }
 0x15a   : > { %4528 = vmatprep.mubr.msk.f32.mxu0 %vm584_vm0, %v4486_v4  ;;  %v4869_v22 = vpop.f32.mrb[35].mxu1 }
 0x15b   : > { %v7555_v23 = vadd.f32 %v4869_v22, %v4868_v56 }
 0x15c   : > { %v943_v32 = vpop.f32.mrb[28].mxu0 }
 0x15d   : > { %v7558_v16 = vadd.f32 %v943_v32, %v7447_v45  ;;  %2327 = vmatmul.mubr.f32.gmra.mrb[118].mxu0 %v4485_v54  ;;  %v945_v63 = vpop.f32.mrb[29].mxu0  ;;  %v4871_v37 = vpop.f32.mrb[36].mxu1  ;;  %v4521_v54 = vld [vmem:[%s6793_s19 + $0x830] sm:$0x1] }
 0x15e   : > { %4529 = vmatprep.mubr.msk.f32.mxu0 %vm584_vm0, %v4492_v24  ;;  %v4872_v40 = vpop.f32.mrb[37].mxu1 }
 0x15f   : > { %v7563_v44 = vadd.f32 %v4872_v40, %v4871_v37 }
 0x160   : > { %v948_v34 = vpop.f32.mrb[30].mxu0 }
 0x161   : > { %v7566_v11 = vadd.f32 %v948_v34, %v7456_v60  ;;  %2332 = vmatmul.mubr.f32.gmra.mrb[120].mxu0 %v4491_v5  ;;  %v950_v19 = vpop.f32.mrb[31].mxu0  ;;  %v4874_v45 = vpop.f32.mrb[38].mxu1 }
 0x162   : > { %4530 = vmatprep.mubr.msk.f32.mxu0 %vm584_vm0, %v4498_v41  ;;  %v4875_v48 = vpop.f32.mrb[39].mxu1 }
 0x163   : > { %v7570_v50 = vadd.f32 %v4875_v48, %v4874_v45 }
 0x164   : > { %v953_v10 = vpop.f32.mrb[32].mxu0 }
 0x165   : > { %v7574_v52 = vadd.f32 %v953_v10, %v7464_v39  ;;  %2337 = vmatmul.mubr.f32.gmra.mrb[122].mxu0 %v4497_v27  ;;  %v955_v62 = vpop.f32.mrb[33].mxu0  ;;  %v4877_v60 = vpop.f32.mrb[40].mxu1 }
 0x166   : > { %4531 = vmatprep.mubr.msk.f32.mxu0 %vm584_vm0, %v4504_v13  ;;  %v4878_v31 = vpop.f32.mrb[41].mxu1 }
 0x167   : > { %v7578_v28 = vadd.f32 %v4878_v31, %v4877_v60 }
 0x168   : > { %v958_v42 = vpop.f32.mrb[34].mxu0 }
 0x169   : > { %v7582_v35 = vadd.f32 %v958_v42, %v7472_v20  ;;  %2342 = vmatmul.mubr.f32.gmra.mrb[124].mxu0 %v4503_v3  ;;  %v4880_v39 = vpop.f32.mrb[42].mxu1  ;;  %v960_v55 = vpop.f32.mrb[35].mxu0 }
 0x16a   : > { %v4881_v29 = vpop.f32.mrb[43].mxu1  ;;  %4532 = vmatprep.mubr.msk.f32.mxu0 %vm584_vm0, %v4510_v36 }
 0x16b   : > { %v7586_v46 = vadd.f32 %v4881_v29, %v4880_v39 }
 0x16c   : > { %v963_v47 = vpop.f32.mrb[36].mxu0 }
 0x16d   : > { %v7590_v17 = vadd.f32 %v963_v47, %v7480_v12  ;;  %v4915_v61 = vpop.f32.mrb[44].mxu1  ;;  %2347 = vmatmul.mubr.f32.gmra.mrb[126].mxu0 %v4509_v58  ;;  %v965_v20 = vpop.f32.mrb[37].mxu0 }
 0x16e   : > { %v4916_v25 = vpop.f32.mrb[45].mxu1  ;;  %4533 = vmatprep.mubr.msk.f32.mxu0 %vm584_vm0, %v4516_v49 }
 0x16f   : > { %v4917_v6 = vadd.f32 %v4916_v25, %v4915_v61 }
 0x170   : > { %v968_v38 = vpop.f32.mrb[38].mxu0 }
 0x171   : > { %v7596_v4 = vadd.f32 %v968_v38, %v7488_v43  ;;  %v4918_v18 = vpop.f32.mrb[46].mxu1  ;;  %2352 = vmatmul.mubr.f32.gmra.mrb[128].mxu0 %v4515_v21  ;;  %v970_v0 = vpop.f32.mrb[39].mxu0  ;;  %v1269_v12 = vadd.f32 %v4917_v6, %v7506_v26 }
 0x172   : > { %v4919_v56 = vpop.f32.mrb[47].mxu1  ;;  %4534 = vmatprep.mubr.msk.f32.mxu0 %vm584_vm0, %v4522_v9 }
 0x173   : > { %v4920_v22 = vadd.f32 %v4919_v56, %v4918_v18 }
 0x174   : > { %v973_v24 = vpop.f32.mrb[40].mxu0 }
 0x175   : > { %v7602_v32 = vadd.f32 %v973_v24, %v7495_v8  ;;  %v4921_v63 = vpop.f32.mrb[48].mxu1  ;;  %2357 = vmatmul.mubr.f32.gmra.mrb[130].mxu0 %v4521_v54  ;;  %v975_v37 = vpop.f32.mrb[41].mxu0  ;;  %v1274_v43 = vadd.f32 %v4920_v22, %v7512_v59 }
 0x176   : > { %v4922_v5 = vpop.f32.mrb[49].mxu1 }
 0x177   : > { %v4923_v40 = vadd.f32 %v4922_v5, %v4921_v63 }
 0x178   : > { %v978_v41 = vpop.f32.mrb[42].mxu0 }
 0x179   : > { %v7606_v34 = vadd.f32 %v978_v41, %v7501_v1  ;;  %v4924_v26 = vpop.f32.mrb[50].mxu1  ;;  %v980_v19 = vpop.f32.mrb[43].mxu0  ;;  %v1279_v45 = vadd.f32 %v4923_v40, %v7521_v14 }
 0x17a   : > { %v4925_v27 = vpop.f32.mrb[51].mxu1 }
 0x17b   : > { %v4926_v48 = vadd.f32 %v4925_v27, %v4924_v26 }
 0x17d   : > { %v4927_v13 = vpop.f32.mrb[52].mxu1  ;;  %v1284_v8 = vadd.f32 %v4926_v48, %v7529_v53 }
 0x17e   : > { %v4928_v10 = vpop.f32.mrb[53].mxu1 }
 0x17f   : > { %v4929_v62 = vadd.f32 %v4928_v10, %v4927_v13 }
 0x181   : > { %v4930_v60 = vpop.f32.mrb[54].mxu1  ;;  %v1289_v59 = vadd.f32 %v4929_v62, %v7539_v2 }
 0x182   : > { %v4931_v3 = vpop.f32.mrb[55].mxu1 }
 0x183   : > { %v4932_v31 = vadd.f32 %v4931_v3, %v4930_v60  ;;  %v2674_v3 = vld [vmem:[%s8582_s4 + $0x8] sm:$0xff] }
 0x185   : > { %v4933_v36 = vpop.f32.mrb[56].mxu1  ;;  %v1294_v1 = vadd.f32 %v4932_v31, %v7547_v15 }
 0x186   : > { %v4934_v42 = vpop.f32.mrb[57].mxu1 }
 0x187   : > { %v4935_v39 = vadd.f32 %v4934_v42, %v4933_v36 }
 0x189   : > { %v4936_v55 = vpop.f32.mrb[58].mxu1  ;;  %v1299_v14 = vadd.f32 %v4935_v39, %v7555_v23 }
 0x18a   : > { %v4937_v29 = vpop.f32.mrb[59].mxu1 }
 0x18b   : > { %v4938_v58 = vadd.f32 %v4937_v29, %v4936_v55 }
 0x18c   : > { %v1388_v49 = vpop.f32.mrb[44].mxu0 }
 0x18d   : > { %v4939_v47 = vpop.f32.mrb[60].mxu1  ;;  %v7613_v53 = vadd.f32 %v1388_v49, %v1269_v12  ;;  %v1390_v61 = vpop.f32.mrb[45].mxu0  ;;  %v1304_v20 = vadd.f32 %v4938_v58, %v7563_v44 }
 0x18e   : > { %v4940_v2 = vpop.f32.mrb[61].mxu1 }
 0x18f   : > { %v4941_v21 = vadd.f32 %v4940_v2, %v4939_v47 }
 0x190   : > { %v1393_v15 = vpop.f32.mrb[46].mxu0 }
 0x191   : > { %v4942_v6 = vpop.f32.mrb[62].mxu1  ;;  %v7618_v9 = vadd.f32 %v1393_v15, %v1274_v43  ;;  %v1395_v38 = vpop.f32.mrb[47].mxu0  ;;  %v1309_v23 = vadd.f32 %v4941_v21, %v7570_v50 }
 0x192   : > { %v4943_v18 = vpop.f32.mrb[63].mxu1 }
 0x193   : > { %v4944_v12 = vadd.f32 %v4943_v18, %v4942_v6 }
 0x194   : > { %v1398_v56 = vpop.f32.mrb[48].mxu0 }
 0x195   : > { %v4945_v54 = vpop.f32.mrb[64].mxu1  ;;  %v7623_v44 = vadd.f32 %v1398_v56, %v1279_v45  ;;  %v1400_v22 = vpop.f32.mrb[49].mxu0  ;;  %v1314_v24 = vadd.f32 %v4944_v12, %v7578_v28 }
 0x196   : > { %v4946_v63 = vpop.f32.mrb[65].mxu1 }
 0x197   : > { %v4947_v43 = vadd.f32 %v4946_v63, %v4945_v54 }
 0x198   : > { %v1403_v5 = vpop.f32.mrb[50].mxu0 }
 0x199   : > { %v7628_v40 = vadd.f32 %v1403_v5, %v1284_v8  ;;  %v1405_v50 = vpop.f32.mrb[51].mxu0  ;;  %v4980_v41 = vpop.f32.mrb[66].mxu1  ;;  %v1319_v26 = vadd.f32 %v4947_v43, %v7586_v46  ;;  %v2673_v46 = vld [vmem:[%s8582_s4] sm:$0xff] }
 0x19a   : > { %v4981_v19 = vpop.f32.mrb[67].mxu1  ;;  %v6137_v36 = vpack.c.bf16 %v2674_v3, %v2673_v46 }
 0x19b   : > { %v4982_v27 = vadd.f32 %v4981_v19, %v4980_v41 }
 0x19c   : > { %v1408_v48 = vpop.f32.mrb[52].mxu0  ;;  %6138 = vmatpush3.bf16.msra.mxu0 %v6137_v36 }
 0x19d   : > { %v7633_v13 = vadd.f32 %v1408_v48, %v1289_v59  ;;  %v1410_v28 = vpop.f32.mrb[53].mxu0  ;;  %v4983_v10 = vpop.f32.mrb[68].mxu1  ;;  %6139 = vmatprep.subr.bf16.mxu0 %v8591_v57 }
 0x19e   : > { %v4984_v62 = vpop.f32.mrb[69].mxu1 }
 0x19f   : > { %v7637_v8 = vadd.f32 %v4984_v62, %v4983_v10 }
 0x1a0   : > { %v1413_v31 = vpop.f32.mrb[54].mxu0 }
 0x1a1   : > { %v7645_v59 = vadd.f32 %v1413_v31, %v1294_v1  ;;  %v1415_v42 = vpop.f32.mrb[55].mxu0  ;;  %v4986_v39 = vpop.f32.mrb[70].mxu1 }
 0x1a2   : > { %v4987_v55 = vpop.f32.mrb[71].mxu1 }
 0x1a3   : > { %v7649_v58 = vadd.f32 %v4987_v55, %v4986_v39 }
 0x1a4   : > { %v1418_v49 = vpop.f32.mrb[56].mxu0 }
 0x1a5   : > { %v7652_v47 = vadd.f32 %v1418_v49, %v1299_v14  ;;  %v1420_v61 = vpop.f32.mrb[57].mxu0  ;;  %v4989_v2 = vpop.f32.mrb[72].mxu1 }
 0x1a6   : > { %v4990_v21 = vpop.f32.mrb[73].mxu1 }
 0x1a7   : > { %v7656_v15 = vadd.f32 %v4990_v21, %v4989_v2 }
 0x1a8   : > { %v1423_v6 = vpop.f32.mrb[58].mxu0 }
 0x1a9   : > { %v7658_v38 = vadd.f32 %v1423_v6, %v1304_v20  ;;  %v1425_v18 = vpop.f32.mrb[59].mxu0  ;;  %v4992_v12 = vpop.f32.mrb[74].mxu1 }
 0x1aa   : > { %v4993_v56 = vpop.f32.mrb[75].mxu1 }
 0x1ab   : > { %v7662_v22 = vadd.f32 %v4993_v56, %v4992_v12 }
 0x1ac   : > { %v1428_v14 = vpop.f32.mrb[60].mxu0 }
 0x1ad   : > { %v7664_v63 = vadd.f32 %v1428_v14, %v1309_v23  ;;  %v1430_v43 = vpop.f32.mrb[61].mxu0  ;;  %v4995_v5 = vpop.f32.mrb[76].mxu1 }
 0x1ae   : > { %v4996_v50 = vpop.f32.mrb[77].mxu1 }
 0x1af   : > { %v7668_v19 = vadd.f32 %v4996_v50, %v4995_v5  ;;  %v2509_v5 = vld [vmem:[%s8581_s3 + $0x8] sm:$0xff] }
 0x1b0   : > { %v1433_v20 = vpop.f32.mrb[62].mxu0 }
 0x1b1   : > { %v7670_v48 = vadd.f32 %v1433_v20, %v1314_v24  ;;  %v1435_v28 = vpop.f32.mrb[63].mxu0  ;;  %v4998_v10 = vpop.f32.mrb[78].mxu1 }
 0x1b2   : > { %v4999_v62 = vpop.f32.mrb[79].mxu1 }
 0x1b3   : > { %v7674_v3 = vadd.f32 %v4999_v62, %v4998_v10 }
 0x1b4   : > { %v1438_v23 = vpop.f32.mrb[64].mxu0 }
 0x1b5   : > { %v7676_v31 = vadd.f32 %v1438_v23, %v1319_v26  ;;  %v1440_v36 = vpop.f32.mrb[65].mxu0  ;;  %v5001_v42 = vpop.f32.mrb[80].mxu1  ;;  %v2508_v26 = vld [vmem:[%s8581_s3] sm:$0xff] }
 0x1b6   : > { %v5002_v39 = vpop.f32.mrb[81].mxu1  ;;  %v6130_v20 = vpack.c.bf16 %v2509_v5, %v2508_v26 }
 0x1b7   : > { %v7680_v49 = vadd.f32 %v5002_v39, %v5001_v42  ;;  %v2675_v42 = vld [vmem:[%s8582_s4 + $0x10] sm:$0xff]  ;;  %v2676_v39 = vld [vmem:[%s8582_s4 + $0x18] sm:$0x3f] }
 0x1b8   : > { %v5045_v24 = vpop.f32.mrb[66].mxu0  ;;  %6131 = vmatpush3.bf16.msra.mxu1 %v6130_v20 }
 0x1b9   : > { %v5046_v61 = vpop.f32.mrb[67].mxu0  ;;  %6132 = vmatprep.subr.bf16.mxu1 %v8591_v57 }
 0x1ba   : > { %v5047_v2 = vadd.f32 %v5046_v61, %v5045_v24  ;;  %v2510_v24 = vld [vmem:[%s8581_s3 + $0x10] sm:$0xff] }
 0x1bb   : > { %v5004_v21 = vpop.f32.mrb[82].mxu1 }
 0x1bc   : > { %v5048_v6 = vpop.f32.mrb[68].mxu0  ;;  %v5005_v18 = vpop.f32.mrb[83].mxu1  ;;  %v1729_v12 = vadd.f32 %v5047_v2, %v4982_v27  ;;  %v2511_v2 = vld [vmem:[%s8581_s3 + $0x18] sm:$0x3f] }
 0x1bd   : > { %v5049_v56 = vpop.f32.mrb[69].mxu0  ;;  %v5006_v14 = vadd.f32 %v5005_v18, %v5004_v21 }
 0x1be   : > { %v5050_v43 = vadd.f32 %v5049_v56, %v5048_v6  ;;  %v6133_v56 = vpack.c.bf16 %v2511_v2, %v2510_v24 }
 0x1bf   : > { %v5007_v50 = vpop.f32.mrb[84].mxu1 }
 0x1c0   : > { %v5051_v28 = vpop.f32.mrb[70].mxu0  ;;  %v5008_v10 = vpop.f32.mrb[85].mxu1  ;;  %v1734_v62 = vadd.f32 %v5050_v43, %v7637_v8  ;;  %v6140_v8 = vpack.c.bf16 %v2676_v39, %v2675_v42  ;;  %6135 = vmatpush3.bf16.msk.msra.mxu1 %vm7095_vm3, %v6133_v56 }
 0x1c1   : > { %v5052_v23 = vpop.f32.mrb[71].mxu0  ;;  %v5009_v36 = vadd.f32 %v5008_v10, %v5007_v50  ;;  %v8593_v50 = vmov 0.0   ;;  %6143 = vmatprep.subr.bf16.mxu1 %v8591_v57 }
 0x1c2   : > { %v5053_v27 = vadd.f32 %v5052_v23, %v5051_v28  ;;  %6142 = vmatpush3.bf16.msk.msra.mxu0 %vm7095_vm3, %v6140_v8  ;;  %5347 = vmatprep.mubr.msk.f32.mxu1 %vm6476_vm4, %v8593_v50 }
 0x1c3   : > { %v5010_v61 = vpop.f32.mrb[86].mxu1  ;;  %6150 = vmatprep.subr.bf16.mxu0 %v8591_v57  ;;  %5388 = vmatprep.mubr.msk.f32.mxu0 %vm6476_vm4, %v8593_v50 }
 0x1c4   : > { %v5054_v21 = vpop.f32.mrb[72].mxu0  ;;  %v5011_v6 = vpop.f32.mrb[87].mxu1  ;;  %v1739_v18 = vadd.f32 %v5053_v27, %v7649_v58 }
 0x1c5   : > { %v5055_v43 = vpop.f32.mrb[73].mxu0  ;;  %v5012_v26 = vadd.f32 %v5011_v6, %v5010_v61 }
 0x1c6   : > { %v5056_v5 = vadd.f32 %v5055_v43, %v5054_v21 }
 0x1c8   : > { %v5057_v58 = vpop.f32.mrb[74].mxu0  ;;  %v1744_v20 = vadd.f32 %v5056_v5, %v7656_v15 }
 0x1c9   : > { %v5058_v28 = vpop.f32.mrb[75].mxu0 }
 0x1ca   : > { %v5059_v10 = vadd.f32 %v5058_v28, %v5057_v58 }
 0x1cc   : > { %v5060_v23 = vpop.f32.mrb[76].mxu0  ;;  %v1749_v27 = vadd.f32 %v5059_v10, %v7662_v22 }
 0x1cd   : > { %v5061_v42 = vpop.f32.mrb[77].mxu0 }
 0x1ce   : > { %v5062_v39 = vadd.f32 %v5061_v42, %v5060_v23 }
 0x1d0   : > { %v5063_v24 = vpop.f32.mrb[78].mxu0  ;;  %v1754_v61 = vadd.f32 %v5062_v39, %v7668_v19 }
 0x1d1   : > { %v5064_v8 = vpop.f32.mrb[79].mxu0 }
 0x1d2   : > { %v5065_v2 = vadd.f32 %v5064_v8, %v5063_v24 }
 0x1d4   : > { %v5066_v21 = vpop.f32.mrb[80].mxu0  ;;  %v1759_v6 = vadd.f32 %v5065_v2, %v7674_v3 }
 0x1d5   : > { %v1848_v56 = vpop.f32.mrb[88].mxu1  ;;  %v5067_v43 = vpop.f32.mrb[81].mxu0 }
 0x1d6   : > { %v7717_v15 = vadd.f32 %v1848_v56, %v1729_v12  ;;  %v5068_v5 = vadd.f32 %v5067_v43, %v5066_v21  ;;  %v1850_v55 = vpop.f32.mrb[89].mxu1 }
 0x1d8   : > { %v5069_v58 = vpop.f32.mrb[82].mxu0  ;;  %v1764_v28 = vadd.f32 %v5068_v5, %v7680_v49 }
 0x1d9   : > { %v1853_v22 = vpop.f32.mrb[90].mxu1  ;;  %v5070_v10 = vpop.f32.mrb[83].mxu0 }
 0x1da   : > { %v7720_v23 = vadd.f32 %v1853_v22, %v1734_v62  ;;  %v5071_v42 = vadd.f32 %v5070_v10, %v5069_v58  ;;  %v1855_v19 = vpop.f32.mrb[91].mxu1 }
 0x1dc   : > { %v5072_v39 = vpop.f32.mrb[84].mxu0  ;;  %v1769_v24 = vadd.f32 %v5071_v42, %v5006_v14 }
 0x1dd   : > { %v1858_v8 = vpop.f32.mrb[92].mxu1  ;;  %v5073_v57 = vpop.f32.mrb[85].mxu0 }
 0x1de   : > { %v7722_v3 = vadd.f32 %v1858_v8, %v1739_v18  ;;  %v5074_v2 = vadd.f32 %v5073_v57, %v5072_v39  ;;  %v1860_v12 = vpop.f32.mrb[93].mxu1 }
 0x1e0   : > { %v5075_v56 = vpop.f32.mrb[86].mxu0  ;;  %v1774_v21 = vadd.f32 %v5074_v2, %v5009_v36 }
 0x1e1   : > { %v1863_v55 = vpop.f32.mrb[94].mxu1  ;;  %v5076_v43 = vpop.f32.mrb[87].mxu0 }
 0x1e2   : > { %v7724_v46 = vadd.f32 %v1863_v55, %v1744_v20  ;;  %v5077_v49 = vadd.f32 %v5076_v43, %v5075_v56  ;;  %v1865_v5 = vpop.f32.mrb[95].mxu1 }
 0x1e4   : > { %v5110_v62 = vpop.f32.mrb[88].mxu0  ;;  %v1779_v22 = vadd.f32 %v5077_v49, %v5012_v26 }
 0x1e5   : > { %v1868_v58 = vpop.f32.mrb[96].mxu1  ;;  %v5111_v10 = vpop.f32.mrb[89].mxu0 }
 0x1e6   : > { %v7726_v19 = vadd.f32 %v1868_v58, %v1749_v27  ;;  %v5112_v14 = vadd.f32 %v5111_v10, %v5110_v62  ;;  %v1870_v42 = vpop.f32.mrb[97].mxu1 }
 0x1e8   : > { %v5113_v18 = vpop.f32.mrb[90].mxu0 }
 0x1e9   : > { %v1873_v8 = vpop.f32.mrb[98].mxu1  ;;  %v5114_v57 = vpop.f32.mrb[91].mxu0 }
 0x1ea   : > { %v7728_v39 = vadd.f32 %v1873_v8, %v1754_v61  ;;  %v1875_v36 = vpop.f32.mrb[99].mxu1  ;;  %v5115_v2 = vadd.f32 %v5114_v57, %v5113_v18 }
 0x1ec   : > { %v5116_v12 = vpop.f32.mrb[92].mxu0 }
 0x1ed   : > { %v1878_v20 = vpop.f32.mrb[100].mxu1  ;;  %v5117_v55 = vpop.f32.mrb[93].mxu0 }
 0x1ee   : > { %v7730_v56 = vadd.f32 %v1878_v20, %v1759_v6  ;;  %v1880_v43 = vpop.f32.mrb[101].mxu1  ;;  %v5118_v26 = vadd.f32 %v5117_v55, %v5116_v12 }
 0x1f0   : > { %v5119_v49 = vpop.f32.mrb[94].mxu0 }
 0x1f1   : > { %v1883_v5 = vpop.f32.mrb[102].mxu1  ;;  %v5120_v27 = vpop.f32.mrb[95].mxu0 }
 0x1f2   : > { %v7732_v58 = vadd.f32 %v1883_v5, %v1764_v28  ;;  %v1885_v62 = vpop.f32.mrb[103].mxu1  ;;  %v5121_v10 = vadd.f32 %v5120_v27, %v5119_v49 }
 0x1f4   : > { %v5122_v42 = vpop.f32.mrb[96].mxu0 }
 0x1f5   : > { %v1888_v50 = vpop.f32.mrb[104].mxu1  ;;  %v5123_v61 = vpop.f32.mrb[97].mxu0 }
 0x1f6   : > { %v7734_v8 = vadd.f32 %v1888_v50, %v1769_v24  ;;  %v1890_v18 = vpop.f32.mrb[105].mxu1  ;;  %v5124_v57 = vadd.f32 %v5123_v61, %v5122_v42 }
 0x1f8   : > { %v5125_v36 = vpop.f32.mrb[98].mxu0 }
 0x1f9   : > { %v1893_v41 = vpop.f32.mrb[106].mxu1  ;;  %v5126_v6 = vpop.f32.mrb[99].mxu0 }
 0x1fa   : > { %v7736_v20 = vadd.f32 %v1893_v41, %v1774_v21  ;;  %v1895_v12 = vpop.f32.mrb[107].mxu1  ;;  %v5127_v55 = vadd.f32 %v5126_v6, %v5125_v36 }
 0x1fc   : > { %v5128_v43 = vpop.f32.mrb[100].mxu0 }
 0x1fd   : > { %v1898_v54 = vpop.f32.mrb[108].mxu1  ;;  %v5129_v28 = vpop.f32.mrb[101].mxu0 }
 0x1fe   : > { %v7738_v5 = vadd.f32 %v1898_v54, %v1779_v22  ;;  %v1900_v49 = vpop.f32.mrb[109].mxu1  ;;  %v5130_v27 = vadd.f32 %v5129_v28, %v5128_v43 }
 0x200   : > { %v5131_v62 = vpop.f32.mrb[102].mxu0 }
 0x201   : > { %v5175_v1 = vpop.f32.mrb[110].mxu1  ;;  %v5132_v50 = vpop.f32.mrb[103].mxu0 }
 0x202   : > { %v5176_v24 = vpop.f32.mrb[111].mxu1  ;;  %v5133_v18 = vadd.f32 %v5132_v50, %v5131_v62 }
 0x203   : > { %v5177_v42 = vadd.f32 %v5176_v24, %v5175_v1 }
 0x204   : > { %v5134_v61 = vpop.f32.mrb[104].mxu0 }
 0x205   : > { %v5178_v29 = vpop.f32.mrb[112].mxu1  ;;  %v5135_v60 = vpop.f32.mrb[105].mxu0  ;;  %v2189_v41 = vadd.f32 %v5177_v42, %v5112_v14 }
 0x206   : > { %v5179_v21 = vpop.f32.mrb[113].mxu1  ;;  %v5136_v12 = vadd.f32 %v5135_v60, %v5134_v61 }
 0x207   : > { %v5180_v36 = vadd.f32 %v5179_v21, %v5178_v29 }
 0x208   : > { %v5137_v6 = vpop.f32.mrb[106].mxu0 }
 0x209   : > { %v5181_v45 = vpop.f32.mrb[114].mxu1  ;;  %v5138_v37 = vpop.f32.mrb[107].mxu0  ;;  %v2194_v54 = vadd.f32 %v5180_v36, %v5115_v2  ;;  %v2397_v36 = vlaneseq }
 0x20a   : > { %v5182_v22 = vpop.f32.mrb[115].mxu1  ;;  %v5139_v49 = vadd.f32 %v5138_v37, %v5137_v6 }
 0x20b   : > { %v5183_v43 = vadd.f32 %v5182_v22, %v5181_v45 }
 0x20c   : > { %v5140_v28 = vpop.f32.mrb[108].mxu0 }
 0x20d   : > { %v5184_v0 = vpop.f32.mrb[116].mxu1  ;;  %v5141_v25 = vpop.f32.mrb[109].mxu0  ;;  %v2199_v33 = vadd.f32 %v5183_v43, %v5118_v26  ;;  %v7746_v26 = vshrl.u32 %v2397_v36, 7 }
 0x20e   : > { %v5185_v62 = vpop.f32.mrb[117].mxu1  ;;  %v7740_v1 = vadd.f32 %v5141_v25, %v5140_v28 }
 0x20f   : > { %v5186_v50 = vadd.f32 %v5185_v62, %v5184_v0  ;;  %v2399_v28 = vsub.s32 0, %v7746_v26 }
 0x211   : > { %v5187_v24 = vpop.f32.mrb[118].mxu1  ;;  %v2204_v14 = vadd.f32 %v5186_v50, %v5121_v10 }
 0x212   : > { %v5188_v42 = vpop.f32.mrb[119].mxu1 }
 0x213   : > { %v5189_v60 = vadd.f32 %v5188_v42, %v5187_v24 }
 0x215   : > { %v5190_v29 = vpop.f32.mrb[120].mxu1  ;;  %v7742_v61 = vadd.f32 %v5189_v60, %v5124_v57  ;;  %v2395_v57 = vld [vmem:[%s8580_s2] sm:$0xff] }
 0x216   : > { %v5191_v21 = vpop.f32.mrb[121].mxu1 }
 0x217   : > { %v5192_v2 = vadd.f32 %v5191_v21, %v5190_v29  ;;  %v7760_v21 = vrot.slane %v2395_v57, %v2399_v28 }
 0x219   : > { %v5193_v37 = vpop.f32.mrb[122].mxu1  ;;  %v7744_v45 = vadd.f32 %v5192_v2, %v5127_v55  ;;  %v2414_v55 = vsub.s32 1, %v7746_v26  ;;  %v2429_v2 = vsub.s32 2, %v7746_v26 }
 0x21a   : > { %v5194_v6 = vpop.f32.mrb[123].mxu1 }
 0x21b   : > { %v5195_v22 = vadd.f32 %v5194_v6, %v5193_v37  ;;  %v8601_v6 = vmax.f32 %v7533_v7, %v7613_v53 }
 0x21d   : > { %v5196_v25 = vpop.f32.mrb[124].mxu1  ;;  %v7748_v43 = vadd.f32 %v5195_v22, %v5130_v27  ;;  %v7768_v22 = vrot.slane %v2395_v57, %v2414_v55 }
 0x21e   : > { %v5197_v0 = vpop.f32.mrb[125].mxu1 }
 0x21f   : > { %v5198_v10 = vadd.f32 %v5197_v0, %v5196_v25 }
 0x220   : > { %v2308_v62 = vpop.f32.mrb[110].mxu0 }
 0x221   : > { %v5199_v50 = vpop.f32.mrb[126].mxu1  ;;  %v2309_v24 = vadd.f32 %v2308_v62, %v2189_v41  ;;  %v2310_v42 = vpop.f32.mrb[111].mxu0  ;;  %v7755_v60 = vadd.f32 %v5198_v10, %v5133_v18 }
 0x222   : > { %v5200_v29 = vpop.f32.mrb[127].mxu1 }
 0x223   : > { %v2373_v27 = vmax.f32 %v7717_v15, %v2309_v24  ;;  %v5201_v36 = vadd.f32 %v5200_v29, %v5199_v50  ;;  %v7775_v50 = vrot.slane %v2395_v57, %v2429_v2  ;;  %v8602_v29 = vmax.f32 %v7542_v30, %v7618_v9 }
 0x224   : > { %v2313_v37 = vpop.f32.mrb[112].mxu0  ;;  %v8603_v30 = vmax.f32 %v7550_v51, %v7623_v44  ;;  %v8604_v51 = vmax.f32 %v7558_v16, %v7628_v40 }
 0x225   : > { %v2384_v41 = vmax.f32 %v8601_v6, %v2373_v27  ;;  %v5202_v18 = vpop.f32.mrb[128].mxu1  ;;  %v2314_v25 = vadd.f32 %v2313_v37, %v2194_v54  ;;  %v2315_v0 = vpop.f32.mrb[113].mxu0  ;;  %v7770_v15 = vadd.f32 %v5201_v36, %v5136_v12 }
 0x226   : > { %v5203_v10 = vpop.f32.mrb[129].mxu1 }
 0x227   : > { %v2401_v62 = vadd.f32 %v7760_v21, %v2384_v41  ;;  %v2374_v24 = vmax.f32 %v7720_v23, %v2314_v25  ;;  %v5204_v7 = vadd.f32 %v5203_v10, %v5202_v18 }
 0x228   : > { %v2318_v53 = vpop.f32.mrb[114].mxu0 }
 0x229   : > { %v2416_v42 = vmul.f32 %v7768_v22, %v2401_v62  ;;  %v2385_v54 = vmax.f32 %v8602_v29, %v2374_v24  ;;  %v5205_v27 = vpop.f32.mrb[130].mxu1  ;;  %v2319_v12 = vadd.f32 %v2318_v53, %v2199_v33  ;;  %v2320_v36 = vpop.f32.mrb[115].mxu0  ;;  %v7782_v37 = vadd.f32 %v5204_v7, %v5139_v49 }
 0x22a   : > { %v5206_v6 = vpop.f32.mrb[131].mxu1 }
 0x22b   : > { %v2431_v41 = vadd.f32 %v7775_v50, %v2416_v42  ;;  %v2402_v57 = vadd.f32 %v7760_v21, %v2385_v54  ;;  %v2375_v23 = vmax.f32 %v7722_v3, %v2319_v12  ;;  %v5207_v18 = vadd.f32 %v5206_v6, %v5205_v27 }
 0x22c   : > { %v2323_v25 = vpop.f32.mrb[116].mxu0 }
 0x22d   : > { %v4535_v0 = vmul.f32 -1.442695, %v2431_v41  ;;  %v2417_v10 = vmul.f32 %v7768_v22, %v2402_v57  ;;  %v2386_v9 = vmax.f32 %v8603_v30, %v2375_v23  ;;  %v2324_v33 = vadd.f32 %v2323_v25, %v2204_v14  ;;  %v2325_v62 = vpop.f32.mrb[117].mxu0 }
 0x22e   : > { %v7792_v49 = vadd.f32 %v5207_v18, %v7740_v1  ;;  %v8605_v41 = vmax.f32 %v7566_v11, %v7633_v13  ;;  %v8606_v30 = vmax.f32 %v7574_v52, %v7645_v59  ;;  %v8607_v52 = vmax.f32 %v7582_v35, %v7652_v47 }
 0x22f   : > { %6225 = vpow2.f32 %v4535_v0  ;;  %v2432_v24 = vadd.f32 %v7775_v50, %v2417_v10  ;;  %v2403_v7 = vadd.f32 %v7760_v21, %v2386_v9  ;;  %v2376_v3 = vmax.f32 %v7724_v46, %v2324_v33 }
 0x230   : > { %v2328_v53 = vpop.f32.mrb[118].mxu0  ;;  %v8608_v35 = vmax.f32 %v7590_v17, %v7658_v38 }
 0x231   : > { %v4536_v42 = vmul.f32 -1.442695, %v2432_v24  ;;  %v2418_v29 = vmul.f32 %v7768_v22, %v2403_v7  ;;  %v2387_v44 = vmax.f32 %v8604_v51, %v2376_v3  ;;  %v2329_v14 = vadd.f32 %v2328_v53, %v7742_v61  ;;  %v2330_v54 = vpop.f32.mrb[119].mxu0 }
 0x233   : > { %6227 = vpow2.f32 %v4536_v42  ;;  %v2433_v1 = vadd.f32 %v7775_v50, %v2418_v29  ;;  %v2404_v27 = vadd.f32 %v7760_v21, %v2387_v44  ;;  %v2377_v12 = vmax.f32 %v7726_v19, %v2329_v14 }
 0x234   : > { %v2333_v36 = vpop.f32.mrb[120].mxu0 }
 0x235   : > { %v4537_v46 = vmul.f32 -1.442695, %v2433_v1  ;;  %v2419_v6 = vmul.f32 %v7768_v22, %v2404_v27  ;;  %v2388_v57 = vmax.f32 %v8605_v41, %v2377_v12  ;;  %v2334_v16 = vadd.f32 %v2333_v36, %v7744_v45  ;;  %v2335_v40 = vpop.f32.mrb[121].mxu0  ;;  %v2804_v36 = vld [vmem:[%s8583_s5] sm:$0xff] }
 0x237   : > { %6229 = vpow2.f32 %v4537_v46  ;;  %v2434_v61 = vadd.f32 %v7775_v50, %v2419_v6  ;;  %v2405_v23 = vadd.f32 %v7760_v21, %v2388_v57  ;;  %v2378_v18 = vmax.f32 %v7728_v39, %v2334_v16 }
 0x238   : > { %v2338_v25 = vpop.f32.mrb[122].mxu0 }
 0x239   : > { %v6226_v19 = vpop.eup %6225  ;;  %v4538_v0 = vmul.f32 -1.442695, %v2434_v61  ;;  %v2420_v10 = vmul.f32 %v7768_v22, %v2405_v23  ;;  %v2389_v11 = vmax.f32 %v8606_v30, %v2378_v18  ;;  %v2339_v13 = vadd.f32 %v2338_v25, %v7748_v43  ;;  %v2340_v45 = vpop.f32.mrb[123].mxu0 }
 0x23a   : > { %v2475_v9 = vadd.f32 1.0, %v6226_v19  ;;  %v8609_v61 = vmax.f32 %v7596_v4, %v7664_v63  ;;  %v2806_v19 = vld [vmem:[%s8583_s5 + $0x10] sm:$0xff] }
 0x23b   : > { %6231 = vpow2.f32 %v4538_v0  ;;  %v2435_v33 = vadd.f32 %v7775_v50, %v2420_v10  ;;  %v2406_v62 = vadd.f32 %v7760_v21, %v2389_v11  ;;  %v2379_v39 = vmax.f32 %v7730_v56, %v2339_v13 }
 0x23c   : > { %6233 = vrcp.f32 %v2475_v9  ;;  %v2343_v24 = vpop.f32.mrb[124].mxu0  ;;  %v8610_v11 = vmov 0.0  }
 0x23d   : > { %v6228_v7 = vpop.eup %6227  ;;  %v4539_v3 = vmul.f32 -1.442695, %v2435_v33  ;;  %v2421_v53 = vmul.f32 %v7768_v22, %v2406_v62  ;;  %v2390_v59 = vmax.f32 %v8607_v52, %v2379_v39  ;;  %v2344_v43 = vadd.f32 %v2343_v24, %v7755_v60  ;;  %v2345_v42 = vpop.f32.mrb[125].mxu0 }
 0x23e   : > { %v2476_v29 = vadd.f32 1.0, %v6228_v7 }
 0x23f   : > { %6235 = vpow2.f32 %v4539_v3  ;;  %v2436_v51 = vadd.f32 %v7775_v50, %v2421_v53  ;;  %v2407_v44 = vadd.f32 %v7760_v21, %v2390_v59  ;;  %v2380_v56 = vmax.f32 %v7732_v58, %v2344_v43  ;;  %v2805_v58 = vld [vmem:[%s8583_s5 + $0x8] sm:$0xff] }
 0x240   : > { %6237 = vrcp.f32 %v2476_v29  ;;  %v2348_v14 = vpop.f32.mrb[126].mxu0  ;;  %v8612_v53 = vmov 0.0|0.0  }
 0x241   : > { %v6230_v54 = vpop.eup %6229  ;;  %v4540_v1 = vmul.f32 -1.442695, %v2436_v51  ;;  %v2422_v27 = vmul.f32 %v7768_v22, %v2407_v44  ;;  %v2391_v47 = vmax.f32 %v8608_v35, %v2380_v56  ;;  %v2349_v60 = vadd.f32 %v2348_v14, %v7770_v15  ;;  %v2350_v12 = vpop.f32.mrb[127].mxu0 }
 0x242   : > { %v2477_v46 = vadd.f32 1.0, %v6230_v54  ;;  %v6144_v15 = vpack.c.bf16 %v2805_v58, %v2804_v36 }
 0x243   : > { %6239 = vpow2.f32 %v4540_v1  ;;  %v2437_v6 = vadd.f32 %v7775_v50, %v2422_v27  ;;  %v2408_v41 = vadd.f32 %v7760_v21, %v2391_v47  ;;  %v2381_v17 = vmax.f32 %v7734_v8, %v2349_v60  ;;  %v2807_v8 = vld [vmem:[%s8583_s5 + $0x18] sm:$0x3f] }
 0x244   : > { %6241 = vrcp.f32 %v2477_v46  ;;  %v2353_v38 = vpop.f32.mrb[128].mxu0  ;;  %v6147_v13 = vpack.c.bf16 %v2807_v8, %v2806_v19 }
 0x245   : > { %v6232_v57 = vpop.eup %6231  ;;  %v4541_v16 = vmul.f32 -1.442695, %v2437_v6  ;;  %v2423_v40 = vmul.f32 %v7768_v22, %v2408_v41  ;;  %v2392_v23 = vmax.f32 %v8609_v61, %v2381_v17  ;;  %v2354_v18 = vadd.f32 %v2353_v38, %v7782_v37  ;;  %v2355_v25 = vpop.f32.mrb[129].mxu0 }
 0x246   : > { %v7854_v0 = vpop.eup %6233  ;;  %v2478_v10 = vadd.f32 1.0, %v6232_v57 }
 0x247   : > { %6243 = vpow2.f32 %v4541_v16  ;;  %v2438_v30 = vadd.f32 %v7775_v50, %v2423_v40  ;;  %v2409_v4 = vadd.f32 %v7760_v21, %v2392_v23  ;;  %v2382_v63 = vmax.f32 %v7736_v20, %v2354_v18  ;;  %5348 = vmatmul.mubr.msk.f32.vlgmr.msra.gmra.mrb[132].mxu1 %vm2516_vm5, %v7854_v0  ;;  %5389 = vmatmul.mubr.msk.f32.vlgmr.msra.gmra.mrb[132].mxu0 %vm2516_vm5, %v7854_v0  ;;  %v8034_v40 = vld [vmem:[%s8585_s7] sm:$0x7] }
 0x248   : > { %6245 = vrcp.f32 %v2478_v10  ;;  %v2358_v37 = vpop.f32.mrb[130].mxu0  ;;  %5350 = vmatprep.mubr.msk.f32.mxu1 %vm6476_vm4, %v8610_v11  ;;  %5391 = vmatprep.mubr.msk.f32.mxu0 %vm6476_vm4, %v8610_v11  ;;  %v8611_v20 = vmax.f32 %v7602_v32, %v7670_v48  ;;  %v8041_v18 = vrot.slane %v8034_v40, %v2414_v55 }
 0x249   : > { %v6236_v45 = vpop.eup %6235  ;;  %v4542_v9 = vmul.f32 -1.442695, %v2438_v30  ;;  %v2424_v33 = vmul.f32 %v7768_v22, %v2409_v4  ;;  %v2359_v39 = vadd.f32 %v2358_v37, %v7792_v49  ;;  %v2360_v24 = vpop.f32.mrb[131].mxu0  ;;  %6145 = vmatpush3.bf16.msra.mxu1 %v6144_v15 }
 0x24a   : > { %v2393_v62 = vmax.f32 %v8611_v20, %v2382_v63  ;;  %v7872_v7 = vpop.eup %6237  ;;  %v2479_v3 = vadd.f32 1.0, %v6236_v45  ;;  %6146 = vmatprep.subr.bf16.mxu1 %v8612_v53 }
 0x24b   : > { %6247 = vpow2.f32 %v4542_v9  ;;  %v2439_v52 = vadd.f32 %v7775_v50, %v2424_v33  ;;  %v2383_v43 = vmax.f32 %v7738_v5, %v2359_v39  ;;  %5351 = vmatmul.mubr.msk.f32.gmra.mrb[134].mxu1 %vm2516_vm5, %v7872_v7  ;;  %5392 = vmatmul.mubr.msk.f32.gmra.mrb[134].mxu0 %vm2516_vm5, %v7872_v7  ;;  %v8613_v5 = vmax.f32 %v7606_v34, %v7676_v31 }
 0x24c   : > { %v2410_v59 = vadd.f32 %v7760_v21, %v2393_v62  ;;  %6249 = vrcp.f32 %v2479_v3  ;;  %5353 = vmatprep.mubr.msk.f32.mxu1 %vm6476_vm4, %v8610_v11  ;;  %5394 = vmatprep.mubr.msk.f32.mxu0 %vm6476_vm4, %v8610_v11 }
 0x24d   : > { %v6240_v32 = vpop.eup %6239  ;;  %v4543_v48 = vmul.f32 -1.442695, %v2439_v52  ;;  %v2394_v42 = vmax.f32 %v8613_v5, %v2383_v43  ;;  %6149 = vmatpush3.bf16.msk.msra.mxu1 %vm7095_vm3, %v6147_v13 }
 0x24e   : > { %v2425_v49 = vmul.f32 %v7768_v22, %v2410_v59  ;;  %v7892_v51 = vpop.eup %6241  ;;  %v2480_v44 = vadd.f32 1.0, %v6240_v32  ;;  %6170 = vmatprep.subr.bf16.mxu1 %v8612_v53 }
 0x24f   : > { %6251 = vpow2.f32 %v4543_v48  ;;  %v2411_v14 = vadd.f32 %v7760_v21, %v2394_v42  ;;  %5354 = vmatmul.mubr.msk.f32.gmra.mrb[136].mxu1 %vm2516_vm5, %v7892_v51  ;;  %5395 = vmatmul.mubr.msk.f32.gmra.mrb[136].mxu0 %vm2516_vm5, %v7892_v51 }
 0x250   : > { %v2440_v56 = vadd.f32 %v7775_v50, %v2425_v49  ;;  %6253 = vrcp.f32 %v2480_v44  ;;  %5356 = vmatprep.mubr.msk.f32.mxu1 %vm6476_vm4, %v8610_v11  ;;  %5397 = vmatprep.mubr.msk.f32.mxu0 %vm6476_vm4, %v8610_v11 }
 0x251   : > { %v6244_v34 = vpop.eup %6243  ;;  %v2426_v54 = vmul.f32 %v7768_v22, %v2411_v14 }
 0x252   : > { %v4544_v31 = vmul.f32 -1.442695, %v2440_v56  ;;  %v7906_v1 = vpop.eup %6245  ;;  %v2481_v21 = vadd.f32 1.0, %v6244_v34 }
 0x253   : > { %v2441_v27 = vadd.f32 %v7775_v50, %v2426_v54  ;;  %5357 = vmatmul.mubr.msk.f32.gmra.mrb[138].mxu1 %vm2516_vm5, %v7906_v1  ;;  %5398 = vmatmul.mubr.msk.f32.gmra.mrb[138].mxu0 %vm2516_vm5, %v7906_v1 }
 0x254   : > { %6255 = vpow2.f32 %v4544_v31  ;;  %5359 = vmatprep.mubr.msk.f32.mxu1 %vm6476_vm4, %v8610_v11  ;;  %5400 = vmatprep.mubr.msk.f32.mxu0 %vm6476_vm4, %v8610_v11 }
 0x255   : > { %6257 = vrcp.f32 %v2481_v21  ;;  %v6248_v22 = vpop.eup %6247  ;;  %v4545_v35 = vmul.f32 -1.442695, %v2441_v27 }
 0x256   : > { %v7917_v47 = vpop.eup %6249  ;;  %v2482_v60 = vadd.f32 1.0, %v6248_v22 }
 0x257   : > { %6259 = vpow2.f32 %v4545_v35  ;;  %5360 = vmatmul.mubr.msk.f32.gmra.mrb[140].mxu1 %vm2516_vm5, %v7917_v47  ;;  %5401 = vmatmul.mubr.msk.f32.gmra.mrb[140].mxu0 %vm2516_vm5, %v7917_v47 }
 0x258   : > { %6261 = vrcp.f32 %v2482_v60  ;;  %5362 = vmatprep.mubr.msk.f32.mxu1 %vm6476_vm4, %v8610_v11  ;;  %5403 = vmatprep.mubr.msk.f32.mxu0 %vm6476_vm4, %v8610_v11 }
 0x259   : > { %v6252_v50 = vpop.eup %6251 }
 0x25a   : > { %v7927_v12 = vpop.eup %6253  ;;  %v2483_v36 = vadd.f32 1.0, %v6252_v50 }
 0x25b   : > { %5363 = vmatmul.mubr.msk.f32.gmra.mrb[142].mxu1 %vm2516_vm5, %v7927_v12  ;;  %5404 = vmatmul.mubr.msk.f32.gmra.mrb[142].mxu0 %vm2516_vm5, %v7927_v12 }
 0x25c   : > { %6263 = vrcp.f32 %v2483_v36  ;;  %5365 = vmatprep.mubr.msk.f32.mxu1 %vm6476_vm4, %v8610_v11  ;;  %5406 = vmatprep.mubr.msk.f32.mxu0 %vm6476_vm4, %v8610_v11 }
 0x25e   : > { %v6256_v58 = vpop.eup %6255 }
 0x25f   : > { %v7937_v46 = vpop.eup %6257  ;;  %v2484_v6 = vadd.f32 1.0, %v6256_v58 }
 0x260   : > { %5366 = vmatmul.mubr.msk.f32.gmra.mrb[144].mxu1 %vm2516_vm5, %v7937_v46  ;;  %5407 = vmatmul.mubr.msk.f32.gmra.mrb[144].mxu0 %vm2516_vm5, %v7937_v46 }
 0x261   : > { %6265 = vrcp.f32 %v2484_v6  ;;  %5368 = vmatprep.mubr.msk.f32.mxu1 %vm6476_vm4, %v8610_v11  ;;  %5409 = vmatprep.mubr.msk.f32.mxu0 %vm6476_vm4, %v8610_v11  ;;  %v6260_v41 = vpop.eup %6259 }
 0x262   : > { %v7947_v17 = vpop.eup %6261  ;;  %v2485_v38 = vadd.f32 1.0, %v6260_v41 }
 0x264   : > { %5369 = vmatmul.mubr.msk.f32.gmra.mrb[146].mxu1 %vm2516_vm5, %v7947_v17  ;;  %5410 = vmatmul.mubr.msk.f32.gmra.mrb[146].mxu0 %vm2516_vm5, %v7947_v17  ;;  %6267 = vrcp.f32 %v2485_v38 }
 0x265   : > { %5371 = vmatprep.mubr.msk.f32.mxu1 %vm6476_vm4, %v8610_v11  ;;  %5412 = vmatprep.mubr.msk.f32.mxu0 %vm6476_vm4, %v8610_v11 }
 0x266   : > { %v7957_v15 = vpop.eup %6263 }
 0x268   : > { %5372 = vmatmul.mubr.msk.f32.gmra.mrb[148].mxu1 %vm2516_vm5, %v7957_v15  ;;  %5413 = vmatmul.mubr.msk.f32.gmra.mrb[148].mxu0 %vm2516_vm5, %v7957_v15 }
 0x269   : > { %5374 = vmatprep.mubr.msk.f32.mxu1 %vm6476_vm4, %v8610_v11  ;;  %5415 = vmatprep.mubr.msk.f32.mxu0 %vm6476_vm4, %v8610_v11 }
 0x26b   : > { %v7967_v57 = vpop.eup %6265 }
 0x26c   : > { %5375 = vmatmul.mubr.msk.f32.gmra.mrb[150].mxu1 %vm2516_vm5, %v7967_v57  ;;  %5416 = vmatmul.mubr.msk.f32.gmra.mrb[150].mxu0 %vm2516_vm5, %v7967_v57 }
 0x26d   : > { %5377 = vmatprep.mubr.msk.f32.mxu1 %vm6476_vm4, %v8610_v11  ;;  %5418 = vmatprep.mubr.msk.f32.mxu0 %vm6476_vm4, %v8610_v11 }
 0x26e   : > { %v7977_v16 = vpop.eup %6267 }
 0x270   : > { %5378 = vmatmul.mubr.msk.f32.gmra.mrb[152].mxu1 %vm2516_vm5, %v7977_v16  ;;  %5419 = vmatmul.mubr.msk.f32.gmra.mrb[152].mxu0 %vm2516_vm5, %v7977_v16 }
 0x271   : > { %5429 = vmatprep.mubr.msk.f32.mxu1 %vm6476_vm4, %v8610_v11  ;;  %5484 = vmatprep.mubr.msk.f32.mxu0 %vm6476_vm4, %v8610_v11 }
 0x274   : > { %5430 = vmatmul.mubr.msk.f32.vlgmr.msra.gmra.mrb[154].mxu1 %vm2516_vm5, %v7854_v0 }
 0x275   : > { %5432 = vmatprep.mubr.msk.f32.mxu1 %vm6476_vm4, %v8610_v11 }
 0x278   : > { %5433 = vmatmul.mubr.msk.f32.gmra.mrb[156].mxu1 %vm2516_vm5, %v7872_v7 }
 0x279   : > { %5435 = vmatprep.mubr.msk.f32.mxu1 %vm6476_vm4, %v8610_v11 }
 0x27c   : > { %5436 = vmatmul.mubr.msk.f32.gmra.mrb[158].mxu1 %vm2516_vm5, %v7892_v51 }
 0x27d   : > { %5438 = vmatprep.mubr.msk.f32.mxu1 %vm6476_vm4, %v8610_v11 }
 0x280   : > { %5439 = vmatmul.mubr.msk.f32.gmra.mrb[160].mxu1 %vm2516_vm5, %v7906_v1 }
 0x281   : > { %5441 = vmatprep.mubr.msk.f32.mxu1 %vm6476_vm4, %v8610_v11 }
 0x284   : > { %5442 = vmatmul.mubr.msk.f32.gmra.mrb[162].mxu1 %vm2516_vm5, %v7917_v47 }
 0x285   : > { %5444 = vmatprep.mubr.msk.f32.mxu1 %vm6476_vm4, %v8610_v11 }
 0x288   : > { %5445 = vmatmul.mubr.msk.f32.gmra.mrb[164].mxu1 %vm2516_vm5, %v7927_v12 }
 0x289   : > { %5447 = vmatprep.mubr.msk.f32.mxu1 %vm6476_vm4, %v8610_v11 }
 0x28c   : > { %5448 = vmatmul.mubr.msk.f32.gmra.mrb[166].mxu1 %vm2516_vm5, %v7937_v46 }
 0x28d   : > { %5450 = vmatprep.mubr.msk.f32.mxu1 %vm6476_vm4, %v8610_v11 }
 0x290   : > { %5451 = vmatmul.mubr.msk.f32.gmra.mrb[168].mxu1 %vm2516_vm5, %v7947_v17 }
 0x291   : > { %5453 = vmatprep.mubr.msk.f32.mxu1 %vm6476_vm4, %v8610_v11 }
 0x294   : > { %5454 = vmatmul.mubr.msk.f32.gmra.mrb[170].mxu1 %vm2516_vm5, %v7957_v15 }
 0x295   : > { %5456 = vmatprep.mubr.msk.f32.mxu1 %vm6476_vm4, %v8610_v11 }
 0x298   : > { %5457 = vmatmul.mubr.msk.f32.gmra.mrb[172].mxu1 %vm2516_vm5, %v7967_v57 }
 0x299   : > { %5459 = vmatprep.mubr.msk.f32.mxu1 %vm6476_vm4, %v8610_v11 }
 0x29c   : > { %5460 = vmatmul.mubr.msk.f32.gmra.mrb[174].mxu1 %vm2516_vm5, %v7977_v16 }
 0x29d   : > { %5539 = vmatprep.mubr.msk.f32.mxu1 %vm6476_vm4, %v8610_v11 }
 0x31a   : > { %v8036_v61 = vpop.f32.mrb[132].mxu1  ;;  %v2750_v23 = vpop.f32.mrb[132].mxu0 }
 0x31b   : > { %v5349_v25 = vpop.f32.mrb[133].mxu1  ;;  %v5390_v19 = vpop.f32.mrb[133].mxu0  ;;  %v2751_v30 = vadd.f32 %v2750_v23, %v8041_v18 }
 0x31e   : > { %v8043_v8 = vpop.f32.mrb[134].mxu1  ;;  %v2755_v10 = vpop.f32.mrb[134].mxu0 }
 0x31f   : > { %v2756_v4 = vadd.f32 %v2755_v10, %v8041_v18  ;;  %v5352_v63 = vpop.f32.mrb[135].mxu1  ;;  %v5393_v37 = vpop.f32.mrb[135].mxu0 }
 0x321   : > { %v6151_v55 = vpack.c.bf16 %v2756_v4, %v2751_v30 }
 0x322   : > { %v8053_v45 = vpop.f32.mrb[136].mxu1  ;;  %v2760_v9 = vpop.f32.mrb[136].mxu0 }
 0x323   : > { %v5355_v33 = vpop.f32.mrb[137].mxu1  ;;  %v5396_v20 = vpop.f32.mrb[137].mxu0  ;;  %6153 = vmatpush3.bf16.xpose.msk.msra.mxu0 %vm8049_vm7, %v6151_v55  ;;  %v2761_v24 = vadd.f32 %v2760_v9, %v8041_v18 }
 0x324   : > { %6154 = vmatprep.subr.bf16.mxu0 %v8612_v53 }
 0x326   : > { %v8058_v62 = vpop.f32.mrb[138].mxu1  ;;  %v2765_v39 = vpop.f32.mrb[138].mxu0 }
 0x327   : > { %v2766_v3 = vadd.f32 %v2765_v39, %v8041_v18  ;;  %v5358_v52 = vpop.f32.mrb[139].mxu1  ;;  %v5399_v59 = vpop.f32.mrb[139].mxu0 }
 0x328   : > { %v8097_v59 = vrot.slane %v8034_v40, %v2429_v2 }
 0x329   : > { %v6155_v43 = vpack.c.bf16 %v2766_v3, %v2761_v24 }
 0x32a   : > { %v8062_v32 = vpop.f32.mrb[140].mxu1  ;;  %v2770_v48 = vpop.f32.mrb[140].mxu0 }
 0x32b   : > { %v5361_v49 = vpop.f32.mrb[141].mxu1  ;;  %v5402_v5 = vpop.f32.mrb[141].mxu0  ;;  %6157 = vmatpush3.bf16.xpose.msk.msra.mxu0 %vm8049_vm7, %v6155_v43  ;;  %v2771_v56 = vadd.f32 %v2770_v48, %v8041_v18  ;;  %v8102_v48 = vrot.slane %v8034_v40, %v2399_v28 }
 0x32c   : > { %6158 = vmatprep.subr.bf16.mxu0 %v8612_v53 }
 0x32d   : > { %v2620_v2 = vadd.f32 %v8036_v61, %v8102_v48  ;;  %v2625_v40 = vadd.f32 %v8043_v8, %v8102_v48 }
 0x32e   : > { %v8067_v42 = vpop.f32.mrb[142].mxu1  ;;  %v2775_v44 = vpop.f32.mrb[142].mxu0 }
 0x32f   : > { %v2776_v14 = vadd.f32 %v2775_v44, %v8041_v18  ;;  %v5364_v34 = vpop.f32.mrb[143].mxu1  ;;  %v5405_v31 = vpop.f32.mrb[143].mxu0 }
 0x331   : > { %v6159_v54 = vpack.c.bf16 %v2776_v14, %v2771_v56 }
 0x333   : > { %v8071_v21 = vpop.f32.mrb[144].mxu1  ;;  %v2780_v27 = vpop.f32.mrb[144].mxu0  ;;  %6161 = vmatpush3.bf16.xpose.msk.msra.mxu0 %vm8049_vm7, %v6159_v54 }
 0x334   : > { %v5367_v22 = vpop.f32.mrb[145].mxu1  ;;  %v5408_v35 = vpop.f32.mrb[145].mxu0  ;;  %6162 = vmatprep.subr.bf16.mxu0 %v8612_v53  ;;  %v2781_v36 = vadd.f32 %v2780_v27, %v8041_v18  ;;  %v2630_v27 = vadd.f32 %v8053_v45, %v8102_v48 }
 0x337   : > { %v8076_v60 = vpop.f32.mrb[146].mxu1  ;;  %v2785_v50 = vpop.f32.mrb[146].mxu0 }
 0x338   : > { %v2786_v58 = vadd.f32 %v2785_v50, %v8041_v18  ;;  %v5370_v6 = vpop.f32.mrb[147].mxu1  ;;  %v5411_v41 = vpop.f32.mrb[147].mxu0  ;;  %v2635_v50 = vadd.f32 %v8058_v62, %v8102_v48 }
 0x339   : > { %v2640_v41 = vadd.f32 %v8062_v32, %v8102_v48 }
 0x33a   : > { %v6163_v38 = vpack.c.bf16 %v2786_v58, %v2781_v36 }
 0x33b   : > { %v8080_v23 = vpop.f32.mrb[148].mxu1  ;;  %v2790_v25 = vpop.f32.mrb[148].mxu0 }
 0x33c   : > { %v5373_v19 = vpop.f32.mrb[149].mxu1  ;;  %v5414_v10 = vpop.f32.mrb[149].mxu0  ;;  %6165 = vmatpush3.bf16.xpose.msk.msra.mxu0 %vm8049_vm7, %v6163_v38  ;;  %v2791_v63 = vadd.f32 %v2790_v25, %v8041_v18 }
 0x33d   : > { %6166 = vmatprep.subr.bf16.mxu0 %v8612_v53  ;;  %v2645_v19 = vadd.f32 %v8067_v42, %v8102_v48 }
 0x33f   : > { %v8085_v30 = vpop.f32.mrb[150].mxu1  ;;  %v2795_v4 = vpop.f32.mrb[150].mxu0 }
 0x340   : > { %v2796_v37 = vadd.f32 %v2795_v4, %v8041_v18  ;;  %v5376_v55 = vpop.f32.mrb[151].mxu1  ;;  %v5417_v9 = vpop.f32.mrb[151].mxu0 }
 0x342   : > { %v6167_v33 = vpack.c.bf16 %v2796_v37, %v2791_v63  ;;  %v2650_v37 = vadd.f32 %v8071_v21, %v8102_v48 }
 0x343   : > { %v8089_v20 = vpop.f32.mrb[152].mxu1  ;;  %v2800_v39 = vpop.f32.mrb[152].mxu0 }
 0x344   : > { %v5379_v24 = vpop.f32.mrb[153].mxu1  ;;  %v5420_v3 = vpop.f32.mrb[153].mxu0  ;;  %6169 = vmatpush3.bf16.xpose.msk.msra.mxu0 %vm8049_vm7, %v6167_v33  ;;  %v2801_v49 = vadd.f32 %v2800_v39, %v8041_v18  ;;  %v2655_v33 = vadd.f32 %v8076_v60, %v8102_v48 }
 0x345   : > { %5482 = vmatprep.subr.mxu0 %v8610_v11 }
 0x347   : > { %v2881_v52 = vpop.f32.mrb[154].mxu1 }
 0x348   : > { %v5431_v43 = vpop.f32.mrb[155].mxu1  ;;  %v2882_v13 = vadd.f32 %v2881_v52, %v8097_v59  ;;  %v2660_v52 = vadd.f32 %v8080_v23, %v8102_v48  ;;  %v2670_v23 = vadd.f32 %v8089_v20, %v8102_v48 }
 0x34b   : > { %v2886_v5 = vpop.f32.mrb[156].mxu1 }
 0x34c   : > { %v2887_v44 = vadd.f32 %v2886_v5, %v8097_v59  ;;  %v5434_v56 = vpop.f32.mrb[157].mxu1  ;;  %5483 = vmatpush3.xpose.msk.msra.mxu0 %vm2935_vm6, %v2801_v49  ;;  %v2665_v5 = vadd.f32 %v8085_v30, %v8102_v48 }
 0x34d   : > { %5572 = vmatprep.subr.mxu0 %v8610_v11 }
 0x34e   : > { %v6171_v14 = vpack.c.bf16 %v2887_v44, %v2882_v13 }
 0x34f   : > { %v2891_v34 = vpop.f32.mrb[158].mxu1  ;;  %5485 = vmatmul.mubr.msk.f32.vlgmr.msra.gmra.mrb[154].mxu0 %vm2935_vm6, %v2620_v2 }
 0x350   : > { %v5437_v28 = vpop.f32.mrb[159].mxu1  ;;  %6172 = vmatpush3.bf16.msra.mxu1 %v6171_v14  ;;  %5487 = vmatprep.mubr.msk.f32.mxu0 %vm6476_vm4, %v8610_v11  ;;  %v2892_v61 = vadd.f32 %v2891_v34, %v8097_v59 }
 0x351   : > { %6173 = vmatprep.subr.bf16.mxu1 %v8612_v53 }
 0x353   : > { %v2896_v18 = vpop.f32.mrb[160].mxu1  ;;  %5488 = vmatmul.mubr.msk.f32.gmra.mrb[156].mxu0 %vm2935_vm6, %v2625_v40 }
 0x354   : > { %v2897_v31 = vadd.f32 %v2896_v18, %v8097_v59  ;;  %v5440_v54 = vpop.f32.mrb[161].mxu1  ;;  %5490 = vmatprep.mubr.msk.f32.mxu0 %vm6476_vm4, %v8610_v11 }
 0x356   : > { %v6174_v22 = vpack.c.bf16 %v2897_v31, %v2892_v61 }
 0x357   : > { %v2901_v35 = vpop.f32.mrb[162].mxu1  ;;  %5491 = vmatmul.mubr.msk.f32.gmra.mrb[158].mxu0 %vm2935_vm6, %v2630_v27 }
 0x358   : > { %v5443_v8 = vpop.f32.mrb[163].mxu1  ;;  %6175 = vmatpush3.bf16.msra.mxu1 %v6174_v22  ;;  %5493 = vmatprep.mubr.msk.f32.mxu0 %vm6476_vm4, %v8610_v11  ;;  %v2902_v58 = vadd.f32 %v2901_v35, %v8097_v59 }
 0x359   : > { %6176 = vmatprep.subr.bf16.mxu1 %v8612_v53 }
 0x35b   : > { %v2906_v36 = vpop.f32.mrb[164].mxu1  ;;  %5494 = vmatmul.mubr.msk.f32.gmra.mrb[160].mxu0 %vm2935_vm6, %v2635_v50 }
 0x35c   : > { %v2907_v45 = vadd.f32 %v2906_v36, %v8097_v59  ;;  %v5446_v6 = vpop.f32.mrb[165].mxu1  ;;  %5496 = vmatprep.mubr.msk.f32.mxu0 %vm6476_vm4, %v8610_v11 }
 0x35e   : > { %v6177_v38 = vpack.c.bf16 %v2907_v45, %v2902_v58 }
 0x35f   : > { %v2911_v25 = vpop.f32.mrb[166].mxu1  ;;  %5497 = vmatmul.mubr.msk.f32.gmra.mrb[162].mxu0 %vm2935_vm6, %v2640_v41 }
 0x360   : > { %v5449_v62 = vpop.f32.mrb[167].mxu1  ;;  %6178 = vmatpush3.bf16.msra.mxu1 %v6177_v38  ;;  %5499 = vmatprep.mubr.msk.f32.mxu0 %vm6476_vm4, %v8610_v11  ;;  %v2912_v4 = vadd.f32 %v2911_v25, %v8097_v59 }
 0x361   : > { %6179 = vmatprep.subr.bf16.mxu1 %v8612_v53 }
 0x363   : > { %v2916_v10 = vpop.f32.mrb[168].mxu1  ;;  %5500 = vmatmul.mubr.msk.f32.gmra.mrb[164].mxu0 %vm2935_vm6, %v2645_v19 }
 0x364   : > { %v2917_v32 = vadd.f32 %v2916_v10, %v8097_v59  ;;  %v5452_v63 = vpop.f32.mrb[169].mxu1  ;;  %5502 = vmatprep.mubr.msk.f32.mxu0 %vm6476_vm4, %v8610_v11 }
 0x366   : > { %v6180_v55 = vpack.c.bf16 %v2917_v32, %v2912_v4 }
 0x367   : > { %v2921_v9 = vpop.f32.mrb[170].mxu1  ;;  %5503 = vmatmul.mubr.msk.f32.gmra.mrb[166].mxu0 %vm2935_vm6, %v2650_v37 }
 0x368   : > { %v5455_v42 = vpop.f32.mrb[171].mxu1  ;;  %6181 = vmatpush3.bf16.msra.mxu1 %v6180_v55  ;;  %5505 = vmatprep.mubr.msk.f32.mxu0 %vm6476_vm4, %v8610_v11  ;;  %v2922_v24 = vadd.f32 %v2921_v9, %v8097_v59 }
 0x369   : > { %6182 = vmatprep.subr.bf16.mxu1 %v8612_v53 }
 0x36b   : > { %v2926_v39 = vpop.f32.mrb[172].mxu1  ;;  %5506 = vmatmul.mubr.msk.f32.gmra.mrb[168].mxu0 %vm2935_vm6, %v2655_v33 }
 0x36c   : > { %v2927_v21 = vadd.f32 %v2926_v39, %v8097_v59  ;;  %v5458_v3 = vpop.f32.mrb[173].mxu1  ;;  %5508 = vmatprep.mubr.msk.f32.mxu0 %vm6476_vm4, %v8610_v11 }
 0x36e   : > { %v6183_v43 = vpack.c.bf16 %v2927_v21, %v2922_v24 }
 0x36f   : > { %v2931_v49 = vpop.f32.mrb[174].mxu1  ;;  %5509 = vmatmul.mubr.msk.f32.gmra.mrb[170].mxu0 %vm2935_vm6, %v2660_v52 }
 0x370   : > { %v5461_v60 = vpop.f32.mrb[175].mxu1  ;;  %6184 = vmatpush3.bf16.msra.mxu1 %v6183_v43  ;;  %5511 = vmatprep.mubr.msk.f32.mxu0 %vm6476_vm4, %v8610_v11  ;;  %v2932_v13 = vadd.f32 %v2931_v49, %v8097_v59 }
 0x371   : > { %5537 = vmatprep.subr.mxu1 %v8610_v11 }
 0x373   : > { %5512 = vmatmul.mubr.msk.f32.gmra.mrb[172].mxu0 %vm2935_vm6, %v2665_v5 }
 0x374   : > { %5538 = vmatpush3.msk.msra.mxu1 %vm3278_vm8, %v2932_v13  ;;  %5514 = vmatprep.mubr.msk.f32.mxu0 %vm6476_vm4, %v8610_v11 }
 0x375   : > { %6199 = vmatprep.subr.mxu1 %v8610_v11 }
 0x377   : > { %5515 = vmatmul.mubr.msk.f32.gmra.mrb[174].mxu0 %vm2935_vm6, %v2670_v23 }
 0x378   : > { %5574 = vmatprep.mubr.msk.f32.mxu0 %vm6476_vm4, %v8610_v11 }
 0x422   : > { %v3068_v30 = vpop.f32.mrb[154].mxu0 }
 0x423   : > { %v5486_v59 = vpop.f32.mrb[155].mxu0  ;;  %v3123_v44 = vsel %vm3122_vm9, %v3068_v30, -inf }
 0x424   : > { %3124 = vmax.xlane.f32.xlu0 %v3123_v44 }
 0x426   : > { %v3073_v56 = vpop.f32.mrb[156].mxu0 }
 0x427   : > { %v5489_v2 = vpop.f32.mrb[157].mxu0  ;;  %v3126_v14 = vsel %vm3122_vm9, %v3073_v56, -inf }
 0x428   : > { %3127 = vmax.xlane.f32.xlu0 %v3126_v14 }
 0x42a   : > { %v3078_v34 = vpop.f32.mrb[158].mxu0 }
 0x42b   : > { %v5492_v20 = vpop.f32.mrb[159].mxu0  ;;  %v3129_v48 = vsel %vm3122_vm9, %v3078_v34, -inf }
 0x42c   : > { %3130 = vmax.xlane.f32.xlu1 %v3129_v48 }
 0x42e   : > { %v3083_v28 = vpop.f32.mrb[160].mxu0 }
 0x42f   : > { %v5495_v40 = vpop.f32.mrb[161].mxu0  ;;  %v3132_v18 = vsel %vm3122_vm9, %v3083_v28, -inf }
 0x430   : > { %3133 = vmax.xlane.f32.xlu1 %v3132_v18 }
 0x432   : > { %v3088_v61 = vpop.f32.mrb[162].mxu0 }
 0x433   : > { %v5498_v31 = vpop.f32.mrb[163].mxu0  ;;  %v3135_v54 = vsel %vm3122_vm9, %v3088_v61, -inf }
 0x434   : > { %3136 = vmax.xlane.f32.xlu0 %v3135_v54 }
 0x436   : > { %v3093_v27 = vpop.f32.mrb[164].mxu0 }
 0x437   : > { %v5501_v22 = vpop.f32.mrb[165].mxu0  ;;  %v3138_v35 = vsel %vm3122_vm9, %v3093_v27, -inf }
 0x438   : > { %3139 = vmax.xlane.f32.xlu1 %v3138_v35 }
 0x43a   : > { %v3098_v8 = vpop.f32.mrb[166].mxu0 }
 0x43b   : > { %v5504_v50 = vpop.f32.mrb[167].mxu0  ;;  %v3141_v36 = vsel %vm3122_vm9, %v3098_v8, -inf }
 0x43c   : > { %3142 = vmax.xlane.f32.xlu0 %v3141_v36 }
 0x43e   : > { %v3103_v58 = vpop.f32.mrb[168].mxu0 }
 0x43f   : > { %v5507_v45 = vpop.f32.mrb[169].mxu0  ;;  %v3144_v6 = vsel %vm3122_vm9, %v3103_v58, -inf }
 0x440   : > { %3145 = vmax.xlane.f32.xlu1 %v3144_v6 }
 0x442   : > { %v8188_v41 = vpop.f32.mrb[170].mxu0 }
 0x443   : > { %v5510_v38 = vpop.f32.mrb[171].mxu0  ;;  %v3147_v25 = vsel %vm3122_vm9, %v8188_v41, -inf }
 0x444   : > { %3148 = vmax.xlane.f32.xlu0 %v3147_v25 }
 0x446   : > { %v8192_v62 = vpop.f32.mrb[172].mxu0 }
 0x447   : > { %v5513_v19 = vpop.f32.mrb[173].mxu0  ;;  %v3150_v10 = vsel %vm3122_vm9, %v8192_v62, -inf }
 0x448   : > { %3151 = vmax.xlane.f32.xlu1 %v3150_v10 }
 0x44a   : > { %v8196_v4 = vpop.f32.mrb[174].mxu0 }
 0x44b   : > { %v5516_v32 = vpop.f32.mrb[175].mxu0  ;;  %v3154_v63 = vsel %vm3153_vm10, %v8196_v4, -inf }
 0x44c   : > { %3155 = vmax.xlane.f32.xlu0 %v3154_v63 }
 0x4b1   : > { %v3125_v37 = vpop.xlane.xlu0 %3124 }
 0x4b2   : > { %v3157_v55 = vsub.f32 %v3068_v30, %v3125_v37 }
 0x4b4   : > { %v3168_v9 = vmul.f32 1.442695, %v3157_v55 }
 0x4b5   : > { %v3128_v42 = vpop.xlane.xlu0 %3127 }
 0x4b6   : > { %6269 = vpow2.f32 %v3168_v9  ;;  %v3158_v33 = vsub.f32 %v3073_v56, %v3128_v42 }
 0x4b8   : > { %v3170_v39 = vmul.f32 1.442695, %v3158_v33 }
 0x4b9   : > { %v3131_v24 = vpop.xlane.xlu1 %3130 }
 0x4ba   : > { %6271 = vpow2.f32 %v3170_v39  ;;  %v3159_v21 = vsub.f32 %v3078_v34, %v3131_v24  ;;  %v3402_v24 = vld [vmem:[%s8584_s6] sm:$0x1f] }
 0x4bb   : > { %5573 = vmatpush3.msk.msra.mxu0 %vm3440_vm11, %v3402_v24 }
 0x4bc   : > { %v3172_v3 = vmul.f32 1.442695, %v3159_v21  ;;  %6192 = vmatprep.subr.bf16.mxu0 %v8612_v53 }
 0x4bd   : > { %v3134_v52 = vpop.xlane.xlu1 %3133 }
 0x4be   : > { %6273 = vpow2.f32 %v3172_v3  ;;  %v3160_v43 = vsub.f32 %v3083_v28, %v3134_v52 }
 0x4c0   : > { %v8200_v49 = vpop.eup %6269  ;;  %v3174_v60 = vmul.f32 1.442695, %v3160_v43 }
 0x4c1   : > { %v3137_v5 = vpop.xlane.xlu0 %3136  ;;  %v3190_v13 = vsel %vm3122_vm9, %v8200_v49, 0.0 }
 0x4c2   : > { %6275 = vpow2.f32 %v3174_v60  ;;  %v3161_v23 = vsub.f32 %v3088_v61, %v3137_v5  ;;  %3191 = vadd.xlane.f32.xlu1 %v3190_v13 }
 0x4c4   : > { %v8204_v30 = vpop.eup %6271  ;;  %v3176_v59 = vmul.f32 1.442695, %v3161_v23 }
 0x4c5   : > { %v3140_v44 = vpop.xlane.xlu1 %3139  ;;  %v3193_v56 = vsel %vm3122_vm9, %v8204_v30, 0.0 }
 0x4c6   : > { %6277 = vpow2.f32 %v3176_v59  ;;  %v3162_v2 = vsub.f32 %v3093_v27, %v3140_v44  ;;  %3194 = vadd.xlane.f32.xlu0 %v3193_v56 }
 0x4c8   : > { %v8208_v14 = vpop.eup %6273  ;;  %v3178_v34 = vmul.f32 1.442695, %v3162_v2 }
 0x4c9   : > { %v3143_v20 = vpop.xlane.xlu0 %3142  ;;  %v3196_v48 = vsel %vm3122_vm9, %v8208_v14, 0.0 }
 0x4ca   : > { %6279 = vpow2.f32 %v3178_v34  ;;  %v3163_v28 = vsub.f32 %v3098_v8, %v3143_v20  ;;  %3197 = vadd.xlane.f32.xlu1 %v3196_v48 }
 0x4cc   : > { %v8212_v40 = vpop.eup %6275  ;;  %v3180_v18 = vmul.f32 1.442695, %v3163_v28 }
 0x4cd   : > { %v3146_v61 = vpop.xlane.xlu1 %3145  ;;  %v3199_v31 = vsel %vm3122_vm9, %v8212_v40, 0.0 }
 0x4ce   : > { %6281 = vpow2.f32 %v3180_v18  ;;  %v3164_v54 = vsub.f32 %v3103_v58, %v3146_v61  ;;  %3200 = vadd.xlane.f32.xlu0 %v3199_v31 }
 0x4d0   : > { %v8216_v27 = vpop.eup %6277  ;;  %v3182_v22 = vmul.f32 1.442695, %v3164_v54 }
 0x4d1   : > { %v3149_v35 = vpop.xlane.xlu0 %3148  ;;  %v3202_v50 = vsel %vm3122_vm9, %v8216_v27, 0.0 }
 0x4d2   : > { %6283 = vpow2.f32 %v3182_v22  ;;  %v3165_v8 = vsub.f32 %v8188_v41, %v3149_v35  ;;  %3203 = vadd.xlane.f32.xlu1 %v3202_v50 }
 0x4d4   : > { %v8221_v36 = vpop.eup %6279  ;;  %v3184_v45 = vmul.f32 1.442695, %v3165_v8 }
 0x4d5   : > { %v3152_v6 = vpop.xlane.xlu1 %3151  ;;  %v3205_v38 = vsel %vm3122_vm9, %v8221_v36, 0.0 }
 0x4d6   : > { %6285 = vpow2.f32 %v3184_v45  ;;  %v3166_v58 = vsub.f32 %v8192_v62, %v3152_v6  ;;  %3206 = vadd.xlane.f32.xlu0 %v3205_v38 }
 0x4d8   : > { %v8226_v25 = vpop.eup %6281  ;;  %v3186_v19 = vmul.f32 1.442695, %v3166_v58 }
 0x4d9   : > { %v3156_v10 = vpop.xlane.xlu0 %3155  ;;  %v3208_v32 = vsel %vm3122_vm9, %v8226_v25, 0.0 }
 0x4da   : > { %6287 = vpow2.f32 %v3186_v19  ;;  %v3167_v41 = vsub.f32 %v8196_v4, %v3156_v10  ;;  %3209 = vadd.xlane.f32.xlu1 %v3208_v32 }
 0x4dc   : > { %v8231_v63 = vpop.eup %6283  ;;  %v3188_v37 = vmul.f32 1.442695, %v3167_v41 }
 0x4dd   : > { %v3211_v55 = vsel %vm3122_vm9, %v8231_v63, 0.0 }
 0x4de   : > { %6289 = vpow2.f32 %v3188_v37  ;;  %3212 = vadd.xlane.f32.xlu0 %v3211_v55 }
 0x4e0   : > { %v8235_v62 = vpop.eup %6285 }
 0x4e1   : > { %v3214_v9 = vsel %vm3122_vm9, %v8235_v62, 0.0 }
 0x4e2   : > { %3215 = vadd.xlane.f32.xlu1 %v3214_v9 }
 0x4e4   : > { %v8239_v42 = vpop.eup %6287 }
 0x4e5   : > { %v3217_v4 = vsel %vm3122_vm9, %v8239_v42, 0.0 }
 0x4e6   : > { %3218 = vadd.xlane.f32.xlu0 %v3217_v4 }
 0x4e8   : > { %v8243_v33 = vpop.eup %6289 }
 0x4e9   : > { %v3220_v39 = vsel %vm3153_vm10, %v8243_v33, 0.0 }
 0x4ea   : > { %3221 = vadd.xlane.f32.xlu1 %v3220_v39 }
 0x54f   : > { %v3192_v21 = vpop.xlane.xlu1 %3191 }
 0x550   : > { %6291 = vrcp.f32 %v3192_v21 }
 0x553   : > { %v3195_v3 = vpop.xlane.xlu0 %3194 }
 0x554   : > { %6293 = vrcp.f32 %v3195_v3 }
 0x557   : > { %v3198_v52 = vpop.xlane.xlu1 %3197 }
 0x558   : > { %6295 = vrcp.f32 %v3198_v52 }
 0x55a   : > { %v6292_v43 = vpop.eup %6291 }
 0x55b   : > { %v3234_v60 = vmul.f32 %v6292_v43, %v8200_v49  ;;  %v3201_v5 = vpop.xlane.xlu0 %3200 }
 0x55c   : > { %6297 = vrcp.f32 %v3201_v5 }
 0x55d   : > { %5540 = vmatmul.mubr.msk.f32.vlgmr.msra.gmra.mrb[176].mxu1 %vm3122_vm9, %v3234_v60 }
 0x55e   : > { %v6294_v13 = vpop.eup %6293  ;;  %5542 = vmatprep.mubr.msk.f32.mxu1 %vm6476_vm4, %v8610_v11  ;;  %6200 = vmatpush3.msk.msra.mxu1 %vm3440_vm11, %v3402_v24 }
 0x55f   : > { %v3204_v23 = vpop.xlane.xlu1 %3203  ;;  %v3235_v59 = vmul.f32 %v6294_v13, %v8204_v30  ;;  %6185 = vmatprep.subr.bf16.mxu1 %v8612_v53  ;;  %v3684_v13 = vld [vmem:[%s8586_s8] sm:$0xff] }
 0x560   : > { %6299 = vrcp.f32 %v3204_v23  ;;  %v3685_v23 = vld [vmem:[%s8586_s8 + $0x8] sm:$0xff] }
 0x561   : > { %5543 = vmatmul.mubr.msk.f32.gmra.mrb[178].mxu1 %vm3122_vm9, %v3235_v59  ;;  %v6186_v59 = vpack.c.bf16 %v3685_v23, %v3684_v13 }
 0x562   : > { %v6296_v44 = vpop.eup %6295  ;;  %5545 = vmatprep.mubr.msk.f32.mxu1 %vm6476_vm4, %v8610_v11 }
 0x563   : > { %v3207_v49 = vpop.xlane.xlu0 %3206  ;;  %v3236_v56 = vmul.f32 %v6296_v44, %v8208_v14  ;;  %v3686_v44 = vld [vmem:[%s8586_s8 + $0x10] sm:$0xff] }
 0x564   : > { %6301 = vrcp.f32 %v3207_v49  ;;  %v3687_v49 = vld [vmem:[%s8586_s8 + $0x18] sm:$0x3f] }
 0x565   : > { %5546 = vmatmul.mubr.msk.f32.gmra.mrb[180].mxu1 %vm3122_vm9, %v3236_v56  ;;  %v6189_v56 = vpack.c.bf16 %v3687_v49, %v3686_v44 }
 0x566   : > { %v6298_v2 = vpop.eup %6297  ;;  %5548 = vmatprep.mubr.msk.f32.mxu1 %vm6476_vm4, %v8610_v11 }
 0x567   : > { %v3210_v30 = vpop.xlane.xlu1 %3209  ;;  %v3237_v34 = vmul.f32 %v6298_v2, %v8212_v40  ;;  %v3405_v2 = vsub.s32 3, %v7746_v26 }
 0x568   : > { %6303 = vrcp.f32 %v3210_v30  ;;  %v8350_v30 = vld [vmem:[%s8580_s2] sm:$0xff] }
 0x569   : > { %5549 = vmatmul.mubr.msk.f32.gmra.mrb[182].mxu1 %vm3122_vm9, %v3237_v34  ;;  %v8353_v34 = vrot.slane %v8350_v30, %v3405_v2 }
 0x56a   : > { %v6300_v20 = vpop.eup %6299  ;;  %5551 = vmatprep.mubr.msk.f32.mxu1 %vm6476_vm4, %v8610_v11 }
 0x56b   : > { %v3213_v48 = vpop.xlane.xlu0 %3212  ;;  %v3238_v14 = vmul.f32 %v6300_v20, %v8216_v27  ;;  %v3590_v20 = vsub.s32 4, %v7746_v26 }
 0x56c   : > { %6305 = vrcp.f32 %v3213_v48 }
 0x56d   : > { %5552 = vmatmul.mubr.msk.f32.gmra.mrb[184].mxu1 %vm3122_vm9, %v3238_v14  ;;  %v8356_v14 = vstv %s3564_s25 }
 0x56e   : > { %v6302_v28 = vpop.eup %6301  ;;  %5554 = vmatprep.mubr.msk.f32.mxu1 %vm6476_vm4, %v8610_v11 }
 0x56f   : > { %v3216_v18 = vpop.xlane.xlu1 %3215  ;;  %v3239_v40 = vmul.f32 %v6302_v28, %v8221_v36 }
 0x570   : > { %6307 = vrcp.f32 %v3216_v18  ;;  %v3605_v18 = vsub.s32 5, %v7746_v26 }
 0x571   : > { %5555 = vmatmul.mubr.msk.f32.gmra.mrb[186].mxu1 %vm3122_vm9, %v3239_v40 }
 0x572   : > { %v6304_v61 = vpop.eup %6303  ;;  %5557 = vmatprep.mubr.msk.f32.mxu1 %vm6476_vm4, %v8610_v11 }
 0x573   : > { %v3219_v31 = vpop.xlane.xlu0 %3218  ;;  %v3240_v54 = vmul.f32 %v6304_v61, %v8226_v25 }
 0x574   : > { %6309 = vrcp.f32 %v3219_v31  ;;  %v8362_v31 = vrot.slane %v8350_v30, %v3590_v20 }
 0x575   : > { %5558 = vmatmul.mubr.msk.f32.gmra.mrb[188].mxu1 %vm3122_vm9, %v3240_v54 }
 0x576   : > { %v6306_v27 = vpop.eup %6305  ;;  %5560 = vmatprep.mubr.msk.f32.mxu1 %vm6476_vm4, %v8610_v11 }
 0x577   : > { %v3222_v22 = vpop.xlane.xlu1 %3221  ;;  %v3241_v35 = vmul.f32 %v6306_v27, %v8231_v63 }
 0x578   : > { %6311 = vrcp.f32 %v3222_v22  ;;  %v8366_v22 = vrot.slane %v8350_v30, %v3605_v18 }
 0x579   : > { %5561 = vmatmul.mubr.msk.f32.gmra.mrb[190].mxu1 %vm3122_vm9, %v3241_v35 }
 0x57a   : > { %v6308_v50 = vpop.eup %6307  ;;  %5563 = vmatprep.mubr.msk.f32.mxu1 %vm6476_vm4, %v8610_v11 }
 0x57b   : > { %v3242_v8 = vmul.f32 %v6308_v50, %v8235_v62 }
 0x57d   : > { %5564 = vmatmul.mubr.msk.f32.gmra.mrb[192].mxu1 %vm3122_vm9, %v3242_v8 }
 0x57e   : > { %v6310_v36 = vpop.eup %6309  ;;  %5566 = vmatprep.mubr.msk.f32.mxu1 %vm6476_vm4, %v8610_v11 }
 0x57f   : > { %v3243_v45 = vmul.f32 %v6310_v36, %v8239_v42 }
 0x581   : > { %5567 = vmatmul.mubr.msk.f32.gmra.mrb[194].mxu1 %vm3122_vm9, %v3243_v45 }
 0x582   : > { %v6312_v6 = vpop.eup %6311  ;;  %5569 = vmatprep.mubr.msk.f32.mxu1 %vm6476_vm4, %v8610_v11 }
 0x583   : > { %v3244_v38 = vmul.f32 %v6312_v6, %v8243_v33 }
 0x585   : > { %5570 = vmatmul.mubr.msk.f32.gmra.mrb[196].mxu1 %vm3122_vm9, %v3244_v38 }
 0x586   : > { %5595 = vmatprep.mubr.msk.f32.mxu1 %vm6476_vm4, %v8610_v11 }
 0x630   : > { %v3348_v58 = vpop.f32.mrb[176].mxu1 }
 0x631   : > { %v5541_v25 = vpop.f32.mrb[177].mxu1  ;;  %5575 = vmatmul.mubr.msk.f32.vlgmr.msra.gmra.mrb[176].mxu0 %vm2935_vm6, %v3348_v58 }
 0x632   : > { %5577 = vmatprep.mubr.msk.f32.mxu0 %vm6476_vm4, %v8610_v11 }
 0x634   : > { %v3353_v19 = vpop.f32.mrb[178].mxu1 }
 0x635   : > { %v5544_v10 = vpop.f32.mrb[179].mxu1  ;;  %5578 = vmatmul.mubr.msk.f32.gmra.mrb[178].mxu0 %vm2935_vm6, %v3353_v19 }
 0x636   : > { %5580 = vmatprep.mubr.msk.f32.mxu0 %vm6476_vm4, %v8610_v11 }
 0x638   : > { %v3358_v32 = vpop.f32.mrb[180].mxu1 }
 0x639   : > { %v5547_v41 = vpop.f32.mrb[181].mxu1  ;;  %5581 = vmatmul.mubr.msk.f32.gmra.mrb[180].mxu0 %vm2935_vm6, %v3358_v32 }
 0x63a   : > { %5583 = vmatprep.mubr.msk.f32.mxu0 %vm6476_vm4, %v8610_v11 }
 0x63c   : > { %v3363_v63 = vpop.f32.mrb[182].mxu1 }
 0x63d   : > { %v5550_v37 = vpop.f32.mrb[183].mxu1  ;;  %5584 = vmatmul.mubr.msk.f32.gmra.mrb[182].mxu0 %vm2935_vm6, %v3363_v63 }
 0x63e   : > { %5586 = vmatprep.mubr.msk.f32.mxu0 %vm6476_vm4, %v8610_v11 }
 0x640   : > { %v3368_v55 = vpop.f32.mrb[184].mxu1 }
 0x641   : > { %v5553_v62 = vpop.f32.mrb[185].mxu1  ;;  %5587 = vmatmul.mubr.msk.f32.gmra.mrb[184].mxu0 %vm2935_vm6, %v3368_v55 }
 0x642   : > { %5589 = vmatprep.mubr.msk.f32.mxu0 %vm6476_vm4, %v8610_v11 }
 0x644   : > { %v3373_v9 = vpop.f32.mrb[186].mxu1 }
 0x645   : > { %v5556_v42 = vpop.f32.mrb[187].mxu1  ;;  %5590 = vmatmul.mubr.msk.f32.gmra.mrb[186].mxu0 %vm2935_vm6, %v3373_v9 }
 0x646   : > { %5592 = vmatprep.mubr.msk.f32.mxu0 %vm6476_vm4, %v8610_v11 }
 0x648   : > { %v3378_v4 = vpop.f32.mrb[188].mxu1 }
 0x649   : > { %v5559_v33 = vpop.f32.mrb[189].mxu1  ;;  %5593 = vmatmul.mubr.msk.f32.gmra.mrb[188].mxu0 %vm2935_vm6, %v3378_v4 }
 0x64a   : > { %5656 = vmatprep.mubr.msk.f32.mxu0 %vm6476_vm4, %v8610_v11 }
 0x64c   : > { %v3383_v39 = vpop.f32.mrb[190].mxu1 }
 0x64d   : > { %v5562_v24 = vpop.f32.mrb[191].mxu1  ;;  %5596 = vmatmul.mubr.msk.f32.vlgmr.msra.gmra.mrb[198].mxu1 %vm2935_vm6, %v3383_v39 }
 0x64e   : > { %5598 = vmatprep.mubr.msk.f32.mxu1 %vm6476_vm4, %v8610_v11  ;;  %6187 = vmatpush3.bf16.msra.mxu1 %v6186_v59 }
 0x64f   : > { %6188 = vmatprep.subr.bf16.mxu1 %v8612_v53 }
 0x650   : > { %v3388_v21 = vpop.f32.mrb[192].mxu1 }
 0x651   : > { %v5565_v3 = vpop.f32.mrb[193].mxu1  ;;  %5599 = vmatmul.mubr.msk.f32.gmra.mrb[200].mxu1 %vm2935_vm6, %v3388_v21 }
 0x652   : > { %5601 = vmatprep.mubr.msk.f32.mxu1 %vm6476_vm4, %v8610_v11  ;;  %6191 = vmatpush3.bf16.msk.msra.mxu1 %vm7095_vm3, %v6189_v56 }
 0x654   : > { %v3393_v52 = vpop.f32.mrb[194].mxu1 }
 0x655   : > { %v5568_v43 = vpop.f32.mrb[195].mxu1  ;;  %5602 = vmatmul.mubr.msk.f32.gmra.mrb[202].mxu1 %vm2935_vm6, %v3393_v52 }
 0x656   : > { %5604 = vmatprep.mubr.msk.f32.mxu1 %vm6476_vm4, %v8610_v11 }
 0x658   : > { %v3398_v60 = vpop.f32.mrb[196].mxu1 }
 0x659   : > { %v5571_v5 = vpop.f32.mrb[197].mxu1  ;;  %5605 = vmatmul.mubr.msk.f32.gmra.mrb[204].mxu1 %vm2935_vm6, %v3398_v60 }
 0x65a   : > { %5615 = vmatprep.mubr.msk.f32.mxu1 %vm6476_vm4, %v8610_v11 }
 0x704   : > { %v3510_v48 = vpop.f32.mrb[176].mxu0 }
 0x705   : > { %v3511_v28 = vadd.f32 %v3510_v48, %v8353_v34  ;;  %v5576_v40 = vpop.f32.mrb[177].mxu0 }
 0x707   : > { %v3566_v61 = vmul.f32 %v8356_v14, %v3511_v28 }
 0x708   : > { %v3515_v54 = vpop.f32.mrb[178].mxu0 }
 0x709   : > { %v3577_v27 = vadd.f32 %v7854_v0, %v3566_v61  ;;  %v3516_v35 = vadd.f32 %v3515_v54, %v8353_v34  ;;  %v5579_v50 = vpop.f32.mrb[179].mxu0 }
 0x70b   : > { %v3592_v8 = vmul.f32 %v8362_v31, %v3577_v27  ;;  %v3567_v36 = vmul.f32 %v8356_v14, %v3516_v35 }
 0x70c   : > { %v3520_v45 = vpop.f32.mrb[180].mxu0 }
 0x70d   : > { %v3607_v6 = vadd.f32 %v8366_v22, %v3592_v8  ;;  %v3578_v38 = vadd.f32 %v7872_v7, %v3567_v36  ;;  %v3521_v58 = vadd.f32 %v3520_v45, %v8353_v34  ;;  %v5582_v25 = vpop.f32.mrb[181].mxu0 }
 0x70f   : > { %v4628_v19 = vmul.f32 -1.442695, %v3607_v6  ;;  %v3593_v0 = vmul.f32 %v8362_v31, %v3578_v38  ;;  %v3568_v10 = vmul.f32 %v8356_v14, %v3521_v58 }
 0x710   : > { %v3525_v32 = vpop.f32.mrb[182].mxu0 }
 0x711   : > { %6313 = vpow2.f32 %v4628_v19  ;;  %v3608_v41 = vadd.f32 %v8366_v22, %v3593_v0  ;;  %v3579_v63 = vadd.f32 %v7892_v51, %v3568_v10  ;;  %v3526_v37 = vadd.f32 %v3525_v32, %v8353_v34  ;;  %v5585_v55 = vpop.f32.mrb[183].mxu0 }
 0x713   : > { %v4629_v62 = vmul.f32 -1.442695, %v3608_v41  ;;  %v3594_v7 = vmul.f32 %v8362_v31, %v3579_v63  ;;  %v3569_v9 = vmul.f32 %v8356_v14, %v3526_v37 }
 0x714   : > { %v3530_v42 = vpop.f32.mrb[184].mxu0 }
 0x715   : > { %6315 = vpow2.f32 %v4629_v62  ;;  %v3609_v4 = vadd.f32 %v8366_v22, %v3594_v7  ;;  %v3580_v33 = vadd.f32 %v7906_v1, %v3569_v9  ;;  %v3531_v39 = vadd.f32 %v3530_v42, %v8353_v34  ;;  %v5588_v24 = vpop.f32.mrb[185].mxu0 }
 0x717   : > { %v4630_v21 = vmul.f32 -1.442695, %v3609_v4  ;;  %v3595_v51 = vmul.f32 %v8362_v31, %v3580_v33  ;;  %v3570_v3 = vmul.f32 %v8356_v14, %v3531_v39 }
 0x718   : > { %v3535_v52 = vpop.f32.mrb[186].mxu0 }
 0x719   : > { %6317 = vpow2.f32 %v4630_v21  ;;  %v3610_v43 = vadd.f32 %v8366_v22, %v3595_v51  ;;  %v3581_v60 = vadd.f32 %v7917_v47, %v3570_v3  ;;  %v3536_v5 = vadd.f32 %v3535_v52, %v8353_v34  ;;  %v5591_v13 = vpop.f32.mrb[187].mxu0 }
 0x71b   : > { %v6314_v23 = vpop.eup %6313  ;;  %v4631_v59 = vmul.f32 -1.442695, %v3610_v43  ;;  %v3596_v1 = vmul.f32 %v8362_v31, %v3581_v60  ;;  %v3571_v44 = vmul.f32 %v8356_v14, %v3536_v5 }
 0x71c   : > { %v3651_v49 = vadd.f32 1.0, %v6314_v23  ;;  %v3540_v56 = vpop.f32.mrb[188].mxu0 }
 0x71d   : > { %6319 = vpow2.f32 %v4631_v59  ;;  %v3611_v2 = vadd.f32 %v8366_v22, %v3596_v1  ;;  %v3582_v20 = vadd.f32 %v7927_v12, %v3571_v44  ;;  %v3541_v48 = vadd.f32 %v3540_v56, %v8353_v34  ;;  %v5594_v28 = vpop.f32.mrb[189].mxu0 }
 0x71e   : > { %6321 = vrcp.f32 %v3651_v49 }
 0x71f   : > { %v6316_v47 = vpop.eup %6315  ;;  %v4632_v18 = vmul.f32 -1.442695, %v3611_v2  ;;  %v3597_v40 = vmul.f32 %v8362_v31, %v3582_v20  ;;  %v3572_v61 = vmul.f32 %v8356_v14, %v3541_v48 }
 0x720   : > { %v3652_v54 = vadd.f32 1.0, %v6316_v47  ;;  %v3545_v27 = vpop.f32.mrb[198].mxu1 }
 0x721   : > { %6323 = vpow2.f32 %v4632_v18  ;;  %v3612_v35 = vadd.f32 %v8366_v22, %v3597_v40  ;;  %v3583_v50 = vadd.f32 %v7937_v46, %v3572_v61  ;;  %v3546_v8 = vadd.f32 %v3545_v27, %v8353_v34  ;;  %v5597_v12 = vpop.f32.mrb[199].mxu1 }
 0x722   : > { %6325 = vrcp.f32 %v3652_v54 }
 0x723   : > { %v6318_v36 = vpop.eup %6317  ;;  %v4633_v45 = vmul.f32 -1.442695, %v3612_v35  ;;  %v3598_v6 = vmul.f32 %v8362_v31, %v3583_v50  ;;  %v3573_v38 = vmul.f32 %v8356_v14, %v3546_v8 }
 0x724   : > { %v3653_v58 = vadd.f32 1.0, %v6318_v36  ;;  %v3550_v25 = vpop.f32.mrb[200].mxu1 }
 0x725   : > { %6327 = vpow2.f32 %v4633_v45  ;;  %v3613_v19 = vadd.f32 %v8366_v22, %v3598_v6  ;;  %v3584_v0 = vadd.f32 %v7947_v17, %v3573_v38  ;;  %v3551_v10 = vadd.f32 %v3550_v25, %v8353_v34  ;;  %v5600_v46 = vpop.f32.mrb[201].mxu1  ;;  %v3914_v38 = vld [vmem:[%s8587_s9] sm:$0xff] }
 0x726   : > { %6329 = vrcp.f32 %v3653_v58  ;;  %v3915_v58 = vld [vmem:[%s8587_s9 + $0x8] sm:$0xff]  ;;  %v3690_v46 = vsub.s32 6, %v7746_v26 }
 0x727   : > { %v6320_v32 = vpop.eup %6319  ;;  %v4634_v41 = vmul.f32 -1.442695, %v3613_v19  ;;  %v3599_v63 = vmul.f32 %v8362_v31, %v3584_v0  ;;  %v3574_v37 = vmul.f32 %v8356_v14, %v3551_v10  ;;  %v6193_v25 = vpack.c.bf16 %v3915_v58, %v3914_v38  ;;  %v3916_v19 = vld [vmem:[%s8587_s9 + $0x10] sm:$0xff]  ;;  %v3917_v0 = vld [vmem:[%s8587_s9 + $0x18] sm:$0x3f] }
 0x728   : > { %v6322_v55 = vpop.eup %6321  ;;  %v3654_v62 = vadd.f32 1.0, %v6320_v32  ;;  %v3555_v7 = vpop.f32.mrb[202].mxu1  ;;  %v6196_v10 = vpack.c.bf16 %v3917_v0, %v3916_v19  ;;  %v8468_v32 = vrot.slane %v8350_v30, %v3690_v46 }
 0x729   : > { %6331 = vpow2.f32 %v4634_v41  ;;  %v3614_v9 = vadd.f32 %v8366_v22, %v3599_v63  ;;  %v3585_v42 = vadd.f32 %v7957_v15, %v3574_v37  ;;  %v3556_v17 = vadd.f32 %v3555_v7, %v8353_v34  ;;  %v5603_v4 = vpop.f32.mrb[203].mxu1  ;;  %5616 = vmatmul.mubr.msk.f32.vlgmr.msra.gmra.mrb[206].mxu1 %vm2516_vm5, %v6322_v55  ;;  %6194 = vmatpush3.bf16.msra.mxu0 %v6193_v25 }
 0x72a   : > { %6333 = vrcp.f32 %v3654_v62  ;;  %5618 = vmatprep.mubr.msk.f32.mxu1 %vm6476_vm4, %v8610_v11  ;;  %6195 = vmatprep.subr.bf16.mxu0 %v8612_v53 }
 0x72b   : > { %v6324_v33 = vpop.eup %6323  ;;  %v4635_v39 = vmul.f32 -1.442695, %v3614_v9  ;;  %v3600_v24 = vmul.f32 %v8362_v31, %v3585_v42  ;;  %v3575_v21 = vmul.f32 %v8356_v14, %v3556_v17 }
 0x72c   : > { %v6326_v51 = vpop.eup %6325  ;;  %v3655_v3 = vadd.f32 1.0, %v6324_v33  ;;  %v3560_v52 = vpop.f32.mrb[204].mxu1 }
 0x72d   : > { %6335 = vpow2.f32 %v4635_v39  ;;  %v3615_v15 = vadd.f32 %v8366_v22, %v3600_v24  ;;  %v3586_v43 = vadd.f32 %v7967_v57, %v3575_v21  ;;  %v3561_v60 = vadd.f32 %v3560_v52, %v8353_v34  ;;  %v5606_v5 = vpop.f32.mrb[205].mxu1  ;;  %5619 = vmatmul.mubr.msk.f32.gmra.mrb[208].mxu1 %vm2516_vm5, %v6326_v51  ;;  %6198 = vmatpush3.bf16.msk.msra.mxu0 %vm7095_vm3, %v6196_v10 }
 0x72e   : > { %6337 = vrcp.f32 %v3655_v3  ;;  %5621 = vmatprep.mubr.msk.f32.mxu1 %vm6476_vm4, %v8610_v11 }
 0x72f   : > { %v6328_v13 = vpop.eup %6327  ;;  %v4636_v23 = vmul.f32 -1.442695, %v3615_v15  ;;  %v3601_v59 = vmul.f32 %v8362_v31, %v3586_v43  ;;  %v3576_v1 = vmul.f32 %v8356_v14, %v3561_v60 }
 0x730   : > { %v6330_v44 = vpop.eup %6329  ;;  %v3656_v49 = vadd.f32 1.0, %v6328_v13 }
 0x731   : > { %6339 = vpow2.f32 %v4636_v23  ;;  %v3616_v57 = vadd.f32 %v8366_v22, %v3601_v59  ;;  %v3587_v34 = vadd.f32 %v7977_v16, %v3576_v1  ;;  %5622 = vmatmul.mubr.msk.f32.gmra.mrb[210].mxu1 %vm2516_vm5, %v6330_v44 }
 0x732   : > { %6341 = vrcp.f32 %v3656_v49  ;;  %5624 = vmatprep.mubr.msk.f32.mxu1 %vm6476_vm4, %v8610_v11 }
 0x733   : > { %v6332_v56 = vpop.eup %6331  ;;  %v4637_v2 = vmul.f32 -1.442695, %v3616_v57  ;;  %v3602_v20 = vmul.f32 %v8362_v31, %v3587_v34 }
 0x734   : > { %v6334_v48 = vpop.eup %6333  ;;  %v3657_v28 = vadd.f32 1.0, %v6332_v56 }
 0x735   : > { %6343 = vpow2.f32 %v4637_v2  ;;  %v3617_v14 = vadd.f32 %v8366_v22, %v3602_v20  ;;  %5625 = vmatmul.mubr.msk.f32.gmra.mrb[212].mxu1 %vm2516_vm5, %v6334_v48 }
 0x736   : > { %6345 = vrcp.f32 %v3657_v28  ;;  %5627 = vmatprep.mubr.msk.f32.mxu1 %vm6476_vm4, %v8610_v11 }
 0x737   : > { %v6336_v16 = vpop.eup %6335  ;;  %v4638_v47 = vmul.f32 -1.442695, %v3617_v14 }
 0x738   : > { %v6338_v18 = vpop.eup %6337  ;;  %v3658_v40 = vadd.f32 1.0, %v6336_v16 }
 0x739   : > { %6347 = vpow2.f32 %v4638_v47  ;;  %5628 = vmatmul.mubr.msk.f32.gmra.mrb[214].mxu1 %vm2516_vm5, %v6338_v18 }
 0x73a   : > { %6349 = vrcp.f32 %v3658_v40  ;;  %5630 = vmatprep.mubr.msk.f32.mxu1 %vm6476_vm4, %v8610_v11 }
 0x73b   : > { %v6340_v31 = vpop.eup %6339 }
 0x73c   : > { %v6342_v61 = vpop.eup %6341  ;;  %v3659_v22 = vadd.f32 1.0, %v6340_v31 }
 0x73d   : > { %5631 = vmatmul.mubr.msk.f32.gmra.mrb[216].mxu1 %vm2516_vm5, %v6342_v61 }
 0x73e   : > { %6351 = vrcp.f32 %v3659_v22  ;;  %5633 = vmatprep.mubr.msk.f32.mxu1 %vm6476_vm4, %v8610_v11 }
 0x73f   : > { %v6344_v54 = vpop.eup %6343 }
 0x740   : > { %v6346_v27 = vpop.eup %6345  ;;  %v3660_v35 = vadd.f32 1.0, %v6344_v54 }
 0x741   : > { %5634 = vmatmul.mubr.msk.f32.gmra.mrb[218].mxu1 %vm2516_vm5, %v6346_v27 }
 0x742   : > { %6353 = vrcp.f32 %v3660_v35  ;;  %5636 = vmatprep.mubr.msk.f32.mxu1 %vm6476_vm4, %v8610_v11 }
 0x743   : > { %v6348_v50 = vpop.eup %6347 }
 0x744   : > { %v6350_v8 = vpop.eup %6349  ;;  %v3661_v12 = vadd.f32 1.0, %v6348_v50 }
 0x745   : > { %5637 = vmatmul.mubr.msk.f32.gmra.mrb[220].mxu1 %vm2516_vm5, %v6350_v8 }
 0x746   : > { %6355 = vrcp.f32 %v3661_v12  ;;  %5639 = vmatprep.mubr.msk.f32.mxu1 %vm6476_vm4, %v8610_v11 }
 0x748   : > { %v6352_v36 = vpop.eup %6351 }
 0x749   : > { %5640 = vmatmul.mubr.msk.f32.gmra.mrb[222].mxu1 %vm2516_vm5, %v6352_v36 }
 0x74a   : > { %5642 = vmatprep.mubr.msk.f32.mxu1 %vm6476_vm4, %v8610_v11 }
 0x74c   : > { %v6354_v45 = vpop.eup %6353 }
 0x74d   : > { %5643 = vmatmul.mubr.msk.f32.gmra.mrb[224].mxu1 %vm2516_vm5, %v6354_v45 }
 0x74e   : > { %5645 = vmatprep.mubr.msk.f32.mxu1 %vm6476_vm4, %v8610_v11 }
 0x750   : > { %v6356_v6 = vpop.eup %6355 }
 0x751   : > { %5646 = vmatmul.mubr.msk.f32.gmra.mrb[226].mxu1 %vm2516_vm5, %v6356_v6 }
 0x7fc   : > { %v3794_v41 = vpop.f32.mrb[206].mxu1 }
 0x7fd   : > { %v3795_v53 = vadd.f32 %v3794_v41, %v8468_v32  ;;  %v5617_v63 = vpop.f32.mrb[207].mxu1 }
 0x7ff   : > { %v4651_v37 = vmul.f32 -1.442695, %v3795_v53 }
 0x800   : > { %v3799_v55 = vpop.f32.mrb[208].mxu1 }
 0x801   : > { %6357 = vpow2.f32 %v4651_v37  ;;  %v3800_v62 = vadd.f32 %v3799_v55, %v8468_v32  ;;  %v5620_v7 = vpop.f32.mrb[209].mxu1 }
 0x803   : > { %v4652_v9 = vmul.f32 -1.442695, %v3800_v62 }
 0x804   : > { %v3804_v42 = vpop.f32.mrb[210].mxu1 }
 0x805   : > { %6359 = vpow2.f32 %v4652_v9  ;;  %v3805_v29 = vadd.f32 %v3804_v42, %v8468_v32  ;;  %v5623_v17 = vpop.f32.mrb[211].mxu1 }
 0x807   : > { %v4653_v4 = vmul.f32 -1.442695, %v3805_v29 }
 0x808   : > { %v3809_v33 = vpop.f32.mrb[212].mxu1 }
 0x809   : > { %6361 = vpow2.f32 %v4653_v4  ;;  %v3810_v39 = vadd.f32 %v3809_v33, %v8468_v32  ;;  %v5626_v24 = vpop.f32.mrb[213].mxu1 }
 0x80b   : > { %v6358_v21 = vpop.eup %6357  ;;  %v4654_v51 = vmul.f32 -1.442695, %v3810_v39 }
 0x80c   : > { %v3881_v3 = vadd.f32 1.0, %v6358_v21  ;;  %v3814_v52 = vpop.f32.mrb[214].mxu1 }
 0x80d   : > { %6363 = vpow2.f32 %v4654_v51  ;;  %v3815_v15 = vadd.f32 %v3814_v52, %v8468_v32  ;;  %v5629_v43 = vpop.f32.mrb[215].mxu1  ;;  %v3920_v51 = vsub.s32 7, %v7746_v26 }
 0x80e   : > { %6365 = vrcp.f32 %v3881_v3 }
 0x80f   : > { %v6360_v60 = vpop.eup %6359  ;;  %v4655_v5 = vmul.f32 -1.442695, %v3815_v15  ;;  %v8514_v3 = vrot.slane %v8350_v30, %v3920_v51  ;;  %v4147_v51 = vld [vmem:[%s8588_s10 + $0x18] sm:$0xff] }
 0x810   : > { %v3882_v13 = vadd.f32 1.0, %v6360_v60  ;;  %v3819_v23 = vpop.f32.mrb[216].mxu1 }
 0x811   : > { %6367 = vpow2.f32 %v4655_v5  ;;  %v3820_v59 = vadd.f32 %v3819_v23, %v8468_v32  ;;  %v5632_v1 = vpop.f32.mrb[217].mxu1 }
 0x812   : > { %6369 = vrcp.f32 %v3882_v13 }
 0x813   : > { %v6362_v44 = vpop.eup %6361  ;;  %v4656_v49 = vmul.f32 -1.442695, %v3820_v59 }
 0x814   : > { %v3883_v57 = vadd.f32 1.0, %v6362_v44  ;;  %v3824_v34 = vpop.f32.mrb[218].mxu1 }
 0x815   : > { %6371 = vpow2.f32 %v4656_v49  ;;  %v3825_v56 = vadd.f32 %v3824_v34, %v8468_v32  ;;  %v5635_v2 = vpop.f32.mrb[219].mxu1 }
 0x816   : > { %6373 = vrcp.f32 %v3883_v57 }
 0x817   : > { %v6364_v20 = vpop.eup %6363  ;;  %v4657_v48 = vmul.f32 -1.442695, %v3825_v56 }
 0x818   : > { %v6366_v28 = vpop.eup %6365  ;;  %v3884_v14 = vadd.f32 1.0, %v6364_v20  ;;  %v3829_v16 = vpop.f32.mrb[220].mxu1 }
 0x819   : > { %6375 = vpow2.f32 %v4657_v48  ;;  %v3830_v47 = vadd.f32 %v3829_v16, %v8468_v32  ;;  %v5638_v18 = vpop.f32.mrb[221].mxu1  ;;  %5657 = vmatmul.mubr.msk.f32.vlgmr.msra.gmra.mrb[190].mxu0 %vm2516_vm5, %v6366_v28 }
 0x81a   : > { %6377 = vrcp.f32 %v3884_v14  ;;  %5659 = vmatprep.mubr.msk.f32.mxu0 %vm6476_vm4, %v8610_v11 }
 0x81b   : > { %v6368_v40 = vpop.eup %6367  ;;  %v4658_v31 = vmul.f32 -1.442695, %v3830_v47 }
 0x81c   : > { %v6370_v61 = vpop.eup %6369  ;;  %v3885_v22 = vadd.f32 1.0, %v6368_v40  ;;  %v3834_v54 = vpop.f32.mrb[222].mxu1 }
 0x81d   : > { %6379 = vpow2.f32 %v4658_v31  ;;  %v3835_v27 = vadd.f32 %v3834_v54, %v8468_v32  ;;  %v5641_v35 = vpop.f32.mrb[223].mxu1  ;;  %5660 = vmatmul.mubr.msk.f32.gmra.mrb[192].mxu0 %vm2516_vm5, %v6370_v61 }
 0x81e   : > { %6381 = vrcp.f32 %v3885_v22  ;;  %5662 = vmatprep.mubr.msk.f32.mxu0 %vm6476_vm4, %v8610_v11 }
 0x81f   : > { %v6372_v50 = vpop.eup %6371  ;;  %v4659_v8 = vmul.f32 -1.442695, %v3835_v27 }
 0x820   : > { %v6374_v12 = vpop.eup %6373  ;;  %v3886_v36 = vadd.f32 1.0, %v6372_v50  ;;  %v3839_v45 = vpop.f32.mrb[224].mxu1 }
 0x821   : > { %6383 = vpow2.f32 %v4659_v8  ;;  %v3840_v6 = vadd.f32 %v3839_v45, %v8468_v32  ;;  %v5644_v38 = vpop.f32.mrb[225].mxu1  ;;  %5663 = vmatmul.mubr.msk.f32.gmra.mrb[194].mxu0 %vm2516_vm5, %v6374_v12  ;;  %v4144_v8 = vld [vmem:[%s8588_s10] sm:$0xff] }
 0x822   : > { %6385 = vrcp.f32 %v3886_v36  ;;  %5665 = vmatprep.mubr.msk.f32.mxu0 %vm6476_vm4, %v8610_v11 }
 0x823   : > { %v6376_v58 = vpop.eup %6375  ;;  %v4660_v25 = vmul.f32 -1.442695, %v3840_v6 }
 0x824   : > { %v6378_v19 = vpop.eup %6377  ;;  %v3887_v0 = vadd.f32 1.0, %v6376_v58  ;;  %v3844_v10 = vpop.f32.mrb[226].mxu1 }
 0x825   : > { %6387 = vpow2.f32 %v4660_v25  ;;  %v3845_v46 = vadd.f32 %v3844_v10, %v8468_v32  ;;  %v5647_v41 = vpop.f32.mrb[227].mxu1  ;;  %5666 = vmatmul.mubr.msk.f32.gmra.mrb[196].mxu0 %vm2516_vm5, %v6378_v19 }
 0x826   : > { %6389 = vrcp.f32 %v3887_v0  ;;  %5668 = vmatprep.mubr.msk.f32.mxu0 %vm6476_vm4, %v8610_v11  ;;  %v4145_v0 = vld [vmem:[%s8588_s10 + $0x8] sm:$0xff] }
 0x827   : > { %v6380_v53 = vpop.eup %6379  ;;  %v4661_v63 = vmul.f32 -1.442695, %v3845_v46 }
 0x828   : > { %v6382_v37 = vpop.eup %6381  ;;  %v3888_v55 = vadd.f32 1.0, %v6380_v53 }
 0x829   : > { %6391 = vpow2.f32 %v4661_v63  ;;  %5669 = vmatmul.mubr.msk.f32.gmra.mrb[198].mxu0 %vm2516_vm5, %v6382_v37 }
 0x82a   : > { %6393 = vrcp.f32 %v3888_v55  ;;  %5671 = vmatprep.mubr.msk.f32.mxu0 %vm6476_vm4, %v8610_v11 }
 0x82b   : > { %v6384_v62 = vpop.eup %6383 }
 0x82c   : > { %v6386_v32 = vpop.eup %6385  ;;  %v3889_v7 = vadd.f32 1.0, %v6384_v62 }
 0x82d   : > { %5672 = vmatmul.mubr.msk.f32.gmra.mrb[200].mxu0 %vm2516_vm5, %v6386_v32 }
 0x82e   : > { %6395 = vrcp.f32 %v3889_v7  ;;  %5674 = vmatprep.mubr.msk.f32.mxu0 %vm6476_vm4, %v8610_v11  ;;  %v4146_v7 = vld [vmem:[%s8588_s10 + $0x10] sm:$0xff] }
 0x82f   : > { %v6388_v9 = vpop.eup %6387 }
 0x830   : > { %v6390_v42 = vpop.eup %6389  ;;  %v3890_v29 = vadd.f32 1.0, %v6388_v9 }
 0x831   : > { %5675 = vmatmul.mubr.msk.f32.gmra.mrb[202].mxu0 %vm2516_vm5, %v6390_v42 }
 0x832   : > { %6397 = vrcp.f32 %v3890_v29  ;;  %5677 = vmatprep.mubr.msk.f32.mxu0 %vm6476_vm4, %v8610_v11 }
 0x833   : > { %v6392_v17 = vpop.eup %6391 }
 0x834   : > { %v6394_v4 = vpop.eup %6393  ;;  %v3891_v33 = vadd.f32 1.0, %v6392_v17 }
 0x835   : > { %5678 = vmatmul.mubr.msk.f32.gmra.mrb[204].mxu0 %vm2516_vm5, %v6394_v4 }
 0x836   : > { %6399 = vrcp.f32 %v3891_v33  ;;  %5680 = vmatprep.mubr.msk.f32.mxu0 %vm6476_vm4, %v8610_v11 }
 0x838   : > { %v6396_v39 = vpop.eup %6395 }
 0x839   : > { %5681 = vmatmul.mubr.msk.f32.gmra.mrb[206].mxu0 %vm2516_vm5, %v6396_v39 }
 0x83a   : > { %5683 = vmatprep.mubr.msk.f32.mxu0 %vm6476_vm4, %v8610_v11 }
 0x83c   : > { %v6398_v24 = vpop.eup %6397 }
 0x83d   : > { %5684 = vmatmul.mubr.msk.f32.gmra.mrb[208].mxu0 %vm2516_vm5, %v6398_v24 }
 0x83e   : > { %5686 = vmatprep.mubr.msk.f32.mxu0 %vm6476_vm4, %v8610_v11 }
 0x840   : > { %v6400_v21 = vpop.eup %6399 }
 0x841   : > { %5687 = vmatmul.mubr.msk.f32.gmra.mrb[210].mxu0 %vm2516_vm5, %v6400_v21 }
 0x8ec   : > { %v4024_v52 = vpop.f32.mrb[190].mxu0 }
 0x8ed   : > { %v4025_v15 = vadd.f32 %v4024_v52, %v8514_v3  ;;  %v5658_v43 = vpop.f32.mrb[191].mxu0 }
 0x8ef   : > { %v4674_v60 = vmul.f32 -1.442695, %v4025_v15 }
 0x8f0   : > { %v4029_v5 = vpop.f32.mrb[192].mxu0 }
 0x8f1   : > { %6401 = vpow2.f32 %v4674_v60  ;;  %v4030_v13 = vadd.f32 %v4029_v5, %v8514_v3  ;;  %v5661_v23 = vpop.f32.mrb[193].mxu0 }
 0x8f3   : > { %v4675_v59 = vmul.f32 -1.442695, %v4030_v13 }
 0x8f4   : > { %v4034_v11 = vpop.f32.mrb[194].mxu0 }
 0x8f5   : > { %6403 = vpow2.f32 %v4675_v59  ;;  %v4035_v1 = vadd.f32 %v4034_v11, %v8514_v3  ;;  %v5664_v44 = vpop.f32.mrb[195].mxu0 }
 0x8f7   : > { %v4676_v26 = vmul.f32 -1.442695, %v4035_v1  ;;  %v4148_v1 = vld [vmem:[%s8588_s10 + $0x20] sm:$0xff] }
 0x8f8   : > { %v4039_v49 = vpop.f32.mrb[196].mxu0 }
 0x8f9   : > { %6405 = vpow2.f32 %v4676_v26  ;;  %v4040_v30 = vadd.f32 %v4039_v49, %v8514_v3  ;;  %v5667_v57 = vpop.f32.mrb[197].mxu0 }
 0x8fb   : > { %v6402_v34 = vpop.eup %6401  ;;  %v4677_v56 = vmul.f32 -1.442695, %v4040_v30 }
 0x8fc   : > { %v4111_v2 = vadd.f32 1.0, %v6402_v34  ;;  %v4044_v20 = vpop.f32.mrb[198].mxu0 }
 0x8fd   : > { %6407 = vpow2.f32 %v4677_v56  ;;  %v4045_v48 = vadd.f32 %v4044_v20, %v8514_v3  ;;  %v5670_v28 = vpop.f32.mrb[199].mxu0 }
 0x8fe   : > { %6409 = vrcp.f32 %v4111_v2 }
 0x8ff   : > { %v6404_v14 = vpop.eup %6403  ;;  %v4678_v16 = vmul.f32 -1.442695, %v4045_v48 }
 0x900   : > { %v4112_v47 = vadd.f32 1.0, %v6404_v14  ;;  %v4049_v18 = vpop.f32.mrb[200].mxu0  ;;  %v4150_v14 = vld [vmem:[%s8588_s10 + $0x30] sm:$0xff] }
 0x901   : > { %6411 = vpow2.f32 %v4678_v16  ;;  %v4050_v40 = vadd.f32 %v4049_v18, %v8514_v3  ;;  %v5673_v31 = vpop.f32.mrb[201].mxu0 }
 0x902   : > { %6413 = vrcp.f32 %v4112_v47 }
 0x903   : > { %v6406_v61 = vpop.eup %6405  ;;  %v4679_v22 = vmul.f32 -1.442695, %v4050_v40 }
 0x904   : > { %v4113_v54 = vadd.f32 1.0, %v6406_v61  ;;  %v4054_v27 = vpop.f32.mrb[202].mxu0  ;;  %v4151_v61 = vld [vmem:[%s8588_s10 + $0x38] sm:$0xff] }
 0x905   : > { %6415 = vpow2.f32 %v4679_v22  ;;  %v4055_v35 = vadd.f32 %v4054_v27, %v8514_v3  ;;  %v5676_v50 = vpop.f32.mrb[203].mxu0 }
 0x906   : > { %6417 = vrcp.f32 %v4113_v54 }
 0x907   : > { %v6408_v12 = vpop.eup %6407  ;;  %v4680_v36 = vmul.f32 -1.442695, %v4055_v35 }
 0x908   : > { %v6410_v45 = vpop.eup %6409  ;;  %v4114_v6 = vadd.f32 1.0, %v6408_v12  ;;  %v4059_v38 = vpop.f32.mrb[204].mxu0 }
 0x909   : > { %6419 = vpow2.f32 %v4680_v36  ;;  %v4060_v58 = vadd.f32 %v4059_v38, %v8514_v3  ;;  %v5679_v25 = vpop.f32.mrb[205].mxu0  ;;  %v4155_v19 = vmul.f32 %v6410_v45, %v4144_v8  ;;  %v4152_v8 = vld [vmem:[%s8588_s10 + $0x40] sm:$0xff] }
 0x90a   : > { %6421 = vrcp.f32 %v4114_v6  ;;  %v4153_v6 = vld [vmem:[%s8588_s10 + $0x48] sm:$0xff] }
 0x90b   : > { %v6412_v10 = vpop.eup %6411  ;;  %v4681_v46 = vmul.f32 -1.442695, %v4060_v58  ;;  %v4166_v41 = vsel %vm2516_vm5, %v4155_v19, 0.0  ;;  %v4154_v19 = vld [vmem:[%s8588_s10 + $0x50] sm:$0x1] }
 0x90c   : > { %v6414_v53 = vpop.eup %6413  ;;  %v4115_v63 = vadd.f32 1.0, %v6412_v10  ;;  %4167 = vadd.xlane.f32.xlu0 %v4166_v41  ;;  %v4064_v37 = vpop.f32.mrb[206].mxu0 }
 0x90d   : > { %6423 = vpow2.f32 %v4681_v46  ;;  %v4065_v55 = vadd.f32 %v4064_v37, %v8514_v3  ;;  %v5682_v62 = vpop.f32.mrb[207].mxu0  ;;  %v4156_v32 = vmul.f32 %v6414_v53, %v4145_v0 }
 0x90e   : > { %6425 = vrcp.f32 %v4115_v63 }
 0x90f   : > { %v6416_v9 = vpop.eup %6415  ;;  %v4682_v42 = vmul.f32 -1.442695, %v4065_v55  ;;  %v4169_v29 = vsel %vm2516_vm5, %v4156_v32, 0.0 }
 0x910   : > { %v6418_v17 = vpop.eup %6417  ;;  %v4116_v4 = vadd.f32 1.0, %v6416_v9  ;;  %4170 = vadd.xlane.f32.xlu1 %v4169_v29  ;;  %v4069_v33 = vpop.f32.mrb[208].mxu0 }
 0x911   : > { %6427 = vpow2.f32 %v4682_v42  ;;  %v4070_v39 = vadd.f32 %v4069_v33, %v8514_v3  ;;  %v5685_v24 = vpop.f32.mrb[209].mxu0  ;;  %v4157_v21 = vmul.f32 %v6418_v17, %v4146_v7 }
 0x912   : > { %6429 = vrcp.f32 %v4116_v4 }
 0x913   : > { %v6420_v52 = vpop.eup %6419  ;;  %v4683_v15 = vmul.f32 -1.442695, %v4070_v39  ;;  %v4172_v43 = vsel %vm2516_vm5, %v4157_v21, 0.0 }
 0x914   : > { %v6422_v60 = vpop.eup %6421  ;;  %v4117_v5 = vadd.f32 1.0, %v6420_v52  ;;  %4173 = vadd.xlane.f32.xlu0 %v4172_v43  ;;  %v4074_v13 = vpop.f32.mrb[210].mxu0 }
 0x915   : > { %6431 = vpow2.f32 %v4683_v15  ;;  %v4075_v23 = vadd.f32 %v4074_v13, %v8514_v3  ;;  %v5688_v59 = vpop.f32.mrb[211].mxu0  ;;  %v4158_v11 = vmul.f32 %v6422_v60, %v4147_v51  ;;  %v4149_v3 = vld [vmem:[%s8588_s10 + $0x28] sm:$0xff] }
 0x916   : > { %6433 = vrcp.f32 %v4117_v5 }
 0x917   : > { %v6424_v44 = vpop.eup %6423  ;;  %v4684_v26 = vmul.f32 -1.442695, %v4075_v23  ;;  %v4175_v49 = vsel %vm2516_vm5, %v4158_v11, 0.0 }
 0x918   : > { %v6426_v30 = vpop.eup %6425  ;;  %v4118_v57 = vadd.f32 1.0, %v6424_v44  ;;  %4176 = vadd.xlane.f32.xlu1 %v4175_v49  ;;  %v4218_v44 = vstv %s4685_s26 }
 0x919   : > { %6435 = vpow2.f32 %v4684_v26  ;;  %v4159_v34 = vmul.f32 %v6426_v30, %v4148_v1 }
 0x91a   : > { %6437 = vrcp.f32 %v4118_v57 }
 0x91b   : > { %v6428_v56 = vpop.eup %6427  ;;  %v4178_v2 = vsel %vm2516_vm5, %v4159_v34, 0.0 }
 0x91c   : > { %v6430_v20 = vpop.eup %6429  ;;  %v4119_v48 = vadd.f32 1.0, %v6428_v56  ;;  %4179 = vadd.xlane.f32.xlu0 %v4178_v2 }
 0x91d   : > { %v4160_v28 = vmul.f32 %v6430_v20, %v4149_v3 }
 0x91e   : > { %6439 = vrcp.f32 %v4119_v48 }
 0x91f   : > { %v6432_v16 = vpop.eup %6431  ;;  %v4181_v47 = vsel %vm2516_vm5, %v4160_v28, 0.0 }
 0x920   : > { %v6434_v18 = vpop.eup %6433  ;;  %v4120_v40 = vadd.f32 1.0, %v6432_v16  ;;  %4182 = vadd.xlane.f32.xlu1 %v4181_v47 }
 0x921   : > { %v4161_v31 = vmul.f32 %v6434_v18, %v4150_v14 }
 0x922   : > { %6441 = vrcp.f32 %v4120_v40 }
 0x923   : > { %v6436_v22 = vpop.eup %6435  ;;  %v4184_v54 = vsel %vm2516_vm5, %v4161_v31, 0.0 }
 0x924   : > { %v6438_v27 = vpop.eup %6437  ;;  %v4121_v35 = vadd.f32 1.0, %v6436_v22  ;;  %4185 = vadd.xlane.f32.xlu0 %v4184_v54 }
 0x925   : > { %v4162_v50 = vmul.f32 %v6438_v27, %v4151_v61 }
 0x926   : > { %6443 = vrcp.f32 %v4121_v35 }
 0x927   : > { %v4187_v12 = vsel %vm2516_vm5, %v4162_v50, 0.0 }
 0x928   : > { %v6440_v36 = vpop.eup %6439  ;;  %4188 = vadd.xlane.f32.xlu1 %v4187_v12 }
 0x929   : > { %v4163_v45 = vmul.f32 %v6440_v36, %v4152_v8 }
 0x92b   : > { %v4190_v38 = vsel %vm2516_vm5, %v4163_v45, 0.0 }
 0x92c   : > { %v6442_v58 = vpop.eup %6441  ;;  %4191 = vadd.xlane.f32.xlu0 %v4190_v38 }
 0x92d   : > { %v4164_v25 = vmul.f32 %v6442_v58, %v4153_v6 }
 0x92f   : > { %v4193_v0 = vsel %vm2516_vm5, %v4164_v25, 0.0 }
 0x930   : > { %v6444_v10 = vpop.eup %6443  ;;  %4194 = vadd.xlane.f32.xlu1 %v4193_v0 }
 0x931   : > { %v4165_v46 = vmul.f32 %v6444_v10, %v4154_v19 }
 0x933   : > { %v4197_v41 = vsel %vm4196_vm12, %v4165_v46, 0.0 }
 0x934   : > { %4198 = vadd.xlane.f32.xlu0 %v4197_v41 }
 0x999   : > { %v4168_v53 = vpop.xlane.xlu0 %4167 }
 0x99d   : > { %v4171_v63 = vpop.xlane.xlu1 %4170 }
 0x99e   : > { %v4200_v55 = vadd.f32 %v4171_v63, %v4168_v53 }
 0x9a1   : > { %v4174_v37 = vpop.xlane.xlu0 %4173 }
 0x9a2   : > { %v4201_v32 = vadd.f32 %v4200_v55, %v4174_v37 }
 0x9a5   : > { %v4177_v62 = vpop.xlane.xlu1 %4176 }
 0x9a6   : > { %v4202_v9 = vadd.f32 %v4201_v32, %v4177_v62 }
 0x9a9   : > { %v4180_v7 = vpop.xlane.xlu0 %4179 }
 0x9aa   : > { %v4203_v29 = vadd.f32 %v4202_v9, %v4180_v7 }
 0x9ad   : > { %v4183_v42 = vpop.xlane.xlu1 %4182 }
 0x9ae   : > { %v4204_v4 = vadd.f32 %v4203_v29, %v4183_v42 }
 0x9b1   : > { %v4186_v17 = vpop.xlane.xlu0 %4185 }
 0x9b2   : > { %v4205_v39 = vadd.f32 %v4204_v4, %v4186_v17 }
 0x9b5   : > { %v4189_v33 = vpop.xlane.xlu1 %4188 }
 0x9b6   : > { %v4206_v21 = vadd.f32 %v4205_v39, %v4189_v33 }
 0x9b9   : > { %v4192_v24 = vpop.xlane.xlu0 %4191 }
 0x9ba   : > { %v4207_v52 = vadd.f32 %v4206_v21, %v4192_v24 }
 0x9bd   : > { %v4195_v51 = vpop.xlane.xlu1 %4194 }
 0x9be   : > { %v4208_v15 = vadd.f32 %v4207_v52, %v4195_v51 }
 0x9c1   : > { %v4199_v43 = vpop.xlane.xlu0 %4198 }
 0x9c2   : > { %v4209_v60 = vsel %vm3278_vm8, %v4199_v43, 0.0 }
 0x9c3   : > { %v4210_v5 = vadd.f32 %v4209_v60, %v4208_v15 }
 0x9c5   : > { %v4211_v13 = vrot.slane %v4210_v5, 4 }
 0x9c7   : > { %v4212_v23 = vadd.f32 %v4211_v13, %v4210_v5 }
 0x9c9   : > { %v4213_v59 = vrot.slane %v4212_v23, 2 }
 0x9cb   : > { %v4214_v11 = vadd.f32 %v4213_v59, %v4212_v23 }
 0x9cd   : > { %v4215_v1 = vrot.slane %v4214_v11, 1 }
 0x9cf   : > { %v4216_v26 = vadd.f32 %v4215_v1, %v4214_v11 }
 0x9d1   : > { %v4219_v49 = vadd.f32 %v4218_v44, %v4216_v26 }
 0x9d3   : > { %4221 = vst.msk [vmem:[%s423_s28] sm:$0x1] %vm4220_vm13, %v4219_v49 }
 0x9d4 PF: > { %s23_s21 = sadd.s32 1, %s6471_s21  }
 0x9d5   : > { %p20_p1 = scmp.ge.s32.totalorder %s23_s21, 4  }
 0x9d7   :  { %22 = sbr.rel (!%p20_p1) target bundleno = 1 (0x1), region = 106 }
 0x9de   :  { %4239 = vsyncpa [#allocation3], 1 }
 0x9df   :  { %4241 = vsyncpa [#allocation3 + $0x1], 1 }

</bundles_post_ra>
